<compile_context>
chip_gen: v7x
topology: tpu7x:2x2x1
jax: 0.10.0
libtpu: 0.0.40
codegen_flags: <defaults>
</compile_context>

<pallas_src>
import functools
import numpy as np

import jax
import jax.numpy as jnp
from jax import lax
from jax.experimental import pallas as pl
from jax.experimental.pallas import tpu as pltpu

_TILE_M = 512                    # row tile for token-parallel kernels (multiple of 8)
_LN_EPS = 1e-5

_VMEM_LIMIT_CACHE = None


def _vmem_limit():
    """Half of the detected physical VMEM, clamped to [32 MiB, 96 MiB].
    -> 64 MiB on v5e/v6e (128 MiB parts), 32 MiB on v7x (64 MiB part)."""
    global _VMEM_LIMIT_CACHE
    if _VMEM_LIMIT_CACHE is None:
        cap = None
        try:
            cap = getattr(pltpu.get_tpu_info(), "vmem_capacity_bytes", None)
        except Exception:
            cap = None
        if not cap:
            cap = 64 * 1024 * 1024
        _VMEM_LIMIT_CACHE = int(min(96 * 1024 * 1024,
                                    max(32 * 1024 * 1024, cap // 2)))
    return _VMEM_LIMIT_CACHE


def _cparams(grid_rank=1):
    return pltpu.CompilerParams(
        dimension_semantics=("parallel",) * grid_rank,
        vmem_limit_bytes=_vmem_limit())


def _row_tile(m):
    """Row tile (multiple of 8) and grid size.  Caps the tile at _TILE_M and keeps
    >=2 grid steps whenever m > 8 so v7x's second TensorCore gets work."""
    if m <= 8:
        return m, 1
    half = (m + 1) // 2
    tm = min(_TILE_M, ((half + 7) // 8) * 8)
    return tm, -(-m // tm)


def _largest_divisor(n, cap):
    best = 1
    for d in range(1, min(n, max(1, cap)) + 1):
        if n % d == 0:
            best = d
    return best


def _erf_poly(x):
    # Abramowitz & Stegun 7.1.26 polynomial, |err| < 1.5e-7 -> exact-GELU semantics
    # at f32 precision without relying on a lax.erf lowering inside the kernel.
    a1, a2, a3, a4, a5 = 0.254829592, -0.284496736, 1.421413741, -1.453152027, 1.061405429
    p = 0.3275911
    ax = jnp.abs(x)
    t = 1.0 / (1.0 + p * ax)
    poly = ((((a5 * t + a4) * t + a3) * t + a2) * t + a1) * t
    y = 1.0 - poly * jnp.exp(-ax * ax)
    return jnp.where(x < 0, -y, y)


# ----------------------------- Pallas kernels ------------------------------

def _ln_kernel(x_ref, g_ref, b_ref, o_ref, *, eps):
    x = x_ref[...].astype(jnp.float32)
    mu = jnp.mean(x, axis=-1, keepdims=True)
    xc = x - mu
    var = jnp.mean(xc * xc, axis=-1, keepdims=True)
    y = xc * lax.rsqrt(var + eps)
    o_ref[...] = (y * g_ref[...] + b_ref[...]).astype(o_ref.dtype)


def _ln_linear_kernel(x_ref, g_ref, b_ref, w_ref, wb_ref, o_ref, *, eps):
    # LayerNorm prologue fused with a bf16 matmul (f32 accumulation).
    x = x_ref[...].astype(jnp.float32)
    mu = jnp.mean(x, axis=-1, keepdims=True)
    xc = x - mu
    var = jnp.mean(xc * xc, axis=-1, keepdims=True)
    xn = xc * lax.rsqrt(var + eps) * g_ref[...] + b_ref[...]
    acc = jnp.dot(xn.astype(jnp.bfloat16), w_ref[...],
                  preferred_element_type=jnp.float32)
    o_ref[...] = (acc + wb_ref[...]).astype(o_ref.dtype)


def _linear_ln_kernel(x_ref, w_ref, wb_ref, g_ref, b_ref, o_ref, *, eps):
    # bf16 matmul followed by a fused LayerNorm epilogue (patch embed / patch merging).
    acc = jnp.dot(x_ref[...].astype(jnp.bfloat16), w_ref[...],
                  preferred_element_type=jnp.float32)
    y = acc + wb_ref[...]
    mu = jnp.mean(y, axis=-1, keepdims=True)
    yc = y - mu
    var = jnp.mean(yc * yc, axis=-1, keepdims=True)
    o_ref[...] = (yc * lax.rsqrt(var + eps) * g_ref[...] + b_ref[...]).astype(o_ref.dtype)


def _res_ln_mlp_kernel(sc_ref, a_ref, g_ref, b_ref, w1_ref, b1_ref, w2_ref, b2_ref,
                       o_ref, *, eps):
    # x = shortcut + attn (fused residual);  o = x + fc2(GELU(fc1(LN(x))))
    # hidden activation never leaves VMEM.
    x = sc_ref[...].astype(jnp.float32) + a_ref[...].astype(jnp.float32)
    mu = jnp.mean(x, axis=-1, keepdims=True)
    xc = x - mu
    var = jnp.mean(xc * xc, axis=-1, keepdims=True)
    xn = xc * lax.rsqrt(var + eps) * g_ref[...] + b_ref[...]
    h = jnp.dot(xn.astype(jnp.bfloat16), w1_ref[...],
                preferred_element_type=jnp.float32) + b1_ref[...]
    h = 0.5 * h * (1.0 + _erf_poly(h * (2.0 ** -0.5)))     # exact (erf) GELU
    y = jnp.dot(h.astype(jnp.bfloat16), w2_ref[...],
                preferred_element_type=jnp.float32)
    o_ref[...] = (x + y + b2_ref[...]).astype(o_ref.dtype)


def _window_attn_kernel(qkv_ref, bias_ref, *rest, num_heads, has_mask):
    # qkv_ref: (G, N, 3C) bf16, packed head-major QKV (Q already scaled via weights).
    # bias_ref: (H, N, N) f32.  Optional mask_ref: (G, N, N) f32.
    # Output: (G, N, C) with the attention output projection fused (flat GEMM).
    if has_mask:
        mask_ref, pw_ref, pb_ref, o_ref = rest
    else:
        pw_ref, pb_ref, o_ref = rest
    g, n, c3 = qkv_ref.shape
    c = c3 // 3
    dh = c // num_heads
    bias = bias_ref[...].astype(jnp.float32)
    mask = mask_ref[...].astype(jnp.float32) if has_mask else None
    # TODO(synk): a head-major (3, H, dh) packed QKV layout would remove the per-head
    # lane slices and the lane-dim concatenate entirely; kept per-head slices here for
    # lowering robustness at small dh.
    heads = []
    for h in range(num_heads):
        qh = qkv_ref[:, :, h * dh:(h + 1) * dh].astype(jnp.bfloat16)
        kh = qkv_ref[:, :, c + h * dh:c + (h + 1) * dh].astype(jnp.bfloat16)
        vh = qkv_ref[:, :, 2 * c + h * dh:2 * c + (h + 1) * dh].astype(jnp.bfloat16)
        s = jnp.einsum("gnd,gmd->gnm", qh, kh, preferred_element_type=jnp.float32)
        s = s + bias[h][None]
        if has_mask:
            s = s + mask
        s = s - jnp.max(s, axis=-1, keepdims=True)
        p = jnp.exp(s)
        p = p * pl.reciprocal(jnp.sum(p, axis=-1, keepdims=True), approx=True)
        heads.append(jnp.einsum("gnm,gmd->gnd", p.astype(jnp.bfloat16), vh,
                                preferred_element_type=jnp.float32))
    attn = jnp.concatenate(heads, axis=-1).astype(jnp.bfloat16)        # (G, N, C)
    # Flat projection GEMM: one (G*N, C) x (C, C) MXU matmul instead of G tiny ones.
    proj = jnp.dot(attn.reshape(g * n, c), pw_ref[...],
                   preferred_element_type=jnp.float32)
    o_ref[...] = (proj.reshape(g, n, c) + pb_ref[...]).astype(o_ref.dtype)


def _mean_pool_kernel(x_ref, o_ref):
    # (1, L, C) -> (1, 1, C) global average pool (AdaptiveAvgPool3d(1) + flatten).
    o_ref[...] = jnp.mean(x_ref[...].astype(jnp.float32), axis=1,
                          keepdims=True).astype(o_ref.dtype)


# ------------------------------ Pallas wrappers ------------------------------

def pallas_layernorm(x2d, g, b, eps=_LN_EPS):
    m, c = x2d.shape
    tm, gm = _row_tile(m)
    return pl.pallas_call(
        functools.partial(_ln_kernel, eps=eps),
        out_shape=jax.ShapeDtypeStruct((m, c), jnp.float32),
        grid=(gm,),
        in_specs=[pl.BlockSpec((tm, c), lambda i: (i, 0)),
                  pl.BlockSpec((1, c), lambda i: (0, 0)),
                  pl.BlockSpec((1, c), lambda i: (0, 0))],
        out_specs=pl.BlockSpec((tm, c), lambda i: (i, 0)),
        compiler_params=_cparams(),
    )(x2d, g.reshape(1, c), b.reshape(1, c))


def pallas_ln_linear(x2d, g, b, w, wb, out_dtype=jnp.float32, eps=_LN_EPS):
    m, k = x2d.shape
    n = w.shape[1]
    tm, gm = _row_tile(m)
    return pl.pallas_call(
        functools.partial(_ln_linear_kernel, eps=eps),
        out_shape=jax.ShapeDtypeStruct((m, n), out_dtype),
        grid=(gm,),
        in_specs=[pl.BlockSpec((tm, k), lambda i: (i, 0)),
                  pl.BlockSpec((1, k), lambda i: (0, 0)),
                  pl.BlockSpec((1, k), lambda i: (0, 0)),
                  pl.BlockSpec((k, n), lambda i: (0, 0)),
                  pl.BlockSpec((1, n), lambda i: (0, 0))],
        out_specs=pl.BlockSpec((tm, n), lambda i: (i, 0)),
        compiler_params=_cparams(),
    )(x2d, g.reshape(1, k), b.reshape(1, k), w, wb.reshape(1, n))


def pallas_linear_ln(x2d, w, wb, g, b, eps=_LN_EPS):
    m, k = x2d.shape
    n = w.shape[1]
    if wb is None:
        wb = jnp.zeros((n,), jnp.float32)
    tm, gm = _row_tile(m)
    return pl.pallas_call(
        functools.partial(_linear_ln_kernel, eps=eps),
        out_shape=jax.ShapeDtypeStruct((m, n), jnp.float32),
        grid=(gm,),
        in_specs=[pl.BlockSpec((tm, k), lambda i: (i, 0)),
                  pl.BlockSpec((k, n), lambda i: (0, 0)),
                  pl.BlockSpec((1, n), lambda i: (0, 0)),
                  pl.BlockSpec((1, n), lambda i: (0, 0)),
                  pl.BlockSpec((1, n), lambda i: (0, 0))],
        out_specs=pl.BlockSpec((tm, n), lambda i: (i, 0)),
        compiler_params=_cparams(),
    )(x2d, w, wb.reshape(1, n), g.reshape(1, n), b.reshape(1, n))


def pallas_res_ln_mlp(shortcut2d, attn2d, g, b, w1, b1, w2, b2, eps=_LN_EPS):
    m, c = shortcut2d.shape
    hid = w1.shape[1]
    tm, gm = _row_tile(m)
    return pl.pallas_call(
        functools.partial(_res_ln_mlp_kernel, eps=eps),
        out_shape=jax.ShapeDtypeStruct((m, c), jnp.float32),
        grid=(gm,),
        in_specs=[pl.BlockSpec((tm, c), lambda i: (i, 0)),
                  pl.BlockSpec((tm, c), lambda i: (i, 0)),
                  pl.BlockSpec((1, c), lambda i: (0, 0)),
                  pl.BlockSpec((1, c), lambda i: (0, 0)),
                  pl.BlockSpec((c, hid), lambda i: (0, 0)),
                  pl.BlockSpec((1, hid), lambda i: (0, 0)),
                  pl.BlockSpec((hid, c), lambda i: (0, 0)),
                  pl.BlockSpec((1, c), lambda i: (0, 0))],
        out_specs=pl.BlockSpec((tm, c), lambda i: (i, 0)),
        compiler_params=_cparams(),
    )(shortcut2d, attn2d, g.reshape(1, c), b.reshape(1, c),
      w1, b1.reshape(1, hid), w2, b2.reshape(1, c))


def pallas_window_attention(qkv_win, attn_bias, mask, proj_w, proj_b, num_heads):
    """qkv_win: (BW, N, 3C) bf16; attn_bias: (H, Nfull, Nfull); mask: (nW, N, N) or None."""
    bw, n, c3 = qkv_win.shape
    c = c3 // 3
    bias = attn_bias[:, :n, :n]
    # ~2048 tokens per grid step, but keep >=2 grid steps (v7x megacore) and
    # (masked case) a group size that divides the mask period nW.
    cap = max(1, min(2048 // n, max(1, bw // 2)))
    has_mask = mask is not None
    if has_mask:
        nw = mask.shape[0]
        grp = _largest_divisor(nw, cap)
        nblk = max(1, nw // grp)
    else:
        grp = _largest_divisor(bw, cap)
    grid = (bw // grp,)
    in_specs = [pl.BlockSpec((grp, n, c3), lambda i: (i, 0, 0)),
                pl.BlockSpec((num_heads, n, n), lambda i: (0, 0, 0))]
    args = [qkv_win, bias]
    if has_mask:
        in_specs.append(pl.BlockSpec((grp, n, n), lambda i, _nb=nblk: (i % _nb, 0, 0)))
        args.append(mask.astype(jnp.float32))
    in_specs += [pl.BlockSpec((c, c), lambda i: (0, 0)),
                 pl.BlockSpec((1, c), lambda i: (0, 0))]
    args += [proj_w, proj_b.reshape(1, c)]
    kern = functools.partial(_window_attn_kernel, num_heads=num_heads, has_mask=has_mask)
    return pl.pallas_call(
        kern,
        out_shape=jax.ShapeDtypeStruct((bw, n, c), jnp.float32),
        grid=grid,
        in_specs=in_specs,
        out_specs=pl.BlockSpec((grp, n, c), lambda i: (i, 0, 0)),
        compiler_params=_cparams(),
    )(*args)


def pallas_mean_pool(x3d):
    b, l, c = x3d.shape
    out = pl.pallas_call(
        _mean_pool_kernel,
        out_shape=jax.ShapeDtypeStruct((b, 1, c), jnp.float32),
        grid=(b,),
        in_specs=[pl.BlockSpec((1, l, c), lambda i: (i, 0, 0))],
        out_specs=pl.BlockSpec((1, 1, c), lambda i: (i, 0, 0)),
        compiler_params=_cparams(),
    )(x3d)
    return out[:, 0, :]


# ------------------------------ Swin glue (JAX) -----------------------------

def get_window_size(x_size, window_size, shift_size):
    ws, ss = list(window_size), list(shift_size)
    for i in range(len(x_size)):
        if x_size[i] <= window_size[i]:
            ws[i] = x_size[i]
            ss[i] = 0
    return tuple(ws), tuple(ss)


def window_partition(x, ws):
    b, d, h, w, c = x.shape
    x = x.reshape(b, d // ws[0], ws[0], h // ws[1], ws[1], w // ws[2], ws[2], c)
    return jnp.transpose(x, (0, 1, 3, 5, 2, 4, 6, 7)).reshape(
        -1, ws[0] * ws[1] * ws[2], c)


def window_reverse(windows, ws, dims):
    b, d, h, w = dims
    x = windows.reshape(b, d // ws[0], h // ws[1], w // ws[2], ws[0], ws[1], ws[2], -1)
    return jnp.transpose(x, (0, 1, 4, 2, 5, 3, 6, 7)).reshape(b, d, h, w, -1)


def compute_mask(dims, ws, ss):
    d, h, w = dims
    img_mask = np.zeros((1, d, h, w, 1), np.float32)
    cnt = 0
    for d_sl in (slice(-ws[0]), slice(-ws[0], -ss[0]), slice(-ss[0], None)):
        for h_sl in (slice(-ws[1]), slice(-ws[1], -ss[1]), slice(-ss[1], None)):
            for w_sl in (slice(-ws[2]), slice(-ws[2], -ss[2]), slice(-ss[2], None)):
                img_mask[:, d_sl, h_sl, w_sl, :] = cnt
                cnt += 1
    mw = window_partition(jnp.asarray(img_mask), ws)[..., 0]      # (nW, N)
    attn_mask = mw[:, None, :] - mw[:, :, None]
    return jnp.where(attn_mask != 0, -100.0, 0.0).astype(jnp.float32)


def build_rel_position_index(ws):
    wd, wh, ww = ws
    coords = np.stack(np.meshgrid(np.arange(wd), np.arange(wh), np.arange(ww),
                                  indexing="ij"))
    cf = coords.reshape(3, -1)
    rel = (cf[:, :, None] - cf[:, None, :]).transpose(1, 2, 0).astype(np.int64)
    rel[:, :, 0] += wd - 1
    rel[:, :, 1] += wh - 1
    rel[:, :, 2] += ww - 1
    rel[:, :, 0] *= (2 * wh - 1) * (2 * ww - 1)
    rel[:, :, 1] *= (2 * ww - 1)
    return rel.sum(-1)                                            # (N, N)


def swin_block(x, p, num_heads, window_size, shift_size, mask_matrix):
    b, d, h, w, c = x.shape
    shortcut = x
    ws, ss = get_window_size((d, h, w), window_size, shift_size)
    # Fused LayerNorm(norm1) + QKV projection, emitted in bf16 (per-token so it
    # commutes with pad / roll / window_partition).
    qkv = pallas_ln_linear(x.reshape(-1, c), p["norm1_g"], p["norm1_b"],
                           p["qkv_w"], p["qkv_b"], out_dtype=jnp.bfloat16)
    qkv = qkv.reshape(b, d, h, w, 3 * c)
    pad_d = (ws[0] - d % ws[0]) % ws[0]
    pad_h = (ws[1] - h % ws[1]) % ws[1]
    pad_w = (ws[2] - w % ws[2]) % ws[2]
    # TODO(synk): when padding is actually needed, MONAI pads the *normalized* activations
    # before QKV (padded tokens carry qkv_bias); here padded tokens carry zero qkv.  The
    # test shapes are window-aligned so no padding occurs.
    if pad_d or pad_h or pad_w:
        qkv = jnp.pad(qkv, ((0, 0), (0, pad_d), (0, pad_h), (0, pad_w), (0, 0)))
    _, dp, hp, wp, _ = qkv.shape
    if any(s > 0 for s in ss):
        qkv = jnp.roll(qkv, shift=(-ss[0], -ss[1], -ss[2]), axis=(1, 2, 3))
        attn_mask = mask_matrix
    else:
        attn_mask = None
    qkv_win = window_partition(qkv, ws)                           # (B*nW, N, 3C) bf16
    attn = pallas_window_attention(qkv_win, p["attn_bias"], attn_mask,
                                   p["proj_w"], p["proj_b"], num_heads)
    shifted = window_reverse(attn, ws, (b, dp, hp, wp))
    if any(s > 0 for s in ss):
        xo = jnp.roll(shifted, shift=ss, axis=(1, 2, 3))
    else:
        xo = shifted
    if pad_d or pad_h or pad_w:
        xo = xo[:, :d, :h, :w, :]
    # Fused residual add + LayerNorm(norm2) + fc1 + exact GELU + fc2 + residual add.
    y = pallas_res_ln_mlp(shortcut.reshape(-1, c), xo.reshape(-1, c),
                          p["norm2_g"], p["norm2_b"],
                          p["fc1_w"], p["fc1_b"], p["fc2_w"], p["fc2_b"])
    return y.reshape(shortcut.shape)


def patch_merging_v2(x, p):
    b, d, h, w, c = x.shape
    # TODO(synk): odd spatial sizes would need MONAI-style padding; test shapes are even.
    x = jnp.concatenate(
        [x[:, i::2, j::2, k::2, :] for i in range(2) for j in range(2) for k in range(2)],
        axis=-1)                                                  # (B, D/2, H/2, W/2, 8C)
    y = pallas_linear_ln(x.reshape(-1, 8 * c), p["red_w"], None,  # Linear(8C->2C), no bias
                         p["norm_g"], p["norm_b"])                # then LayerNorm(2C)  (V2)
    return y.reshape(b, d // 2, h // 2, w // 2, 2 * c)


def basic_layer(x, p, depth, num_heads, window_size, has_downsample):
    b, d, h, w, c = x.shape
    ws, ss = get_window_size((d, h, w), window_size, tuple(i // 2 for i in window_size))
    dp = int(np.ceil(d / ws[0])) * ws[0]
    hp = int(np.ceil(h / ws[1])) * ws[1]
    wp = int(np.ceil(w / ws[2])) * ws[2]
    mask_matrix = compute_mask((dp, hp, wp), ws, ss) if any(s > 0 for s in ss) else None
    for i in range(depth):
        shift = (0, 0, 0) if i % 2 == 0 else tuple(j // 2 for j in window_size)
        x = swin_block(x, p["blocks"][i], num_heads, window_size, shift, mask_matrix)
    if has_downsample:
        return x, patch_merging_v2(x, p["downsample"])
    return x, None


def patch_embed(x, p, patch_size, embed_dim):
    # Conv3d(kernel=stride=patch_size) == non-overlapping patch extraction + fused matmul+LN.
    b, cin, d, h, w = x.shape
    pd, ph, pw = patch_size
    x = x.reshape(b, cin, d // pd, pd, h // ph, ph, w // pw, pw)
    x = jnp.transpose(x, (0, 2, 4, 6, 1, 3, 5, 7))
    dp, hp, wp = d // pd, h // ph, w // pw
    patches = x.reshape(b * dp * hp * wp, cin * pd * ph * pw)
    y = pallas_linear_ln(patches, p["w"], p["b"], p["norm_g"], p["norm_b"])
    return y.reshape(b, dp, hp, wp, embed_dim)                    # channel-last


def swin_forward(x, prep, *, patch_size, embed_dim, window_size, depths, num_heads):
    x = patch_embed(x, prep["patch_embed"], patch_size, embed_dim)
    # pos_drop / dropout / drop_path: identity (eval mode, rates = 0)
    feature_maps = []
    last_cl = None
    num_layers = len(depths)
    for i in range(num_layers):
        z, z_ds = basic_layer(x, prep["layers"][i], depths[i], num_heads[i],
                              window_size, has_downsample=i + 1 < num_layers)
        b, d, h, w, c = z.shape
        zn = pallas_layernorm(z.reshape(-1, c), prep["norms"][i]["g"],
                              prep["norms"][i]["b"]).reshape(z.shape)
        feature_maps.append(jnp.transpose(zn, (0, 4, 1, 2, 3)))   # NCDHW
        last_cl = zn
        if z_ds is not None:
            x = z_ds
    b, d, h, w, c = last_cl.shape
    cls_feature = pallas_mean_pool(last_cl.reshape(b, d * h * w, c))
    return {"cls_feature": cls_feature, "feature_maps": feature_maps}


# ------------------------------- Parameters --------------------------------

def init_params(key, in_chans, embed_dim, window_size, patch_size, depths,
                num_heads, mlp_ratio):
    kit = iter(jax.random.split(key, 128))

    def normal(shape, scale=0.02):
        return scale * jax.random.normal(next(kit), shape, jnp.float32)

    pvol = in_chans * patch_size[0] * patch_size[1] * patch_size[2]
    params = {
        "patch_embed": {
            "w": normal((pvol, embed_dim)),
            "b": jnp.zeros((embed_dim,), jnp.float32),
            "norm_g": jnp.ones((embed_dim,), jnp.float32),
            "norm_b": jnp.zeros((embed_dim,), jnp.float32),
        },
        "layers": [],
        "norms": [],
    }
    num_rel = (2 * window_size[0] - 1) * (2 * window_size[1] - 1) * (2 * window_size[2] - 1)
    num_layers = len(depths)
    for i in range(num_layers):
        dim = embed_dim << i
        hidden = int(dim * mlp_ratio)
        blocks = []
        for _ in range(depths[i]):
            blocks.append({
                "norm1_g": jnp.ones((dim,), jnp.float32),
                "norm1_b": jnp.zeros((dim,), jnp.float32),
                "qkv_w": normal((dim, 3 * dim)),
                "qkv_b": jnp.zeros((3 * dim,), jnp.float32),
                "rel_bias": normal((num_rel, num_heads[i])),
                "proj_w": normal((dim, dim)),
                "proj_b": jnp.zeros((dim,), jnp.float32),
                "norm2_g": jnp.ones((dim,), jnp.float32),
                "norm2_b": jnp.zeros((dim,), jnp.float32),
                "fc1_w": normal((dim, hidden)),
                "fc1_b": jnp.zeros((hidden,), jnp.float32),
                "fc2_w": normal((hidden, dim)),
                "fc2_b": jnp.zeros((dim,), jnp.float32),
            })
        layer = {"blocks": blocks}
        if i + 1 < num_layers:
            layer["downsample"] = {
                "red_w": normal((8 * dim, 2 * dim)),
                "norm_g": jnp.ones((2 * dim,), jnp.float32),
                "norm_b": jnp.zeros((2 * dim,), jnp.float32),
            }
        params["layers"].append(layer)
        params["norms"].append({
            "g": jnp.ones((dim,), jnp.float32),
            "b": jnp.zeros((dim,), jnp.float32),
        })
    return params


def prepare_params(params, rel_index, window_size, num_heads, embed_dim):
    """Fold 1/sqrt(Dh) into the Q part of qkv, pre-gather the relative-position bias
    into (H, N, N), and cast matmul weights to bf16 (LN params / biases stay f32)."""
    bf = lambda a: a.astype(jnp.bfloat16)
    n_full = window_size[0] * window_size[1] * window_size[2]
    rel_idx = jnp.asarray(rel_index).reshape(-1)
    prep = {
        "patch_embed": {
            "w": bf(params["patch_embed"]["w"]),
            "b": params["patch_embed"]["b"],
            "norm_g": params["patch_embed"]["norm_g"],
            "norm_b": params["patch_embed"]["norm_b"],
        },
        "layers": [],
        "norms": params["norms"],
    }
    for i, layer in enumerate(params["layers"]):
        dim = embed_dim << i
        heads = num_heads[i]
        dh = dim // heads
        scale = dh ** -0.5
        qkv_scale = jnp.concatenate([jnp.full((dim,), scale, jnp.float32),
                                     jnp.ones((2 * dim,), jnp.float32)])
        blocks = []
        for blk in layer["blocks"]:
            bias_full = blk["rel_bias"][rel_idx].reshape(n_full, n_full, heads)
            bias_full = jnp.transpose(bias_full, (2, 0, 1)).astype(jnp.float32)
            blocks.append({
                "norm1_g": blk["norm1_g"], "norm1_b": blk["norm1_b"],
                "qkv_w": bf(blk["qkv_w"] * qkv_scale[None, :]),
                "qkv_b": blk["qkv_b"] * qkv_scale,
                "attn_bias": bias_full,
                "proj_w": bf(blk["proj_w"]), "proj_b": blk["proj_b"],
                "norm2_g": blk["norm2_g"], "norm2_b": blk["norm2_b"],
                "fc1_w": bf(blk["fc1_w"]), "fc1_b": blk["fc1_b"],
                "fc2_w": bf(blk["fc2_w"]), "fc2_b": blk["fc2_b"],
            })
        lay = {"blocks": blocks}
        if "downsample" in layer:
            lay["downsample"] = {
                "red_w": bf(layer["downsample"]["red_w"]),
                "norm_g": layer["downsample"]["norm_g"],
                "norm_b": layer["downsample"]["norm_b"],
            }
        prep["layers"].append(lay)
    return prep


# ---------------------------------- main ------------------------------------

if __name__ == "__main__":
    B = 2
    IN_CHANS = 1
    EMBED_DIM = 24
    WINDOW = (2, 2, 2)
    PATCH = (2, 2, 2)
    DEPTHS = (2, 2)
    HEADS = (3, 6)
    MLP_RATIO = 4.0
    D = H = W = 8

    key = jax.random.PRNGKey(0)
    kx, kp = jax.random.split(key)
    x = jax.random.normal(kx, (B, IN_CHANS, D, H, W), jnp.float32)
    params = init_params(kp, IN_CHANS, EMBED_DIM, WINDOW, PATCH, DEPTHS, HEADS, MLP_RATIO)
    rel_index = build_rel_position_index(WINDOW)
    prep = prepare_params(params, rel_index, WINDOW, HEADS, EMBED_DIM)

    fwd = jax.jit(functools.partial(
        swin_forward, patch_size=PATCH, embed_dim=EMBED_DIM, window_size=WINDOW,
        depths=DEPTHS, num_heads=HEADS))

    out = fwd(x, prep)
    jax.block_until_ready(out)

    assert out["cls_feature"].shape == (B, EMBED_DIM << (len(DEPTHS) - 1))
    assert out["feature_maps"][0].shape == (B, EMBED_DIM, D // 2, H // 2, W // 2)
    assert out["feature_maps"][1].shape == (B, EMBED_DIM * 2, D // 4, H // 4, W // 4)
    assert all(bool(jnp.all(jnp.isfinite(f))) for f in out["feature_maps"])
    assert bool(jnp.all(jnp.isfinite(out["cls_feature"])))
    print("KERNEL_OK")
</pallas_src>

<mosaic_0001>
module attributes {stable_mosaic.version = 11 : i64} {
  func.func @_window_attn_kernel(%arg0: i32, %arg1: memref<8x8x72xbf16, #tpu.memory_space<vmem>>, %arg2: memref<3x8x8xf32, #tpu.memory_space<vmem>>, %arg3: memref<24x24xbf16, #tpu.memory_space<vmem>>, %arg4: memref<1x24xf32, #tpu.memory_space<vmem>>, %arg5: memref<8x8x24xf32, #tpu.memory_space<vmem>>) attributes {dimension_semantics = [#tpu.dimension_semantics<parallel>], iteration_bounds = array<i64: 2>, scalar_prefetch = 0 : i64, scratch_operands = 0 : i64, tpu.core_type = #tpu.core_type<tc>, window_params = [{transform_indices = @transform_0, window_bounds = array<i64: 8, 8, 72>}, {pipeline_mode = #tpu.pipeline_mode<synchronous>, transform_indices = @transform_1, window_bounds = array<i64: 3, 8, 8>}, {pipeline_mode = #tpu.pipeline_mode<synchronous>, transform_indices = @transform_2, window_bounds = array<i64: 24, 24>}, {pipeline_mode = #tpu.pipeline_mode<synchronous>, transform_indices = @transform_3, window_bounds = array<i64: 1, 24>}, {transform_indices = @transform_4, window_bounds = array<i64: 8, 8, 24>}]} {
    %c0 = arith.constant 0 : index
    %c0_0 = arith.constant 0 : index
    %c0_1 = arith.constant 0 : index
    %0 = vector.load %arg2[%c0, %c0_0, %c0_1] : memref<3x8x8xf32, #tpu.memory_space<vmem>>, vector<3x8x8xf32>
    %c0_2 = arith.constant 0 : index
    %c0_3 = arith.constant 0 : index
    %c0_4 = arith.constant 0 : index
    %1 = vector.load %arg1[%c0_2, %c0_3, %c0_4] : memref<8x8x72xbf16, #tpu.memory_space<vmem>>, vector<8x8x8xbf16>
    %c0_5 = arith.constant 0 : index
    %c0_6 = arith.constant 0 : index
    %c24 = arith.constant 24 : index
    %2 = vector.load %arg1[%c0_5, %c0_6, %c24] : memref<8x8x72xbf16, #tpu.memory_space<vmem>>, vector<8x8x8xbf16>
    %c0_7 = arith.constant 0 : index
    %c0_8 = arith.constant 0 : index
    %c48 = arith.constant 48 : index
    %3 = vector.load %arg1[%c0_7, %c0_8, %c48] : memref<8x8x72xbf16, #tpu.memory_space<vmem>>, vector<8x8x8xbf16>
    "tpu.trace_start"() <{level = 10 : i32, message = "gnd,gmd->gnm"}> : () -> ()
    %cst = arith.constant dense<0.000000e+00> : vector<8x8x8xf32>
    %4 = tpu.matmul %1, %2, %cst {dimension_numbers = #tpu.dot_dimension_numbers<[2], [2], [1], [1], [0, 0, 0, 1, 1, 1], [0], [0]>} : vector<8x8x8xbf16>, vector<8x8x8xbf16>, vector<8x8x8xf32> -> vector<8x8x8xf32>
    "tpu.trace_stop"() : () -> ()
    %5 = vector.extract_strided_slice %0 {offsets = [0, 0, 0], sizes = [1, 8, 8], strides = [1, 1, 1]} : vector<3x8x8xf32> to vector<1x8x8xf32>
    %6 = vector.shape_cast %5 : vector<1x8x8xf32> to vector<8x8xf32>
    %7 = vector.shape_cast %6 : vector<8x8xf32> to vector<1x8x8xf32>
    %8 = vector.broadcast %7 : vector<1x8x8xf32> to vector<8x8x8xf32>
    %9 = arith.addf %4, %8 : vector<8x8x8xf32>
    %cst_9 = arith.constant dense<0xFF800000> : vector<8x8xf32>
    %10 = vector.multi_reduction <maximumf>, %9, %cst_9 [2] : vector<8x8x8xf32> to vector<8x8xf32>
    %11 = vector.shape_cast %10 : vector<8x8xf32> to vector<8x8x1xf32>
    %12 = vector.broadcast %11 : vector<8x8x1xf32> to vector<8x8x8xf32>
    %13 = arith.subf %9, %12 : vector<8x8x8xf32>
    %14 = math.exp %13 : vector<8x8x8xf32>
    %cst_10 = arith.constant dense<0.000000e+00> : vector<8x8xf32>
    %15 = vector.multi_reduction <add>, %14, %cst_10 [2] : vector<8x8x8xf32> to vector<8x8xf32>
    %16 = vector.shape_cast %15 : vector<8x8xf32> to vector<8x8x1xf32>
    %17 = tpu.reciprocal %16 {approx = true} : vector<8x8x1xf32> -> vector<8x8x1xf32>
    %18 = vector.broadcast %17 : vector<8x8x1xf32> to vector<8x8x8xf32>
    %19 = arith.mulf %14, %18 : vector<8x8x8xf32>
    %20 = arith.truncf %19 : vector<8x8x8xf32> to vector<8x8x8xbf16>
    "tpu.trace_start"() <{level = 10 : i32, message = "gnm,gmd->gnd"}> : () -> ()
    %cst_11 = arith.constant dense<0.000000e+00> : vector<8x8x8xf32>
    %21 = tpu.matmul %20, %3, %cst_11 {dimension_numbers = #tpu.dot_dimension_numbers<[2], [1], [1], [2], [0, 0, 0, 1, 1, 2], [0], [0]>} : vector<8x8x8xbf16>, vector<8x8x8xbf16>, vector<8x8x8xf32> -> vector<8x8x8xf32>
    "tpu.trace_stop"() : () -> ()
    %c0_12 = arith.constant 0 : index
    %c0_13 = arith.constant 0 : index
    %c8 = arith.constant 8 : index
    %22 = vector.load %arg1[%c0_12, %c0_13, %c8] : memref<8x8x72xbf16, #tpu.memory_space<vmem>>, vector<8x8x8xbf16>
    %c0_14 = arith.constant 0 : index
    %c0_15 = arith.constant 0 : index
    %c32 = arith.constant 32 : index
    %23 = vector.load %arg1[%c0_14, %c0_15, %c32] : memref<8x8x72xbf16, #tpu.memory_space<vmem>>, vector<8x8x8xbf16>
    %c0_16 = arith.constant 0 : index
    %c0_17 = arith.constant 0 : index
    %c56 = arith.constant 56 : index
    %24 = vector.load %arg1[%c0_16, %c0_17, %c56] : memref<8x8x72xbf16, #tpu.memory_space<vmem>>, vector<8x8x8xbf16>
    "tpu.trace_start"() <{level = 10 : i32, message = "gnd,gmd->gnm"}> : () -> ()
    %cst_18 = arith.constant dense<0.000000e+00> : vector<8x8x8xf32>
    %25 = tpu.matmul %22, %23, %cst_18 {dimension_numbers = #tpu.dot_dimension_numbers<[2], [2], [1], [1], [0, 0, 0, 1, 1, 1], [0], [0]>} : vector<8x8x8xbf16>, vector<8x8x8xbf16>, vector<8x8x8xf32> -> vector<8x8x8xf32>
    "tpu.trace_stop"() : () -> ()
    %26 = vector.extract_strided_slice %0 {offsets = [1, 0, 0], sizes = [1, 8, 8], strides = [1, 1, 1]} : vector<3x8x8xf32> to vector<1x8x8xf32>
    %27 = vector.shape_cast %26 : vector<1x8x8xf32> to vector<8x8xf32>
    %28 = vector.shape_cast %27 : vector<8x8xf32> to vector<1x8x8xf32>
    %29 = vector.broadcast %28 : vector<1x8x8xf32> to vector<8x8x8xf32>
    %30 = arith.addf %25, %29 : vector<8x8x8xf32>
    %cst_19 = arith.constant dense<0xFF800000> : vector<8x8xf32>
    %31 = vector.multi_reduction <maximumf>, %30, %cst_19 [2] : vector<8x8x8xf32> to vector<8x8xf32>
    %32 = vector.shape_cast %31 : vector<8x8xf32> to vector<8x8x1xf32>
    %33 = vector.broadcast %32 : vector<8x8x1xf32> to vector<8x8x8xf32>
    %34 = arith.subf %30, %33 : vector<8x8x8xf32>
    %35 = math.exp %34 : vector<8x8x8xf32>
    %cst_20 = arith.constant dense<0.000000e+00> : vector<8x8xf32>
    %36 = vector.multi_reduction <add>, %35, %cst_20 [2] : vector<8x8x8xf32> to vector<8x8xf32>
    %37 = vector.shape_cast %36 : vector<8x8xf32> to vector<8x8x1xf32>
    %38 = tpu.reciprocal %37 {approx = true} : vector<8x8x1xf32> -> vector<8x8x1xf32>
    %39 = vector.broadcast %38 : vector<8x8x1xf32> to vector<8x8x8xf32>
    %40 = arith.mulf %35, %39 : vector<8x8x8xf32>
    %41 = arith.truncf %40 : vector<8x8x8xf32> to vector<8x8x8xbf16>
    "tpu.trace_start"() <{level = 10 : i32, message = "gnm,gmd->gnd"}> : () -> ()
    %cst_21 = arith.constant dense<0.000000e+00> : vector<8x8x8xf32>
    %42 = tpu.matmul %41, %24, %cst_21 {dimension_numbers = #tpu.dot_dimension_numbers<[2], [1], [1], [2], [0, 0, 0, 1, 1, 2], [0], [0]>} : vector<8x8x8xbf16>, vector<8x8x8xbf16>, vector<8x8x8xf32> -> vector<8x8x8xf32>
    "tpu.trace_stop"() : () -> ()
    %c0_22 = arith.constant 0 : index
    %c0_23 = arith.constant 0 : index
    %c16 = arith.constant 16 : index
    %43 = vector.load %arg1[%c0_22, %c0_23, %c16] : memref<8x8x72xbf16, #tpu.memory_space<vmem>>, vector<8x8x8xbf16>
    %c0_24 = arith.constant 0 : index
    %c0_25 = arith.constant 0 : index
    %c40 = arith.constant 40 : index
    %44 = vector.load %arg1[%c0_24, %c0_25, %c40] : memref<8x8x72xbf16, #tpu.memory_space<vmem>>, vector<8x8x8xbf16>
    %c0_26 = arith.constant 0 : index
    %c0_27 = arith.constant 0 : index
    %c64 = arith.constant 64 : index
    %45 = vector.load %arg1[%c0_26, %c0_27, %c64] : memref<8x8x72xbf16, #tpu.memory_space<vmem>>, vector<8x8x8xbf16>
    "tpu.trace_start"() <{level = 10 : i32, message = "gnd,gmd->gnm"}> : () -> ()
    %cst_28 = arith.constant dense<0.000000e+00> : vector<8x8x8xf32>
    %46 = tpu.matmul %43, %44, %cst_28 {dimension_numbers = #tpu.dot_dimension_numbers<[2], [2], [1], [1], [0, 0, 0, 1, 1, 1], [0], [0]>} : vector<8x8x8xbf16>, vector<8x8x8xbf16>, vector<8x8x8xf32> -> vector<8x8x8xf32>
    "tpu.trace_stop"() : () -> ()
    %47 = vector.extract_strided_slice %0 {offsets = [2, 0, 0], sizes = [1, 8, 8], strides = [1, 1, 1]} : vector<3x8x8xf32> to vector<1x8x8xf32>
    %48 = vector.shape_cast %47 : vector<1x8x8xf32> to vector<8x8xf32>
    %49 = vector.shape_cast %48 : vector<8x8xf32> to vector<1x8x8xf32>
    %50 = vector.broadcast %49 : vector<1x8x8xf32> to vector<8x8x8xf32>
    %51 = arith.addf %46, %50 : vector<8x8x8xf32>
    %cst_29 = arith.constant dense<0xFF800000> : vector<8x8xf32>
    %52 = vector.multi_reduction <maximumf>, %51, %cst_29 [2] : vector<8x8x8xf32> to vector<8x8xf32>
    %53 = vector.shape_cast %52 : vector<8x8xf32> to vector<8x8x1xf32>
    %54 = vector.broadcast %53 : vector<8x8x1xf32> to vector<8x8x8xf32>
    %55 = arith.subf %51, %54 : vector<8x8x8xf32>
    %56 = math.exp %55 : vector<8x8x8xf32>
    %cst_30 = arith.constant dense<0.000000e+00> : vector<8x8xf32>
    %57 = vector.multi_reduction <add>, %56, %cst_30 [2] : vector<8x8x8xf32> to vector<8x8xf32>
    %58 = vector.shape_cast %57 : vector<8x8xf32> to vector<8x8x1xf32>
    %59 = tpu.reciprocal %58 {approx = true} : vector<8x8x1xf32> -> vector<8x8x1xf32>
    %60 = vector.broadcast %59 : vector<8x8x1xf32> to vector<8x8x8xf32>
    %61 = arith.mulf %56, %60 : vector<8x8x8xf32>
    %62 = arith.truncf %61 : vector<8x8x8xf32> to vector<8x8x8xbf16>
    "tpu.trace_start"() <{level = 10 : i32, message = "gnm,gmd->gnd"}> : () -> ()
    %cst_31 = arith.constant dense<0.000000e+00> : vector<8x8x8xf32>
    %63 = tpu.matmul %62, %45, %cst_31 {dimension_numbers = #tpu.dot_dimension_numbers<[2], [1], [1], [2], [0, 0, 0, 1, 1, 2], [0], [0]>} : vector<8x8x8xbf16>, vector<8x8x8xbf16>, vector<8x8x8xf32> -> vector<8x8x8xf32>
    "tpu.trace_stop"() : () -> ()
    %64 = tpu.concatenate %21, %42, %63 in 2 : vector<8x8x8xf32>, vector<8x8x8xf32>, vector<8x8x8xf32> -> vector<8x8x24xf32>
    %65 = arith.truncf %64 : vector<8x8x24xf32> to vector<8x8x24xbf16>
    %66 = vector.shape_cast %65 : vector<8x8x24xbf16> to vector<64x24xbf16>
    %c0_32 = arith.constant 0 : index
    %c0_33 = arith.constant 0 : index
    %67 = vector.load %arg3[%c0_32, %c0_33] : memref<24x24xbf16, #tpu.memory_space<vmem>>, vector<24x24xbf16>
    %cst_34 = arith.constant dense<0.000000e+00> : vector<64x24xf32>
    %68 = tpu.matmul %66, %67, %cst_34 {dimension_numbers = #tpu.dot_dimension_numbers<[1], [0], [0], [1], [0, 0, 1, 1], [], []>} : vector<64x24xbf16>, vector<24x24xbf16>, vector<64x24xf32> -> vector<64x24xf32>
    %69 = vector.shape_cast %68 : vector<64x24xf32> to vector<8x8x24xf32>
    %c0_35 = arith.constant 0 : index
    %c0_36 = arith.constant 0 : index
    %70 = vector.load %arg4[%c0_35, %c0_36] : memref<1x24xf32, #tpu.memory_space<vmem>>, vector<1x24xf32>
    %71 = vector.shape_cast %70 : vector<1x24xf32> to vector<1x1x24xf32>
    %72 = vector.broadcast %71 : vector<1x1x24xf32> to vector<8x8x24xf32>
    %73 = arith.addf %69, %72 : vector<8x8x24xf32>
    %c0_37 = arith.constant 0 : index
    %c0_38 = arith.constant 0 : index
    %c0_39 = arith.constant 0 : index
    %74 = vector.load %arg5[%c0_37, %c0_38, %c0_39] : memref<8x8x24xf32, #tpu.memory_space<vmem>>, vector<8x8x24xf32>
    tpu.vector_store %arg5[%c0_37, %c0_38, %c0_39], %73 {strides = array<i32>} : memref<8x8x24xf32, #tpu.memory_space<vmem>>, vector<8x8x24xf32>,
    return
  }
  func.func @transform_0(%arg0: i32) -> (i32, i32, i32) {
    %c0_i32 = arith.constant 0 : i32
    %c0_i32_0 = arith.constant 0 : i32
    %c0_i32_1 = arith.constant 0 : i32
    return %arg0, %c0_i32, %c0_i32_0 : i32, i32, i32
  }
  func.func @transform_1(%arg0: i32) -> (i32, i32, i32) {
    %c0_i32 = arith.constant 0 : i32
    %c0_i32_0 = arith.constant 0 : i32
    %c0_i32_1 = arith.constant 0 : i32
    %c0_i32_2 = arith.constant 0 : i32
    return %c0_i32, %c0_i32_0, %c0_i32_1 : i32, i32, i32
  }
  func.func @transform_2(%arg0: i32) -> (i32, i32) {
    %c0_i32 = arith.constant 0 : i32
    %c0_i32_0 = arith.constant 0 : i32
    %c0_i32_1 = arith.constant 0 : i32
    return %c0_i32, %c0_i32_0 : i32, i32
  }
  func.func @transform_3(%arg0: i32) -> (i32, i32) {
    %c0_i32 = arith.constant 0 : i32
    %c0_i32_0 = arith.constant 0 : i32
    %c0_i32_1 = arith.constant 0 : i32
    return %c0_i32, %c0_i32_0 : i32, i32
  }
  func.func @transform_4(%arg0: i32) -> (i32, i32, i32) {
    %c0_i32 = arith.constant 0 : i32
    %c0_i32_0 = arith.constant 0 : i32
    %c0_i32_1 = arith.constant 0 : i32
    return %arg0, %c0_i32, %c0_i32_0 : i32, i32, i32
  }
}

module attributes {stable_mosaic.version = 11 : i64} {
  func.func @_linear_ln_kernel(%arg0: i32, %arg1: memref<64x8xf32, #tpu.memory_space<vmem>>, %arg2: memref<8x24xbf16, #tpu.memory_space<vmem>>, %arg3: memref<1x24xf32, #tpu.memory_space<vmem>>, %arg4: memref<1x24xf32, #tpu.memory_space<vmem>>, %arg5: memref<1x24xf32, #tpu.memory_space<vmem>>, %arg6: memref<64x24xf32, #tpu.memory_space<vmem>>) attributes {dimension_semantics = [#tpu.dimension_semantics<parallel>], iteration_bounds = array<i64: 2>, scalar_prefetch = 0 : i64, scratch_operands = 0 : i64, tpu.core_type = #tpu.core_type<tc>, window_params = [{transform_indices = @transform_0, window_bounds = array<i64: 64, 8>}, {pipeline_mode = #tpu.pipeline_mode<synchronous>, transform_indices = @transform_1, window_bounds = array<i64: 8, 24>}, {pipeline_mode = #tpu.pipeline_mode<synchronous>, transform_indices = @transform_2, window_bounds = array<i64: 1, 24>}, {pipeline_mode = #tpu.pipeline_mode<synchronous>, transform_indices = @transform_3, window_bounds = array<i64: 1, 24>}, {pipeline_mode = #tpu.pipeline_mode<synchronous>, transform_indices = @transform_4, window_bounds = array<i64: 1, 24>}, {transform_indices = @transform_5, window_bounds = array<i64: 64, 24>}]} {
    %c0 = arith.constant 0 : index
    %c0_0 = arith.constant 0 : index
    %0 = vector.load %arg1[%c0, %c0_0] : memref<64x8xf32, #tpu.memory_space<vmem>>, vector<64x8xf32>
    %1 = arith.truncf %0 : vector<64x8xf32> to vector<64x8xbf16>
    %c0_1 = arith.constant 0 : index
    %c0_2 = arith.constant 0 : index
    %2 = vector.load %arg2[%c0_1, %c0_2] : memref<8x24xbf16, #tpu.memory_space<vmem>>, vector<8x24xbf16>
    %cst = arith.constant dense<0.000000e+00> : vector<64x24xf32>
    %3 = tpu.matmul %1, %2, %cst {dimension_numbers = #tpu.dot_dimension_numbers<[1], [0], [0], [1], [0, 0, 1, 1], [], []>} : vector<64x8xbf16>, vector<8x24xbf16>, vector<64x24xf32> -> vector<64x24xf32>
    %c0_3 = arith.constant 0 : index
    %c0_4 = arith.constant 0 : index
    %4 = vector.load %arg3[%c0_3, %c0_4] : memref<1x24xf32, #tpu.memory_space<vmem>>, vector<1x24xf32>
    %5 = vector.broadcast %4 : vector<1x24xf32> to vector<64x24xf32>
    %6 = arith.addf %3, %5 : vector<64x24xf32>
    %cst_5 = arith.constant dense<0.000000e+00> : vector<64xf32>
    %7 = vector.multi_reduction <add>, %6, %cst_5 [1] : vector<64x24xf32> to vector<64xf32>
    %8 = vector.shape_cast %7 : vector<64xf32> to vector<64x1xf32>
    %cst_6 = arith.constant 2.400000e+01 : f32
    %9 = vector.broadcast %cst_6 : f32 to vector<64x1xf32>
    %10 = arith.divf %8, %9 : vector<64x1xf32>
    %11 = vector.broadcast %10 : vector<64x1xf32> to vector<64x24xf32>
    %12 = arith.subf %6, %11 : vector<64x24xf32>
    %13 = arith.mulf %12, %12 : vector<64x24xf32>
    %cst_7 = arith.constant dense<0.000000e+00> : vector<64xf32>
    %14 = vector.multi_reduction <add>, %13, %cst_7 [1] : vector<64x24xf32> to vector<64xf32>
    %15 = vector.shape_cast %14 : vector<64xf32> to vector<64x1xf32>
    %cst_8 = arith.constant 2.400000e+01 : f32
    %16 = vector.broadcast %cst_8 : f32 to vector<64x1xf32>
    %17 = arith.divf %15, %16 : vector<64x1xf32>
    %cst_9 = arith.constant 9.99999974E-6 : f32
    %18 = vector.broadcast %cst_9 : f32 to vector<64x1xf32>
    %19 = arith.addf %17, %18 : vector<64x1xf32>
    %20 = math.rsqrt %19 : vector<64x1xf32>
    %21 = vector.broadcast %20 : vector<64x1xf32> to vector<64x24xf32>
    %22 = arith.mulf %12, %21 : vector<64x24xf32>
    %c0_10 = arith.constant 0 : index
    %c0_11 = arith.constant 0 : index
    %23 = vector.load %arg4[%c0_10, %c0_11] : memref<1x24xf32, #tpu.memory_space<vmem>>, vector<1x24xf32>
    %24 = vector.broadcast %23 : vector<1x24xf32> to vector<64x24xf32>
    %25 = arith.mulf %22, %24 : vector<64x24xf32>
    %c0_12 = arith.constant 0 : index
    %c0_13 = arith.constant 0 : index
    %26 = vector.load %arg5[%c0_12, %c0_13] : memref<1x24xf32, #tpu.memory_space<vmem>>, vector<1x24xf32>
    %27 = vector.broadcast %26 : vector<1x24xf32> to vector<64x24xf32>
    %28 = arith.addf %25, %27 : vector<64x24xf32>
    %c0_14 = arith.constant 0 : index
    %c0_15 = arith.constant 0 : index
    %29 = vector.load %arg6[%c0_14, %c0_15] : memref<64x24xf32, #tpu.memory_space<vmem>>, vector<64x24xf32>
    tpu.vector_store %arg6[%c0_14, %c0_15], %28 {strides = array<i32>} : memref<64x24xf32, #tpu.memory_space<vmem>>, vector<64x24xf32>,
    return
  }
  func.func @transform_0(%arg0: i32) -> (i32, i32) {
    %c0_i32 = arith.constant 0 : i32
    %c0_i32_0 = arith.constant 0 : i32
    return %arg0, %c0_i32 : i32, i32
  }
  func.func @transform_1(%arg0: i32) -> (i32, i32) {
    %c0_i32 = arith.constant 0 : i32
    %c0_i32_0 = arith.constant 0 : i32
    %c0_i32_1 = arith.constant 0 : i32
    return %c0_i32, %c0_i32_0 : i32, i32
  }
  func.func @transform_2(%arg0: i32) -> (i32, i32) {
    %c0_i32 = arith.constant 0 : i32
    %c0_i32_0 = arith.constant 0 : i32
    %c0_i32_1 = arith.constant 0 : i32
    return %c0_i32, %c0_i32_0 : i32, i32
  }
  func.func @transform_3(%arg0: i32) -> (i32, i32) {
    %c0_i32 = arith.constant 0 : i32
    %c0_i32_0 = arith.constant 0 : i32
    %c0_i32_1 = arith.constant 0 : i32
    return %c0_i32, %c0_i32_0 : i32, i32
  }
  func.func @transform_4(%arg0: i32) -> (i32, i32) {
    %c0_i32 = arith.constant 0 : i32
    %c0_i32_0 = arith.constant 0 : i32
    %c0_i32_1 = arith.constant 0 : i32
    return %c0_i32, %c0_i32_0 : i32, i32
  }
  func.func @transform_5(%arg0: i32) -> (i32, i32) {
    %c0_i32 = arith.constant 0 : i32
    %c0_i32_0 = arith.constant 0 : i32
    return %arg0, %c0_i32 : i32, i32
  }
}

module attributes {stable_mosaic.version = 11 : i64} {
  func.func @_ln_linear_kernel(%arg0: i32, %arg1: memref<64x24xf32, #tpu.memory_space<vmem>>, %arg2: memref<1x24xf32, #tpu.memory_space<vmem>>, %arg3: memref<1x24xf32, #tpu.memory_space<vmem>>, %arg4: memref<24x72xbf16, #tpu.memory_space<vmem>>, %arg5: memref<1x72xf32, #tpu.memory_space<vmem>>, %arg6: memref<64x72xbf16, #tpu.memory_space<vmem>>) attributes {dimension_semantics = [#tpu.dimension_semantics<parallel>], iteration_bounds = array<i64: 2>, scalar_prefetch = 0 : i64, scratch_operands = 0 : i64, tpu.core_type = #tpu.core_type<tc>, window_params = [{transform_indices = @transform_0, window_bounds = array<i64: 64, 24>}, {pipeline_mode = #tpu.pipeline_mode<synchronous>, transform_indices = @transform_1, window_bounds = array<i64: 1, 24>}, {pipeline_mode = #tpu.pipeline_mode<synchronous>, transform_indices = @transform_2, window_bounds = array<i64: 1, 24>}, {pipeline_mode = #tpu.pipeline_mode<synchronous>, transform_indices = @transform_3, window_bounds = array<i64: 24, 72>}, {pipeline_mode = #tpu.pipeline_mode<synchronous>, transform_indices = @transform_4, window_bounds = array<i64: 1, 72>}, {transform_indices = @transform_5, window_bounds = array<i64: 64, 72>}]} {
    %c0 = arith.constant 0 : index
    %c0_0 = arith.constant 0 : index
    %0 = vector.load %arg1[%c0, %c0_0] : memref<64x24xf32, #tpu.memory_space<vmem>>, vector<64x24xf32>
    %cst = arith.constant dense<0.000000e+00> : vector<64xf32>
    %1 = vector.multi_reduction <add>, %0, %cst [1] : vector<64x24xf32> to vector<64xf32>
    %2 = vector.shape_cast %1 : vector<64xf32> to vector<64x1xf32>
    %cst_1 = arith.constant 2.400000e+01 : f32
    %3 = vector.broadcast %cst_1 : f32 to vector<64x1xf32>
    %4 = arith.divf %2, %3 : vector<64x1xf32>
    %5 = vector.broadcast %4 : vector<64x1xf32> to vector<64x24xf32>
    %6 = arith.subf %0, %5 : vector<64x24xf32>
    %7 = arith.mulf %6, %6 : vector<64x24xf32>
    %cst_2 = arith.constant dense<0.000000e+00> : vector<64xf32>
    %8 = vector.multi_reduction <add>, %7, %cst_2 [1] : vector<64x24xf32> to vector<64xf32>
    %9 = vector.shape_cast %8 : vector<64xf32> to vector<64x1xf32>
    %cst_3 = arith.constant 2.400000e+01 : f32
    %10 = vector.broadcast %cst_3 : f32 to vector<64x1xf32>
    %11 = arith.divf %9, %10 : vector<64x1xf32>
    %cst_4 = arith.constant 9.99999974E-6 : f32
    %12 = vector.broadcast %cst_4 : f32 to vector<64x1xf32>
    %13 = arith.addf %11, %12 : vector<64x1xf32>
    %14 = math.rsqrt %13 : vector<64x1xf32>
    %15 = vector.broadcast %14 : vector<64x1xf32> to vector<64x24xf32>
    %16 = arith.mulf %6, %15 : vector<64x24xf32>
    %c0_5 = arith.constant 0 : index
    %c0_6 = arith.constant 0 : index
    %17 = vector.load %arg2[%c0_5, %c0_6] : memref<1x24xf32, #tpu.memory_space<vmem>>, vector<1x24xf32>
    %18 = vector.broadcast %17 : vector<1x24xf32> to vector<64x24xf32>
    %19 = arith.mulf %16, %18 : vector<64x24xf32>
    %c0_7 = arith.constant 0 : index
    %c0_8 = arith.constant 0 : index
    %20 = vector.load %arg3[%c0_7, %c0_8] : memref<1x24xf32, #tpu.memory_space<vmem>>, vector<1x24xf32>
    %21 = vector.broadcast %20 : vector<1x24xf32> to vector<64x24xf32>
    %22 = arith.addf %19, %21 : vector<64x24xf32>
    %23 = arith.truncf %22 : vector<64x24xf32> to vector<64x24xbf16>
    %c0_9 = arith.constant 0 : index
    %c0_10 = arith.constant 0 : index
    %24 = vector.load %arg4[%c0_9, %c0_10] : memref<24x72xbf16, #tpu.memory_space<vmem>>, vector<24x72xbf16>
    %cst_11 = arith.constant dense<0.000000e+00> : vector<64x72xf32>
    %25 = tpu.matmul %23, %24, %cst_11 {dimension_numbers = #tpu.dot_dimension_numbers<[1], [0], [0], [1], [0, 0, 1, 1], [], []>} : vector<64x24xbf16>, vector<24x72xbf16>, vector<64x72xf32> -> vector<64x72xf32>
    %c0_12 = arith.constant 0 : index
    %c0_13 = arith.constant 0 : index
    %26 = vector.load %arg5[%c0_12, %c0_13] : memref<1x72xf32, #tpu.memory_space<vmem>>, vector<1x72xf32>
    %27 = vector.broadcast %26 : vector<1x72xf32> to vector<64x72xf32>
    %28 = arith.addf %25, %27 : vector<64x72xf32>
    %29 = arith.truncf %28 : vector<64x72xf32> to vector<64x72xbf16>
    %c0_14 = arith.constant 0 : index
    %c0_15 = arith.constant 0 : index
    %30 = vector.load %arg6[%c0_14, %c0_15] : memref<64x72xbf16, #tpu.memory_space<vmem>>, vector<64x72xbf16>
    tpu.vector_store %arg6[%c0_14, %c0_15], %29 {strides = array<i32>} : memref<64x72xbf16, #tpu.memory_space<vmem>>, vector<64x72xbf16>,
    return
  }
  func.func @transform_0(%arg0: i32) -> (i32, i32) {
    %c0_i32 = arith.constant 0 : i32
    %c0_i32_0 = arith.constant 0 : i32
    return %arg0, %c0_i32 : i32, i32
  }
  func.func @transform_1(%arg0: i32) -> (i32, i32) {
    %c0_i32 = arith.constant 0 : i32
    %c0_i32_0 = arith.constant 0 : i32
    %c0_i32_1 = arith.constant 0 : i32
    return %c0_i32, %c0_i32_0 : i32, i32
  }
  func.func @transform_2(%arg0: i32) -> (i32, i32) {
    %c0_i32 = arith.constant 0 : i32
    %c0_i32_0 = arith.constant 0 : i32
    %c0_i32_1 = arith.constant 0 : i32
    return %c0_i32, %c0_i32_0 : i32, i32
  }
  func.func @transform_3(%arg0: i32) -> (i32, i32) {
    %c0_i32 = arith.constant 0 : i32
    %c0_i32_0 = arith.constant 0 : i32
    %c0_i32_1 = arith.constant 0 : i32
    return %c0_i32, %c0_i32_0 : i32, i32
  }
  func.func @transform_4(%arg0: i32) -> (i32, i32) {
    %c0_i32 = arith.constant 0 : i32
    %c0_i32_0 = arith.constant 0 : i32
    %c0_i32_1 = arith.constant 0 : i32
    return %c0_i32, %c0_i32_0 : i32, i32
  }
  func.func @transform_5(%arg0: i32) -> (i32, i32) {
    %c0_i32 = arith.constant 0 : i32
    %c0_i32_0 = arith.constant 0 : i32
    return %arg0, %c0_i32 : i32, i32
  }
}

module attributes {stable_mosaic.version = 11 : i64} {
  func.func @_res_ln_mlp_kernel(%arg0: i32, %arg1: memref<64x24xf32, #tpu.memory_space<vmem>>, %arg2: memref<64x24xf32, #tpu.memory_space<vmem>>, %arg3: memref<1x24xf32, #tpu.memory_space<vmem>>, %arg4: memref<1x24xf32, #tpu.memory_space<vmem>>, %arg5: memref<24x96xbf16, #tpu.memory_space<vmem>>, %arg6: memref<1x96xf32, #tpu.memory_space<vmem>>, %arg7: memref<96x24xbf16, #tpu.memory_space<vmem>>, %arg8: memref<1x24xf32, #tpu.memory_space<vmem>>, %arg9: memref<64x24xf32, #tpu.memory_space<vmem>>) attributes {dimension_semantics = [#tpu.dimension_semantics<parallel>], iteration_bounds = array<i64: 2>, scalar_prefetch = 0 : i64, scratch_operands = 0 : i64, tpu.core_type = #tpu.core_type<tc>, window_params = [{transform_indices = @transform_0, window_bounds = array<i64: 64, 24>}, {transform_indices = @transform_1, window_bounds = array<i64: 64, 24>}, {pipeline_mode = #tpu.pipeline_mode<synchronous>, transform_indices = @transform_2, window_bounds = array<i64: 1, 24>}, {pipeline_mode = #tpu.pipeline_mode<synchronous>, transform_indices = @transform_3, window_bounds = array<i64: 1, 24>}, {pipeline_mode = #tpu.pipeline_mode<synchronous>, transform_indices = @transform_4, window_bounds = array<i64: 24, 96>}, {pipeline_mode = #tpu.pipeline_mode<synchronous>, transform_indices = @transform_5, window_bounds = array<i64: 1, 96>}, {pipeline_mode = #tpu.pipeline_mode<synchronous>, transform_indices = @transform_6, window_bounds = array<i64: 96, 24>}, {pipeline_mode = #tpu.pipeline_mode<synchronous>, transform_indices = @transform_7, window_bounds = array<i64: 1, 24>}, {transform_indices = @transform_8, window_bounds = array<i64: 64, 24>}]} {
    %c0 = arith.constant 0 : index
    %c0_0 = arith.constant 0 : index
    %0 = vector.load %arg1[%c0, %c0_0] : memref<64x24xf32, #tpu.memory_space<vmem>>, vector<64x24xf32>
    %c0_1 = arith.constant 0 : index
    %c0_2 = arith.constant 0 : index
    %1 = vector.load %arg2[%c0_1, %c0_2] : memref<64x24xf32, #tpu.memory_space<vmem>>, vector<64x24xf32>
    %2 = arith.addf %0, %1 : vector<64x24xf32>
    %cst = arith.constant dense<0.000000e+00> : vector<64xf32>
    %3 = vector.multi_reduction <add>, %2, %cst [1] : vector<64x24xf32> to vector<64xf32>
    %4 = vector.shape_cast %3 : vector<64xf32> to vector<64x1xf32>
    %cst_3 = arith.constant 2.400000e+01 : f32
    %5 = vector.broadcast %cst_3 : f32 to vector<64x1xf32>
    %6 = arith.divf %4, %5 : vector<64x1xf32>
    %7 = vector.broadcast %6 : vector<64x1xf32> to vector<64x24xf32>
    %8 = arith.subf %2, %7 : vector<64x24xf32>
    %9 = arith.mulf %8, %8 : vector<64x24xf32>
    %cst_4 = arith.constant dense<0.000000e+00> : vector<64xf32>
    %10 = vector.multi_reduction <add>, %9, %cst_4 [1] : vector<64x24xf32> to vector<64xf32>
    %11 = vector.shape_cast %10 : vector<64xf32> to vector<64x1xf32>
    %cst_5 = arith.constant 2.400000e+01 : f32
    %12 = vector.broadcast %cst_5 : f32 to vector<64x1xf32>
    %13 = arith.divf %11, %12 : vector<64x1xf32>
    %cst_6 = arith.constant 9.99999974E-6 : f32
    %14 = vector.broadcast %cst_6 : f32 to vector<64x1xf32>
    %15 = arith.addf %13, %14 : vector<64x1xf32>
    %16 = math.rsqrt %15 : vector<64x1xf32>
    %17 = vector.broadcast %16 : vector<64x1xf32> to vector<64x24xf32>
    %18 = arith.mulf %8, %17 : vector<64x24xf32>
    %c0_7 = arith.constant 0 : index
    %c0_8 = arith.constant 0 : index
    %19 = vector.load %arg3[%c0_7, %c0_8] : memref<1x24xf32, #tpu.memory_space<vmem>>, vector<1x24xf32>
    %20 = vector.broadcast %19 : vector<1x24xf32> to vector<64x24xf32>
    %21 = arith.mulf %18, %20 : vector<64x24xf32>
    %c0_9 = arith.constant 0 : index
    %c0_10 = arith.constant 0 : index
    %22 = vector.load %arg4[%c0_9, %c0_10] : memref<1x24xf32, #tpu.memory_space<vmem>>, vector<1x24xf32>
    %23 = vector.broadcast %22 : vector<1x24xf32> to vector<64x24xf32>
    %24 = arith.addf %21, %23 : vector<64x24xf32>
    %25 = arith.truncf %24 : vector<64x24xf32> to vector<64x24xbf16>
    %c0_11 = arith.constant 0 : index
    %c0_12 = arith.constant 0 : index
    %26 = vector.load %arg5[%c0_11, %c0_12] : memref<24x96xbf16, #tpu.memory_space<vmem>>, vector<24x96xbf16>
    %cst_13 = arith.constant dense<0.000000e+00> : vector<64x96xf32>
    %27 = tpu.matmul %25, %26, %cst_13 {dimension_numbers = #tpu.dot_dimension_numbers<[1], [0], [0], [1], [0, 0, 1, 1], [], []>} : vector<64x24xbf16>, vector<24x96xbf16>, vector<64x96xf32> -> vector<64x96xf32>
    %c0_14 = arith.constant 0 : index
    %c0_15 = arith.constant 0 : index
    %28 = vector.load %arg6[%c0_14, %c0_15] : memref<1x96xf32, #tpu.memory_space<vmem>>, vector<1x96xf32>
    %29 = vector.broadcast %28 : vector<1x96xf32> to vector<64x96xf32>
    %30 = arith.addf %27, %29 : vector<64x96xf32>
    %cst_16 = arith.constant 5.000000e-01 : f32
    %31 = vector.broadcast %cst_16 : f32 to vector<64x96xf32>
    %32 = arith.mulf %31, %30 : vector<64x96xf32>
    %cst_17 = arith.constant 0.707106769 : f32
    %33 = vector.broadcast %cst_17 : f32 to vector<64x96xf32>
    %34 = arith.mulf %30, %33 : vector<64x96xf32>
    %35 = math.absf %34 : vector<64x96xf32>
    %cst_18 = arith.constant 0.327591091 : f32
    %36 = vector.broadcast %cst_18 : f32 to vector<64x96xf32>
    %37 = arith.mulf %36, %35 : vector<64x96xf32>
    %cst_19 = arith.constant 1.000000e+00 : f32
    %38 = vector.broadcast %cst_19 : f32 to vector<64x96xf32>
    %39 = arith.addf %38, %37 : vector<64x96xf32>
    %cst_20 = arith.constant 1.000000e+00 : f32
    %40 = vector.broadcast %cst_20 : f32 to vector<64x96xf32>
    %41 = arith.divf %40, %39 : vector<64x96xf32>
    %cst_21 = arith.constant 1.06140542 : f32
    %42 = vector.broadcast %cst_21 : f32 to vector<64x96xf32>
    %43 = arith.mulf %42, %41 : vector<64x96xf32>
    %cst_22 = arith.constant -1.45315206 : f32
    %44 = vector.broadcast %cst_22 : f32 to vector<64x96xf32>
    %45 = arith.addf %43, %44 : vector<64x96xf32>
    %46 = arith.mulf %45, %41 : vector<64x96xf32>
    %cst_23 = arith.constant 1.42141378 : f32
    %47 = vector.broadcast %cst_23 : f32 to vector<64x96xf32>
    %48 = arith.addf %46, %47 : vector<64x96xf32>
    %49 = arith.mulf %48, %41 : vector<64x96xf32>
    %cst_24 = arith.constant -0.284496725 : f32
    %50 = vector.broadcast %cst_24 : f32 to vector<64x96xf32>
    %51 = arith.addf %49, %50 : vector<64x96xf32>
    %52 = arith.mulf %51, %41 : vector<64x96xf32>
    %cst_25 = arith.constant 0.254829586 : f32
    %53 = vector.broadcast %cst_25 : f32 to vector<64x96xf32>
    %54 = arith.addf %52, %53 : vector<64x96xf32>
    %55 = arith.mulf %54, %41 : vector<64x96xf32>
    %cst_26 = arith.constant 0.000000e+00 : f32
    %56 = vector.broadcast %cst_26 : f32 to vector<64x96xf32>
    %57 = arith.subf %56, %35 : vector<64x96xf32>
    %58 = arith.mulf %57, %35 : vector<64x96xf32>
    %59 = math.exp %58 : vector<64x96xf32>
    %60 = arith.mulf %55, %59 : vector<64x96xf32>
    %cst_27 = arith.constant 1.000000e+00 : f32
    %61 = vector.broadcast %cst_27 : f32 to vector<64x96xf32>
    %62 = arith.subf %61, %60 : vector<64x96xf32>
    %cst_28 = arith.constant 0.000000e+00 : f32
    %63 = vector.broadcast %cst_28 : f32 to vector<64x96xf32>
    %64 = arith.cmpf olt, %34, %63 : vector<64x96xf32>
    %cst_29 = arith.constant 0.000000e+00 : f32
    %65 = vector.broadcast %cst_29 : f32 to vector<64x96xf32>
    %66 = arith.subf %65, %62 : vector<64x96xf32>
    %67 = arith.select %64, %66, %62 : vector<64x96xi1>, vector<64x96xf32>
    %cst_30 = arith.constant 1.000000e+00 : f32
    %68 = vector.broadcast %cst_30 : f32 to vector<64x96xf32>
    %69 = arith.addf %68, %67 : vector<64x96xf32>
    %70 = arith.mulf %32, %69 : vector<64x96xf32>
    %71 = arith.truncf %70 : vector<64x96xf32> to vector<64x96xbf16>
    %c0_31 = arith.constant 0 : index
    %c0_32 = arith.constant 0 : index
    %72 = vector.load %arg7[%c0_31, %c0_32] : memref<96x24xbf16, #tpu.memory_space<vmem>>, vector<96x24xbf16>
    %cst_33 = arith.constant dense<0.000000e+00> : vector<64x24xf32>
    %73 = tpu.matmul %71, %72, %cst_33 {dimension_numbers = #tpu.dot_dimension_numbers<[1], [0], [0], [1], [0, 0, 1, 1], [], []>} : vector<64x96xbf16>, vector<96x24xbf16>, vector<64x24xf32> -> vector<64x24xf32>
    %74 = arith.addf %2, %73 : vector<64x24xf32>
    %c0_34 = arith.constant 0 : index
    %c0_35 = arith.constant 0 : index
    %75 = vector.load %arg8[%c0_34, %c0_35] : memref<1x24xf32, #tpu.memory_space<vmem>>, vector<1x24xf32>
    %76 = vector.broadcast %75 : vector<1x24xf32> to vector<64x24xf32>
    %77 = arith.addf %74, %76 : vector<64x24xf32>
    %c0_36 = arith.constant 0 : index
    %c0_37 = arith.constant 0 : index
    %78 = vector.load %arg9[%c0_36, %c0_37] : memref<64x24xf32, #tpu.memory_space<vmem>>, vector<64x24xf32>
    tpu.vector_store %arg9[%c0_36, %c0_37], %77 {strides = array<i32>} : memref<64x24xf32, #tpu.memory_space<vmem>>, vector<64x24xf32>,
    return
  }
  func.func @transform_0(%arg0: i32) -> (i32, i32) {
    %c0_i32 = arith.constant 0 : i32
    %c0_i32_0 = arith.constant 0 : i32
    return %arg0, %c0_i32 : i32, i32
  }
  func.func @transform_1(%arg0: i32) -> (i32, i32) {
    %c0_i32 = arith.constant 0 : i32
    %c0_i32_0 = arith.constant 0 : i32
    return %arg0, %c0_i32 : i32, i32
  }
  func.func @transform_2(%arg0: i32) -> (i32, i32) {
    %c0_i32 = arith.constant 0 : i32
    %c0_i32_0 = arith.constant 0 : i32
    %c0_i32_1 = arith.constant 0 : i32
    return %c0_i32, %c0_i32_0 : i32, i32
  }
  func.func @transform_3(%arg0: i32) -> (i32, i32) {
    %c0_i32 = arith.constant 0 : i32
    %c0_i32_0 = arith.constant 0 : i32
    %c0_i32_1 = arith.constant 0 : i32
    return %c0_i32, %c0_i32_0 : i32, i32
  }
  func.func @transform_4(%arg0: i32) -> (i32, i32) {
    %c0_i32 = arith.constant 0 : i32
    %c0_i32_0 = arith.constant 0 : i32
    %c0_i32_1 = arith.constant 0 : i32
    return %c0_i32, %c0_i32_0 : i32, i32
  }
  func.func @transform_5(%arg0: i32) -> (i32, i32) {
    %c0_i32 = arith.constant 0 : i32
    %c0_i32_0 = arith.constant 0 : i32
    %c0_i32_1 = arith.constant 0 : i32
    return %c0_i32, %c0_i32_0 : i32, i32
  }
  func.func @transform_6(%arg0: i32) -> (i32, i32) {
    %c0_i32 = arith.constant 0 : i32
    %c0_i32_0 = arith.constant 0 : i32
    %c0_i32_1 = arith.constant 0 : i32
    return %c0_i32, %c0_i32_0 : i32, i32
  }
  func.func @transform_7(%arg0: i32) -> (i32, i32) {
    %c0_i32 = arith.constant 0 : i32
    %c0_i32_0 = arith.constant 0 : i32
    %c0_i32_1 = arith.constant 0 : i32
    return %c0_i32, %c0_i32_0 : i32, i32
  }
  func.func @transform_8(%arg0: i32) -> (i32, i32) {
    %c0_i32 = arith.constant 0 : i32
    %c0_i32_0 = arith.constant 0 : i32
    return %arg0, %c0_i32 : i32, i32
  }
}

module attributes {stable_mosaic.version = 11 : i64} {
  func.func @_window_attn_kernel(%arg0: i32, %arg1: memref<8x8x72xbf16, #tpu.memory_space<vmem>>, %arg2: memref<3x8x8xf32, #tpu.memory_space<vmem>>, %arg3: memref<8x8x8xf32, #tpu.memory_space<vmem>>, %arg4: memref<24x24xbf16, #tpu.memory_space<vmem>>, %arg5: memref<1x24xf32, #tpu.memory_space<vmem>>, %arg6: memref<8x8x24xf32, #tpu.memory_space<vmem>>) attributes {dimension_semantics = [#tpu.dimension_semantics<parallel>], iteration_bounds = array<i64: 2>, scalar_prefetch = 0 : i64, scratch_operands = 0 : i64, tpu.core_type = #tpu.core_type<tc>, window_params = [{transform_indices = @transform_0, window_bounds = array<i64: 8, 8, 72>}, {pipeline_mode = #tpu.pipeline_mode<synchronous>, transform_indices = @transform_1, window_bounds = array<i64: 3, 8, 8>}, {transform_indices = @transform_2, window_bounds = array<i64: 8, 8, 8>}, {pipeline_mode = #tpu.pipeline_mode<synchronous>, transform_indices = @transform_3, window_bounds = array<i64: 24, 24>}, {pipeline_mode = #tpu.pipeline_mode<synchronous>, transform_indices = @transform_4, window_bounds = array<i64: 1, 24>}, {transform_indices = @transform_5, window_bounds = array<i64: 8, 8, 24>}]} {
    %c0 = arith.constant 0 : index
    %c0_0 = arith.constant 0 : index
    %c0_1 = arith.constant 0 : index
    %0 = vector.load %arg2[%c0, %c0_0, %c0_1] : memref<3x8x8xf32, #tpu.memory_space<vmem>>, vector<3x8x8xf32>
    %c0_2 = arith.constant 0 : index
    %c0_3 = arith.constant 0 : index
    %c0_4 = arith.constant 0 : index
    %1 = vector.load %arg3[%c0_2, %c0_3, %c0_4] : memref<8x8x8xf32, #tpu.memory_space<vmem>>, vector<8x8x8xf32>
    %c0_5 = arith.constant 0 : index
    %c0_6 = arith.constant 0 : index
    %c0_7 = arith.constant 0 : index
    %2 = vector.load %arg1[%c0_5, %c0_6, %c0_7] : memref<8x8x72xbf16, #tpu.memory_space<vmem>>, vector<8x8x8xbf16>
    %c0_8 = arith.constant 0 : index
    %c0_9 = arith.constant 0 : index
    %c24 = arith.constant 24 : index
    %3 = vector.load %arg1[%c0_8, %c0_9, %c24] : memref<8x8x72xbf16, #tpu.memory_space<vmem>>, vector<8x8x8xbf16>
    %c0_10 = arith.constant 0 : index
    %c0_11 = arith.constant 0 : index
    %c48 = arith.constant 48 : index
    %4 = vector.load %arg1[%c0_10, %c0_11, %c48] : memref<8x8x72xbf16, #tpu.memory_space<vmem>>, vector<8x8x8xbf16>
    "tpu.trace_start"() <{level = 10 : i32, message = "gnd,gmd->gnm"}> : () -> ()
    %cst = arith.constant dense<0.000000e+00> : vector<8x8x8xf32>
    %5 = tpu.matmul %2, %3, %cst {dimension_numbers = #tpu.dot_dimension_numbers<[2], [2], [1], [1], [0, 0, 0, 1, 1, 1], [0], [0]>} : vector<8x8x8xbf16>, vector<8x8x8xbf16>, vector<8x8x8xf32> -> vector<8x8x8xf32>
    "tpu.trace_stop"() : () -> ()
    %6 = vector.extract_strided_slice %0 {offsets = [0, 0, 0], sizes = [1, 8, 8], strides = [1, 1, 1]} : vector<3x8x8xf32> to vector<1x8x8xf32>
    %7 = vector.shape_cast %6 : vector<1x8x8xf32> to vector<8x8xf32>
    %8 = vector.shape_cast %7 : vector<8x8xf32> to vector<1x8x8xf32>
    %9 = vector.broadcast %8 : vector<1x8x8xf32> to vector<8x8x8xf32>
    %10 = arith.addf %5, %9 : vector<8x8x8xf32>
    %11 = arith.addf %10, %1 : vector<8x8x8xf32>
    %cst_12 = arith.constant dense<0xFF800000> : vector<8x8xf32>
    %12 = vector.multi_reduction <maximumf>, %11, %cst_12 [2] : vector<8x8x8xf32> to vector<8x8xf32>
    %13 = vector.shape_cast %12 : vector<8x8xf32> to vector<8x8x1xf32>
    %14 = vector.broadcast %13 : vector<8x8x1xf32> to vector<8x8x8xf32>
    %15 = arith.subf %11, %14 : vector<8x8x8xf32>
    %16 = math.exp %15 : vector<8x8x8xf32>
    %cst_13 = arith.constant dense<0.000000e+00> : vector<8x8xf32>
    %17 = vector.multi_reduction <add>, %16, %cst_13 [2] : vector<8x8x8xf32> to vector<8x8xf32>
    %18 = vector.shape_cast %17 : vector<8x8xf32> to vector<8x8x1xf32>
    %19 = tpu.reciprocal %18 {approx = true} : vector<8x8x1xf32> -> vector<8x8x1xf32>
    %20 = vector.broadcast %19 : vector<8x8x1xf32> to vector<8x8x8xf32>
    %21 = arith.mulf %16, %20 : vector<8x8x8xf32>
    %22 = arith.truncf %21 : vector<8x8x8xf32> to vector<8x8x8xbf16>
    "tpu.trace_start"() <{level = 10 : i32, message = "gnm,gmd->gnd"}> : () -> ()
    %cst_14 = arith.constant dense<0.000000e+00> : vector<8x8x8xf32>
    %23 = tpu.matmul %22, %4, %cst_14 {dimension_numbers = #tpu.dot_dimension_numbers<[2], [1], [1], [2], [0, 0, 0, 1, 1, 2], [0], [0]>} : vector<8x8x8xbf16>, vector<8x8x8xbf16>, vector<8x8x8xf32> -> vector<8x8x8xf32>
    "tpu.trace_stop"() : () -> ()
    %c0_15 = arith.constant 0 : index
    %c0_16 = arith.constant 0 : index
    %c8 = arith.constant 8 : index
    %24 = vector.load %arg1[%c0_15, %c0_16, %c8] : memref<8x8x72xbf16, #tpu.memory_space<vmem>>, vector<8x8x8xbf16>
    %c0_17 = arith.constant 0 : index
    %c0_18 = arith.constant 0 : index
    %c32 = arith.constant 32 : index
    %25 = vector.load %arg1[%c0_17, %c0_18, %c32] : memref<8x8x72xbf16, #tpu.memory_space<vmem>>, vector<8x8x8xbf16>
    %c0_19 = arith.constant 0 : index
    %c0_20 = arith.constant 0 : index
    %c56 = arith.constant 56 : index
    %26 = vector.load %arg1[%c0_19, %c0_20, %c56] : memref<8x8x72xbf16, #tpu.memory_space<vmem>>, vector<8x8x8xbf16>
    "tpu.trace_start"() <{level = 10 : i32, message = "gnd,gmd->gnm"}> : () -> ()
    %cst_21 = arith.constant dense<0.000000e+00> : vector<8x8x8xf32>
    %27 = tpu.matmul %24, %25, %cst_21 {dimension_numbers = #tpu.dot_dimension_numbers<[2], [2], [1], [1], [0, 0, 0, 1, 1, 1], [0], [0]>} : vector<8x8x8xbf16>, vector<8x8x8xbf16>, vector<8x8x8xf32> -> vector<8x8x8xf32>
    "tpu.trace_stop"() : () -> ()
    %28 = vector.extract_strided_slice %0 {offsets = [1, 0, 0], sizes = [1, 8, 8], strides = [1, 1, 1]} : vector<3x8x8xf32> to vector<1x8x8xf32>
    %29 = vector.shape_cast %28 : vector<1x8x8xf32> to vector<8x8xf32>
    %30 = vector.shape_cast %29 : vector<8x8xf32> to vector<1x8x8xf32>
    %31 = vector.broadcast %30 : vector<1x8x8xf32> to vector<8x8x8xf32>
    %32 = arith.addf %27, %31 : vector<8x8x8xf32>
    %33 = arith.addf %32, %1 : vector<8x8x8xf32>
    %cst_22 = arith.constant dense<0xFF800000> : vector<8x8xf32>
    %34 = vector.multi_reduction <maximumf>, %33, %cst_22 [2] : vector<8x8x8xf32> to vector<8x8xf32>
    %35 = vector.shape_cast %34 : vector<8x8xf32> to vector<8x8x1xf32>
    %36 = vector.broadcast %35 : vector<8x8x1xf32> to vector<8x8x8xf32>
    %37 = arith.subf %33, %36 : vector<8x8x8xf32>
    %38 = math.exp %37 : vector<8x8x8xf32>
    %cst_23 = arith.constant dense<0.000000e+00> : vector<8x8xf32>
    %39 = vector.multi_reduction <add>, %38, %cst_23 [2] : vector<8x8x8xf32> to vector<8x8xf32>
    %40 = vector.shape_cast %39 : vector<8x8xf32> to vector<8x8x1xf32>
    %41 = tpu.reciprocal %40 {approx = true} : vector<8x8x1xf32> -> vector<8x8x1xf32>
    %42 = vector.broadcast %41 : vector<8x8x1xf32> to vector<8x8x8xf32>
    %43 = arith.mulf %38, %42 : vector<8x8x8xf32>
    %44 = arith.truncf %43 : vector<8x8x8xf32> to vector<8x8x8xbf16>
    "tpu.trace_start"() <{level = 10 : i32, message = "gnm,gmd->gnd"}> : () -> ()
    %cst_24 = arith.constant dense<0.000000e+00> : vector<8x8x8xf32>
    %45 = tpu.matmul %44, %26, %cst_24 {dimension_numbers = #tpu.dot_dimension_numbers<[2], [1], [1], [2], [0, 0, 0, 1, 1, 2], [0], [0]>} : vector<8x8x8xbf16>, vector<8x8x8xbf16>, vector<8x8x8xf32> -> vector<8x8x8xf32>
    "tpu.trace_stop"() : () -> ()
    %c0_25 = arith.constant 0 : index
    %c0_26 = arith.constant 0 : index
    %c16 = arith.constant 16 : index
    %46 = vector.load %arg1[%c0_25, %c0_26, %c16] : memref<8x8x72xbf16, #tpu.memory_space<vmem>>, vector<8x8x8xbf16>
    %c0_27 = arith.constant 0 : index
    %c0_28 = arith.constant 0 : index
    %c40 = arith.constant 40 : index
    %47 = vector.load %arg1[%c0_27, %c0_28, %c40] : memref<8x8x72xbf16, #tpu.memory_space<vmem>>, vector<8x8x8xbf16>
    %c0_29 = arith.constant 0 : index
    %c0_30 = arith.constant 0 : index
    %c64 = arith.constant 64 : index
    %48 = vector.load %arg1[%c0_29, %c0_30, %c64] : memref<8x8x72xbf16, #tpu.memory_space<vmem>>, vector<8x8x8xbf16>
    "tpu.trace_start"() <{level = 10 : i32, message = "gnd,gmd->gnm"}> : () -> ()
    %cst_31 = arith.constant dense<0.000000e+00> : vector<8x8x8xf32>
    %49 = tpu.matmul %46, %47, %cst_31 {dimension_numbers = #tpu.dot_dimension_numbers<[2], [2], [1], [1], [0, 0, 0, 1, 1, 1], [0], [0]>} : vector<8x8x8xbf16>, vector<8x8x8xbf16>, vector<8x8x8xf32> -> vector<8x8x8xf32>
    "tpu.trace_stop"() : () -> ()
    %50 = vector.extract_strided_slice %0 {offsets = [2, 0, 0], sizes = [1, 8, 8], strides = [1, 1, 1]} : vector<3x8x8xf32> to vector<1x8x8xf32>
    %51 = vector.shape_cast %50 : vector<1x8x8xf32> to vector<8x8xf32>
    %52 = vector.shape_cast %51 : vector<8x8xf32> to vector<1x8x8xf32>
    %53 = vector.broadcast %52 : vector<1x8x8xf32> to vector<8x8x8xf32>
    %54 = arith.addf %49, %53 : vector<8x8x8xf32>
    %55 = arith.addf %54, %1 : vector<8x8x8xf32>
    %cst_32 = arith.constant dense<0xFF800000> : vector<8x8xf32>
    %56 = vector.multi_reduction <maximumf>, %55, %cst_32 [2] : vector<8x8x8xf32> to vector<8x8xf32>
    %57 = vector.shape_cast %56 : vector<8x8xf32> to vector<8x8x1xf32>
    %58 = vector.broadcast %57 : vector<8x8x1xf32> to vector<8x8x8xf32>
    %59 = arith.subf %55, %58 : vector<8x8x8xf32>
    %60 = math.exp %59 : vector<8x8x8xf32>
    %cst_33 = arith.constant dense<0.000000e+00> : vector<8x8xf32>
    %61 = vector.multi_reduction <add>, %60, %cst_33 [2] : vector<8x8x8xf32> to vector<8x8xf32>
    %62 = vector.shape_cast %61 : vector<8x8xf32> to vector<8x8x1xf32>
    %63 = tpu.reciprocal %62 {approx = true} : vector<8x8x1xf32> -> vector<8x8x1xf32>
    %64 = vector.broadcast %63 : vector<8x8x1xf32> to vector<8x8x8xf32>
    %65 = arith.mulf %60, %64 : vector<8x8x8xf32>
    %66 = arith.truncf %65 : vector<8x8x8xf32> to vector<8x8x8xbf16>
    "tpu.trace_start"() <{level = 10 : i32, message = "gnm,gmd->gnd"}> : () -> ()
    %cst_34 = arith.constant dense<0.000000e+00> : vector<8x8x8xf32>
    %67 = tpu.matmul %66, %48, %cst_34 {dimension_numbers = #tpu.dot_dimension_numbers<[2], [1], [1], [2], [0, 0, 0, 1, 1, 2], [0], [0]>} : vector<8x8x8xbf16>, vector<8x8x8xbf16>, vector<8x8x8xf32> -> vector<8x8x8xf32>
    "tpu.trace_stop"() : () -> ()
    %68 = tpu.concatenate %23, %45, %67 in 2 : vector<8x8x8xf32>, vector<8x8x8xf32>, vector<8x8x8xf32> -> vector<8x8x24xf32>
    %69 = arith.truncf %68 : vector<8x8x24xf32> to vector<8x8x24xbf16>
    %70 = vector.shape_cast %69 : vector<8x8x24xbf16> to vector<64x24xbf16>
    %c0_35 = arith.constant 0 : index
    %c0_36 = arith.constant 0 : index
    %71 = vector.load %arg4[%c0_35, %c0_36] : memref<24x24xbf16, #tpu.memory_space<vmem>>, vector<24x24xbf16>
    %cst_37 = arith.constant dense<0.000000e+00> : vector<64x24xf32>
    %72 = tpu.matmul %70, %71, %cst_37 {dimension_numbers = #tpu.dot_dimension_numbers<[1], [0], [0], [1], [0, 0, 1, 1], [], []>} : vector<64x24xbf16>, vector<24x24xbf16>, vector<64x24xf32> -> vector<64x24xf32>
    %73 = vector.shape_cast %72 : vector<64x24xf32> to vector<8x8x24xf32>
    %c0_38 = arith.constant 0 : index
    %c0_39 = arith.constant 0 : index
    %74 = vector.load %arg5[%c0_38, %c0_39] : memref<1x24xf32, #tpu.memory_space<vmem>>, vector<1x24xf32>
    %75 = vector.shape_cast %74 : vector<1x24xf32> to vector<1x1x24xf32>
    %76 = vector.broadcast %75 : vector<1x1x24xf32> to vector<8x8x24xf32>
    %77 = arith.addf %73, %76 : vector<8x8x24xf32>
    %c0_40 = arith.constant 0 : index
    %c0_41 = arith.constant 0 : index
    %c0_42 = arith.constant 0 : index
    %78 = vector.load %arg6[%c0_40, %c0_41, %c0_42] : memref<8x8x24xf32, #tpu.memory_space<vmem>>, vector<8x8x24xf32>
    tpu.vector_store %arg6[%c0_40, %c0_41, %c0_42], %77 {strides = array<i32>} : memref<8x8x24xf32, #tpu.memory_space<vmem>>, vector<8x8x24xf32>,
    return
  }
  func.func @transform_0(%arg0: i32) -> (i32, i32, i32) {
    %c0_i32 = arith.constant 0 : i32
    %c0_i32_0 = arith.constant 0 : i32
    %c0_i32_1 = arith.constant 0 : i32
    return %arg0, %c0_i32, %c0_i32_0 : i32, i32, i32
  }
  func.func @transform_1(%arg0: i32) -> (i32, i32, i32) {
    %c0_i32 = arith.constant 0 : i32
    %c0_i32_0 = arith.constant 0 : i32
    %c0_i32_1 = arith.constant 0 : i32
    %c0_i32_2 = arith.constant 0 : i32
    return %c0_i32, %c0_i32_0, %c0_i32_1 : i32, i32, i32
  }
  func.func @transform_2(%arg0: i32) -> (i32, i32, i32) {
    %c1_i32 = arith.constant 1 : i32
    %c0_i32 = arith.constant 0 : i32
    %0 = arith.cmpi eq, %c1_i32, %c0_i32 : i32
    %c1_i32_0 = arith.constant 1 : i32
    %1 = arith.select %0, %c1_i32_0, %c1_i32 : i32
    %2 = arith.remsi %arg0, %1 : i32
    %c0_i32_1 = arith.constant 0 : i32
    %3 = arith.cmpi ne, %2, %c0_i32_1 : i32
    %c0_i32_2 = arith.constant 0 : i32
    %4 = arith.cmpi slt, %2, %c0_i32_2 : i32
    %c0_i32_3 = arith.constant 0 : i32
    %5 = arith.cmpi slt, %1, %c0_i32_3 : i32
    %6 = arith.xori %4, %5 : i1
    %7 = arith.andi %6, %3 : i1
    %8 = arith.addi %2, %1 : i32
    %9 = arith.select %7, %8, %2 : i32
    %c0_i32_4 = arith.constant 0 : i32
    %c0_i32_5 = arith.constant 0 : i32
    %c0_i32_6 = arith.constant 0 : i32
    return %9, %c0_i32_4, %c0_i32_5 : i32, i32, i32
  }
  func.func @transform_3(%arg0: i32) -> (i32, i32) {
    %c0_i32 = arith.constant 0 : i32
    %c0_i32_0 = arith.constant 0 : i32
    %c0_i32_1 = arith.constant 0 : i32
    return %c0_i32, %c0_i32_0 : i32, i32
  }
  func.func @transform_4(%arg0: i32) -> (i32, i32) {
    %c0_i32 = arith.constant 0 : i32
    %c0_i32_0 = arith.constant 0 : i32
    %c0_i32_1 = arith.constant 0 : i32
    return %c0_i32, %c0_i32_0 : i32, i32
  }
  func.func @transform_5(%arg0: i32) -> (i32, i32, i32) {
    %c0_i32 = arith.constant 0 : i32
    %c0_i32_0 = arith.constant 0 : i32
    %c0_i32_1 = arith.constant 0 : i32
    return %arg0, %c0_i32, %c0_i32_0 : i32, i32, i32
  }
}

module attributes {stable_mosaic.version = 11 : i64} {
  func.func @_linear_ln_kernel(%arg0: i32, %arg1: memref<8x192xf32, #tpu.memory_space<vmem>>, %arg2: memref<192x48xbf16, #tpu.memory_space<vmem>>, %arg3: memref<1x48xf32, #tpu.memory_space<vmem>>, %arg4: memref<1x48xf32, #tpu.memory_space<vmem>>, %arg5: memref<1x48xf32, #tpu.memory_space<vmem>>, %arg6: memref<8x48xf32, #tpu.memory_space<vmem>>) attributes {dimension_semantics = [#tpu.dimension_semantics<parallel>], iteration_bounds = array<i64: 2>, scalar_prefetch = 0 : i64, scratch_operands = 0 : i64, tpu.core_type = #tpu.core_type<tc>, window_params = [{transform_indices = @transform_0, window_bounds = array<i64: 8, 192>}, {pipeline_mode = #tpu.pipeline_mode<synchronous>, transform_indices = @transform_1, window_bounds = array<i64: 192, 48>}, {pipeline_mode = #tpu.pipeline_mode<synchronous>, transform_indices = @transform_2, window_bounds = array<i64: 1, 48>}, {pipeline_mode = #tpu.pipeline_mode<synchronous>, transform_indices = @transform_3, window_bounds = array<i64: 1, 48>}, {pipeline_mode = #tpu.pipeline_mode<synchronous>, transform_indices = @transform_4, window_bounds = array<i64: 1, 48>}, {transform_indices = @transform_5, window_bounds = array<i64: 8, 48>}]} {
    %c0 = arith.constant 0 : index
    %c0_0 = arith.constant 0 : index
    %0 = vector.load %arg1[%c0, %c0_0] : memref<8x192xf32, #tpu.memory_space<vmem>>, vector<8x192xf32>
    %1 = arith.truncf %0 : vector<8x192xf32> to vector<8x192xbf16>
    %c0_1 = arith.constant 0 : index
    %c0_2 = arith.constant 0 : index
    %2 = vector.load %arg2[%c0_1, %c0_2] : memref<192x48xbf16, #tpu.memory_space<vmem>>, vector<192x48xbf16>
    %cst = arith.constant dense<0.000000e+00> : vector<8x48xf32>
    %3 = tpu.matmul %1, %2, %cst {dimension_numbers = #tpu.dot_dimension_numbers<[1], [0], [0], [1], [0, 0, 1, 1], [], []>} : vector<8x192xbf16>, vector<192x48xbf16>, vector<8x48xf32> -> vector<8x48xf32>
    %c0_3 = arith.constant 0 : index
    %c0_4 = arith.constant 0 : index
    %4 = vector.load %arg3[%c0_3, %c0_4] : memref<1x48xf32, #tpu.memory_space<vmem>>, vector<1x48xf32>
    %5 = vector.broadcast %4 : vector<1x48xf32> to vector<8x48xf32>
    %6 = arith.addf %3, %5 : vector<8x48xf32>
    %cst_5 = arith.constant dense<0.000000e+00> : vector<8xf32>
    %7 = vector.multi_reduction <add>, %6, %cst_5 [1] : vector<8x48xf32> to vector<8xf32>
    %8 = vector.shape_cast %7 : vector<8xf32> to vector<8x1xf32>
    %cst_6 = arith.constant 4.800000e+01 : f32
    %9 = vector.broadcast %cst_6 : f32 to vector<8x1xf32>
    %10 = arith.divf %8, %9 : vector<8x1xf32>
    %11 = vector.broadcast %10 : vector<8x1xf32> to vector<8x48xf32>
    %12 = arith.subf %6, %11 : vector<8x48xf32>
    %13 = arith.mulf %12, %12 : vector<8x48xf32>
    %cst_7 = arith.constant dense<0.000000e+00> : vector<8xf32>
    %14 = vector.multi_reduction <add>, %13, %cst_7 [1] : vector<8x48xf32> to vector<8xf32>
    %15 = vector.shape_cast %14 : vector<8xf32> to vector<8x1xf32>
    %cst_8 = arith.constant 4.800000e+01 : f32
    %16 = vector.broadcast %cst_8 : f32 to vector<8x1xf32>
    %17 = arith.divf %15, %16 : vector<8x1xf32>
    %cst_9 = arith.constant 9.99999974E-6 : f32
    %18 = vector.broadcast %cst_9 : f32 to vector<8x1xf32>
    %19 = arith.addf %17, %18 : vector<8x1xf32>
    %20 = math.rsqrt %19 : vector<8x1xf32>
    %21 = vector.broadcast %20 : vector<8x1xf32> to vector<8x48xf32>
    %22 = arith.mulf %12, %21 : vector<8x48xf32>
    %c0_10 = arith.constant 0 : index
    %c0_11 = arith.constant 0 : index
    %23 = vector.load %arg4[%c0_10, %c0_11] : memref<1x48xf32, #tpu.memory_space<vmem>>, vector<1x48xf32>
    %24 = vector.broadcast %23 : vector<1x48xf32> to vector<8x48xf32>
    %25 = arith.mulf %22, %24 : vector<8x48xf32>
    %c0_12 = arith.constant 0 : index
    %c0_13 = arith.constant 0 : index
    %26 = vector.load %arg5[%c0_12, %c0_13] : memref<1x48xf32, #tpu.memory_space<vmem>>, vector<1x48xf32>
    %27 = vector.broadcast %26 : vector<1x48xf32> to vector<8x48xf32>
    %28 = arith.addf %25, %27 : vector<8x48xf32>
    %c0_14 = arith.constant 0 : index
    %c0_15 = arith.constant 0 : index
    %29 = vector.load %arg6[%c0_14, %c0_15] : memref<8x48xf32, #tpu.memory_space<vmem>>, vector<8x48xf32>
    tpu.vector_store %arg6[%c0_14, %c0_15], %28 {strides = array<i32>} : memref<8x48xf32, #tpu.memory_space<vmem>>, vector<8x48xf32>,
    return
  }
  func.func @transform_0(%arg0: i32) -> (i32, i32) {
    %c0_i32 = arith.constant 0 : i32
    %c0_i32_0 = arith.constant 0 : i32
    return %arg0, %c0_i32 : i32, i32
  }
  func.func @transform_1(%arg0: i32) -> (i32, i32) {
    %c0_i32 = arith.constant 0 : i32
    %c0_i32_0 = arith.constant 0 : i32
    %c0_i32_1 = arith.constant 0 : i32
    return %c0_i32, %c0_i32_0 : i32, i32
  }
  func.func @transform_2(%arg0: i32) -> (i32, i32) {
    %c0_i32 = arith.constant 0 : i32
    %c0_i32_0 = arith.constant 0 : i32
    %c0_i32_1 = arith.constant 0 : i32
    return %c0_i32, %c0_i32_0 : i32, i32
  }
  func.func @transform_3(%arg0: i32) -> (i32, i32) {
    %c0_i32 = arith.constant 0 : i32
    %c0_i32_0 = arith.constant 0 : i32
    %c0_i32_1 = arith.constant 0 : i32
    return %c0_i32, %c0_i32_0 : i32, i32
  }
  func.func @transform_4(%arg0: i32) -> (i32, i32) {
    %c0_i32 = arith.constant 0 : i32
    %c0_i32_0 = arith.constant 0 : i32
    %c0_i32_1 = arith.constant 0 : i32
    return %c0_i32, %c0_i32_0 : i32, i32
  }
  func.func @transform_5(%arg0: i32) -> (i32, i32) {
    %c0_i32 = arith.constant 0 : i32
    %c0_i32_0 = arith.constant 0 : i32
    return %arg0, %c0_i32 : i32, i32
  }
}

module attributes {stable_mosaic.version = 11 : i64} {
  func.func @_ln_linear_kernel(%arg0: i32, %arg1: memref<8x48xf32, #tpu.memory_space<vmem>>, %arg2: memref<1x48xf32, #tpu.memory_space<vmem>>, %arg3: memref<1x48xf32, #tpu.memory_space<vmem>>, %arg4: memref<48x144xbf16, #tpu.memory_space<vmem>>, %arg5: memref<1x144xf32, #tpu.memory_space<vmem>>, %arg6: memref<8x144xbf16, #tpu.memory_space<vmem>>) attributes {dimension_semantics = [#tpu.dimension_semantics<parallel>], iteration_bounds = array<i64: 2>, scalar_prefetch = 0 : i64, scratch_operands = 0 : i64, tpu.core_type = #tpu.core_type<tc>, window_params = [{transform_indices = @transform_0, window_bounds = array<i64: 8, 48>}, {pipeline_mode = #tpu.pipeline_mode<synchronous>, transform_indices = @transform_1, window_bounds = array<i64: 1, 48>}, {pipeline_mode = #tpu.pipeline_mode<synchronous>, transform_indices = @transform_2, window_bounds = array<i64: 1, 48>}, {pipeline_mode = #tpu.pipeline_mode<synchronous>, transform_indices = @transform_3, window_bounds = array<i64: 48, 144>}, {pipeline_mode = #tpu.pipeline_mode<synchronous>, transform_indices = @transform_4, window_bounds = array<i64: 1, 144>}, {transform_indices = @transform_5, window_bounds = array<i64: 8, 144>}]} {
    %c0 = arith.constant 0 : index
    %c0_0 = arith.constant 0 : index
    %0 = vector.load %arg1[%c0, %c0_0] : memref<8x48xf32, #tpu.memory_space<vmem>>, vector<8x48xf32>
    %cst = arith.constant dense<0.000000e+00> : vector<8xf32>
    %1 = vector.multi_reduction <add>, %0, %cst [1] : vector<8x48xf32> to vector<8xf32>
    %2 = vector.shape_cast %1 : vector<8xf32> to vector<8x1xf32>
    %cst_1 = arith.constant 4.800000e+01 : f32
    %3 = vector.broadcast %cst_1 : f32 to vector<8x1xf32>
    %4 = arith.divf %2, %3 : vector<8x1xf32>
    %5 = vector.broadcast %4 : vector<8x1xf32> to vector<8x48xf32>
    %6 = arith.subf %0, %5 : vector<8x48xf32>
    %7 = arith.mulf %6, %6 : vector<8x48xf32>
    %cst_2 = arith.constant dense<0.000000e+00> : vector<8xf32>
    %8 = vector.multi_reduction <add>, %7, %cst_2 [1] : vector<8x48xf32> to vector<8xf32>
    %9 = vector.shape_cast %8 : vector<8xf32> to vector<8x1xf32>
    %cst_3 = arith.constant 4.800000e+01 : f32
    %10 = vector.broadcast %cst_3 : f32 to vector<8x1xf32>
    %11 = arith.divf %9, %10 : vector<8x1xf32>
    %cst_4 = arith.constant 9.99999974E-6 : f32
    %12 = vector.broadcast %cst_4 : f32 to vector<8x1xf32>
    %13 = arith.addf %11, %12 : vector<8x1xf32>
    %14 = math.rsqrt %13 : vector<8x1xf32>
    %15 = vector.broadcast %14 : vector<8x1xf32> to vector<8x48xf32>
    %16 = arith.mulf %6, %15 : vector<8x48xf32>
    %c0_5 = arith.constant 0 : index
    %c0_6 = arith.constant 0 : index
    %17 = vector.load %arg2[%c0_5, %c0_6] : memref<1x48xf32, #tpu.memory_space<vmem>>, vector<1x48xf32>
    %18 = vector.broadcast %17 : vector<1x48xf32> to vector<8x48xf32>
    %19 = arith.mulf %16, %18 : vector<8x48xf32>
    %c0_7 = arith.constant 0 : index
    %c0_8 = arith.constant 0 : index
    %20 = vector.load %arg3[%c0_7, %c0_8] : memref<1x48xf32, #tpu.memory_space<vmem>>, vector<1x48xf32>
    %21 = vector.broadcast %20 : vector<1x48xf32> to vector<8x48xf32>
    %22 = arith.addf %19, %21 : vector<8x48xf32>
    %23 = arith.truncf %22 : vector<8x48xf32> to vector<8x48xbf16>
    %c0_9 = arith.constant 0 : index
    %c0_10 = arith.constant 0 : index
    %24 = vector.load %arg4[%c0_9, %c0_10] : memref<48x144xbf16, #tpu.memory_space<vmem>>, vector<48x144xbf16>
    %cst_11 = arith.constant dense<0.000000e+00> : vector<8x144xf32>
    %25 = tpu.matmul %23, %24, %cst_11 {dimension_numbers = #tpu.dot_dimension_numbers<[1], [0], [0], [1], [0, 0, 1, 1], [], []>} : vector<8x48xbf16>, vector<48x144xbf16>, vector<8x144xf32> -> vector<8x144xf32>
    %c0_12 = arith.constant 0 : index
    %c0_13 = arith.constant 0 : index
    %26 = vector.load %arg5[%c0_12, %c0_13] : memref<1x144xf32, #tpu.memory_space<vmem>>, vector<1x144xf32>
    %27 = vector.broadcast %26 : vector<1x144xf32> to vector<8x144xf32>
    %28 = arith.addf %25, %27 : vector<8x144xf32>
    %29 = arith.truncf %28 : vector<8x144xf32> to vector<8x144xbf16>
    %c0_14 = arith.constant 0 : index
    %c0_15 = arith.constant 0 : index
    %30 = vector.load %arg6[%c0_14, %c0_15] : memref<8x144xbf16, #tpu.memory_space<vmem>>, vector<8x144xbf16>
    tpu.vector_store %arg6[%c0_14, %c0_15], %29 {strides = array<i32>} : memref<8x144xbf16, #tpu.memory_space<vmem>>, vector<8x144xbf16>,
    return
  }
  func.func @transform_0(%arg0: i32) -> (i32, i32) {
    %c0_i32 = arith.constant 0 : i32
    %c0_i32_0 = arith.constant 0 : i32
    return %arg0, %c0_i32 : i32, i32
  }
  func.func @transform_1(%arg0: i32) -> (i32, i32) {
    %c0_i32 = arith.constant 0 : i32
    %c0_i32_0 = arith.constant 0 : i32
    %c0_i32_1 = arith.constant 0 : i32
    return %c0_i32, %c0_i32_0 : i32, i32
  }
  func.func @transform_2(%arg0: i32) -> (i32, i32) {
    %c0_i32 = arith.constant 0 : i32
    %c0_i32_0 = arith.constant 0 : i32
    %c0_i32_1 = arith.constant 0 : i32
    return %c0_i32, %c0_i32_0 : i32, i32
  }
  func.func @transform_3(%arg0: i32) -> (i32, i32) {
    %c0_i32 = arith.constant 0 : i32
    %c0_i32_0 = arith.constant 0 : i32
    %c0_i32_1 = arith.constant 0 : i32
    return %c0_i32, %c0_i32_0 : i32, i32
  }
  func.func @transform_4(%arg0: i32) -> (i32, i32) {
    %c0_i32 = arith.constant 0 : i32
    %c0_i32_0 = arith.constant 0 : i32
    %c0_i32_1 = arith.constant 0 : i32
    return %c0_i32, %c0_i32_0 : i32, i32
  }
  func.func @transform_5(%arg0: i32) -> (i32, i32) {
    %c0_i32 = arith.constant 0 : i32
    %c0_i32_0 = arith.constant 0 : i32
    return %arg0, %c0_i32 : i32, i32
  }
}

module attributes {stable_mosaic.version = 11 : i64} {
  func.func @_res_ln_mlp_kernel(%arg0: i32, %arg1: memref<8x48xf32, #tpu.memory_space<vmem>>, %arg2: memref<8x48xf32, #tpu.memory_space<vmem>>, %arg3: memref<1x48xf32, #tpu.memory_space<vmem>>, %arg4: memref<1x48xf32, #tpu.memory_space<vmem>>, %arg5: memref<48x192xbf16, #tpu.memory_space<vmem>>, %arg6: memref<1x192xf32, #tpu.memory_space<vmem>>, %arg7: memref<192x48xbf16, #tpu.memory_space<vmem>>, %arg8: memref<1x48xf32, #tpu.memory_space<vmem>>, %arg9: memref<8x48xf32, #tpu.memory_space<vmem>>) attributes {dimension_semantics = [#tpu.dimension_semantics<parallel>], iteration_bounds = array<i64: 2>, scalar_prefetch = 0 : i64, scratch_operands = 0 : i64, tpu.core_type = #tpu.core_type<tc>, window_params = [{transform_indices = @transform_0, window_bounds = array<i64: 8, 48>}, {transform_indices = @transform_1, window_bounds = array<i64: 8, 48>}, {pipeline_mode = #tpu.pipeline_mode<synchronous>, transform_indices = @transform_2, window_bounds = array<i64: 1, 48>}, {pipeline_mode = #tpu.pipeline_mode<synchronous>, transform_indices = @transform_3, window_bounds = array<i64: 1, 48>}, {pipeline_mode = #tpu.pipeline_mode<synchronous>, transform_indices = @transform_4, window_bounds = array<i64: 48, 192>}, {pipeline_mode = #tpu.pipeline_mode<synchronous>, transform_indices = @transform_5, window_bounds = array<i64: 1, 192>}, {pipeline_mode = #tpu.pipeline_mode<synchronous>, transform_indices = @transform_6, window_bounds = array<i64: 192, 48>}, {pipeline_mode = #tpu.pipeline_mode<synchronous>, transform_indices = @transform_7, window_bounds = array<i64: 1, 48>}, {transform_indices = @transform_8, window_bounds = array<i64: 8, 48>}]} {
    %c0 = arith.constant 0 : index
    %c0_0 = arith.constant 0 : index
    %0 = vector.load %arg1[%c0, %c0_0] : memref<8x48xf32, #tpu.memory_space<vmem>>, vector<8x48xf32>
    %c0_1 = arith.constant 0 : index
    %c0_2 = arith.constant 0 : index
    %1 = vector.load %arg2[%c0_1, %c0_2] : memref<8x48xf32, #tpu.memory_space<vmem>>, vector<8x48xf32>
    %2 = arith.addf %0, %1 : vector<8x48xf32>
    %cst = arith.constant dense<0.000000e+00> : vector<8xf32>
    %3 = vector.multi_reduction <add>, %2, %cst [1] : vector<8x48xf32> to vector<8xf32>
    %4 = vector.shape_cast %3 : vector<8xf32> to vector<8x1xf32>
    %cst_3 = arith.constant 4.800000e+01 : f32
    %5 = vector.broadcast %cst_3 : f32 to vector<8x1xf32>
    %6 = arith.divf %4, %5 : vector<8x1xf32>
    %7 = vector.broadcast %6 : vector<8x1xf32> to vector<8x48xf32>
    %8 = arith.subf %2, %7 : vector<8x48xf32>
    %9 = arith.mulf %8, %8 : vector<8x48xf32>
    %cst_4 = arith.constant dense<0.000000e+00> : vector<8xf32>
    %10 = vector.multi_reduction <add>, %9, %cst_4 [1] : vector<8x48xf32> to vector<8xf32>
    %11 = vector.shape_cast %10 : vector<8xf32> to vector<8x1xf32>
    %cst_5 = arith.constant 4.800000e+01 : f32
    %12 = vector.broadcast %cst_5 : f32 to vector<8x1xf32>
    %13 = arith.divf %11, %12 : vector<8x1xf32>
    %cst_6 = arith.constant 9.99999974E-6 : f32
    %14 = vector.broadcast %cst_6 : f32 to vector<8x1xf32>
    %15 = arith.addf %13, %14 : vector<8x1xf32>
    %16 = math.rsqrt %15 : vector<8x1xf32>
    %17 = vector.broadcast %16 : vector<8x1xf32> to vector<8x48xf32>
    %18 = arith.mulf %8, %17 : vector<8x48xf32>
    %c0_7 = arith.constant 0 : index
    %c0_8 = arith.constant 0 : index
    %19 = vector.load %arg3[%c0_7, %c0_8] : memref<1x48xf32, #tpu.memory_space<vmem>>, vector<1x48xf32>
    %20 = vector.broadcast %19 : vector<1x48xf32> to vector<8x48xf32>
    %21 = arith.mulf %18, %20 : vector<8x48xf32>
    %c0_9 = arith.constant 0 : index
    %c0_10 = arith.constant 0 : index
    %22 = vector.load %arg4[%c0_9, %c0_10] : memref<1x48xf32, #tpu.memory_space<vmem>>, vector<1x48xf32>
    %23 = vector.broadcast %22 : vector<1x48xf32> to vector<8x48xf32>
    %24 = arith.addf %21, %23 : vector<8x48xf32>
    %25 = arith.truncf %24 : vector<8x48xf32> to vector<8x48xbf16>
    %c0_11 = arith.constant 0 : index
    %c0_12 = arith.constant 0 : index
    %26 = vector.load %arg5[%c0_11, %c0_12] : memref<48x192xbf16, #tpu.memory_space<vmem>>, vector<48x192xbf16>
    %cst_13 = arith.constant dense<0.000000e+00> : vector<8x192xf32>
    %27 = tpu.matmul %25, %26, %cst_13 {dimension_numbers = #tpu.dot_dimension_numbers<[1], [0], [0], [1], [0, 0, 1, 1], [], []>} : vector<8x48xbf16>, vector<48x192xbf16>, vector<8x192xf32> -> vector<8x192xf32>
    %c0_14 = arith.constant 0 : index
    %c0_15 = arith.constant 0 : index
    %28 = vector.load %arg6[%c0_14, %c0_15] : memref<1x192xf32, #tpu.memory_space<vmem>>, vector<1x192xf32>
    %29 = vector.broadcast %28 : vector<1x192xf32> to vector<8x192xf32>
    %30 = arith.addf %27, %29 : vector<8x192xf32>
    %cst_16 = arith.constant 5.000000e-01 : f32
    %31 = vector.broadcast %cst_16 : f32 to vector<8x192xf32>
    %32 = arith.mulf %31, %30 : vector<8x192xf32>
    %cst_17 = arith.constant 0.707106769 : f32
    %33 = vector.broadcast %cst_17 : f32 to vector<8x192xf32>
    %34 = arith.mulf %30, %33 : vector<8x192xf32>
    %35 = math.absf %34 : vector<8x192xf32>
    %cst_18 = arith.constant 0.327591091 : f32
    %36 = vector.broadcast %cst_18 : f32 to vector<8x192xf32>
    %37 = arith.mulf %36, %35 : vector<8x192xf32>
    %cst_19 = arith.constant 1.000000e+00 : f32
    %38 = vector.broadcast %cst_19 : f32 to vector<8x192xf32>
    %39 = arith.addf %38, %37 : vector<8x192xf32>
    %cst_20 = arith.constant 1.000000e+00 : f32
    %40 = vector.broadcast %cst_20 : f32 to vector<8x192xf32>
    %41 = arith.divf %40, %39 : vector<8x192xf32>
    %cst_21 = arith.constant 1.06140542 : f32
    %42 = vector.broadcast %cst_21 : f32 to vector<8x192xf32>
    %43 = arith.mulf %42, %41 : vector<8x192xf32>
    %cst_22 = arith.constant -1.45315206 : f32
    %44 = vector.broadcast %cst_22 : f32 to vector<8x192xf32>
    %45 = arith.addf %43, %44 : vector<8x192xf32>
    %46 = arith.mulf %45, %41 : vector<8x192xf32>
    %cst_23 = arith.constant 1.42141378 : f32
    %47 = vector.broadcast %cst_23 : f32 to vector<8x192xf32>
    %48 = arith.addf %46, %47 : vector<8x192xf32>
    %49 = arith.mulf %48, %41 : vector<8x192xf32>
    %cst_24 = arith.constant -0.284496725 : f32
    %50 = vector.broadcast %cst_24 : f32 to vector<8x192xf32>
    %51 = arith.addf %49, %50 : vector<8x192xf32>
    %52 = arith.mulf %51, %41 : vector<8x192xf32>
    %cst_25 = arith.constant 0.254829586 : f32
    %53 = vector.broadcast %cst_25 : f32 to vector<8x192xf32>
    %54 = arith.addf %52, %53 : vector<8x192xf32>
    %55 = arith.mulf %54, %41 : vector<8x192xf32>
    %cst_26 = arith.constant 0.000000e+00 : f32
    %56 = vector.broadcast %cst_26 : f32 to vector<8x192xf32>
    %57 = arith.subf %56, %35 : vector<8x192xf32>
    %58 = arith.mulf %57, %35 : vector<8x192xf32>
    %59 = math.exp %58 : vector<8x192xf32>
    %60 = arith.mulf %55, %59 : vector<8x192xf32>
    %cst_27 = arith.constant 1.000000e+00 : f32
    %61 = vector.broadcast %cst_27 : f32 to vector<8x192xf32>
    %62 = arith.subf %61, %60 : vector<8x192xf32>
    %cst_28 = arith.constant 0.000000e+00 : f32
    %63 = vector.broadcast %cst_28 : f32 to vector<8x192xf32>
    %64 = arith.cmpf olt, %34, %63 : vector<8x192xf32>
    %cst_29 = arith.constant 0.000000e+00 : f32
    %65 = vector.broadcast %cst_29 : f32 to vector<8x192xf32>
    %66 = arith.subf %65, %62 : vector<8x192xf32>
    %67 = arith.select %64, %66, %62 : vector<8x192xi1>, vector<8x192xf32>
    %cst_30 = arith.constant 1.000000e+00 : f32
    %68 = vector.broadcast %cst_30 : f32 to vector<8x192xf32>
    %69 = arith.addf %68, %67 : vector<8x192xf32>
    %70 = arith.mulf %32, %69 : vector<8x192xf32>
    %71 = arith.truncf %70 : vector<8x192xf32> to vector<8x192xbf16>
    %c0_31 = arith.constant 0 : index
    %c0_32 = arith.constant 0 : index
    %72 = vector.load %arg7[%c0_31, %c0_32] : memref<192x48xbf16, #tpu.memory_space<vmem>>, vector<192x48xbf16>
    %cst_33 = arith.constant dense<0.000000e+00> : vector<8x48xf32>
    %73 = tpu.matmul %71, %72, %cst_33 {dimension_numbers = #tpu.dot_dimension_numbers<[1], [0], [0], [1], [0, 0, 1, 1], [], []>} : vector<8x192xbf16>, vector<192x48xbf16>, vector<8x48xf32> -> vector<8x48xf32>
    %74 = arith.addf %2, %73 : vector<8x48xf32>
    %c0_34 = arith.constant 0 : index
    %c0_35 = arith.constant 0 : index
    %75 = vector.load %arg8[%c0_34, %c0_35] : memref<1x48xf32, #tpu.memory_space<vmem>>, vector<1x48xf32>
    %76 = vector.broadcast %75 : vector<1x48xf32> to vector<8x48xf32>
    %77 = arith.addf %74, %76 : vector<8x48xf32>
    %c0_36 = arith.constant 0 : index
    %c0_37 = arith.constant 0 : index
    %78 = vector.load %arg9[%c0_36, %c0_37] : memref<8x48xf32, #tpu.memory_space<vmem>>, vector<8x48xf32>
    tpu.vector_store %arg9[%c0_36, %c0_37], %77 {strides = array<i32>} : memref<8x48xf32, #tpu.memory_space<vmem>>, vector<8x48xf32>,
    return
  }
  func.func @transform_0(%arg0: i32) -> (i32, i32) {
    %c0_i32 = arith.constant 0 : i32
    %c0_i32_0 = arith.constant 0 : i32
    return %arg0, %c0_i32 : i32, i32
  }
  func.func @transform_1(%arg0: i32) -> (i32, i32) {
    %c0_i32 = arith.constant 0 : i32
    %c0_i32_0 = arith.constant 0 : i32
    return %arg0, %c0_i32 : i32, i32
  }
  func.func @transform_2(%arg0: i32) -> (i32, i32) {
    %c0_i32 = arith.constant 0 : i32
    %c0_i32_0 = arith.constant 0 : i32
    %c0_i32_1 = arith.constant 0 : i32
    return %c0_i32, %c0_i32_0 : i32, i32
  }
  func.func @transform_3(%arg0: i32) -> (i32, i32) {
    %c0_i32 = arith.constant 0 : i32
    %c0_i32_0 = arith.constant 0 : i32
    %c0_i32_1 = arith.constant 0 : i32
    return %c0_i32, %c0_i32_0 : i32, i32
  }
  func.func @transform_4(%arg0: i32) -> (i32, i32) {
    %c0_i32 = arith.constant 0 : i32
    %c0_i32_0 = arith.constant 0 : i32
    %c0_i32_1 = arith.constant 0 : i32
    return %c0_i32, %c0_i32_0 : i32, i32
  }
  func.func @transform_5(%arg0: i32) -> (i32, i32) {
    %c0_i32 = arith.constant 0 : i32
    %c0_i32_0 = arith.constant 0 : i32
    %c0_i32_1 = arith.constant 0 : i32
    return %c0_i32, %c0_i32_0 : i32, i32
  }
  func.func @transform_6(%arg0: i32) -> (i32, i32) {
    %c0_i32 = arith.constant 0 : i32
    %c0_i32_0 = arith.constant 0 : i32
    %c0_i32_1 = arith.constant 0 : i32
    return %c0_i32, %c0_i32_0 : i32, i32
  }
  func.func @transform_7(%arg0: i32) -> (i32, i32) {
    %c0_i32 = arith.constant 0 : i32
    %c0_i32_0 = arith.constant 0 : i32
    %c0_i32_1 = arith.constant 0 : i32
    return %c0_i32, %c0_i32_0 : i32, i32
  }
  func.func @transform_8(%arg0: i32) -> (i32, i32) {
    %c0_i32 = arith.constant 0 : i32
    %c0_i32_0 = arith.constant 0 : i32
    return %arg0, %c0_i32 : i32, i32
  }
}

module attributes {stable_mosaic.version = 11 : i64} {
  func.func @_window_attn_kernel(%arg0: i32, %arg1: memref<1x8x144xbf16, #tpu.memory_space<vmem>>, %arg2: memref<6x8x8xf32, #tpu.memory_space<vmem>>, %arg3: memref<48x48xbf16, #tpu.memory_space<vmem>>, %arg4: memref<1x48xf32, #tpu.memory_space<vmem>>, %arg5: memref<1x8x48xf32, #tpu.memory_space<vmem>>) attributes {dimension_semantics = [#tpu.dimension_semantics<parallel>], iteration_bounds = array<i64: 2>, scalar_prefetch = 0 : i64, scratch_operands = 0 : i64, tpu.core_type = #tpu.core_type<tc>, window_params = [{transform_indices = @transform_0, window_bounds = array<i64: 1, 8, 144>}, {pipeline_mode = #tpu.pipeline_mode<synchronous>, transform_indices = @transform_1, window_bounds = array<i64: 6, 8, 8>}, {pipeline_mode = #tpu.pipeline_mode<synchronous>, transform_indices = @transform_2, window_bounds = array<i64: 48, 48>}, {pipeline_mode = #tpu.pipeline_mode<synchronous>, transform_indices = @transform_3, window_bounds = array<i64: 1, 48>}, {transform_indices = @transform_4, window_bounds = array<i64: 1, 8, 48>}]} {
    %c0 = arith.constant 0 : index
    %c0_0 = arith.constant 0 : index
    %c0_1 = arith.constant 0 : index
    %0 = vector.load %arg2[%c0, %c0_0, %c0_1] : memref<6x8x8xf32, #tpu.memory_space<vmem>>, vector<6x8x8xf32>
    %c0_2 = arith.constant 0 : index
    %c0_3 = arith.constant 0 : index
    %c0_4 = arith.constant 0 : index
    %1 = vector.load %arg1[%c0_2, %c0_3, %c0_4] : memref<1x8x144xbf16, #tpu.memory_space<vmem>>, vector<1x8x8xbf16>
    %c0_5 = arith.constant 0 : index
    %c0_6 = arith.constant 0 : index
    %c48 = arith.constant 48 : index
    %2 = vector.load %arg1[%c0_5, %c0_6, %c48] : memref<1x8x144xbf16, #tpu.memory_space<vmem>>, vector<1x8x8xbf16>
    %c0_7 = arith.constant 0 : index
    %c0_8 = arith.constant 0 : index
    %c96 = arith.constant 96 : index
    %3 = vector.load %arg1[%c0_7, %c0_8, %c96] : memref<1x8x144xbf16, #tpu.memory_space<vmem>>, vector<1x8x8xbf16>
    "tpu.trace_start"() <{level = 10 : i32, message = "gnd,gmd->gnm"}> : () -> ()
    %cst = arith.constant dense<0.000000e+00> : vector<1x8x8xf32>
    %4 = tpu.matmul %1, %2, %cst {dimension_numbers = #tpu.dot_dimension_numbers<[2], [2], [1], [1], [0, 0, 0, 1, 1, 1], [0], [0]>} : vector<1x8x8xbf16>, vector<1x8x8xbf16>, vector<1x8x8xf32> -> vector<1x8x8xf32>
    "tpu.trace_stop"() : () -> ()
    %5 = vector.extract_strided_slice %0 {offsets = [0, 0, 0], sizes = [1, 8, 8], strides = [1, 1, 1]} : vector<6x8x8xf32> to vector<1x8x8xf32>
    %6 = vector.shape_cast %5 : vector<1x8x8xf32> to vector<8x8xf32>
    %7 = vector.shape_cast %6 : vector<8x8xf32> to vector<1x8x8xf32>
    %8 = arith.addf %4, %7 : vector<1x8x8xf32>
    %cst_9 = arith.constant dense<0xFF800000> : vector<1x8xf32>
    %9 = vector.multi_reduction <maximumf>, %8, %cst_9 [2] : vector<1x8x8xf32> to vector<1x8xf32>
    %10 = vector.shape_cast %9 : vector<1x8xf32> to vector<1x8x1xf32>
    %11 = vector.broadcast %10 : vector<1x8x1xf32> to vector<1x8x8xf32>
    %12 = arith.subf %8, %11 : vector<1x8x8xf32>
    %13 = math.exp %12 : vector<1x8x8xf32>
    %cst_10 = arith.constant dense<0.000000e+00> : vector<1x8xf32>
    %14 = vector.multi_reduction <add>, %13, %cst_10 [2] : vector<1x8x8xf32> to vector<1x8xf32>
    %15 = vector.shape_cast %14 : vector<1x8xf32> to vector<1x8x1xf32>
    %16 = tpu.reciprocal %15 {approx = true} : vector<1x8x1xf32> -> vector<1x8x1xf32>
    %17 = vector.broadcast %16 : vector<1x8x1xf32> to vector<1x8x8xf32>
    %18 = arith.mulf %13, %17 : vector<1x8x8xf32>
    %19 = arith.truncf %18 : vector<1x8x8xf32> to vector<1x8x8xbf16>
    "tpu.trace_start"() <{level = 10 : i32, message = "gnm,gmd->gnd"}> : () -> ()
    %cst_11 = arith.constant dense<0.000000e+00> : vector<1x8x8xf32>
    %20 = tpu.matmul %19, %3, %cst_11 {dimension_numbers = #tpu.dot_dimension_numbers<[2], [1], [1], [2], [0, 0, 0, 1, 1, 2], [0], [0]>} : vector<1x8x8xbf16>, vector<1x8x8xbf16>, vector<1x8x8xf32> -> vector<1x8x8xf32>
    "tpu.trace_stop"() : () -> ()
    %c0_12 = arith.constant 0 : index
    %c0_13 = arith.constant 0 : index
    %c8 = arith.constant 8 : index
    %21 = vector.load %arg1[%c0_12, %c0_13, %c8] : memref<1x8x144xbf16, #tpu.memory_space<vmem>>, vector<1x8x8xbf16>
    %c0_14 = arith.constant 0 : index
    %c0_15 = arith.constant 0 : index
    %c56 = arith.constant 56 : index
    %22 = vector.load %arg1[%c0_14, %c0_15, %c56] : memref<1x8x144xbf16, #tpu.memory_space<vmem>>, vector<1x8x8xbf16>
    %c0_16 = arith.constant 0 : index
    %c0_17 = arith.constant 0 : index
    %c104 = arith.constant 104 : index
    %23 = vector.load %arg1[%c0_16, %c0_17, %c104] : memref<1x8x144xbf16, #tpu.memory_space<vmem>>, vector<1x8x8xbf16>
    "tpu.trace_start"() <{level = 10 : i32, message = "gnd,gmd->gnm"}> : () -> ()
    %cst_18 = arith.constant dense<0.000000e+00> : vector<1x8x8xf32>
    %24 = tpu.matmul %21, %22, %cst_18 {dimension_numbers = #tpu.dot_dimension_numbers<[2], [2], [1], [1], [0, 0, 0, 1, 1, 1], [0], [0]>} : vector<1x8x8xbf16>, vector<1x8x8xbf16>, vector<1x8x8xf32> -> vector<1x8x8xf32>
    "tpu.trace_stop"() : () -> ()
    %25 = vector.extract_strided_slice %0 {offsets = [1, 0, 0], sizes = [1, 8, 8], strides = [1, 1, 1]} : vector<6x8x8xf32> to vector<1x8x8xf32>
    %26 = vector.shape_cast %25 : vector<1x8x8xf32> to vector<8x8xf32>
    %27 = vector.shape_cast %26 : vector<8x8xf32> to vector<1x8x8xf32>
    %28 = arith.addf %24, %27 : vector<1x8x8xf32>
    %cst_19 = arith.constant dense<0xFF800000> : vector<1x8xf32>
    %29 = vector.multi_reduction <maximumf>, %28, %cst_19 [2] : vector<1x8x8xf32> to vector<1x8xf32>
    %30 = vector.shape_cast %29 : vector<1x8xf32> to vector<1x8x1xf32>
    %31 = vector.broadcast %30 : vector<1x8x1xf32> to vector<1x8x8xf32>
    %32 = arith.subf %28, %31 : vector<1x8x8xf32>
    %33 = math.exp %32 : vector<1x8x8xf32>
    %cst_20 = arith.constant dense<0.000000e+00> : vector<1x8xf32>
    %34 = vector.multi_reduction <add>, %33, %cst_20 [2] : vector<1x8x8xf32> to vector<1x8xf32>
    %35 = vector.shape_cast %34 : vector<1x8xf32> to vector<1x8x1xf32>
    %36 = tpu.reciprocal %35 {approx = true} : vector<1x8x1xf32> -> vector<1x8x1xf32>
    %37 = vector.broadcast %36 : vector<1x8x1xf32> to vector<1x8x8xf32>
    %38 = arith.mulf %33, %37 : vector<1x8x8xf32>
    %39 = arith.truncf %38 : vector<1x8x8xf32> to vector<1x8x8xbf16>
    "tpu.trace_start"() <{level = 10 : i32, message = "gnm,gmd->gnd"}> : () -> ()
    %cst_21 = arith.constant dense<0.000000e+00> : vector<1x8x8xf32>
    %40 = tpu.matmul %39, %23, %cst_21 {dimension_numbers = #tpu.dot_dimension_numbers<[2], [1], [1], [2], [0, 0, 0, 1, 1, 2], [0], [0]>} : vector<1x8x8xbf16>, vector<1x8x8xbf16>, vector<1x8x8xf32> -> vector<1x8x8xf32>
    "tpu.trace_stop"() : () -> ()
    %c0_22 = arith.constant 0 : index
    %c0_23 = arith.constant 0 : index
    %c16 = arith.constant 16 : index
    %41 = vector.load %arg1[%c0_22, %c0_23, %c16] : memref<1x8x144xbf16, #tpu.memory_space<vmem>>, vector<1x8x8xbf16>
    %c0_24 = arith.constant 0 : index
    %c0_25 = arith.constant 0 : index
    %c64 = arith.constant 64 : index
    %42 = vector.load %arg1[%c0_24, %c0_25, %c64] : memref<1x8x144xbf16, #tpu.memory_space<vmem>>, vector<1x8x8xbf16>
    %c0_26 = arith.constant 0 : index
    %c0_27 = arith.constant 0 : index
    %c112 = arith.constant 112 : index
    %43 = vector.load %arg1[%c0_26, %c0_27, %c112] : memref<1x8x144xbf16, #tpu.memory_space<vmem>>, vector<1x8x8xbf16>
    "tpu.trace_start"() <{level = 10 : i32, message = "gnd,gmd->gnm"}> : () -> ()
    %cst_28 = arith.constant dense<0.000000e+00> : vector<1x8x8xf32>
    %44 = tpu.matmul %41, %42, %cst_28 {dimension_numbers = #tpu.dot_dimension_numbers<[2], [2], [1], [1], [0, 0, 0, 1, 1, 1], [0], [0]>} : vector<1x8x8xbf16>, vector<1x8x8xbf16>, vector<1x8x8xf32> -> vector<1x8x8xf32>
    "tpu.trace_stop"() : () -> ()
    %45 = vector.extract_strided_slice %0 {offsets = [2, 0, 0], sizes = [1, 8, 8], strides = [1, 1, 1]} : vector<6x8x8xf32> to vector<1x8x8xf32>
    %46 = vector.shape_cast %45 : vector<1x8x8xf32> to vector<8x8xf32>
    %47 = vector.shape_cast %46 : vector<8x8xf32> to vector<1x8x8xf32>
    %48 = arith.addf %44, %47 : vector<1x8x8xf32>
    %cst_29 = arith.constant dense<0xFF800000> : vector<1x8xf32>
    %49 = vector.multi_reduction <maximumf>, %48, %cst_29 [2] : vector<1x8x8xf32> to vector<1x8xf32>
    %50 = vector.shape_cast %49 : vector<1x8xf32> to vector<1x8x1xf32>
    %51 = vector.broadcast %50 : vector<1x8x1xf32> to vector<1x8x8xf32>
    %52 = arith.subf %48, %51 : vector<1x8x8xf32>
    %53 = math.exp %52 : vector<1x8x8xf32>
    %cst_30 = arith.constant dense<0.000000e+00> : vector<1x8xf32>
    %54 = vector.multi_reduction <add>, %53, %cst_30 [2] : vector<1x8x8xf32> to vector<1x8xf32>
    %55 = vector.shape_cast %54 : vector<1x8xf32> to vector<1x8x1xf32>
    %56 = tpu.reciprocal %55 {approx = true} : vector<1x8x1xf32> -> vector<1x8x1xf32>
    %57 = vector.broadcast %56 : vector<1x8x1xf32> to vector<1x8x8xf32>
    %58 = arith.mulf %53, %57 : vector<1x8x8xf32>
    %59 = arith.truncf %58 : vector<1x8x8xf32> to vector<1x8x8xbf16>
    "tpu.trace_start"() <{level = 10 : i32, message = "gnm,gmd->gnd"}> : () -> ()
    %cst_31 = arith.constant dense<0.000000e+00> : vector<1x8x8xf32>
    %60 = tpu.matmul %59, %43, %cst_31 {dimension_numbers = #tpu.dot_dimension_numbers<[2], [1], [1], [2], [0, 0, 0, 1, 1, 2], [0], [0]>} : vector<1x8x8xbf16>, vector<1x8x8xbf16>, vector<1x8x8xf32> -> vector<1x8x8xf32>
    "tpu.trace_stop"() : () -> ()
    %c0_32 = arith.constant 0 : index
    %c0_33 = arith.constant 0 : index
    %c24 = arith.constant 24 : index
    %61 = vector.load %arg1[%c0_32, %c0_33, %c24] : memref<1x8x144xbf16, #tpu.memory_space<vmem>>, vector<1x8x8xbf16>
    %c0_34 = arith.constant 0 : index
    %c0_35 = arith.constant 0 : index
    %c72 = arith.constant 72 : index
    %62 = vector.load %arg1[%c0_34, %c0_35, %c72] : memref<1x8x144xbf16, #tpu.memory_space<vmem>>, vector<1x8x8xbf16>
    %c0_36 = arith.constant 0 : index
    %c0_37 = arith.constant 0 : index
    %c120 = arith.constant 120 : index
    %63 = vector.load %arg1[%c0_36, %c0_37, %c120] : memref<1x8x144xbf16, #tpu.memory_space<vmem>>, vector<1x8x8xbf16>
    "tpu.trace_start"() <{level = 10 : i32, message = "gnd,gmd->gnm"}> : () -> ()
    %cst_38 = arith.constant dense<0.000000e+00> : vector<1x8x8xf32>
    %64 = tpu.matmul %61, %62, %cst_38 {dimension_numbers = #tpu.dot_dimension_numbers<[2], [2], [1], [1], [0, 0, 0, 1, 1, 1], [0], [0]>} : vector<1x8x8xbf16>, vector<1x8x8xbf16>, vector<1x8x8xf32> -> vector<1x8x8xf32>
    "tpu.trace_stop"() : () -> ()
    %65 = vector.extract_strided_slice %0 {offsets = [3, 0, 0], sizes = [1, 8, 8], strides = [1, 1, 1]} : vector<6x8x8xf32> to vector<1x8x8xf32>
    %66 = vector.shape_cast %65 : vector<1x8x8xf32> to vector<8x8xf32>
    %67 = vector.shape_cast %66 : vector<8x8xf32> to vector<1x8x8xf32>
    %68 = arith.addf %64, %67 : vector<1x8x8xf32>
    %cst_39 = arith.constant dense<0xFF800000> : vector<1x8xf32>
    %69 = vector.multi_reduction <maximumf>, %68, %cst_39 [2] : vector<1x8x8xf32> to vector<1x8xf32>
    %70 = vector.shape_cast %69 : vector<1x8xf32> to vector<1x8x1xf32>
    %71 = vector.broadcast %70 : vector<1x8x1xf32> to vector<1x8x8xf32>
    %72 = arith.subf %68, %71 : vector<1x8x8xf32>
    %73 = math.exp %72 : vector<1x8x8xf32>
    %cst_40 = arith.constant dense<0.000000e+00> : vector<1x8xf32>
    %74 = vector.multi_reduction <add>, %73, %cst_40 [2] : vector<1x8x8xf32> to vector<1x8xf32>
    %75 = vector.shape_cast %74 : vector<1x8xf32> to vector<1x8x1xf32>
    %76 = tpu.reciprocal %75 {approx = true} : vector<1x8x1xf32> -> vector<1x8x1xf32>
    %77 = vector.broadcast %76 : vector<1x8x1xf32> to vector<1x8x8xf32>
    %78 = arith.mulf %73, %77 : vector<1x8x8xf32>
    %79 = arith.truncf %78 : vector<1x8x8xf32> to vector<1x8x8xbf16>
    "tpu.trace_start"() <{level = 10 : i32, message = "gnm,gmd->gnd"}> : () -> ()
    %cst_41 = arith.constant dense<0.000000e+00> : vector<1x8x8xf32>
    %80 = tpu.matmul %79, %63, %cst_41 {dimension_numbers = #tpu.dot_dimension_numbers<[2], [1], [1], [2], [0, 0, 0, 1, 1, 2], [0], [0]>} : vector<1x8x8xbf16>, vector<1x8x8xbf16>, vector<1x8x8xf32> -> vector<1x8x8xf32>
    "tpu.trace_stop"() : () -> ()
    %c0_42 = arith.constant 0 : index
    %c0_43 = arith.constant 0 : index
    %c32 = arith.constant 32 : index
    %81 = vector.load %arg1[%c0_42, %c0_43, %c32] : memref<1x8x144xbf16, #tpu.memory_space<vmem>>, vector<1x8x8xbf16>
    %c0_44 = arith.constant 0 : index
    %c0_45 = arith.constant 0 : index
    %c80 = arith.constant 80 : index
    %82 = vector.load %arg1[%c0_44, %c0_45, %c80] : memref<1x8x144xbf16, #tpu.memory_space<vmem>>, vector<1x8x8xbf16>
    %c0_46 = arith.constant 0 : index
    %c0_47 = arith.constant 0 : index
    %c128 = arith.constant 128 : index
    %83 = vector.load %arg1[%c0_46, %c0_47, %c128] : memref<1x8x144xbf16, #tpu.memory_space<vmem>>, vector<1x8x8xbf16>
    "tpu.trace_start"() <{level = 10 : i32, message = "gnd,gmd->gnm"}> : () -> ()
    %cst_48 = arith.constant dense<0.000000e+00> : vector<1x8x8xf32>
    %84 = tpu.matmul %81, %82, %cst_48 {dimension_numbers = #tpu.dot_dimension_numbers<[2], [2], [1], [1], [0, 0, 0, 1, 1, 1], [0], [0]>} : vector<1x8x8xbf16>, vector<1x8x8xbf16>, vector<1x8x8xf32> -> vector<1x8x8xf32>
    "tpu.trace_stop"() : () -> ()
    %85 = vector.extract_strided_slice %0 {offsets = [4, 0, 0], sizes = [1, 8, 8], strides = [1, 1, 1]} : vector<6x8x8xf32> to vector<1x8x8xf32>
    %86 = vector.shape_cast %85 : vector<1x8x8xf32> to vector<8x8xf32>
    %87 = vector.shape_cast %86 : vector<8x8xf32> to vector<1x8x8xf32>
    %88 = arith.addf %84, %87 : vector<1x8x8xf32>
    %cst_49 = arith.constant dense<0xFF800000> : vector<1x8xf32>
    %89 = vector.multi_reduction <maximumf>, %88, %cst_49 [2] : vector<1x8x8xf32> to vector<1x8xf32>
    %90 = vector.shape_cast %89 : vector<1x8xf32> to vector<1x8x1xf32>
    %91 = vector.broadcast %90 : vector<1x8x1xf32> to vector<1x8x8xf32>
    %92 = arith.subf %88, %91 : vector<1x8x8xf32>
    %93 = math.exp %92 : vector<1x8x8xf32>
    %cst_50 = arith.constant dense<0.000000e+00> : vector<1x8xf32>
    %94 = vector.multi_reduction <add>, %93, %cst_50 [2] : vector<1x8x8xf32> to vector<1x8xf32>
    %95 = vector.shape_cast %94 : vector<1x8xf32> to vector<1x8x1xf32>
    %96 = tpu.reciprocal %95 {approx = true} : vector<1x8x1xf32> -> vector<1x8x1xf32>
    %97 = vector.broadcast %96 : vector<1x8x1xf32> to vector<1x8x8xf32>
    %98 = arith.mulf %93, %97 : vector<1x8x8xf32>
    %99 = arith.truncf %98 : vector<1x8x8xf32> to vector<1x8x8xbf16>
    "tpu.trace_start"() <{level = 10 : i32, message = "gnm,gmd->gnd"}> : () -> ()
    %cst_51 = arith.constant dense<0.000000e+00> : vector<1x8x8xf32>
    %100 = tpu.matmul %99, %83, %cst_51 {dimension_numbers = #tpu.dot_dimension_numbers<[2], [1], [1], [2], [0, 0, 0, 1, 1, 2], [0], [0]>} : vector<1x8x8xbf16>, vector<1x8x8xbf16>, vector<1x8x8xf32> -> vector<1x8x8xf32>
    "tpu.trace_stop"() : () -> ()
    %c0_52 = arith.constant 0 : index
    %c0_53 = arith.constant 0 : index
    %c40 = arith.constant 40 : index
    %101 = vector.load %arg1[%c0_52, %c0_53, %c40] : memref<1x8x144xbf16, #tpu.memory_space<vmem>>, vector<1x8x8xbf16>
    %c0_54 = arith.constant 0 : index
    %c0_55 = arith.constant 0 : index
    %c88 = arith.constant 88 : index
    %102 = vector.load %arg1[%c0_54, %c0_55, %c88] : memref<1x8x144xbf16, #tpu.memory_space<vmem>>, vector<1x8x8xbf16>
    %c0_56 = arith.constant 0 : index
    %c0_57 = arith.constant 0 : index
    %c136 = arith.constant 136 : index
    %103 = vector.load %arg1[%c0_56, %c0_57, %c136] : memref<1x8x144xbf16, #tpu.memory_space<vmem>>, vector<1x8x8xbf16>
    "tpu.trace_start"() <{level = 10 : i32, message = "gnd,gmd->gnm"}> : () -> ()
    %cst_58 = arith.constant dense<0.000000e+00> : vector<1x8x8xf32>
    %104 = tpu.matmul %101, %102, %cst_58 {dimension_numbers = #tpu.dot_dimension_numbers<[2], [2], [1], [1], [0, 0, 0, 1, 1, 1], [0], [0]>} : vector<1x8x8xbf16>, vector<1x8x8xbf16>, vector<1x8x8xf32> -> vector<1x8x8xf32>
    "tpu.trace_stop"() : () -> ()
    %105 = vector.extract_strided_slice %0 {offsets = [5, 0, 0], sizes = [1, 8, 8], strides = [1, 1, 1]} : vector<6x8x8xf32> to vector<1x8x8xf32>
    %106 = vector.shape_cast %105 : vector<1x8x8xf32> to vector<8x8xf32>
    %107 = vector.shape_cast %106 : vector<8x8xf32> to vector<1x8x8xf32>
    %108 = arith.addf %104, %107 : vector<1x8x8xf32>
    %cst_59 = arith.constant dense<0xFF800000> : vector<1x8xf32>
    %109 = vector.multi_reduction <maximumf>, %108, %cst_59 [2] : vector<1x8x8xf32> to vector<1x8xf32>
    %110 = vector.shape_cast %109 : vector<1x8xf32> to vector<1x8x1xf32>
    %111 = vector.broadcast %110 : vector<1x8x1xf32> to vector<1x8x8xf32>
    %112 = arith.subf %108, %111 : vector<1x8x8xf32>
    %113 = math.exp %112 : vector<1x8x8xf32>
    %cst_60 = arith.constant dense<0.000000e+00> : vector<1x8xf32>
    %114 = vector.multi_reduction <add>, %113, %cst_60 [2] : vector<1x8x8xf32> to vector<1x8xf32>
    %115 = vector.shape_cast %114 : vector<1x8xf32> to vector<1x8x1xf32>
    %116 = tpu.reciprocal %115 {approx = true} : vector<1x8x1xf32> -> vector<1x8x1xf32>
    %117 = vector.broadcast %116 : vector<1x8x1xf32> to vector<1x8x8xf32>
    %118 = arith.mulf %113, %117 : vector<1x8x8xf32>
    %119 = arith.truncf %118 : vector<1x8x8xf32> to vector<1x8x8xbf16>
    "tpu.trace_start"() <{level = 10 : i32, message = "gnm,gmd->gnd"}> : () -> ()
    %cst_61 = arith.constant dense<0.000000e+00> : vector<1x8x8xf32>
    %120 = tpu.matmul %119, %103, %cst_61 {dimension_numbers = #tpu.dot_dimension_numbers<[2], [1], [1], [2], [0, 0, 0, 1, 1, 2], [0], [0]>} : vector<1x8x8xbf16>, vector<1x8x8xbf16>, vector<1x8x8xf32> -> vector<1x8x8xf32>
    "tpu.trace_stop"() : () -> ()
    %121 = tpu.concatenate %20, %40, %60, %80, %100, %120 in 2 : vector<1x8x8xf32>, vector<1x8x8xf32>, vector<1x8x8xf32>, vector<1x8x8xf32>, vector<1x8x8xf32>, vector<1x8x8xf32> -> vector<1x8x48xf32>
    %122 = arith.truncf %121 : vector<1x8x48xf32> to vector<1x8x48xbf16>
    %123 = vector.shape_cast %122 : vector<1x8x48xbf16> to vector<8x48xbf16>
    %c0_62 = arith.constant 0 : index
    %c0_63 = arith.constant 0 : index
    %124 = vector.load %arg3[%c0_62, %c0_63] : memref<48x48xbf16, #tpu.memory_space<vmem>>, vector<48x48xbf16>
    %cst_64 = arith.constant dense<0.000000e+00> : vector<8x48xf32>
    %125 = tpu.matmul %123, %124, %cst_64 {dimension_numbers = #tpu.dot_dimension_numbers<[1], [0], [0], [1], [0, 0, 1, 1], [], []>} : vector<8x48xbf16>, vector<48x48xbf16>, vector<8x48xf32> -> vector<8x48xf32>
    %126 = vector.shape_cast %125 : vector<8x48xf32> to vector<1x8x48xf32>
    %c0_65 = arith.constant 0 : index
    %c0_66 = arith.constant 0 : index
    %127 = vector.load %arg4[%c0_65, %c0_66] : memref<1x48xf32, #tpu.memory_space<vmem>>, vector<1x48xf32>
    %128 = vector.shape_cast %127 : vector<1x48xf32> to vector<1x1x48xf32>
    %129 = vector.broadcast %128 : vector<1x1x48xf32> to vector<1x8x48xf32>
    %130 = arith.addf %126, %129 : vector<1x8x48xf32>
    %c0_67 = arith.constant 0 : index
    %c0_68 = arith.constant 0 : index
    %c0_69 = arith.constant 0 : index
    %131 = vector.load %arg5[%c0_67, %c0_68, %c0_69] : memref<1x8x48xf32, #tpu.memory_space<vmem>>, vector<1x8x48xf32>
    tpu.vector_store %arg5[%c0_67, %c0_68, %c0_69], %130 {strides = array<i32>} : memref<1x8x48xf32, #tpu.memory_space<vmem>>, vector<1x8x48xf32>,
    return
  }
  func.func @transform_0(%arg0: i32) -> (i32, i32, i32) {
    %c0_i32 = arith.constant 0 : i32
    %c0_i32_0 = arith.constant 0 : i32
    %c0_i32_1 = arith.constant 0 : i32
    return %arg0, %c0_i32, %c0_i32_0 : i32, i32, i32
  }
  func.func @transform_1(%arg0: i32) -> (i32, i32, i32) {
    %c0_i32 = arith.constant 0 : i32
    %c0_i32_0 = arith.constant 0 : i32
    %c0_i32_1 = arith.constant 0 : i32
    %c0_i32_2 = arith.constant 0 : i32
    return %c0_i32, %c0_i32_0, %c0_i32_1 : i32, i32, i32
  }
  func.func @transform_2(%arg0: i32) -> (i32, i32) {
    %c0_i32 = arith.constant 0 : i32
    %c0_i32_0 = arith.constant 0 : i32
    %c0_i32_1 = arith.constant 0 : i32
    return %c0_i32, %c0_i32_0 : i32, i32
  }
  func.func @transform_3(%arg0: i32) -> (i32, i32) {
    %c0_i32 = arith.constant 0 : i32
    %c0_i32_0 = arith.constant 0 : i32
    %c0_i32_1 = arith.constant 0 : i32
    return %c0_i32, %c0_i32_0 : i32, i32
  }
  func.func @transform_4(%arg0: i32) -> (i32, i32, i32) {
    %c0_i32 = arith.constant 0 : i32
    %c0_i32_0 = arith.constant 0 : i32
    %c0_i32_1 = arith.constant 0 : i32
    return %arg0, %c0_i32, %c0_i32_0 : i32, i32, i32
  }
}

module attributes {stable_mosaic.version = 11 : i64} {
  func.func @_mean_pool_kernel(%arg0: i32, %arg1: memref<1x8x48xf32, #tpu.memory_space<vmem>>, %arg2: memref<1x1x48xf32, #tpu.memory_space<vmem>>) attributes {dimension_semantics = [#tpu.dimension_semantics<parallel>], iteration_bounds = array<i64: 2>, scalar_prefetch = 0 : i64, scratch_operands = 0 : i64, tpu.core_type = #tpu.core_type<tc>, window_params = [{transform_indices = @transform_0, window_bounds = array<i64: 1, 8, 48>}, {transform_indices = @transform_1, window_bounds = array<i64: 1, 1, 48>}]} {
    %c0 = arith.constant 0 : index
    %c0_0 = arith.constant 0 : index
    %c0_1 = arith.constant 0 : index
    %0 = vector.load %arg1[%c0, %c0_0, %c0_1] : memref<1x8x48xf32, #tpu.memory_space<vmem>>, vector<1x8x48xf32>
    %cst = arith.constant dense<0.000000e+00> : vector<1x48xf32>
    %1 = vector.multi_reduction <add>, %0, %cst [1] : vector<1x8x48xf32> to vector<1x48xf32>
    %2 = vector.shape_cast %1 : vector<1x48xf32> to vector<1x1x48xf32>
    %cst_2 = arith.constant 8.000000e+00 : f32
    %3 = vector.broadcast %cst_2 : f32 to vector<1x1x48xf32>
    %4 = arith.divf %2, %3 : vector<1x1x48xf32>
    %c0_3 = arith.constant 0 : index
    %c0_4 = arith.constant 0 : index
    %c0_5 = arith.constant 0 : index
    %5 = vector.load %arg2[%c0_3, %c0_4, %c0_5] : memref<1x1x48xf32, #tpu.memory_space<vmem>>, vector<1x1x48xf32>
    tpu.vector_store %arg2[%c0_3, %c0_4, %c0_5], %4 {strides = array<i32>} : memref<1x1x48xf32, #tpu.memory_space<vmem>>, vector<1x1x48xf32>,
    return
  }
  func.func @transform_0(%arg0: i32) -> (i32, i32, i32) {
    %c0_i32 = arith.constant 0 : i32
    %c0_i32_0 = arith.constant 0 : i32
    %c0_i32_1 = arith.constant 0 : i32
    return %arg0, %c0_i32, %c0_i32_0 : i32, i32, i32
  }
  func.func @transform_1(%arg0: i32) -> (i32, i32, i32) {
    %c0_i32 = arith.constant 0 : i32
    %c0_i32_0 = arith.constant 0 : i32
    %c0_i32_1 = arith.constant 0 : i32
    return %arg0, %c0_i32, %c0_i32_0 : i32, i32, i32
  }
}

module attributes {stable_mosaic.version = 11 : i64} {
  func.func @_ln_kernel(%arg0: i32, %arg1: memref<8x48xf32, #tpu.memory_space<vmem>>, %arg2: memref<1x48xf32, #tpu.memory_space<vmem>>, %arg3: memref<1x48xf32, #tpu.memory_space<vmem>>, %arg4: memref<8x48xf32, #tpu.memory_space<vmem>>) attributes {dimension_semantics = [#tpu.dimension_semantics<parallel>], iteration_bounds = array<i64: 2>, scalar_prefetch = 0 : i64, scratch_operands = 0 : i64, tpu.core_type = #tpu.core_type<tc>, window_params = [{transform_indices = @transform_0, window_bounds = array<i64: 8, 48>}, {pipeline_mode = #tpu.pipeline_mode<synchronous>, transform_indices = @transform_1, window_bounds = array<i64: 1, 48>}, {pipeline_mode = #tpu.pipeline_mode<synchronous>, transform_indices = @transform_2, window_bounds = array<i64: 1, 48>}, {transform_indices = @transform_3, window_bounds = array<i64: 8, 48>}]} {
    %c0 = arith.constant 0 : index
    %c0_0 = arith.constant 0 : index
    %0 = vector.load %arg1[%c0, %c0_0] : memref<8x48xf32, #tpu.memory_space<vmem>>, vector<8x48xf32>
    %cst = arith.constant dense<0.000000e+00> : vector<8xf32>
    %1 = vector.multi_reduction <add>, %0, %cst [1] : vector<8x48xf32> to vector<8xf32>
    %2 = vector.shape_cast %1 : vector<8xf32> to vector<8x1xf32>
    %cst_1 = arith.constant 4.800000e+01 : f32
    %3 = vector.broadcast %cst_1 : f32 to vector<8x1xf32>
    %4 = arith.divf %2, %3 : vector<8x1xf32>
    %5 = vector.broadcast %4 : vector<8x1xf32> to vector<8x48xf32>
    %6 = arith.subf %0, %5 : vector<8x48xf32>
    %7 = arith.mulf %6, %6 : vector<8x48xf32>
    %cst_2 = arith.constant dense<0.000000e+00> : vector<8xf32>
    %8 = vector.multi_reduction <add>, %7, %cst_2 [1] : vector<8x48xf32> to vector<8xf32>
    %9 = vector.shape_cast %8 : vector<8xf32> to vector<8x1xf32>
    %cst_3 = arith.constant 4.800000e+01 : f32
    %10 = vector.broadcast %cst_3 : f32 to vector<8x1xf32>
    %11 = arith.divf %9, %10 : vector<8x1xf32>
    %cst_4 = arith.constant 9.99999974E-6 : f32
    %12 = vector.broadcast %cst_4 : f32 to vector<8x1xf32>
    %13 = arith.addf %11, %12 : vector<8x1xf32>
    %14 = math.rsqrt %13 : vector<8x1xf32>
    %15 = vector.broadcast %14 : vector<8x1xf32> to vector<8x48xf32>
    %16 = arith.mulf %6, %15 : vector<8x48xf32>
    %c0_5 = arith.constant 0 : index
    %c0_6 = arith.constant 0 : index
    %17 = vector.load %arg2[%c0_5, %c0_6] : memref<1x48xf32, #tpu.memory_space<vmem>>, vector<1x48xf32>
    %18 = vector.broadcast %17 : vector<1x48xf32> to vector<8x48xf32>
    %19 = arith.mulf %16, %18 : vector<8x48xf32>
    %c0_7 = arith.constant 0 : index
    %c0_8 = arith.constant 0 : index
    %20 = vector.load %arg3[%c0_7, %c0_8] : memref<1x48xf32, #tpu.memory_space<vmem>>, vector<1x48xf32>
    %21 = vector.broadcast %20 : vector<1x48xf32> to vector<8x48xf32>
    %22 = arith.addf %19, %21 : vector<8x48xf32>
    %c0_9 = arith.constant 0 : index
    %c0_10 = arith.constant 0 : index
    %23 = vector.load %arg4[%c0_9, %c0_10] : memref<8x48xf32, #tpu.memory_space<vmem>>, vector<8x48xf32>
    tpu.vector_store %arg4[%c0_9, %c0_10], %22 {strides = array<i32>} : memref<8x48xf32, #tpu.memory_space<vmem>>, vector<8x48xf32>,
    return
  }
  func.func @transform_0(%arg0: i32) -> (i32, i32) {
    %c0_i32 = arith.constant 0 : i32
    %c0_i32_0 = arith.constant 0 : i32
    return %arg0, %c0_i32 : i32, i32
  }
  func.func @transform_1(%arg0: i32) -> (i32, i32) {
    %c0_i32 = arith.constant 0 : i32
    %c0_i32_0 = arith.constant 0 : i32
    %c0_i32_1 = arith.constant 0 : i32
    return %c0_i32, %c0_i32_0 : i32, i32
  }
  func.func @transform_2(%arg0: i32) -> (i32, i32) {
    %c0_i32 = arith.constant 0 : i32
    %c0_i32_0 = arith.constant 0 : i32
    %c0_i32_1 = arith.constant 0 : i32
    return %c0_i32, %c0_i32_0 : i32, i32
  }
  func.func @transform_3(%arg0: i32) -> (i32, i32) {
    %c0_i32 = arith.constant 0 : i32
    %c0_i32_0 = arith.constant 0 : i32
    return %arg0, %c0_i32 : i32, i32
  }
}

module attributes {stable_mosaic.version = 11 : i64} {
  func.func @_ln_kernel(%arg0: i32, %arg1: memref<64x24xf32, #tpu.memory_space<vmem>>, %arg2: memref<1x24xf32, #tpu.memory_space<vmem>>, %arg3: memref<1x24xf32, #tpu.memory_space<vmem>>, %arg4: memref<64x24xf32, #tpu.memory_space<vmem>>) attributes {dimension_semantics = [#tpu.dimension_semantics<parallel>], iteration_bounds = array<i64: 2>, scalar_prefetch = 0 : i64, scratch_operands = 0 : i64, tpu.core_type = #tpu.core_type<tc>, window_params = [{transform_indices = @transform_0, window_bounds = array<i64: 64, 24>}, {pipeline_mode = #tpu.pipeline_mode<synchronous>, transform_indices = @transform_1, window_bounds = array<i64: 1, 24>}, {pipeline_mode = #tpu.pipeline_mode<synchronous>, transform_indices = @transform_2, window_bounds = array<i64: 1, 24>}, {transform_indices = @transform_3, window_bounds = array<i64: 64, 24>}]} {
    %c0 = arith.constant 0 : index
    %c0_0 = arith.constant 0 : index
    %0 = vector.load %arg1[%c0, %c0_0] : memref<64x24xf32, #tpu.memory_space<vmem>>, vector<64x24xf32>
    %cst = arith.constant dense<0.000000e+00> : vector<64xf32>
    %1 = vector.multi_reduction <add>, %0, %cst [1] : vector<64x24xf32> to vector<64xf32>
    %2 = vector.shape_cast %1 : vector<64xf32> to vector<64x1xf32>
    %cst_1 = arith.constant 2.400000e+01 : f32
    %3 = vector.broadcast %cst_1 : f32 to vector<64x1xf32>
    %4 = arith.divf %2, %3 : vector<64x1xf32>
    %5 = vector.broadcast %4 : vector<64x1xf32> to vector<64x24xf32>
    %6 = arith.subf %0, %5 : vector<64x24xf32>
    %7 = arith.mulf %6, %6 : vector<64x24xf32>
    %cst_2 = arith.constant dense<0.000000e+00> : vector<64xf32>
    %8 = vector.multi_reduction <add>, %7, %cst_2 [1] : vector<64x24xf32> to vector<64xf32>
    %9 = vector.shape_cast %8 : vector<64xf32> to vector<64x1xf32>
    %cst_3 = arith.constant 2.400000e+01 : f32
    %10 = vector.broadcast %cst_3 : f32 to vector<64x1xf32>
    %11 = arith.divf %9, %10 : vector<64x1xf32>
    %cst_4 = arith.constant 9.99999974E-6 : f32
    %12 = vector.broadcast %cst_4 : f32 to vector<64x1xf32>
    %13 = arith.addf %11, %12 : vector<64x1xf32>
    %14 = math.rsqrt %13 : vector<64x1xf32>
    %15 = vector.broadcast %14 : vector<64x1xf32> to vector<64x24xf32>
    %16 = arith.mulf %6, %15 : vector<64x24xf32>
    %c0_5 = arith.constant 0 : index
    %c0_6 = arith.constant 0 : index
    %17 = vector.load %arg2[%c0_5, %c0_6] : memref<1x24xf32, #tpu.memory_space<vmem>>, vector<1x24xf32>
    %18 = vector.broadcast %17 : vector<1x24xf32> to vector<64x24xf32>
    %19 = arith.mulf %16, %18 : vector<64x24xf32>
    %c0_7 = arith.constant 0 : index
    %c0_8 = arith.constant 0 : index
    %20 = vector.load %arg3[%c0_7, %c0_8] : memref<1x24xf32, #tpu.memory_space<vmem>>, vector<1x24xf32>
    %21 = vector.broadcast %20 : vector<1x24xf32> to vector<64x24xf32>
    %22 = arith.addf %19, %21 : vector<64x24xf32>
    %c0_9 = arith.constant 0 : index
    %c0_10 = arith.constant 0 : index
    %23 = vector.load %arg4[%c0_9, %c0_10] : memref<64x24xf32, #tpu.memory_space<vmem>>, vector<64x24xf32>
    tpu.vector_store %arg4[%c0_9, %c0_10], %22 {strides = array<i32>} : memref<64x24xf32, #tpu.memory_space<vmem>>, vector<64x24xf32>,
    return
  }
  func.func @transform_0(%arg0: i32) -> (i32, i32) {
    %c0_i32 = arith.constant 0 : i32
    %c0_i32_0 = arith.constant 0 : i32
    return %arg0, %c0_i32 : i32, i32
  }
  func.func @transform_1(%arg0: i32) -> (i32, i32) {
    %c0_i32 = arith.constant 0 : i32
    %c0_i32_0 = arith.constant 0 : i32
    %c0_i32_1 = arith.constant 0 : i32
    return %c0_i32, %c0_i32_0 : i32, i32
  }
  func.func @transform_2(%arg0: i32) -> (i32, i32) {
    %c0_i32 = arith.constant 0 : i32
    %c0_i32_0 = arith.constant 0 : i32
    %c0_i32_1 = arith.constant 0 : i32
    return %c0_i32, %c0_i32_0 : i32, i32
  }
  func.func @transform_3(%arg0: i32) -> (i32, i32) {
    %c0_i32 = arith.constant 0 : i32
    %c0_i32_0 = arith.constant 0 : i32
    return %arg0, %c0_i32 : i32, i32
  }
}

</mosaic_0001>

<bundles_post_ra>
// kernel: swin_forward.18
= control target key start
LH: loop header
LB: loop body
LE: loop exit
PB: predicated region body
PF: predicated region fallthrough
CT: control target
= control target key end

     0   :  { %s698_s18 = smov 0   ;;  %s802_s0 = inlined_call_operand.vmem [shape: f32[128,24], index: 0, kind: input, shape index: {}]   ;;  %s803_s1 = inlined_call_operand.vmem [shape: f32[1,24], index: 1, kind: input, shape index: {}]   ;;  %s804_s2 = inlined_call_operand.vmem [shape: f32[1,24], index: 2, kind: input, shape index: {}]   ;;  %s805_s3 = inlined_call_operand.vmem [shape: bf16[24,72], index: 3, kind: input, shape index: {}]   ;;  %s806_s4 = inlined_call_operand.vmem [shape: f32[1,72], index: 4, kind: input, shape index: {}]   ;;  %s807_s5 = inlined_call_operand.vmem [shape: bf16[128,72], index: 5, kind: output, shape index: {}]  }
   0x1 LB: > { %s574_s19 = sadd.s32 4294967295, %s666_s18   ;;  %p578_p0 = scmp.ge.s32.totalorder %s666_s18, 1  ;;  %s666_s18 = sphi %s698_s18, %s15_s18  }
   0x2   : > { %p188_p1 = scmp.lt.s32.totalorder %s666_s18, 3 }
   0x4   : > { %p189_p2 = pnand %p578_p0, %p188_p1 }
   0x5   : > { %s579_s20 = sshll.u32 (!%p189_p2), %s574_s19, 3  ;;  %vm237_vm0 = vcmask (!%p189_p2), 195584   ;;  %v642_v56 = vld [vmem:[%s805_s3] sm:$0xff] (!%p189_p2)   ;;  %v643_v57 = vld [vmem:[%s805_s3 + $0x8] ss:$0 sps:$4 sm:$0xff] (!%p189_p2)   ;;  %vm408_vm1 = vcmask (!%p189_p2), 1043456  }
   0x6   : > { %192 = sbr.rel (%p189_p2) target bundleno = 568 (0x238), region = 40  ;;  %p217_p3 = scmp.lt.s32.totalorder (!%p189_p2), %s579_s20, 15  ;;  %616 = vmatprep.subr.bf16.mxu0 (!%p189_p2), %v642_v56  ;;  %628 = vmatprep.subr.bf16.mxu1 (!%p189_p2), %v642_v56  ;;  %v410_v58 = vsel (!%p189_p2), %vm408_vm1, %v643_v57, 0  ;;  %vm509_vm2 = vcmask (!%p189_p2), 584704  }
   0x7   : > { %617 = vmatpush3.bf16.msra.mxu0 (!%p189_p2), %v642_v56  ;;  %630 = vmatpush3.bf16.msra.mxu1 (!%p189_p2), %v642_v56 }
   0x8   : > { %632 = vmatprep.subr.msk.bf16.mxu0 (!%p189_p2), %vm408_vm1, %v643_v57  ;;  %633 = vmatprep.subr.msk.bf16.mxu1 (!%p189_p2), %vm408_vm1, %v643_v57 }
   0xb   : > { %619 = vmatpush3.bf16.msra.mxu0 (!%p189_p2), %v410_v58  ;;  %631 = vmatpush3.bf16.msra.mxu1 (!%p189_p2), %v410_v58 }
   0xd   : > { %s809_s20 = smov (!%p217_p3, %s579_s20), 15 }
   0xe   : > { %s580_s21 = sshll.u32 %s809_s20, 3  ;;  %s582_s10 = sshll.u32 %s809_s20, 2 }
   0xf   : > { %s220_s24 = scalar_lea.vmem %s802_s0, %s580_s21  ;;  %s226_s13 = scalar_lea.vmem %s807_s5, %s582_s10 }
  0x10   : > { %v229_v0 = vld [vmem:[%s220_s24] sm:$0xff]  ;;  %v230_v2 = vld [vmem:[%s220_s24 + $0x8] sm:$0xff]  ;;  %v231_v8 = vld [vmem:[%s220_s24 + $0x10] sm:$0xff] }
  0x11   : > { %v233_v1 = vld [vmem:[%s220_s24 + $0x20] sm:$0xff]  ;;  %v238_v3 = vsel %vm237_vm0, %v229_v0, 0.0  ;;  %v234_v5 = vld [vmem:[%s220_s24 + $0x28] sm:$0xff]  ;;  %v241_v6 = vsel %vm237_vm0, %v230_v2, 0.0  ;;  %v232_v9 = vld [vmem:[%s220_s24 + $0x18] sm:$0xff]  ;;  %v244_v10 = vsel %vm237_vm0, %v231_v8, 0.0 }
  0x12   : > { %v250_v4 = vsel %vm237_vm0, %v233_v1, 0.0  ;;  %239 = vadd.xlane.f32.xlu0 %v238_v3  ;;  %v253_v7 = vsel %vm237_vm0, %v234_v5, 0.0  ;;  %v247_v11 = vsel %vm237_vm0, %v232_v9, 0.0  ;;  %v235_v12 = vld [vmem:[%s220_s24 + $0x30] sm:$0xff]  ;;  %v236_v13 = vld [vmem:[%s220_s24 + $0x38] sm:$0xff] }
  0x13   : > { %251 = vadd.xlane.f32.xlu1 %v250_v4  ;;  %v256_v14 = vsel %vm237_vm0, %v235_v12, 0.0  ;;  %v259_v15 = vsel %vm237_vm0, %v236_v13, 0.0 }
  0x16   : > { %242 = vadd.xlane.f32.xlu0 %v241_v6 }
  0x17   : > { %254 = vadd.xlane.f32.xlu1 %v253_v7 }
  0x1a   : > { %245 = vadd.xlane.f32.xlu0 %v244_v10 }
  0x1b   : > { %248 = vadd.xlane.f32.xlu1 %v247_v11 }
  0x1e   : > { %257 = vadd.xlane.f32.xlu0 %v256_v14 }
  0x1f   : > { %260 = vadd.xlane.f32.xlu1 %v259_v15 }
  0x9f   : > { %v240_v16 = vpop.xlane.xlu0 %239 }
  0xa0   : > { %v252_v17 = vpop.xlane.xlu1 %251  ;;  %v263_v18 = vmul.f32 0.041666668, %v240_v16 }
  0xa1   : > { %v267_v19 = vmul.f32 0.041666668, %v252_v17 }
  0xa2   : > { %v720_v20 = vsub.f32 %v229_v0, %v263_v18 }
  0xa3   : > { %v722_v21 = vsub.f32 %v233_v1, %v267_v19  ;;  %v243_v22 = vpop.xlane.xlu0 %242 }
  0xa4   : > { %v255_v23 = vpop.xlane.xlu1 %254  ;;  %v264_v24 = vmul.f32 0.041666668, %v243_v22  ;;  %v279_v26 = vmul.f32 %v720_v20, %v720_v20  ;;  %v583_v22 = vld [vmem:[%s803_s1] ss:$0 sm:$0xff] }
  0xa5   : > { %v268_v25 = vmul.f32 0.041666668, %v255_v23  ;;  %v283_v27 = vmul.f32 %v722_v21, %v722_v21 }
  0xa6   : > { %v728_v28 = vsub.f32 %v230_v2, %v264_v24  ;;  %v287_v30 = vsel %vm237_vm0, %v279_v26, 0.0 }
  0xa7   : > { %v730_v29 = vsub.f32 %v234_v5, %v268_v25  ;;  %288 = vadd.xlane.f32.xlu0 %v287_v30  ;;  %v246_v31 = vpop.xlane.xlu0 %245  ;;  %v299_v33 = vsel %vm237_vm0, %v283_v27, 0.0  ;;  %v584_v30 = vld [vmem:[%s804_s2] ss:$0 sm:$0xff] }
  0xa8   : > { %v249_v32 = vpop.xlane.xlu1 %248  ;;  %v265_v34 = vmul.f32 0.041666668, %v246_v31  ;;  %v280_v36 = vmul.f32 %v728_v28, %v728_v28 }
  0xa9   : > { %v266_v35 = vmul.f32 0.041666668, %v249_v32  ;;  %v284_v37 = vmul.f32 %v730_v29, %v730_v29 }
  0xaa   : > { %v738_v38 = vsub.f32 %v231_v8, %v265_v34  ;;  %v290_v40 = vsel %vm237_vm0, %v280_v36, 0.0 }
  0xab   : > { %v740_v39 = vsub.f32 %v232_v9, %v266_v35  ;;  %300 = vadd.xlane.f32.xlu0 %v299_v33  ;;  %291 = vadd.xlane.f32.xlu1 %v290_v40  ;;  %v258_v41 = vpop.xlane.xlu0 %257  ;;  %v302_v43 = vsel %vm237_vm0, %v284_v37, 0.0 }
  0xac   : > { %v261_v42 = vpop.xlane.xlu1 %260  ;;  %v269_v44 = vmul.f32 0.041666668, %v258_v41  ;;  %v281_v46 = vmul.f32 %v738_v38, %v738_v38 }
  0xad   : > { %v270_v45 = vmul.f32 0.041666668, %v261_v42  ;;  %v282_v47 = vmul.f32 %v740_v39, %v740_v39 }
  0xae   : > { %v748_v48 = vsub.f32 %v235_v12, %v269_v44  ;;  %v293_v50 = vsel %vm237_vm0, %v281_v46, 0.0 }
  0xaf   : > { %v750_v49 = vsub.f32 %v236_v13, %v270_v45  ;;  %303 = vadd.xlane.f32.xlu1 %v302_v43  ;;  %294 = vadd.xlane.f32.xlu0 %v293_v50  ;;  %v296_v51 = vsel %vm237_vm0, %v282_v47, 0.0 }
  0xb0   : > { %v285_v52 = vmul.f32 %v748_v48, %v748_v48 }
  0xb1   : > { %v286_v53 = vmul.f32 %v750_v49, %v750_v49 }
  0xb2   : > { %v305_v54 = vsel %vm237_vm0, %v285_v52, 0.0 }
  0xb3   : > { %297 = vadd.xlane.f32.xlu1 %v296_v51  ;;  %306 = vadd.xlane.f32.xlu0 %v305_v54  ;;  %v308_v55 = vsel %vm237_vm0, %v286_v53, 0.0 }
  0xb7   : > { %309 = vadd.xlane.f32.xlu1 %v308_v55 }
 0x134   : > { %v289_v59 = vpop.xlane.xlu0 %288 }
 0x135   : > { %v311_v60 = vmul.f32 0.041666668, %v289_v59 }
 0x137   : > { %v319_v61 = vadd.f32 1e-05, %v311_v60 }
 0x138   : > { %v292_v62 = vpop.xlane.xlu1 %291  ;;  %v301_v63 = vpop.xlane.xlu0 %300 }
 0x139   : > { %644 = vrsqrt.f32 %v319_v61  ;;  %v312_v0 = vmul.f32 0.041666668, %v292_v62  ;;  %v315_v1 = vmul.f32 0.041666668, %v301_v63 }
 0x13b   : > { %v320_v2 = vadd.f32 1e-05, %v312_v0  ;;  %v323_v3 = vadd.f32 1e-05, %v315_v1 }
 0x13c   : > { %v304_v4 = vpop.xlane.xlu1 %303  ;;  %v295_v5 = vpop.xlane.xlu0 %294 }
 0x13d   : > { %646 = vrsqrt.f32 %v320_v2  ;;  %v316_v6 = vmul.f32 0.041666668, %v304_v4  ;;  %v313_v7 = vmul.f32 0.041666668, %v295_v5 }
 0x13e   : > { %648 = vrsqrt.f32 %v323_v3 }
 0x13f   : > { %v324_v8 = vadd.f32 1e-05, %v316_v6  ;;  %v321_v9 = vadd.f32 1e-05, %v313_v7 }
 0x140   : > { %v298_v10 = vpop.xlane.xlu1 %297  ;;  %v307_v11 = vpop.xlane.xlu0 %306 }
 0x141   : > { %650 = vrsqrt.f32 %v324_v8  ;;  %v314_v12 = vmul.f32 0.041666668, %v298_v10  ;;  %v317_v13 = vmul.f32 0.041666668, %v307_v11 }
 0x142   : > { %652 = vrsqrt.f32 %v321_v9 }
 0x143   : > { %v645_v14 = vpop.eup %644  ;;  %v322_v15 = vadd.f32 1e-05, %v314_v12  ;;  %v325_v16 = vadd.f32 1e-05, %v317_v13 }
 0x144   : > { %v310_v17 = vpop.xlane.xlu1 %309  ;;  %v335_v18 = vmul.f32 %v645_v14, %v720_v20 }
 0x145   : > { %654 = vrsqrt.f32 %v322_v15  ;;  %v318_v19 = vmul.f32 0.041666668, %v310_v17 }
 0x146   : > { %656 = vrsqrt.f32 %v325_v16  ;;  %v350_v27 = vmul.f32 %v583_v22, %v335_v18 }
 0x147   : > { %v647_v23 = vpop.eup %646  ;;  %v326_v24 = vadd.f32 1e-05, %v318_v19 }
 0x148   : > { %v649_v25 = vpop.eup %648  ;;  %v336_v26 = vmul.f32 %v647_v23, %v728_v28  ;;  %v365_v34 = vadd.f32 %v584_v30, %v350_v27 }
 0x149   : > { %658 = vrsqrt.f32 %v326_v24  ;;  %v339_v20 = vmul.f32 %v649_v25, %v722_v21 }
 0x14a   : > { %v351_v31 = vmul.f32 %v583_v22, %v336_v26 }
 0x14b   : > { %v651_v32 = vpop.eup %650  ;;  %v354_v37 = vmul.f32 %v583_v22, %v339_v20 }
 0x14c   : > { %v653_v33 = vpop.eup %652  ;;  %v366_v35 = vadd.f32 %v584_v30, %v351_v31  ;;  %v340_v36 = vmul.f32 %v651_v32, %v730_v29 }
 0x14d   : > { %v337_v40 = vmul.f32 %v653_v33, %v738_v38  ;;  %v369_v45 = vadd.f32 %v584_v30, %v354_v37 }
 0x14e   : > { %v373_v41 = vpack.c.bf16 %v366_v35, %v365_v34  ;;  %v355_v28 = vmul.f32 %v583_v22, %v340_v36 }
 0x14f   : > { %v655_v42 = vpop.eup %654  ;;  %v352_v46 = vmul.f32 %v583_v22, %v337_v40 }
 0x150   : > { %v657_v43 = vpop.eup %656  ;;  %v338_v44 = vmul.f32 %v655_v42, %v740_v39  ;;  %620 = vmatprep.mubr.msk.bf16.mxu0 %vm237_vm0, %v373_v41  ;;  %v370_v21 = vadd.f32 %v584_v30, %v355_v28 }
 0x151   : > { %v341_v47 = vmul.f32 %v657_v43, %v748_v48  ;;  %v367_v38 = vadd.f32 %v584_v30, %v352_v46  ;;  %v585_v48 = vld [vmem:[%s806_s4] ss:$0 sm:$0xff] }
 0x152   : > { %v375_v50 = vpack.c.bf16 %v370_v21, %v369_v45  ;;  %v353_v51 = vmul.f32 %v583_v22, %v338_v44 }
 0x153   : > { %v659_v29 = vpop.eup %658  ;;  %v356_v54 = vmul.f32 %v583_v22, %v341_v47 }
 0x154   : > { %v342_v52 = vmul.f32 %v659_v29, %v750_v49  ;;  %624 = vmatprep.mubr.msk.bf16.mxu1 %vm237_vm0, %v375_v50  ;;  %v368_v53 = vadd.f32 %v584_v30, %v353_v51 }
 0x155   : > { %v371_v56 = vadd.f32 %v584_v30, %v356_v54 }
 0x156   : > { %v374_v55 = vpack.c.bf16 %v368_v53, %v367_v38  ;;  %v357_v39 = vmul.f32 %v583_v22, %v342_v52 }
 0x158   : > { %621 = vmatmul.mubr.msk.bf16.vlgmr.msra.gmra.mrb[0].mxu0 %vm237_vm0, %v374_v55  ;;  %v372_v57 = vadd.f32 %v584_v30, %v357_v39 }
 0x15a   : > { %v376_v58 = vpack.c.bf16 %v372_v57, %v371_v56 }
 0x15c   : > { %625 = vmatmul.mubr.msk.bf16.vlgmr.msra.gmra.mrb[0].mxu1 %vm237_vm0, %v376_v58 }
 0x22b   : > { %v622_v49 = vpop.f32.mrb[0].mxu0 }
 0x22c   : > { %v455_v59 = vadd.f32 %v622_v49, %v585_v48  ;;  %v446_v60 = vpop.f32.mrb[1].mxu0 }
 0x22d   : > { %v447_v61 = vadd.f32 %v585_v48, %v446_v60  ;;  %v623_v62 = vpop.f32.mrb[2].mxu0 }
 0x22e   : > { %v604_v63 = vpack.c.bf16 %v455_v59, %v455_v59  ;;  %v458_v0 = vadd.f32 %v623_v62, %v585_v48  ;;  %v449_v1 = vpop.f32.mrb[3].mxu0 }
 0x22f   : > { %v602_v2 = vpack.c.bf16 %v447_v61, %v447_v61  ;;  %v450_v3 = vadd.f32 %v585_v48, %v449_v1  ;;  %v626_v4 = vpop.f32.mrb[0].mxu1 }
 0x230   : > { %512 = vst.msk [vmem:[%s226_s13 + $0x8] sm:$0xf] %vm509_vm2, %v604_v63  ;;  %v605_v5 = vpack.c.bf16 %v458_v0, %v458_v0  ;;  %v471_v6 = vadd.f32 %v626_v4, %v585_v48  ;;  %v462_v7 = vpop.f32.mrb[1].mxu1 }
 0x231   : > { %510 = vst.msk [vmem:[%s226_s13] sm:$0xf] %vm509_vm2, %v602_v2  ;;  %v603_v8 = vpack.c.bf16 %v450_v3, %v450_v3  ;;  %v463_v9 = vadd.f32 %v585_v48, %v462_v7  ;;  %v627_v10 = vpop.f32.mrb[2].mxu1 }
 0x232   : > { %513 = vst.msk [vmem:[%s226_s13 + $0xc] sm:$0xf] %vm509_vm2, %v605_v5  ;;  %v608_v11 = vpack.c.bf16 %v471_v6, %v471_v6  ;;  %v474_v12 = vadd.f32 %v627_v10, %v585_v48  ;;  %v465_v13 = vpop.f32.mrb[3].mxu1 }
 0x233   : > { %511 = vst.msk [vmem:[%s226_s13 + $0x4] sm:$0xf] %vm509_vm2, %v603_v8  ;;  %v606_v14 = vpack.c.bf16 %v463_v9, %v463_v9  ;;  %v466_v15 = vadd.f32 %v585_v48, %v465_v13 }
 0x234   : > { %516 = vst.msk [vmem:[%s226_s13 + $0x18] sm:$0xf] %vm509_vm2, %v608_v11  ;;  %v609_v16 = vpack.c.bf16 %v474_v12, %v474_v12 }
 0x235   : > { %514 = vst.msk [vmem:[%s226_s13 + $0x10] sm:$0xf] %vm509_vm2, %v606_v14  ;;  %v607_v17 = vpack.c.bf16 %v466_v15, %v466_v15 }
 0x236   : > { %517 = vst.msk [vmem:[%s226_s13 + $0x1c] sm:$0xf] %vm509_vm2, %v609_v16 }
 0x237   : > { %515 = vst.msk [vmem:[%s226_s13 + $0x14] sm:$0xf] %vm509_vm2, %v607_v17 }
 0x238 PF: > { %s15_s18 = sadd.s32 1, %s666_s18  }
 0x239   : > { %p12_p4 = scmp.ge.s32.totalorder %s15_s18, 4  }
 0x23b   :  { %14 = sbr.rel (!%p12_p4) target bundleno = 1 (0x1), region = 70 }

// kernel: swin_forward.17
= control target key start
LH: loop header
LB: loop body
LE: loop exit
PB: predicated region body
PF: predicated region fallthrough
CT: control target
= control target key end

     0   :  { %s630_s18 = smov 0   ;;  %s740_s0 = inlined_call_operand.vmem [shape: f32[128,8], index: 0, kind: input, shape index: {}]   ;;  %s741_s1 = inlined_call_operand.vmem [shape: bf16[8,24], index: 1, kind: input, shape index: {}]   ;;  %s742_s2 = inlined_call_operand.vmem [shape: f32[1,24], index: 2, kind: input, shape index: {}]   ;;  %s743_s3 = inlined_call_operand.vmem [shape: f32[1,24], index: 3, kind: input, shape index: {}]   ;;  %s744_s4 = inlined_call_operand.vmem [shape: f32[1,24], index: 4, kind: input, shape index: {}]   ;;  %s745_s5 = inlined_call_operand.vmem [shape: f32[128,24], index: 5, kind: output, shape index: {}]  }
   0x1 LB: > { %s531_s19 = sadd.s32 4294967295, %s598_s18   ;;  %p535_p0 = scmp.ge.s32.totalorder %s598_s18, 1  ;;  %s598_s18 = sphi %s630_s18, %s15_s18  }
   0x2   : > { %p188_p1 = scmp.lt.s32.totalorder %s598_s18, 3 }
   0x4   : > { %p189_p2 = pnand %p535_p0, %p188_p1 }
   0x5   : > { %v241_v0 = vld [vmem:[%s741_s1] sm:$0xf] (!%p189_p2)  ;;  %vm262_vm0 = vcmask (!%p189_p2), 1043456   ;;  %s536_s22 = sshll.u32 (!%p189_p2), %s531_s19, 3  ;;  %vm249_vm1 = vcmask (!%p189_p2), 64512   ;;  %vm331_vm2 = vcmask (!%p189_p2), 195584  }
   0x6   : > { %192 = sbr.rel (%p189_p2) target bundleno = 565 (0x235), region = 40  ;;  %566 = vmatprep.subr.msk.bf16.mxu0 (!%p189_p2), %vm262_vm0, %v241_v0  ;;  %567 = vmatprep.subr.msk.bf16.mxu1 (!%p189_p2), %vm262_vm0, %v241_v0  ;;  %v264_v1 = vsel (!%p189_p2), %vm262_vm0, %v241_v0, 0  ;;  %p217_p3 = scmp.lt.s32.totalorder (!%p189_p2), %s536_s22, 15  ;;  %v540_v14 = vld [vmem:[%s742_s2] ss:$0 sm:$0xff] (!%p189_p2) }
   0x7   : > { %555 = vmatpush3.bf16.msra.mxu0 (!%p189_p2), %v264_v1  ;;  %565 = vmatpush3.bf16.msra.mxu1 (!%p189_p2), %v264_v1 }
   0xd   : > { %s747_s22 = smov (!%p217_p3, %s536_s22), 15 }
   0xe   : > { %s537_s23 = sshll.u32 %s747_s22, 3 }
   0xf   : > { %s220_s26 = scalar_lea.vmem %s740_s0, %s537_s23  ;;  %s712_s10 = scalar_lea.vmem %s745_s5, %s537_s23 }
  0x10   : > { %v229_v2 = vld [vmem:[%s220_s26] sm:$0xff]  ;;  %v230_v3 = vld [vmem:[%s220_s26 + $0x8] sm:$0xff]  ;;  %v231_v4 = vld [vmem:[%s220_s26 + $0x10] sm:$0xff] }
  0x11   : > { %v237_v5 = vpack.c.bf16 %v230_v3, %v229_v2  ;;  %v232_v6 = vld [vmem:[%s220_s26 + $0x18] sm:$0xff]  ;;  %v233_v7 = vld [vmem:[%s220_s26 + $0x20] sm:$0xff]  ;;  %v234_v8 = vld [vmem:[%s220_s26 + $0x28] sm:$0xff] }
  0x12   : > { %v238_v9 = vpack.c.bf16 %v232_v6, %v231_v4  ;;  %v239_v10 = vpack.c.bf16 %v234_v8, %v233_v7  ;;  %v235_v11 = vld [vmem:[%s220_s26 + $0x30] sm:$0xff]  ;;  %v236_v12 = vld [vmem:[%s220_s26 + $0x38] sm:$0xff] }
  0x13   : > { %556 = vmatprep.mubr.msk.bf16.mxu0 %vm249_vm1, %v237_v5  ;;  %v240_v13 = vpack.c.bf16 %v236_v12, %v235_v11 }
  0x14   : > { %557 = vmatmul.mubr.msk.bf16.vlgmr.msra.gmra.mrb[0].mxu0 %vm249_vm1, %v238_v9  ;;  %560 = vmatprep.mubr.msk.bf16.mxu1 %vm249_vm1, %v239_v10 }
  0x15   : > { %561 = vmatmul.mubr.msk.bf16.vlgmr.msra.gmra.mrb[0].mxu1 %vm249_vm1, %v240_v13 }
  0xe7   : > { %v558_v15 = vpop.f32.mrb[0].mxu0 }
  0xe8   : > { %v309_v16 = vadd.f32 %v558_v15, %v540_v14  ;;  %v300_v17 = vpop.f32.mrb[1].mxu0  ;;  %v562_v18 = vpop.f32.mrb[0].mxu1 }
  0xe9   : > { %v301_v19 = vadd.f32 %v540_v14, %v300_v17  ;;  %v559_v20 = vpop.f32.mrb[2].mxu0  ;;  %v316_v21 = vpop.f32.mrb[1].mxu1  ;;  %v325_v35 = vadd.f32 %v562_v18, %v540_v14 }
  0xea   : > { %v312_v22 = vadd.f32 %v559_v20, %v540_v14  ;;  %v317_v23 = vadd.f32 %v540_v14, %v316_v21  ;;  %v303_v24 = vpop.f32.mrb[3].mxu0  ;;  %v563_v25 = vpop.f32.mrb[2].mxu1  ;;  %v338_v26 = vsel %vm331_vm2, %v309_v16, 0.0 }
  0xeb   : > { %v319_v27 = vpop.f32.mrb[3].mxu1  ;;  %339 = vadd.xlane.f32.xlu1 %v338_v26  ;;  %v332_v28 = vsel %vm331_vm2, %v301_v19, 0.0  ;;  %v304_v32 = vadd.f32 %v540_v14, %v303_v24  ;;  %v328_v33 = vadd.f32 %v563_v25, %v540_v14  ;;  %v350_v38 = vsel %vm331_vm2, %v325_v35, 0.0 }
  0xec   : > { %333 = vadd.xlane.f32.xlu0 %v332_v28  ;;  %v344_v29 = vsel %vm331_vm2, %v317_v23, 0.0  ;;  %v320_v30 = vadd.f32 %v540_v14, %v319_v27  ;;  %v341_v31 = vsel %vm331_vm2, %v312_v22, 0.0 }
  0xed   : > { %v335_v36 = vsel %vm331_vm2, %v304_v32, 0.0  ;;  %v353_v37 = vsel %vm331_vm2, %v328_v33, 0.0 }
  0xee   : > { %v347_v34 = vsel %vm331_vm2, %v320_v30, 0.0 }
  0xef   : > { %342 = vadd.xlane.f32.xlu1 %v341_v31 }
  0xf0   : > { %345 = vadd.xlane.f32.xlu0 %v344_v29 }
  0xf3   : > { %348 = vadd.xlane.f32.xlu1 %v347_v34 }
  0xf4   : > { %336 = vadd.xlane.f32.xlu0 %v335_v36 }
  0xf7   : > { %354 = vadd.xlane.f32.xlu1 %v353_v37 }
  0xf8   : > { %351 = vadd.xlane.f32.xlu0 %v350_v38 }
 0x178   : > { %v340_v39 = vpop.xlane.xlu1 %339 }
 0x179   : > { %v359_v40 = vmul.f32 0.041666668, %v340_v39  ;;  %v334_v41 = vpop.xlane.xlu0 %333  ;;  %v546_v39 = vld [vmem:[%s744_s4] ss:$0 sm:$0xff] }
 0x17a   : > { %v357_v42 = vmul.f32 0.041666668, %v334_v41 }
 0x17b   : > { %v660_v43 = vsub.f32 %v309_v16, %v359_v40 }
 0x17c   : > { %v662_v44 = vsub.f32 %v301_v19, %v357_v42  ;;  %v343_v45 = vpop.xlane.xlu1 %342 }
 0x17d   : > { %v360_v46 = vmul.f32 0.041666668, %v343_v45  ;;  %v346_v47 = vpop.xlane.xlu0 %345  ;;  %v375_v48 = vmul.f32 %v660_v43, %v660_v43 }
 0x17e   : > { %v361_v49 = vmul.f32 0.041666668, %v346_v47  ;;  %v373_v52 = vmul.f32 %v662_v44, %v662_v44 }
 0x17f   : > { %v666_v50 = vsub.f32 %v312_v22, %v360_v46  ;;  %v387_v51 = vsel %vm331_vm2, %v375_v48, 0.0 }
 0x180   : > { %v671_v53 = vsub.f32 %v317_v23, %v361_v49  ;;  %v349_v54 = vpop.xlane.xlu1 %348  ;;  %388 = vadd.xlane.f32.xlu0 %v387_v51  ;;  %v381_v60 = vsel %vm331_vm2, %v373_v52, 0.0 }
 0x181   : > { %v362_v55 = vmul.f32 0.041666668, %v349_v54  ;;  %v337_v56 = vpop.xlane.xlu0 %336  ;;  %v376_v57 = vmul.f32 %v666_v50, %v666_v50 }
 0x182   : > { %v358_v58 = vmul.f32 0.041666668, %v337_v56  ;;  %v377_v61 = vmul.f32 %v671_v53, %v671_v53 }
 0x183   : > { %v390_v59 = vsel %vm331_vm2, %v376_v57, 0.0  ;;  %v679_v62 = vsub.f32 %v320_v30, %v362_v55 }
 0x184   : > { %v681_v63 = vsub.f32 %v304_v32, %v358_v58  ;;  %391 = vadd.xlane.f32.xlu1 %v390_v59  ;;  %v355_v0 = vpop.xlane.xlu1 %354  ;;  %382 = vadd.xlane.f32.xlu0 %v381_v60  ;;  %v393_v5 = vsel %vm331_vm2, %v377_v61, 0.0 }
 0x185   : > { %v364_v1 = vmul.f32 0.041666668, %v355_v0  ;;  %v352_v2 = vpop.xlane.xlu0 %351  ;;  %v378_v9 = vmul.f32 %v679_v62, %v679_v62 }
 0x186   : > { %v363_v3 = vmul.f32 0.041666668, %v352_v2  ;;  %v374_v4 = vmul.f32 %v681_v63, %v681_v63 }
 0x187   : > { %v686_v6 = vsub.f32 %v328_v33, %v364_v1  ;;  %v396_v11 = vsel %vm331_vm2, %v378_v9, 0.0 }
 0x188   : > { %v688_v7 = vsub.f32 %v325_v35, %v363_v3  ;;  %394 = vadd.xlane.f32.xlu0 %v393_v5  ;;  %v384_v8 = vsel %vm331_vm2, %v374_v4, 0.0  ;;  %v545_v35 = vld [vmem:[%s743_s3] ss:$0 sm:$0xff] }
 0x189   : > { %385 = vadd.xlane.f32.xlu1 %v384_v8  ;;  %v380_v13 = vmul.f32 %v686_v6, %v686_v6 }
 0x18a   : > { %v379_v10 = vmul.f32 %v688_v7, %v688_v7 }
 0x18b   : > { %v402_v14 = vsel %vm331_vm2, %v380_v13, 0.0 }
 0x18c   : > { %v399_v12 = vsel %vm331_vm2, %v379_v10, 0.0 }
 0x18d   : > { %397 = vadd.xlane.f32.xlu1 %v396_v11  ;;  %400 = vadd.xlane.f32.xlu0 %v399_v12 }
 0x191   : > { %403 = vadd.xlane.f32.xlu1 %v402_v14 }
 0x20d   : > { %v389_v15 = vpop.xlane.xlu0 %388 }
 0x20e   : > { %v407_v16 = vmul.f32 0.041666668, %v389_v15 }
 0x210   : > { %v415_v17 = vadd.f32 1e-05, %v407_v16 }
 0x211   : > { %v392_v18 = vpop.xlane.xlu1 %391  ;;  %v383_v19 = vpop.xlane.xlu0 %382 }
 0x212   : > { %576 = vrsqrt.f32 %v415_v17  ;;  %v408_v20 = vmul.f32 0.041666668, %v392_v18  ;;  %v405_v21 = vmul.f32 0.041666668, %v383_v19 }
 0x214   : > { %v416_v22 = vadd.f32 1e-05, %v408_v20  ;;  %v413_v23 = vadd.f32 1e-05, %v405_v21 }
 0x215   : > { %v395_v24 = vpop.xlane.xlu0 %394 }
 0x216   : > { %578 = vrsqrt.f32 %v416_v22  ;;  %v409_v25 = vmul.f32 0.041666668, %v395_v24  ;;  %v386_v26 = vpop.xlane.xlu1 %385 }
 0x217   : > { %580 = vrsqrt.f32 %v413_v23  ;;  %v406_v27 = vmul.f32 0.041666668, %v386_v26 }
 0x218   : > { %v417_v28 = vadd.f32 1e-05, %v409_v25 }
 0x219   : > { %v414_v29 = vadd.f32 1e-05, %v406_v27 }
 0x21a   : > { %582 = vrsqrt.f32 %v417_v28  ;;  %v398_v30 = vpop.xlane.xlu1 %397  ;;  %v401_v31 = vpop.xlane.xlu0 %400 }
 0x21b   : > { %584 = vrsqrt.f32 %v414_v29  ;;  %v410_v32 = vmul.f32 0.041666668, %v398_v30  ;;  %v411_v33 = vmul.f32 0.041666668, %v401_v31 }
 0x21c   : > { %v577_v34 = vpop.eup %576 }
 0x21d   : > { %v431_v36 = vmul.f32 %v577_v34, %v660_v43  ;;  %v418_v37 = vadd.f32 1e-05, %v410_v32  ;;  %v419_v38 = vadd.f32 1e-05, %v411_v33 }
 0x21e   : > { %v404_v40 = vpop.xlane.xlu1 %403 }
 0x21f   : > { %v446_v41 = vmul.f32 %v545_v35, %v431_v36  ;;  %586 = vrsqrt.f32 %v418_v37  ;;  %v412_v42 = vmul.f32 0.041666668, %v404_v40 }
 0x220   : > { %v579_v45 = vpop.eup %578  ;;  %588 = vrsqrt.f32 %v419_v38 }
 0x221   : > { %v581_v43 = vpop.eup %580  ;;  %v461_v46 = vadd.f32 %v546_v39, %v446_v41  ;;  %v432_v47 = vmul.f32 %v579_v45, %v666_v50  ;;  %v420_v48 = vadd.f32 1e-05, %v412_v42 }
 0x222   : > { %v429_v49 = vmul.f32 %v581_v43, %v662_v44 }
 0x223   : > { %469 = vst.msk [vmem:[%s712_s10 + $0x10] sm:$0xff] %vm331_vm2, %v461_v46  ;;  %v447_v51 = vmul.f32 %v545_v35, %v432_v47  ;;  %590 = vrsqrt.f32 %v420_v48 }
 0x224   : > { %v583_v52 = vpop.eup %582  ;;  %v444_v54 = vmul.f32 %v545_v35, %v429_v49 }
 0x225   : > { %v585_v55 = vpop.eup %584  ;;  %v462_v56 = vadd.f32 %v546_v39, %v447_v51  ;;  %v433_v57 = vmul.f32 %v583_v52, %v671_v53 }
 0x226   : > { %v459_v58 = vadd.f32 %v546_v39, %v444_v54  ;;  %v430_v59 = vmul.f32 %v585_v55, %v681_v63 }
 0x227   : > { %470 = vst.msk [vmem:[%s712_s10 + $0x18] sm:$0xff] %vm331_vm2, %v462_v56  ;;  %v448_v50 = vmul.f32 %v545_v35, %v433_v57 }
 0x228   : > { %467 = vst.msk [vmem:[%s712_s10] sm:$0xff] %vm331_vm2, %v459_v58  ;;  %v445_v44 = vmul.f32 %v545_v35, %v430_v59 }
 0x229   : > { %v587_v60 = vpop.eup %586  ;;  %v463_v61 = vadd.f32 %v546_v39, %v448_v50 }
 0x22a   : > { %v589_v0 = vpop.eup %588  ;;  %v460_v1 = vadd.f32 %v546_v39, %v445_v44  ;;  %v434_v2 = vmul.f32 %v587_v60, %v679_v62 }
 0x22b   : > { %471 = vst.msk [vmem:[%s712_s10 + $0x20] sm:$0xff] %vm331_vm2, %v463_v61  ;;  %v435_v53 = vmul.f32 %v589_v0, %v688_v7 }
 0x22c   : > { %468 = vst.msk [vmem:[%s712_s10 + $0x8] sm:$0xff] %vm331_vm2, %v460_v1  ;;  %v449_v63 = vmul.f32 %v545_v35, %v434_v2 }
 0x22d   : > { %v591_v3 = vpop.eup %590  ;;  %v450_v4 = vmul.f32 %v545_v35, %v435_v53 }
 0x22e   : > { %v464_v5 = vadd.f32 %v546_v39, %v449_v63  ;;  %v436_v8 = vmul.f32 %v591_v3, %v686_v6 }
 0x22f   : > { %v465_v9 = vadd.f32 %v546_v39, %v450_v4 }
 0x230   : > { %472 = vst.msk [vmem:[%s712_s10 + $0x28] sm:$0xff] %vm331_vm2, %v464_v5  ;;  %v451_v10 = vmul.f32 %v545_v35, %v436_v8 }
 0x231   : > { %473 = vst.msk [vmem:[%s712_s10 + $0x30] sm:$0xff] %vm331_vm2, %v465_v9 }
 0x232   : > { %v466_v11 = vadd.f32 %v546_v39, %v451_v10 }
 0x234   : > { %474 = vst.msk [vmem:[%s712_s10 + $0x38] sm:$0xff] %vm331_vm2, %v466_v11 }
 0x235 PF: > { %s15_s18 = sadd.s32 1, %s598_s18  }
 0x236   : > { %p12_p4 = scmp.ge.s32.totalorder %s15_s18, 4  }
 0x238   :  { %14 = sbr.rel (!%p12_p4) target bundleno = 1 (0x1), region = 70 }

// kernel: swin_forward.19
= control target key start
LH: loop header
LB: loop body
LE: loop exit
PB: predicated region body
PF: predicated region fallthrough
CT: control target
= control target key end

     0   :  { %s3936_s15 = smov 0   ;;  %s4680_s0 = inlined_call_operand.vmem [shape: bf16[16,8,72], index: 0, kind: input, shape index: {}]   ;;  %s4681_s1 = inlined_call_operand.vmem [shape: f32[3,8,8], index: 1, kind: input, shape index: {}]   ;;  %s4682_s2 = inlined_call_operand.vmem [shape: bf16[24,24], index: 2, kind: input, shape index: {}]   ;;  %s4683_s3 = inlined_call_operand.vmem [shape: f32[1,24], index: 3, kind: input, shape index: {}]   ;;  %s4684_s4 = inlined_call_operand.vmem [shape: f32[16,8,24], index: 4, kind: output, shape index: {}]  }
   0x1 LB: > { %s3208_s16 = sadd.s32 4294967295, %s3897_s15   ;;  %p3212_p0 = scmp.ge.s32.totalorder %s3897_s15, 1  ;;  %s3897_s15 = sphi %s3936_s15, %s14_s15  }
   0x2   : > { %p163_p1 = scmp.lt.s32.totalorder %s3897_s15, 3 }
   0x4   : > { %p164_p2 = pnand %p3212_p0, %p163_p1 }
   0x5   : > { %s3213_s17 = sshll.u32 (!%p164_p2), %s3208_s16, 3  ;;  %v3899_v0 = vmov (!%p164_p2), 0.0   ;;  %vm3900_vm0 = vmmov (!%p164_p2), 0   ;;  %s3901_s22 = smov (!%p164_p2), 104   ;;  %vm218_vm1 = vcmask (!%p164_p2), 64512   ;;  %v202_v33 = vld [vmem:[%s4681_s1] sm:$0xff] (!%p164_p2) }
   0x6   : > { %167 = sbr.rel (%p164_p2) target bundleno = 2552 (0x9f8), region = 36  ;;  %p190_p3 = scmp.lt.s32.totalorder (!%p164_p2), %s3213_s17, 15  ;;  %3408 = vmatprep.subr.bf16.mxu1 (!%p164_p2), %v3899_v0  ;;  %3420 = vmatprep.subr.bf16.mxu0 (!%p164_p2), %v3899_v0  ;;  %vm723_vm2 = vcmask (!%p164_p2), 1043456   ;;  %vm2999_vm3 = vcmask (!%p164_p2), 130048   ;;  %vm3048_vm4 = vcmask (!%p164_p2), 195584  }
   0x7   : > { %3410 = vmatprep.mubr.msk.bf16.mxu1 (!%p164_p2), %vm3900_vm0, %v3899_v0  ;;  %3422 = vmatprep.mubr.msk.bf16.mxu0 (!%p164_p2), %vm3900_vm0, %v3899_v0  ;;  %s3902_s25 = smov (!%p164_p2), 80   ;;  %s3903_s26 = smov (!%p164_p2), 96  }
   0x8   : > { %s3904_s27 = smov (!%p164_p2), 120   ;;  %s3905_s28 = smov (!%p164_p2), 72  }
   0x9   : > { %s3906_s5 = smov (!%p164_p2), 88   ;;  %s3907_s6 = smov (!%p164_p2), 112  }
   0xa   : > { %s3908_s7 = smov (!%p164_p2), 64   ;;  %s3909_s10 = smov (!%p164_p2), 8  }
   0xb   : > { %s3910_s16 = smov (!%p164_p2), 16  }
   0xd   : > { %s4686_s17 = smov (!%p190_p3, %s3213_s17), 15 }
   0xe   : > { %s3214_s18 = sshll.u32 %s4686_s17, 2 }
   0xf   : > { %s3956_s21 = scalar_lea.vmem %s4680_s0, %s3214_s18  ;;  %s3216_s18 = sshll.u32 %s4686_s17, 3 }
  0x10   : > { %v205_v1 = vld [vmem:[%s3956_s21] sm:$0xf]  ;;  %v207_v2 = vld [vmem:[%s3956_s21 + $0x8] sm:$0xf]  ;;  %v206_v3 = vld [vmem:[%s3956_s21 + $0x4] sm:$0xf]  ;;  %s199_s23 = scalar_lea.vmem %s4684_s4, %s3216_s18 }
  0x11   : > { %v3961_v4 = vcombine.low %v205_v1, %v205_v1  ;;  %v3963_v5 = vcombine.low %v207_v2, %v207_v2  ;;  %v208_v6 = vld [vmem:[%s3956_s21 + $0xc] sm:$0xf]  ;;  %v209_v7 = vld [vmem:[%s3956_s21 + $0x10] sm:$0xf]  ;;  %v210_v8 = vld [vmem:[%s3956_s21 + $0x14] sm:$0xf]  ;;  %v3970_v9 = vcombine.low %v206_v3, %v206_v3 }
  0x12   : > { %v3972_v10 = vcombine.low %v208_v6, %v208_v6  ;;  %v212_v11 = vld [vmem:[%s3956_s21 + $0x1c] sm:$0xf]  ;;  %v3976_v12 = vcombine.low %v209_v7, %v209_v7  ;;  %v3979_v13 = vcombine.low %v210_v8, %v210_v8  ;;  %v211_v14 = vld [vmem:[%s3956_s21 + $0x18] sm:$0xf] }
  0x13   : > { %216 = vrot.lane.b32.xlu0 %v3961_v4, %s3901_s22  ;;  %319 = vrot.lane.b32.xlu1 %v3963_v5, %s3901_s22  ;;  %v3984_v15 = vcombine.low %v212_v11, %v212_v11  ;;  %v3986_v16 = vcombine.low %v211_v14, %v211_v14 }
  0x17   : > { %268 = vrot.lane.b32.xlu0 %v3970_v9, %s3901_s22  ;;  %370 = vrot.lane.b32.xlu1 %v3972_v10, %s3901_s22 }
  0x1b   : > { %421 = vrot.lane.b32.xlu0 %v3976_v12, %s3901_s22  ;;  %472 = vrot.lane.b32.xlu1 %v3979_v13, %s3901_s22 }
  0x1f   : > { %574 = vrot.lane.b32.xlu1 %v3984_v15, %s3901_s22  ;;  %523 = vrot.lane.b32.xlu0 %v3986_v16, %s3901_s22 }
  0x85   : > { %v217_v17 = vpop.permute.xlu0 %216  ;;  %v320_v18 = vpop.permute.xlu1 %319 }
  0x86   : > { %v223_v19 = vsel %vm218_vm1, %v217_v17, 0  ;;  %v325_v20 = vsel %vm218_vm1, %v320_v18, 0 }
  0x87   : > { %3409 = vmatpush3.bf16.xpose.msra.mxu1 %v223_v19  ;;  %3421 = vmatpush3.bf16.xpose.msra.mxu0 %v325_v20 }
  0x88   : > { %3414 = vmatprep.subr.bf16.mxu1 %v3899_v0  ;;  %3432 = vmatprep.subr.bf16.mxu0 %v3899_v0 }
  0x89   : > { %v269_v21 = vpop.permute.xlu0 %268  ;;  %v371_v25 = vpop.permute.xlu1 %370 }
  0x8a   : > { %v274_v22 = vsel %vm218_vm1, %v269_v21, 0  ;;  %v376_v27 = vsel %vm218_vm1, %v371_v25, 0 }
  0x8d   : > { %v422_v23 = vpop.permute.xlu0 %421  ;;  %v473_v29 = vpop.permute.xlu1 %472 }
  0x8e   : > { %3411 = vmatmul.mubr.msk.bf16.vlgmr.msra.gmra.mrb[0].mxu1 %vm218_vm1, %v205_v1  ;;  %3423 = vmatmul.mubr.msk.bf16.vlgmr.msra.gmra.mrb[0].mxu0 %vm218_vm1, %v207_v2  ;;  %v427_v24 = vsel %vm218_vm1, %v422_v23, 0  ;;  %v478_v30 = vsel %vm218_vm1, %v473_v29, 0 }
  0x8f   : > { %3415 = vmatpush3.bf16.xpose.msra.mxu1 %v274_v22  ;;  %3433 = vmatpush3.bf16.xpose.msra.mxu0 %v427_v24 }
  0x90   : > { %3416 = vmatprep.mubr.msk.bf16.mxu1 %vm3900_vm0, %v3899_v0  ;;  %3434 = vmatprep.mubr.msk.bf16.mxu0 %vm3900_vm0, %v3899_v0 }
  0x91   : > { %3426 = vmatprep.subr.bf16.mxu1 %v3899_v0  ;;  %3444 = vmatprep.subr.bf16.mxu0 %v3899_v0  ;;  %v524_v26 = vpop.permute.xlu0 %523  ;;  %v575_v31 = vpop.permute.xlu1 %574 }
  0x92   : > { %v529_v28 = vsel %vm218_vm1, %v524_v26, 0  ;;  %v580_v32 = vsel %vm218_vm1, %v575_v31, 0 }
  0x96   : > { %3417 = vmatmul.mubr.msk.bf16.vlgmr.msra.gmra.mrb[4].mxu1 %vm218_vm1, %v206_v3  ;;  %3435 = vmatmul.mubr.msk.bf16.vlgmr.msra.gmra.mrb[4].mxu0 %vm218_vm1, %v209_v7 }
  0x97   : > { %3427 = vmatpush3.bf16.xpose.msra.mxu1 %v376_v27  ;;  %3428 = vmatprep.mubr.msk.bf16.mxu1 %vm3900_vm0, %v3899_v0 }
  0x98   : > { %3438 = vmatprep.subr.bf16.mxu1 %v3899_v0  ;;  %3445 = vmatpush3.bf16.xpose.msra.mxu0 %v529_v28 }
  0x99   : > { %3446 = vmatprep.mubr.msk.bf16.mxu0 %vm3900_vm0, %v3899_v0  ;;  %3456 = vmatprep.subr.bf16.mxu0 %v3899_v0 }
  0x9e   : > { %3429 = vmatmul.mubr.msk.bf16.vlgmr.msra.gmra.mrb[8].mxu1 %vm218_vm1, %v208_v6 }
  0x9f   : > { %3439 = vmatpush3.bf16.xpose.msra.mxu1 %v478_v30  ;;  %3440 = vmatprep.mubr.msk.bf16.mxu1 %vm3900_vm0, %v3899_v0 }
  0xa0   : > { %3450 = vmatprep.subr.bf16.mxu1 %v3899_v0  ;;  %3447 = vmatmul.mubr.msk.bf16.vlgmr.msra.gmra.mrb[8].mxu0 %vm218_vm1, %v211_v14 }
  0xa1   : > { %3458 = vmatprep.mubr.msk.bf16.mxu0 %vm3900_vm0, %v3899_v0 }
  0xa6   : > { %3441 = vmatmul.mubr.msk.bf16.vlgmr.msra.gmra.mrb[12].mxu1 %vm218_vm1, %v210_v8 }
  0xa7   : > { %3451 = vmatpush3.bf16.xpose.msra.mxu1 %v580_v32  ;;  %3452 = vmatprep.mubr.msk.bf16.mxu1 %vm3900_vm0, %v3899_v0 }
  0xa8   : > { %3462 = vmatprep.subr.bf16.mxu1 %v3899_v0 }
  0xae   : > { %3453 = vmatmul.mubr.msk.bf16.vlgmr.msra.gmra.mrb[16].mxu1 %vm218_vm1, %v212_v11 }
  0xaf   : > { %3464 = vmatprep.mubr.msk.bf16.mxu1 %vm3900_vm0, %v3899_v0 }
 0x161   : > { %v259_v34 = vpop.f32.mrb[0].mxu1  ;;  %v361_v35 = vpop.f32.mrb[0].mxu0 }
 0x162   : > { %v4033_v36 = vadd.f32 %v259_v34, %v202_v33  ;;  %v3412_v37 = vpop.f32.mrb[1].mxu1  ;;  %v4035_v38 = vadd.f32 %v361_v35, %v202_v33  ;;  %v3424_v39 = vpop.f32.mrb[1].mxu0 }
 0x163   : > { %v262_v40 = vpop.f32.mrb[2].mxu1  ;;  %v364_v41 = vpop.f32.mrb[2].mxu0 }
 0x164   : > { %v3413_v42 = vpop.f32.mrb[3].mxu1  ;;  %v3425_v43 = vpop.f32.mrb[3].mxu0  ;;  %v622_v44 = vsel %vm218_vm1, %v4033_v36, -inf  ;;  %v628_v45 = vsel %vm218_vm1, %v4035_v38, -inf }
 0x165   : > { %623 = vmax.xlane.f32.xlu0 %v622_v44 }
 0x169   : > { %629 = vmax.xlane.f32.xlu0 %v628_v45  ;;  %v310_v46 = vpop.f32.mrb[4].mxu1  ;;  %v463_v47 = vpop.f32.mrb[4].mxu0 }
 0x16a   : > { %v311_v48 = vadd.f32 %v310_v46, %v202_v33  ;;  %v4041_v49 = vadd.f32 %v463_v47, %v202_v33  ;;  %v3418_v50 = vpop.f32.mrb[5].mxu1  ;;  %v3436_v51 = vpop.f32.mrb[5].mxu0 }
 0x16b   : > { %v313_v52 = vpop.f32.mrb[6].mxu1  ;;  %v466_v53 = vpop.f32.mrb[6].mxu0 }
 0x16c   : > { %v625_v54 = vsel %vm218_vm1, %v311_v48, -inf  ;;  %v3419_v55 = vpop.f32.mrb[7].mxu1  ;;  %v3437_v56 = vpop.f32.mrb[7].mxu0  ;;  %v634_v57 = vsel %vm218_vm1, %v4041_v49, -inf }
 0x16d   : > { %626 = vmax.xlane.f32.xlu1 %v625_v54 }
 0x171   : > { %635 = vmax.xlane.f32.xlu1 %v634_v57  ;;  %v412_v58 = vpop.f32.mrb[8].mxu1 }
 0x172   : > { %v3430_v59 = vpop.f32.mrb[9].mxu1  ;;  %v413_v21 = vadd.f32 %v412_v58, %v202_v33 }
 0x173   : > { %v415_v60 = vpop.f32.mrb[10].mxu1  ;;  %v565_v61 = vpop.f32.mrb[8].mxu0 }
 0x174   : > { %v3431_v62 = vpop.f32.mrb[11].mxu1  ;;  %v4046_v63 = vadd.f32 %v565_v61, %v202_v33  ;;  %v3448_v1 = vpop.f32.mrb[9].mxu0  ;;  %v631_v23 = vsel %vm218_vm1, %v413_v21, -inf  ;;  %v4107_v60 = vld [vmem:[%s3956_s21 + $0x4] ss:$0 sps:$4 sm:$0xff]  }
 0x175   : > { %v568_v2 = vpop.f32.mrb[10].mxu0  ;;  %v4116_v62 = vld [vmem:[%s3956_s21 + $0xc] ss:$0 sps:$4 sm:$0xff]   ;;  %v4131_v1 = vld [vmem:[%s3956_s21 + $0x1c] ss:$0 sps:$4 sm:$0xff]  }
 0x176   : > { %v3449_v3 = vpop.f32.mrb[11].mxu0  ;;  %v640_v25 = vsel %vm218_vm1, %v4046_v63, -inf }
 0x179   : > { %v514_v6 = vpop.f32.mrb[12].mxu1 }
 0x17a   : > { %v3442_v7 = vpop.f32.mrb[13].mxu1  ;;  %v515_v22 = vadd.f32 %v514_v6, %v202_v33 }
 0x17b   : > { %v517_v8 = vpop.f32.mrb[14].mxu1 }
 0x17c   : > { %v3443_v11 = vpop.f32.mrb[15].mxu1  ;;  %v637_v24 = vsel %vm218_vm1, %v515_v22, -inf  ;;  %v4142_v8 = vld [vmem:[%s3956_s21] ss:$0 sps:$4 sm:$0xff]  }
 0x17f   : > { %767 = vrot.lane.b32.xlu0 %v3970_v9, %s3902_s25 }
 0x181   : > { %v616_v14 = vpop.f32.mrb[16].mxu1 }
 0x182   : > { %718 = vrot.lane.b32.xlu1 %v3961_v4, %s3902_s25  ;;  %v4052_v17 = vadd.f32 %v616_v14, %v202_v33  ;;  %v3454_v18 = vpop.f32.mrb[17].mxu1  ;;  %v4151_v14 = vld [vmem:[%s3956_s21 + $0x8] ss:$0 sps:$4 sm:$0xff]  }
 0x183   : > { %v619_v19 = vpop.f32.mrb[18].mxu1 }
 0x184   : > { %v3455_v20 = vpop.f32.mrb[19].mxu1  ;;  %v643_v9 = vsel %vm218_vm1, %v4052_v17, -inf }
 0x185   : > { %v4158_v20 = vld [vmem:[%s3956_s21 + $0x10] ss:$0 sps:$4 sm:$0xff]  }
 0x19e   : > { %632 = vmax.xlane.f32.xlu0 %v631_v23 }
 0x1a2   : > { %638 = vmax.xlane.f32.xlu0 %v637_v24 }
 0x1a6   : > { %644 = vmax.xlane.f32.xlu0 %v643_v9  ;;  %641 = vmax.xlane.f32.xlu1 %v640_v25 }
 0x1b7   : > { %815 = vrot.lane.b32.xlu1 %v3963_v5, %s3902_s25 }
 0x1bb   : > { %863 = vrot.lane.b32.xlu1 %v3972_v10, %s3902_s25 }
 0x1bc   : > { %911 = vrot.lane.b32.xlu0 %v3976_v12, %s3902_s25 }
 0x1bf   : > { %959 = vrot.lane.b32.xlu1 %v3979_v13, %s3902_s25 }
 0x1f2   : > { %v624_v4 = vpop.xlane.xlu0 %623 }
 0x1f3   : > { %v646_v26 = vsub.f32 %v4033_v36, %v624_v4 }
 0x1f5   : > { %v654_v27 = vmul.f32 1.442695, %v646_v26  ;;  %v4167_v26 = vld [vmem:[%s3956_s21 + $0x18] ss:$0 sps:$4 sm:$0xff]  }
 0x1f6   : > { %v630_v28 = vpop.xlane.xlu0 %629 }
 0x1f7   : > { %3795 = vpow2.f32 %v654_v27  ;;  %v648_v29 = vsub.f32 %v4035_v38, %v630_v28 }
 0x1f9   : > { %v658_v30 = vmul.f32 1.442695, %v648_v29 }
 0x1fa   : > { %v627_v5 = vpop.xlane.xlu1 %626  ;;  %v768_v31 = vpop.permute.xlu0 %767 }
 0x1fb   : > { %3797 = vpow2.f32 %v658_v30  ;;  %v647_v10 = vsub.f32 %v311_v48, %v627_v5  ;;  %v773_v32 = vsel %vm723_vm2, %v768_v31, 0 }
 0x1fc   : > { %3463 = vmatpush3.bf16.msra.mxu1 %v773_v32 }
 0x1fd   : > { %v656_v12 = vmul.f32 1.442695, %v647_v10  ;;  %3474 = vmatprep.subr.bf16.mxu1 %v3899_v0 }
 0x1fe   : > { %v636_v13 = vpop.xlane.xlu1 %635 }
 0x1ff   : > { %3799 = vpow2.f32 %v656_v12  ;;  %v650_v33 = vsub.f32 %v4041_v49, %v636_v13 }
 0x201   : > { %v4073_v34 = vpop.eup %3795  ;;  %v662_v35 = vmul.f32 1.442695, %v650_v33 }
 0x202   : > { %v670_v36 = vsel %vm218_vm1, %v4073_v34, 0.0  ;;  %v719_v37 = vpop.permute.xlu1 %718 }
 0x203   : > { %3801 = vpow2.f32 %v662_v35  ;;  %671 = vadd.xlane.f32.xlu1 %v670_v36  ;;  %v725_v38 = vsel %vm723_vm2, %v719_v37, 0 }
 0x204   : > { %3457 = vmatpush3.bf16.msra.mxu0 %v725_v38 }
 0x205   : > { %v4078_v39 = vpop.eup %3797  ;;  %3468 = vmatprep.subr.bf16.mxu0 %v3899_v0 }
 0x206   : > { %v676_v40 = vsel %vm218_vm1, %v4078_v39, 0.0 }
 0x207   : > { %677 = vadd.xlane.f32.xlu1 %v676_v40 }
 0x209   : > { %v4083_v41 = vpop.eup %3799 }
 0x20a   : > { %v673_v42 = vsel %vm218_vm1, %v4083_v41, 0.0 }
 0x20b   : > { %674 = vadd.xlane.f32.xlu0 %v673_v42 }
 0x20d   : > { %v4087_v43 = vpop.eup %3801 }
 0x20e   : > { %v682_v44 = vsel %vm218_vm1, %v4087_v43, 0.0 }
 0x20f   : > { %683 = vadd.xlane.f32.xlu1 %v682_v44 }
 0x22b   : > { %v633_v45 = vpop.xlane.xlu0 %632 }
 0x22c   : > { %v649_v46 = vsub.f32 %v413_v21, %v633_v45 }
 0x22e   : > { %v660_v47 = vmul.f32 1.442695, %v649_v46 }
 0x22f   : > { %v639_v48 = vpop.xlane.xlu0 %638 }
 0x230   : > { %3803 = vpow2.f32 %v660_v47  ;;  %v651_v49 = vsub.f32 %v515_v22, %v639_v48 }
 0x232   : > { %v664_v50 = vmul.f32 1.442695, %v651_v49 }
 0x233   : > { %v642_v51 = vpop.xlane.xlu1 %641  ;;  %v645_v61 = vpop.xlane.xlu0 %644 }
 0x234   : > { %3805 = vpow2.f32 %v664_v50  ;;  %v652_v52 = vsub.f32 %v4046_v63, %v642_v51  ;;  %v653_v63 = vsub.f32 %v4052_v17, %v645_v61 }
 0x236   : > { %v666_v53 = vmul.f32 1.442695, %v652_v52 }
 0x237   : > { %v816_v6 = vpop.permute.xlu1 %815  ;;  %v912_v18 = vpop.permute.xlu0 %911 }
 0x238   : > { %3807 = vpow2.f32 %v666_v53  ;;  %v821_v9 = vsel %vm723_vm2, %v816_v6, 0  ;;  %v917_v32 = vsel %vm723_vm2, %v912_v18, 0 }
 0x23a   : > { %v4092_v54 = vpop.eup %3803 }
 0x23b   : > { %v679_v55 = vsel %vm218_vm1, %v4092_v54, 0.0  ;;  %v864_v7 = vpop.permute.xlu1 %863 }
 0x23c   : > { %680 = vadd.xlane.f32.xlu0 %v679_v55  ;;  %v869_v10 = vsel %vm723_vm2, %v864_v7, 0 }
 0x23e   : > { %v4096_v56 = vpop.eup %3805 }
 0x23f   : > { %v685_v57 = vsel %vm218_vm1, %v4096_v56, 0.0  ;;  %v4144_v11 = vpop.permute.xlu1 %959 }
 0x240   : > { %686 = vadd.xlane.f32.xlu0 %v685_v57  ;;  %v965_v42 = vsel %vm723_vm2, %v4144_v11, 0 }
 0x242   : > { %v4100_v58 = vpop.eup %3807 }
 0x243   : > { %v688_v59 = vsel %vm218_vm1, %v4100_v58, 0.0 }
 0x244   : > { %689 = vadd.xlane.f32.xlu1 %v688_v59 }
 0x255   : > { %1055 = vrot.lane.b32.xlu1 %v3984_v15, %s3902_s25  ;;  %v668_v15 = vmul.f32 1.442695, %v653_v63 }
 0x256   : > { %1007 = vrot.lane.b32.xlu0 %v3986_v16, %s3902_s25  ;;  %v4124_v16 = vld [vmem:[%s3956_s21 + $0x14] ss:$0 sps:$4 sm:$0xff]  }
 0x257   : > { %3809 = vpow2.f32 %v668_v15 }
 0x259   : > { %1169 = vrot.lane.b32.xlu1 %v4107_v60, %s3903_s26 }
 0x25d   : > { %1167 = vrot.lane.b32.xlu1 %v4107_v60, %s3904_s27 }
 0x261   : > { %1275 = vrot.lane.b32.xlu1 %v4116_v62, %s3903_s26  ;;  %v4133_v2 = vpop.eup %3809 }
 0x262   : > { %v691_v3 = vsel %vm218_vm1, %v4133_v2, 0.0 }
 0x265   : > { %1273 = vrot.lane.b32.xlu1 %v4116_v62, %s3904_s27 }
 0x269   : > { %1381 = vrot.lane.b32.xlu1 %v4124_v16, %s3903_s26 }
 0x26d   : > { %1379 = vrot.lane.b32.xlu1 %v4124_v16, %s3904_s27 }
 0x271   : > { %1487 = vrot.lane.b32.xlu1 %v4131_v1, %s3903_s26 }
 0x275   : > { %692 = vadd.xlane.f32.xlu0 %v691_v3  ;;  %1485 = vrot.lane.b32.xlu1 %v4131_v1, %s3904_s27 }
 0x279   : > { %1631 = vrot.lane.b32.xlu1 %v4142_v8, %s3905_s28 }
 0x27d   : > { %1727 = vrot.lane.b32.xlu1 %v4151_v14, %s3905_s28 }
 0x281   : > { %1775 = vrot.lane.b32.xlu1 %v4116_v62, %s3905_s28 }
 0x28b   : > { %1116 = vrot.lane.b32.xlu0 %v4142_v8, %s3903_s26 }
 0x28f   : > { %1114 = vrot.lane.b32.xlu0 %v4142_v8, %s3904_s27 }
 0x290   : > { %v672_v17 = vpop.xlane.xlu1 %671 }
 0x291   : > { %3811 = vrcp.f32 %v672_v17 }
 0x293   : > { %1222 = vrot.lane.b32.xlu0 %v4151_v14, %s3903_s26 }
 0x294   : > { %v678_v19 = vpop.xlane.xlu1 %677 }
 0x295   : > { %3813 = vrcp.f32 %v678_v19 }
 0x297   : > { %1220 = vrot.lane.b32.xlu0 %v4151_v14, %s3904_s27 }
 0x298   : > { %v675_v21 = vpop.xlane.xlu0 %674 }
 0x299   : > { %3815 = vrcp.f32 %v675_v21 }
 0x29b   : > { %v3812_v22 = vpop.eup %3811  ;;  %1328 = vrot.lane.b32.xlu0 %v4158_v20, %s3903_s26 }
 0x29c   : > { %v702_v23 = vmul.f32 %v3812_v22, %v4073_v34  ;;  %v684_v24 = vpop.xlane.xlu1 %683 }
 0x29d   : > { %3817 = vrcp.f32 %v684_v24 }
 0x29e   : > { %v710_v25 = vpack.c.bf16 %v702_v23, %v702_v23 }
 0x29f   : > { %v3814_v4 = vpop.eup %3813  ;;  %1326 = vrot.lane.b32.xlu0 %v4158_v20, %s3904_s27 }
 0x2a0   : > { %3459 = vmatmul.mubr.msk.bf16.vlgmr.msra.gmra.mrb[12].mxu0 %vm218_vm1, %v710_v25  ;;  %v704_v27 = vmul.f32 %v3814_v4, %v4078_v39 }
 0x2a1   : > { %3469 = vmatpush3.bf16.msra.mxu0 %v821_v9  ;;  %3470 = vmatprep.mubr.msk.bf16.mxu0 %vm3900_vm0, %v3899_v0 }
 0x2a2   : > { %3480 = vmatprep.subr.bf16.mxu0 %v3899_v0  ;;  %v712_v30 = vpack.c.bf16 %v704_v27, %v704_v27 }
 0x2a3   : > { %v3816_v28 = vpop.eup %3815  ;;  %1434 = vrot.lane.b32.xlu0 %v4167_v26, %s3903_s26 }
 0x2a4   : > { %v703_v29 = vmul.f32 %v3816_v28, %v4083_v41 }
 0x2a6   : > { %v711_v5 = vpack.c.bf16 %v703_v29, %v703_v29 }
 0x2a7   : > { %v3818_v31 = vpop.eup %3817  ;;  %1432 = vrot.lane.b32.xlu0 %v4167_v26, %s3904_s27 }
 0x2a8   : > { %3471 = vmatmul.mubr.msk.bf16.vlgmr.msra.gmra.mrb[16].mxu0 %vm218_vm1, %v712_v30  ;;  %3465 = vmatmul.mubr.msk.bf16.vlgmr.msra.gmra.mrb[20].mxu1 %vm218_vm1, %v711_v5  ;;  %v706_v12 = vmul.f32 %v3818_v31, %v4087_v43 }
 0x2a9   : > { %3475 = vmatpush3.bf16.msra.mxu1 %v869_v10  ;;  %3481 = vmatpush3.bf16.msra.mxu0 %v917_v32 }
 0x2aa   : > { %3482 = vmatprep.mubr.msk.bf16.mxu0 %vm3900_vm0, %v3899_v0  ;;  %3492 = vmatprep.subr.bf16.mxu0 %v3899_v0  ;;  %v714_v13 = vpack.c.bf16 %v706_v12, %v706_v12 }
 0x2ab   : > { %3476 = vmatprep.mubr.msk.bf16.mxu1 %vm3900_vm0, %v3899_v0  ;;  %3486 = vmatprep.subr.bf16.mxu1 %v3899_v0 }
 0x2ac   : > { %1679 = vrot.lane.b32.xlu0 %v4107_v60, %s3905_s28 }
 0x2b0   : > { %3483 = vmatmul.mubr.msk.bf16.vlgmr.msra.gmra.mrb[20].mxu0 %vm218_vm1, %v714_v13 }
 0x2b1   : > { %3494 = vmatprep.mubr.msk.bf16.mxu0 %vm3900_vm0, %v3899_v0 }
 0x2c9   : > { %v681_v33 = vpop.xlane.xlu0 %680 }
 0x2ca   : > { %3819 = vrcp.f32 %v681_v33 }
 0x2cd   : > { %v687_v34 = vpop.xlane.xlu0 %686 }
 0x2ce   : > { %3821 = vrcp.f32 %v687_v34 }
 0x2d1   : > { %v690_v35 = vpop.xlane.xlu1 %689  ;;  %v1008_v36 = vpop.permute.xlu0 %1007 }
 0x2d2   : > { %3823 = vrcp.f32 %v690_v35  ;;  %v1013_v37 = vsel %vm723_vm2, %v1008_v36, 0 }
 0x2d3   : > { %3493 = vmatpush3.bf16.msra.mxu0 %v1013_v37 }
 0x2d4   : > { %v3820_v38 = vpop.eup %3819  ;;  %3504 = vmatprep.subr.bf16.mxu0 %v3899_v0 }
 0x2d5   : > { %v705_v39 = vmul.f32 %v3820_v38, %v4092_v54  ;;  %v1056_v45 = vpop.permute.xlu1 %1055 }
 0x2d6   : > { %v1061_v49 = vsel %vm723_vm2, %v1056_v45, 0 }
 0x2d7   : > { %v713_v40 = vpack.c.bf16 %v705_v39, %v705_v39 }
 0x2d8   : > { %v3822_v41 = vpop.eup %3821 }
 0x2d9   : > { %3477 = vmatmul.mubr.msk.bf16.vlgmr.msra.gmra.mrb[24].mxu1 %vm218_vm1, %v713_v40  ;;  %v707_v43 = vmul.f32 %v3822_v41, %v4096_v56  ;;  %v1170_v50 = vpop.permute.xlu1 %1169 }
 0x2da   : > { %3487 = vmatpush3.bf16.msra.mxu1 %v965_v42  ;;  %3488 = vmatprep.mubr.msk.bf16.mxu1 %vm3900_vm0, %v3899_v0  ;;  %v1175_v63 = vsel %vm218_vm1, %v1170_v50, 0 }
 0x2db   : > { %3498 = vmatprep.subr.bf16.mxu1 %v3899_v0  ;;  %v715_v47 = vpack.c.bf16 %v707_v43, %v707_v43 }
 0x2dc   : > { %v3824_v44 = vpop.eup %3823 }
 0x2dd   : > { %v708_v46 = vmul.f32 %v3824_v44, %v4100_v58  ;;  %v1168_v54 = vpop.permute.xlu1 %1167 }
 0x2df   : > { %v716_v48 = vpack.c.bf16 %v708_v46, %v708_v46 }
 0x2e1   : > { %3489 = vmatmul.mubr.msk.bf16.vlgmr.msra.gmra.mrb[28].mxu1 %vm218_vm1, %v715_v47  ;;  %3495 = vmatmul.mubr.msk.bf16.vlgmr.msra.gmra.mrb[24].mxu0 %vm218_vm1, %v716_v48  ;;  %v1276_v57 = vpop.permute.xlu1 %1275 }
 0x2e2   : > { %3499 = vmatpush3.bf16.msra.mxu1 %v1061_v49  ;;  %3506 = vmatprep.mubr.msk.bf16.mxu0 %vm3900_vm0, %v3899_v0  ;;  %v1281_v11 = vsel %vm218_vm1, %v1276_v57, 0 }
 0x2e3   : > { %3500 = vmatprep.mubr.msk.bf16.mxu1 %vm3900_vm0, %v3899_v0  ;;  %3510 = vmatprep.subr.bf16.mxu1 %v3899_v0 }
 0x302   : > { %v693_v51 = vpop.xlane.xlu0 %692 }
 0x303   : > { %3825 = vrcp.f32 %v693_v51  ;;  %v203_v51 = vld [vmem:[%s4681_s1 + $0x8] sm:$0xff] }
 0x306   : > { %v1117_v52 = vpop.permute.xlu0 %1116 }
 0x307   : > { %v1122_v53 = vsel %vm218_vm1, %v1117_v52, 0 }
 0x308   : > { %3505 = vmatpush3.bf16.xpose.msra.mxu0 %v1122_v53 }
 0x309   : > { %3516 = vmatprep.subr.bf16.mxu0 %v3899_v0 }
 0x30a   : > { %v1115_v55 = vpop.permute.xlu0 %1114 }
 0x30d   : > { %v3826_v56 = vpop.eup %3825 }
 0x30e   : > { %v709_v58 = vmul.f32 %v3826_v56, %v4133_v2  ;;  %v1223_v59 = vpop.permute.xlu0 %1222  ;;  %v1274_v2 = vpop.permute.xlu1 %1273 }
 0x30f   : > { %v1228_v61 = vsel %vm218_vm1, %v1223_v59, 0  ;;  %3507 = vmatmul.mubr.msk.bf16.vlgmr.msra.gmra.mrb[28].mxu0 %vm218_vm1, %v1115_v55 }
 0x310   : > { %3517 = vmatpush3.bf16.xpose.msra.mxu0 %v1228_v61  ;;  %v717_v15 = vpack.c.bf16 %v709_v58, %v709_v58  ;;  %3518 = vmatprep.mubr.msk.bf16.mxu0 %vm3900_vm0, %v3899_v0 }
 0x311   : > { %3528 = vmatprep.subr.bf16.mxu0 %v3899_v0 }
 0x312   : > { %3501 = vmatmul.mubr.msk.bf16.vlgmr.msra.gmra.mrb[32].mxu1 %vm218_vm1, %v717_v15  ;;  %v1221_v3 = vpop.permute.xlu0 %1220  ;;  %v1382_v17 = vpop.permute.xlu1 %1381 }
 0x313   : > { %3511 = vmatpush3.bf16.xpose.msra.mxu1 %v1175_v63  ;;  %3512 = vmatprep.mubr.msk.bf16.mxu1 %vm3900_vm0, %v3899_v0  ;;  %v1387_v23 = vsel %vm218_vm1, %v1382_v17, 0 }
 0x314   : > { %3522 = vmatprep.subr.bf16.mxu1 %v3899_v0 }
 0x316   : > { %v1329_v6 = vpop.permute.xlu0 %1328  ;;  %v1380_v22 = vpop.permute.xlu1 %1379 }
 0x317   : > { %v1334_v7 = vsel %vm218_vm1, %v1329_v6, 0  ;;  %3519 = vmatmul.mubr.msk.bf16.vlgmr.msra.gmra.mrb[32].mxu0 %vm218_vm1, %v1221_v3 }
 0x318   : > { %3529 = vmatpush3.bf16.xpose.msra.mxu0 %v1334_v7  ;;  %3530 = vmatprep.mubr.msk.bf16.mxu0 %vm3900_vm0, %v3899_v0 }
 0x319   : > { %3540 = vmatprep.subr.bf16.mxu0 %v3899_v0 }
 0x31a   : > { %3513 = vmatmul.mubr.msk.bf16.vlgmr.msra.gmra.mrb[36].mxu1 %vm218_vm1, %v1168_v54  ;;  %v1327_v18 = vpop.permute.xlu0 %1326  ;;  %v1488_v9 = vpop.permute.xlu1 %1487 }
 0x31b   : > { %3523 = vmatpush3.bf16.xpose.msra.mxu1 %v1281_v11  ;;  %3524 = vmatprep.mubr.msk.bf16.mxu1 %vm3900_vm0, %v3899_v0  ;;  %v1493_v25 = vsel %vm218_vm1, %v1488_v9, 0 }
 0x31c   : > { %3534 = vmatprep.subr.bf16.mxu1 %v3899_v0 }
 0x31e   : > { %v1435_v19 = vpop.permute.xlu0 %1434  ;;  %v1486_v4 = vpop.permute.xlu1 %1485 }
 0x31f   : > { %v1440_v21 = vsel %vm218_vm1, %v1435_v19, 0  ;;  %3531 = vmatmul.mubr.msk.bf16.vlgmr.msra.gmra.mrb[36].mxu0 %vm218_vm1, %v1327_v18 }
 0x320   : > { %3541 = vmatpush3.bf16.xpose.msra.mxu0 %v1440_v21  ;;  %3542 = vmatprep.mubr.msk.bf16.mxu0 %vm3900_vm0, %v3899_v0 }
 0x321   : > { %3552 = vmatprep.subr.bf16.mxu0 %v3899_v0 }
 0x322   : > { %3525 = vmatmul.mubr.msk.bf16.vlgmr.msra.gmra.mrb[40].mxu1 %vm218_vm1, %v1274_v2  ;;  %v1433_v24 = vpop.permute.xlu0 %1432  ;;  %v1632_v35 = vpop.permute.xlu1 %1631 }
 0x323   : > { %3535 = vmatpush3.bf16.xpose.msra.mxu1 %v1387_v23  ;;  %3536 = vmatprep.mubr.msk.bf16.mxu1 %vm3900_vm0, %v3899_v0  ;;  %v1637_v37 = vsel %vm723_vm2, %v1632_v35, 0 }
 0x324   : > { %3546 = vmatprep.subr.bf16.mxu1 %v3899_v0 }
 0x326   : > { %v1680_v36 = vpop.permute.xlu0 %1679 }
 0x327   : > { %3543 = vmatmul.mubr.msk.bf16.vlgmr.msra.gmra.mrb[40].mxu0 %vm218_vm1, %v1433_v24  ;;  %v1685_v38 = vsel %vm723_vm2, %v1680_v36, 0 }
 0x328   : > { %3554 = vmatprep.mubr.msk.bf16.mxu0 %vm3900_vm0, %v3899_v0  ;;  %3553 = vmatpush3.bf16.msra.mxu0 %v1637_v37 }
 0x329   : > { %3564 = vmatprep.subr.bf16.mxu0 %v3899_v0 }
 0x32a   : > { %3537 = vmatmul.mubr.msk.bf16.vlgmr.msra.gmra.mrb[44].mxu1 %vm218_vm1, %v1380_v22 }
 0x32b   : > { %3547 = vmatpush3.bf16.xpose.msra.mxu1 %v1493_v25  ;;  %3548 = vmatprep.mubr.msk.bf16.mxu1 %vm3900_vm0, %v3899_v0 }
 0x32c   : > { %3558 = vmatprep.subr.bf16.mxu1 %v3899_v0 }
 0x332   : > { %3549 = vmatmul.mubr.msk.bf16.vlgmr.msra.gmra.mrb[48].mxu1 %vm218_vm1, %v1486_v4 }
 0x333   : > { %3560 = vmatprep.mubr.msk.bf16.mxu1 %vm3900_vm0, %v3899_v0  ;;  %3559 = vmatpush3.bf16.msra.mxu1 %v1685_v38 }
 0x334   : > { %3570 = vmatprep.subr.bf16.mxu1 %v3899_v0 }
 0x373   : > { %v4264_v27 = vpop.f32.mrb[12].mxu0 }
 0x374   : > { %v3460_v28 = vpop.f32.mrb[13].mxu0 }
 0x375   : > { %v764_v29 = vpop.f32.mrb[14].mxu0 }
 0x376   : > { %v3461_v30 = vpop.f32.mrb[15].mxu0 }
 0x37b   : > { %v4266_v5 = vpop.f32.mrb[20].mxu1  ;;  %v4268_v31 = vpop.f32.mrb[16].mxu0 }
 0x37c   : > { %v3466_v10 = vpop.f32.mrb[21].mxu1  ;;  %v3472_v8 = vpop.f32.mrb[17].mxu0 }
 0x37d   : > { %v812_v32 = vpop.f32.mrb[22].mxu1  ;;  %v860_v12 = vpop.f32.mrb[18].mxu0 }
 0x37e   : > { %v3467_v60 = vpop.f32.mrb[23].mxu1  ;;  %v3473_v13 = vpop.f32.mrb[19].mxu0 }
 0x383   : > { %v4270_v33 = vpop.f32.mrb[20].mxu0 }
 0x384   : > { %v3484_v14 = vpop.f32.mrb[21].mxu0 }
 0x385   : > { %v956_v34 = vpop.f32.mrb[22].mxu0 }
 0x386   : > { %v3485_v62 = vpop.f32.mrb[23].mxu0 }
 0x3ac   : > { %v4274_v39 = vpop.f32.mrb[24].mxu1 }
 0x3ad   : > { %v3478_v40 = vpop.f32.mrb[25].mxu1 }
 0x3ae   : > { %v908_v41 = vpop.f32.mrb[26].mxu1 }
 0x3af   : > { %v3479_v42 = vpop.f32.mrb[27].mxu1 }
 0x3b4   : > { %v4278_v43 = vpop.f32.mrb[28].mxu1  ;;  %v4280_v44 = vpop.f32.mrb[24].mxu0 }
 0x3b5   : > { %v3490_v45 = vpop.f32.mrb[29].mxu1  ;;  %v3496_v46 = vpop.f32.mrb[25].mxu0 }
 0x3b6   : > { %v1004_v47 = vpop.f32.mrb[30].mxu1  ;;  %v1052_v48 = vpop.f32.mrb[26].mxu0 }
 0x3b7   : > { %v3491_v49 = vpop.f32.mrb[31].mxu1  ;;  %v3497_v50 = vpop.f32.mrb[27].mxu0 }
 0x3e2   : > { %v1158_v52 = vpop.f32.mrb[28].mxu0 }
 0x3e3   : > { %v4285_v53 = vadd.f32 %v1158_v52, %v203_v51  ;;  %v3508_v54 = vpop.f32.mrb[29].mxu0 }
 0x3e4   : > { %v1161_v55 = vpop.f32.mrb[30].mxu0 }
 0x3e5   : > { %v4287_v56 = vpop.f32.mrb[32].mxu1  ;;  %v3509_v57 = vpop.f32.mrb[31].mxu0  ;;  %v1535_v58 = vsel %vm218_vm1, %v4285_v53, -inf }
 0x3e6   : > { %v3502_v59 = vpop.f32.mrb[33].mxu1  ;;  %1536 = vmax.xlane.f32.xlu0 %v1535_v58  ;;  %v4305_v55 = vpop.permute.xlu1 %1727 }
 0x3e7   : > { %v1100_v61 = vpop.f32.mrb[34].mxu1 }
 0x3e8   : > { %v3503_v63 = vpop.f32.mrb[35].mxu1 }
 0x3ea   : > { %v1264_v15 = vpop.f32.mrb[32].mxu0 }
 0x3eb   : > { %v1265_v3 = vadd.f32 %v1264_v15, %v203_v51  ;;  %v3520_v2 = vpop.f32.mrb[33].mxu0 }
 0x3ec   : > { %v1267_v6 = vpop.f32.mrb[34].mxu0 }
 0x3ed   : > { %v1211_v7 = vpop.f32.mrb[36].mxu1  ;;  %v3521_v11 = vpop.f32.mrb[35].mxu0  ;;  %v1541_v17 = vsel %vm218_vm1, %v1265_v3, -inf }
 0x3ee   : > { %v1212_v18 = vadd.f32 %v1211_v7, %v203_v51  ;;  %v3514_v19 = vpop.f32.mrb[37].mxu1  ;;  %1542 = vmax.xlane.f32.xlu0 %v1541_v17 }
 0x3ef   : > { %v1214_v21 = vpop.f32.mrb[38].mxu1 }
 0x3f0   : > { %v3515_v22 = vpop.f32.mrb[39].mxu1  ;;  %v1538_v23 = vsel %vm218_vm1, %v1212_v18, -inf }
 0x3f1   : > { %1539 = vmax.xlane.f32.xlu1 %v1538_v23 }
 0x3f2   : > { %v1370_v24 = vpop.f32.mrb[36].mxu0 }
 0x3f3   : > { %v1371_v9 = vadd.f32 %v1370_v24, %v203_v51  ;;  %v3532_v25 = vpop.f32.mrb[37].mxu0 }
 0x3f4   : > { %v1373_v4 = vpop.f32.mrb[38].mxu0 }
 0x3f5   : > { %v1317_v28 = vpop.f32.mrb[40].mxu1  ;;  %v1547_v29 = vsel %vm218_vm1, %v1371_v9, -inf  ;;  %v3533_v30 = vpop.f32.mrb[39].mxu0 }
 0x3f6   : > { %v1318_v10 = vadd.f32 %v1317_v28, %v203_v51  ;;  %v3526_v8 = vpop.f32.mrb[41].mxu1  ;;  %1548 = vmax.xlane.f32.xlu1 %v1547_v29 }
 0x3f7   : > { %v1320_v32 = vpop.f32.mrb[42].mxu1 }
 0x3f8   : > { %v3527_v12 = vpop.f32.mrb[43].mxu1  ;;  %v1544_v60 = vsel %vm218_vm1, %v1318_v10, -inf }
 0x3f9   : > { %1545 = vmax.xlane.f32.xlu0 %v1544_v60 }
 0x3fa   : > { %v1476_v13 = vpop.f32.mrb[40].mxu0 }
 0x3fb   : > { %v4295_v14 = vadd.f32 %v1476_v13, %v203_v51  ;;  %v3544_v34 = vpop.f32.mrb[41].mxu0 }
 0x3fc   : > { %v1479_v62 = vpop.f32.mrb[42].mxu0 }
 0x3fd   : > { %v1423_v35 = vpop.f32.mrb[44].mxu1  ;;  %v1553_v36 = vsel %vm218_vm1, %v4295_v14, -inf  ;;  %v3545_v37 = vpop.f32.mrb[43].mxu0 }
 0x3fe   : > { %v1424_v38 = vadd.f32 %v1423_v35, %v203_v51  ;;  %v3538_v40 = vpop.f32.mrb[45].mxu1  ;;  %1554 = vmax.xlane.f32.xlu1 %v1553_v36  ;;  %v4353_v37 = vld [vmem:[%s3956_s21 + $0xc] ss:$0 sps:$4 sm:$0xff]  }
 0x3ff   : > { %v1426_v41 = vpop.f32.mrb[46].mxu1  ;;  %v4361_v40 = vld [vmem:[%s3956_s21 + $0x14] ss:$0 sps:$4 sm:$0xff]  }
 0x400   : > { %v3539_v42 = vpop.f32.mrb[47].mxu1  ;;  %v1550_v45 = vsel %vm218_vm1, %v1424_v38, -inf  ;;  %v4367_v41 = vld [vmem:[%s3956_s21 + $0x8] ss:$0 sps:$4 sm:$0xff]  }
 0x401   : > { %1551 = vmax.xlane.f32.xlu0 %v1550_v45  ;;  %v4371_v42 = vld [vmem:[%s3956_s21 + $0x1c] ss:$0 sps:$4 sm:$0xff]   ;;  %v4377_v45 = vld [vmem:[%s3956_s21 + $0x10] ss:$0 sps:$4 sm:$0xff]  }
 0x405   : > { %v1529_v46 = vpop.f32.mrb[48].mxu1 }
 0x406   : > { %v1530_v47 = vadd.f32 %v1529_v46, %v203_v51  ;;  %v3550_v48 = vpop.f32.mrb[49].mxu1  ;;  %v4308_v51 = vpop.permute.xlu1 %1775  ;;  %v4383_v46 = vld [vmem:[%s3956_s21 + $0x18] ss:$0 sps:$4 sm:$0xff]  }
 0x407   : > { %v1532_v49 = vpop.f32.mrb[50].mxu1 }
 0x408   : > { %v1556_v50 = vsel %vm218_vm1, %v1530_v47, -inf  ;;  %v3551_v52 = vpop.f32.mrb[51].mxu1 }
 0x409   : > { %1557 = vmax.xlane.f32.xlu0 %v1556_v50 }
 0x40f   : > { %1871 = vrot.lane.b32.xlu1 %v4124_v16, %s3905_s28 }
 0x41f   : > { %1823 = vrot.lane.b32.xlu0 %v4158_v20, %s3905_s28 }
 0x473   : > { %v1537_v54 = vpop.xlane.xlu0 %1536 }
 0x474   : > { %v1559_v57 = vsub.f32 %v4285_v53, %v1537_v54 }
 0x476   : > { %v1567_v58 = vmul.f32 1.442695, %v1559_v57 }
 0x478   : > { %3827 = vpow2.f32 %v1567_v58 }
 0x47b   : > { %v1543_v59 = vpop.xlane.xlu0 %1542 }
 0x47c   : > { %v1561_v61 = vsub.f32 %v1265_v3, %v1543_v59  ;;  %v1733_v59 = vsel %vm723_vm2, %v4305_v55, 0 }
 0x47e   : > { %v1571_v63 = vmul.f32 1.442695, %v1561_v61  ;;  %v1540_v15 = vpop.xlane.xlu1 %1539 }
 0x47f   : > { %v1560_v2 = vsub.f32 %v1212_v18, %v1540_v15 }
 0x480   : > { %3829 = vpow2.f32 %v1571_v63 }
 0x481   : > { %v1569_v6 = vmul.f32 1.442695, %v1560_v2 }
 0x482   : > { %v4310_v16 = vpop.eup %3827 }
 0x483   : > { %3831 = vpow2.f32 %v1569_v6  ;;  %v1549_v20 = vpop.xlane.xlu1 %1548  ;;  %v1583_v7 = vsel %vm218_vm1, %v4310_v16, 0.0 }
 0x484   : > { %v1563_v11 = vsub.f32 %v1371_v9, %v1549_v20  ;;  %1584 = vadd.xlane.f32.xlu1 %v1583_v7 }
 0x486   : > { %v1575_v53 = vmul.f32 1.442695, %v1563_v11  ;;  %v1546_v17 = vpop.xlane.xlu0 %1545 }
 0x487   : > { %v1562_v19 = vsub.f32 %v1318_v10, %v1546_v17 }
 0x488   : > { %3833 = vpow2.f32 %v1575_v53  ;;  %v1781_v53 = vsel %vm723_vm2, %v4308_v51, 0 }
 0x489   : > { %v1573_v21 = vmul.f32 1.442695, %v1562_v19 }
 0x48a   : > { %v4314_v3 = vpop.eup %3829 }
 0x48b   : > { %3835 = vpow2.f32 %v1573_v21  ;;  %v1589_v18 = vsel %vm218_vm1, %v4314_v3, 0.0  ;;  %v1555_v32 = vpop.xlane.xlu1 %1554 }
 0x48c   : > { %1590 = vadd.xlane.f32.xlu1 %v1589_v18  ;;  %v1565_v12 = vsub.f32 %v4295_v14, %v1555_v32  ;;  %v4348_v14 = vld [vmem:[%s3956_s21 + $0x4] ss:$0 sps:$4 sm:$0xff]  }
 0x48d   : > { %v4318_v22 = vpop.eup %3831 }
 0x48e   : > { %v1552_v23 = vpop.xlane.xlu0 %1551  ;;  %v1586_v24 = vsel %vm218_vm1, %v4318_v22, 0.0  ;;  %v1579_v60 = vmul.f32 1.442695, %v1565_v12 }
 0x48f   : > { %v1564_v9 = vsub.f32 %v1424_v38, %v1552_v23  ;;  %1587 = vadd.xlane.f32.xlu0 %v1586_v24  ;;  %v4357_v38 = vld [vmem:[%s3956_s21] ss:$0 sps:$4 sm:$0xff]  }
 0x491   : > { %v1577_v25 = vmul.f32 1.442695, %v1564_v9 }
 0x492   : > { %v4322_v4 = vpop.eup %3833 }
 0x493   : > { %3837 = vpow2.f32 %v1577_v25  ;;  %v1595_v28 = vsel %vm218_vm1, %v4322_v4, 0.0 }
 0x494   : > { %1596 = vadd.xlane.f32.xlu1 %v1595_v28  ;;  %3839 = vpow2.f32 %v1579_v60 }
 0x495   : > { %v4326_v29 = vpop.eup %3835 }
 0x496   : > { %v1592_v30 = vsel %vm218_vm1, %v4326_v29, 0.0  ;;  %v1558_v13 = vpop.xlane.xlu0 %1557 }
 0x497   : > { %1593 = vadd.xlane.f32.xlu0 %v1592_v30  ;;  %v1566_v34 = vsub.f32 %v1530_v47, %v1558_v13  ;;  %v1872_v47 = vpop.permute.xlu1 %1871 }
 0x498   : > { %v1877_v24 = vsel %vm723_vm2, %v1872_v47, 0 }
 0x499   : > { %v1581_v62 = vmul.f32 1.442695, %v1566_v34 }
 0x49a   : > { %v1824_v49 = vpop.permute.xlu0 %1823 }
 0x49b   : > { %3841 = vpow2.f32 %v1581_v62  ;;  %v1829_v55 = vsel %vm723_vm2, %v1824_v49, 0 }
 0x49d   : > { %v4330_v10 = vpop.eup %3837 }
 0x49e   : > { %v1598_v8 = vsel %vm218_vm1, %v4330_v10, 0.0  ;;  %v4339_v35 = vpop.eup %3839 }
 0x49f   : > { %1599 = vadd.xlane.f32.xlu0 %v1598_v8 }
 0x4a5   : > { %1967 = vrot.lane.b32.xlu1 %v4131_v1, %s3905_s28  ;;  %v1601_v1 = vsel %vm218_vm1, %v4339_v35, 0.0  ;;  %v4343_v36 = vpop.eup %3841 }
 0x4b5   : > { %1919 = vrot.lane.b32.xlu0 %v4167_v26, %s3905_s28  ;;  %v1604_v26 = vsel %vm218_vm1, %v4343_v36, 0.0 }
 0x4c9   : > { %1602 = vadd.xlane.f32.xlu1 %v1601_v1 }
 0x4d4   : > { %1605 = vadd.xlane.f32.xlu0 %v1604_v26 }
 0x4da   : > { %2081 = vrot.lane.b32.xlu1 %v4348_v14, %s3906_s5 }
 0x4de   : > { %2079 = vrot.lane.b32.xlu1 %v4348_v14, %s3907_s6 }
 0x4e2   : > { %2187 = vrot.lane.b32.xlu1 %v4353_v37, %s3906_s5 }
 0x4e6   : > { %2185 = vrot.lane.b32.xlu1 %v4353_v37, %s3907_s6 }
 0x4ea   : > { %2028 = vrot.lane.b32.xlu0 %v4357_v38, %s3906_s5  ;;  %2293 = vrot.lane.b32.xlu1 %v4361_v40, %s3906_s5 }
 0x4ee   : > { %2026 = vrot.lane.b32.xlu0 %v4357_v38, %s3907_s6  ;;  %2291 = vrot.lane.b32.xlu1 %v4361_v40, %s3907_s6 }
 0x4f2   : > { %2134 = vrot.lane.b32.xlu0 %v4367_v41, %s3906_s5  ;;  %2399 = vrot.lane.b32.xlu1 %v4371_v42, %s3906_s5 }
 0x4f6   : > { %2132 = vrot.lane.b32.xlu0 %v4367_v41, %s3907_s6  ;;  %2397 = vrot.lane.b32.xlu1 %v4371_v42, %s3907_s6 }
 0x4fa   : > { %2240 = vrot.lane.b32.xlu0 %v4377_v45, %s3906_s5  ;;  %2543 = vrot.lane.b32.xlu1 %v4357_v38, %s3908_s7 }
 0x4fe   : > { %2238 = vrot.lane.b32.xlu0 %v4377_v45, %s3907_s6 }
 0x502   : > { %2346 = vrot.lane.b32.xlu0 %v4383_v46, %s3906_s5 }
 0x506   : > { %2344 = vrot.lane.b32.xlu0 %v4383_v46, %s3907_s6 }
 0x511   : > { %v1585_v48 = vpop.xlane.xlu1 %1584 }
 0x512   : > { %3843 = vrcp.f32 %v1585_v48 }
 0x519   : > { %v1591_v50 = vpop.xlane.xlu1 %1590 }
 0x51a   : > { %3845 = vrcp.f32 %v1591_v50 }
 0x51c   : > { %v3844_v52 = vpop.eup %3843  ;;  %v1588_v54 = vpop.xlane.xlu0 %1587 }
 0x51d   : > { %v1615_v57 = vmul.f32 %v3844_v52, %v4310_v16  ;;  %3847 = vrcp.f32 %v1588_v54 }
 0x51f   : > { %v1623_v58 = vpack.c.bf16 %v1615_v57, %v1615_v57 }
 0x521   : > { %3555 = vmatmul.mubr.msk.bf16.vlgmr.msra.gmra.mrb[44].mxu0 %vm218_vm1, %v1623_v58  ;;  %v1597_v61 = vpop.xlane.xlu1 %1596 }
 0x522   : > { %3565 = vmatpush3.bf16.msra.mxu0 %v1733_v59  ;;  %3849 = vrcp.f32 %v1597_v61  ;;  %3566 = vmatprep.mubr.msk.bf16.mxu0 %vm3900_vm0, %v3899_v0 }
 0x523   : > { %3576 = vmatprep.subr.bf16.mxu0 %v3899_v0 }
 0x524   : > { %v3846_v63 = vpop.eup %3845  ;;  %v1594_v15 = vpop.xlane.xlu0 %1593 }
 0x525   : > { %v1617_v2 = vmul.f32 %v3846_v63, %v4314_v3  ;;  %3851 = vrcp.f32 %v1594_v15 }
 0x527   : > { %v3848_v6 = vpop.eup %3847  ;;  %v1625_v16 = vpack.c.bf16 %v1617_v2, %v1617_v2 }
 0x528   : > { %v1616_v20 = vmul.f32 %v3848_v6, %v4318_v22 }
 0x529   : > { %3567 = vmatmul.mubr.msk.bf16.vlgmr.msra.gmra.mrb[48].mxu0 %vm218_vm1, %v1625_v16 }
 0x52a   : > { %3577 = vmatpush3.bf16.msra.mxu0 %v1829_v55  ;;  %v1624_v7 = vpack.c.bf16 %v1616_v20, %v1616_v20  ;;  %3578 = vmatprep.mubr.msk.bf16.mxu0 %vm3900_vm0, %v3899_v0 }
 0x52b   : > { %3588 = vmatprep.subr.bf16.mxu0 %v3899_v0 }
 0x52c   : > { %v3850_v11 = vpop.eup %3849  ;;  %3561 = vmatmul.mubr.msk.bf16.vlgmr.msra.gmra.mrb[52].mxu1 %vm218_vm1, %v1624_v7  ;;  %v1600_v17 = vpop.xlane.xlu0 %1599 }
 0x52d   : > { %v1619_v19 = vmul.f32 %v3850_v11, %v4322_v4  ;;  %3571 = vmatpush3.bf16.msra.mxu1 %v1781_v53  ;;  %3853 = vrcp.f32 %v1600_v17  ;;  %3572 = vmatprep.mubr.msk.bf16.mxu1 %vm3900_vm0, %v3899_v0  ;;  %v1968_v4 = vpop.permute.xlu1 %1967 }
 0x52e   : > { %3582 = vmatprep.subr.bf16.mxu1 %v3899_v0 }
 0x52f   : > { %v3852_v21 = vpop.eup %3851  ;;  %v1627_v3 = vpack.c.bf16 %v1619_v19, %v1619_v19 }
 0x530   : > { %v1618_v18 = vmul.f32 %v3852_v21, %v4326_v29  ;;  %v1920_v22 = vpop.permute.xlu0 %1919  ;;  %v1973_v29 = vsel %vm723_vm2, %v1968_v4, 0 }
 0x531   : > { %v1925_v23 = vsel %vm723_vm2, %v1920_v22, 0  ;;  %3579 = vmatmul.mubr.msk.bf16.vlgmr.msra.gmra.mrb[52].mxu0 %vm218_vm1, %v1627_v3 }
 0x532   : > { %3589 = vmatpush3.bf16.msra.mxu0 %v1925_v23  ;;  %v1626_v51 = vpack.c.bf16 %v1618_v18, %v1618_v18  ;;  %3590 = vmatprep.mubr.msk.bf16.mxu0 %vm3900_vm0, %v3899_v0 }
 0x533   : > { %3600 = vmatprep.subr.bf16.mxu0 %v3899_v0 }
 0x534   : > { %3573 = vmatmul.mubr.msk.bf16.vlgmr.msra.gmra.mrb[56].mxu1 %vm218_vm1, %v1626_v51 }
 0x535   : > { %3583 = vmatpush3.bf16.msra.mxu1 %v1877_v24  ;;  %3584 = vmatprep.mubr.msk.bf16.mxu1 %vm3900_vm0, %v3899_v0 }
 0x536   : > { %3594 = vmatprep.subr.bf16.mxu1 %v3899_v0 }
 0x537   : > { %v3854_v9 = vpop.eup %3853 }
 0x538   : > { %v1620_v25 = vmul.f32 %v3854_v9, %v4330_v10 }
 0x53a   : > { %v1628_v28 = vpack.c.bf16 %v1620_v25, %v1620_v25 }
 0x53c   : > { %3585 = vmatmul.mubr.msk.bf16.vlgmr.msra.gmra.mrb[60].mxu1 %vm218_vm1, %v1628_v28 }
 0x53d   : > { %3595 = vmatpush3.bf16.msra.mxu1 %v1973_v29  ;;  %3596 = vmatprep.mubr.msk.bf16.mxu1 %vm3900_vm0, %v3899_v0 }
 0x53e   : > { %3606 = vmatprep.subr.bf16.mxu1 %v3899_v0 }
 0x556   : > { %v1603_v30 = vpop.xlane.xlu1 %1602 }
 0x557   : > { %3855 = vrcp.f32 %v1603_v30 }
 0x55a   : > { %v2082_v8 = vpop.permute.xlu1 %2081 }
 0x55b   : > { %v2087_v50 = vsel %vm218_vm1, %v2082_v8, 0 }
 0x55e   : > { %v2080_v62 = vpop.permute.xlu1 %2079 }
 0x561   : > { %v3856_v32 = vpop.eup %3855  ;;  %v1606_v12 = vpop.xlane.xlu0 %1605 }
 0x562   : > { %v1621_v60 = vmul.f32 %v3856_v32, %v4339_v35  ;;  %3857 = vrcp.f32 %v1606_v12  ;;  %v2188_v47 = vpop.permute.xlu1 %2187 }
 0x563   : > { %v2193_v59 = vsel %vm218_vm1, %v2188_v47, 0 }
 0x564   : > { %v1629_v10 = vpack.c.bf16 %v1621_v60, %v1621_v60 }
 0x565   : > { %v2029_v13 = vpop.permute.xlu0 %2028 }
 0x566   : > { %v2034_v34 = vsel %vm218_vm1, %v2029_v13, 0  ;;  %3591 = vmatmul.mubr.msk.bf16.vlgmr.msra.gmra.mrb[56].mxu0 %vm218_vm1, %v1629_v10 }
 0x567   : > { %3601 = vmatpush3.bf16.xpose.msra.mxu0 %v2034_v34  ;;  %3602 = vmatprep.mubr.msk.bf16.mxu0 %vm3900_vm0, %v3899_v0 }
 0x568   : > { %3612 = vmatprep.subr.bf16.mxu0 %v3899_v0 }
 0x569   : > { %v2027_v1 = vpop.permute.xlu0 %2026 }
 0x56c   : > { %v3858_v26 = vpop.eup %3857 }
 0x56d   : > { %v1622_v48 = vmul.f32 %v3858_v26, %v4343_v36  ;;  %v2135_v35 = vpop.permute.xlu0 %2134  ;;  %v2186_v36 = vpop.permute.xlu1 %2185 }
 0x56e   : > { %v2140_v49 = vsel %vm218_vm1, %v2135_v35, 0  ;;  %3603 = vmatmul.mubr.msk.bf16.vlgmr.msra.gmra.mrb[60].mxu0 %vm218_vm1, %v2027_v1 }
 0x56f   : > { %3613 = vmatpush3.bf16.xpose.msra.mxu0 %v2140_v49  ;;  %v1630_v52 = vpack.c.bf16 %v1622_v48, %v1622_v48  ;;  %3614 = vmatprep.mubr.msk.bf16.mxu0 %vm3900_vm0, %v3899_v0 }
 0x570   : > { %3624 = vmatprep.subr.bf16.mxu0 %v3899_v0 }
 0x571   : > { %3597 = vmatmul.mubr.msk.bf16.vlgmr.msra.gmra.mrb[64].mxu1 %vm218_vm1, %v1630_v52  ;;  %v2133_v54 = vpop.permute.xlu0 %2132  ;;  %v2294_v61 = vpop.permute.xlu1 %2293 }
 0x572   : > { %3607 = vmatpush3.bf16.xpose.msra.mxu1 %v2087_v50  ;;  %3608 = vmatprep.mubr.msk.bf16.mxu1 %vm3900_vm0, %v3899_v0  ;;  %v2299_v16 = vsel %vm218_vm1, %v2294_v61, 0 }
 0x573   : > { %3618 = vmatprep.subr.bf16.mxu1 %v3899_v0 }
 0x575   : > { %v2241_v57 = vpop.permute.xlu0 %2240  ;;  %v2292_v6 = vpop.permute.xlu1 %2291 }
 0x576   : > { %v2246_v58 = vsel %vm218_vm1, %v2241_v57, 0  ;;  %3615 = vmatmul.mubr.msk.bf16.vlgmr.msra.gmra.mrb[64].mxu0 %vm218_vm1, %v2133_v54  ;;  %v204_v54 = vld [vmem:[%s4681_s1 + $0x10] sm:$0xff] }
 0x577   : > { %3625 = vmatpush3.bf16.xpose.msra.mxu0 %v2246_v58  ;;  %3626 = vmatprep.mubr.msk.bf16.mxu0 %vm3900_vm0, %v3899_v0 }
 0x578   : > { %3636 = vmatprep.subr.bf16.mxu0 %v3899_v0 }
 0x579   : > { %3609 = vmatmul.mubr.msk.bf16.vlgmr.msra.gmra.mrb[68].mxu1 %vm218_vm1, %v2080_v62  ;;  %v2239_v63 = vpop.permute.xlu0 %2238  ;;  %v2400_v55 = vpop.permute.xlu1 %2399 }
 0x57a   : > { %3619 = vmatpush3.bf16.xpose.msra.mxu1 %v2193_v59  ;;  %3620 = vmatprep.mubr.msk.bf16.mxu1 %vm3900_vm0, %v3899_v0  ;;  %v2405_v7 = vsel %vm218_vm1, %v2400_v55, 0 }
 0x57b   : > { %3630 = vmatprep.subr.bf16.mxu1 %v3899_v0 }
 0x57d   : > { %v2347_v15 = vpop.permute.xlu0 %2346  ;;  %v2398_v11 = vpop.permute.xlu1 %2397 }
 0x57e   : > { %v2352_v2 = vsel %vm218_vm1, %v2347_v15, 0  ;;  %3627 = vmatmul.mubr.msk.bf16.vlgmr.msra.gmra.mrb[68].mxu0 %vm218_vm1, %v2239_v63 }
 0x57f   : > { %3637 = vmatpush3.bf16.xpose.msra.mxu0 %v2352_v2  ;;  %3638 = vmatprep.mubr.msk.bf16.mxu0 %vm3900_vm0, %v3899_v0 }
 0x580   : > { %3648 = vmatprep.subr.bf16.mxu0 %v3899_v0 }
 0x581   : > { %3621 = vmatmul.mubr.msk.bf16.vlgmr.msra.gmra.mrb[72].mxu1 %vm218_vm1, %v2186_v36  ;;  %v2345_v20 = vpop.permute.xlu0 %2344  ;;  %v2544_v29 = vpop.permute.xlu1 %2543 }
 0x582   : > { %3631 = vmatpush3.bf16.xpose.msra.mxu1 %v2299_v16  ;;  %3632 = vmatprep.mubr.msk.bf16.mxu1 %vm3900_vm0, %v3899_v0  ;;  %v2549_v8 = vsel %vm723_vm2, %v2544_v29, 0 }
 0x583   : > { %3642 = vmatprep.subr.bf16.mxu1 %v3899_v0 }
 0x586   : > { %3639 = vmatmul.mubr.msk.bf16.vlgmr.msra.gmra.mrb[72].mxu0 %vm218_vm1, %v2345_v20 }
 0x587   : > { %3650 = vmatprep.mubr.msk.bf16.mxu0 %vm3900_vm0, %v3899_v0  ;;  %3649 = vmatpush3.bf16.msra.mxu0 %v2549_v8 }
 0x588   : > { %3660 = vmatprep.subr.bf16.mxu0 %v3899_v0 }
 0x589   : > { %3633 = vmatmul.mubr.msk.bf16.vlgmr.msra.gmra.mrb[76].mxu1 %vm218_vm1, %v2292_v6 }
 0x58a   : > { %3643 = vmatpush3.bf16.xpose.msra.mxu1 %v2405_v7  ;;  %3644 = vmatprep.mubr.msk.bf16.mxu1 %vm3900_vm0, %v3899_v0 }
 0x58b   : > { %3654 = vmatprep.subr.bf16.mxu1 %v3899_v0 }
 0x591   : > { %3645 = vmatmul.mubr.msk.bf16.vlgmr.msra.gmra.mrb[80].mxu1 %vm218_vm1, %v2398_v11 }
 0x592   : > { %3656 = vmatprep.mubr.msk.bf16.mxu1 %vm3900_vm0, %v3899_v0 }
 0x5f4   : > { %v4475_v53 = vpop.f32.mrb[44].mxu0 }
 0x5f5   : > { %v3556_v17 = vpop.f32.mrb[45].mxu0 }
 0x5f6   : > { %v1676_v19 = vpop.f32.mrb[46].mxu0 }
 0x5f7   : > { %v3557_v21 = vpop.f32.mrb[47].mxu0 }
 0x5fc   : > { %v4477_v3 = vpop.f32.mrb[48].mxu0 }
 0x5fd   : > { %v3568_v18 = vpop.f32.mrb[49].mxu0 }
 0x5fe   : > { %v1772_v22 = vpop.f32.mrb[50].mxu0 }
 0x5ff   : > { %v4479_v23 = vpop.f32.mrb[52].mxu1  ;;  %v3569_v51 = vpop.f32.mrb[51].mxu0 }
 0x600   : > { %v3729_v24 = vpack.i.bf16 %v4479_v23, %v4475_v53  ;;  %v3562_v9 = vpop.f32.mrb[53].mxu1 }
 0x601   : > { %v1724_v25 = vpop.f32.mrb[54].mxu1 }
 0x602   : > { %v3563_v4 = vpop.f32.mrb[55].mxu1 }
 0x604   : > { %v4483_v28 = vpop.f32.mrb[52].mxu0 }
 0x605   : > { %v3580_v38 = vpop.f32.mrb[53].mxu0 }
 0x606   : > { %v1868_v30 = vpop.f32.mrb[54].mxu0 }
 0x607   : > { %v4486_v32 = vpop.f32.mrb[56].mxu1  ;;  %v3581_v12 = vpop.f32.mrb[55].mxu0 }
 0x608   : > { %v3734_v60 = vpack.i.bf16 %v4486_v32, %v4477_v3  ;;  %v3574_v10 = vpop.f32.mrb[57].mxu1 }
 0x609   : > { %v1820_v13 = vpop.f32.mrb[58].mxu1 }
 0x60a   : > { %v3575_v34 = vpop.f32.mrb[59].mxu1 }
 0x60f   : > { %v4491_v62 = vpop.f32.mrb[60].mxu1 }
 0x610   : > { %v3744_v1 = vpack.i.bf16 %v4491_v62, %v4483_v28  ;;  %v3586_v26 = vpop.f32.mrb[61].mxu1 }
 0x611   : > { %v1916_v47 = vpop.f32.mrb[62].mxu1 }
 0x612   : > { %v3587_v48 = vpop.f32.mrb[63].mxu1 }
 0x639   : > { %v4495_v35 = vpop.f32.mrb[56].mxu0 }
 0x63a   : > { %v3592_v49 = vpop.f32.mrb[57].mxu0 }
 0x63b   : > { %v1964_v50 = vpop.f32.mrb[58].mxu0 }
 0x63c   : > { %v3593_v52 = vpop.f32.mrb[59].mxu0 }
 0x641   : > { %v2070_v36 = vpop.f32.mrb[60].mxu0 }
 0x642   : > { %v4500_v57 = vadd.f32 %v2070_v36, %v204_v54  ;;  %v3604_v58 = vpop.f32.mrb[61].mxu0 }
 0x643   : > { %v2073_v59 = vpop.f32.mrb[62].mxu0 }
 0x644   : > { %v4502_v61 = vpop.f32.mrb[64].mxu1  ;;  %v3605_v63 = vpop.f32.mrb[63].mxu0  ;;  %v2447_v15 = vsel %vm218_vm1, %v4500_v57, -inf }
 0x645   : > { %v3754_v2 = vpack.i.bf16 %v4502_v61, %v4495_v35  ;;  %v3598_v6 = vpop.f32.mrb[65].mxu1  ;;  %2448 = vmax.xlane.f32.xlu0 %v2447_v15 }
 0x646   : > { %v2012_v16 = vpop.f32.mrb[66].mxu1 }
 0x647   : > { %v3599_v20 = vpop.f32.mrb[67].mxu1 }
 0x649   : > { %v2176_v55 = vpop.f32.mrb[64].mxu0 }
 0x64a   : > { %v2177_v7 = vadd.f32 %v2176_v55, %v204_v54  ;;  %v3616_v11 = vpop.f32.mrb[65].mxu0 }
 0x64b   : > { %v2179_v17 = vpop.f32.mrb[66].mxu0 }
 0x64c   : > { %v2123_v19 = vpop.f32.mrb[68].mxu1  ;;  %v2453_v21 = vsel %vm218_vm1, %v2177_v7, -inf  ;;  %v3617_v18 = vpop.f32.mrb[67].mxu0 }
 0x64d   : > { %v2124_v22 = vadd.f32 %v2123_v19, %v204_v54  ;;  %v3610_v51 = vpop.f32.mrb[69].mxu1  ;;  %2454 = vmax.xlane.f32.xlu0 %v2453_v21 }
 0x64e   : > { %v2126_v9 = vpop.f32.mrb[70].mxu1 }
 0x64f   : > { %v3611_v25 = vpop.f32.mrb[71].mxu1  ;;  %v2450_v4 = vsel %vm218_vm1, %v2124_v22, -inf }
 0x650   : > { %2451 = vmax.xlane.f32.xlu1 %v2450_v4 }
 0x651   : > { %v2282_v38 = vpop.f32.mrb[68].mxu0 }
 0x652   : > { %v4510_v29 = vadd.f32 %v2282_v38, %v204_v54  ;;  %v3628_v30 = vpop.f32.mrb[69].mxu0 }
 0x653   : > { %v2285_v8 = vpop.f32.mrb[70].mxu0 }
 0x654   : > { %v2229_v12 = vpop.f32.mrb[72].mxu1  ;;  %v2459_v10 = vsel %vm218_vm1, %v4510_v29, -inf  ;;  %v3629_v13 = vpop.f32.mrb[71].mxu0 }
 0x655   : > { %v2230_v34 = vadd.f32 %v2229_v12, %v204_v54  ;;  %v3622_v26 = vpop.f32.mrb[73].mxu1  ;;  %2460 = vmax.xlane.f32.xlu1 %v2459_v10 }
 0x656   : > { %v2232_v47 = vpop.f32.mrb[74].mxu1 }
 0x657   : > { %v3623_v48 = vpop.f32.mrb[75].mxu1  ;;  %v2456_v49 = vsel %vm218_vm1, %v2230_v34, -inf }
 0x658   : > { %2457 = vmax.xlane.f32.xlu0 %v2456_v49 }
 0x659   : > { %v2388_v50 = vpop.f32.mrb[72].mxu0 }
 0x65a   : > { %v4515_v52 = vadd.f32 %v2388_v50, %v204_v54  ;;  %v3640_v36 = vpop.f32.mrb[73].mxu0 }
 0x65b   : > { %v2391_v58 = vpop.f32.mrb[74].mxu0 }
 0x65c   : > { %v2335_v59 = vpop.f32.mrb[76].mxu1  ;;  %v2465_v63 = vsel %vm218_vm1, %v4515_v52, -inf  ;;  %v3641_v15 = vpop.f32.mrb[75].mxu0 }
 0x65d   : > { %v2336_v6 = vadd.f32 %v2335_v59, %v204_v54  ;;  %2466 = vmax.xlane.f32.xlu1 %v2465_v63  ;;  %v3634_v16 = vpop.f32.mrb[77].mxu1 }
 0x65e   : > { %v2338_v20 = vpop.f32.mrb[78].mxu1 }
 0x65f   : > { %v2462_v55 = vsel %vm218_vm1, %v2336_v6, -inf  ;;  %v3635_v11 = vpop.f32.mrb[79].mxu1 }
 0x660   : > { %2463 = vmax.xlane.f32.xlu0 %v2462_v55 }
 0x664   : > { %v2441_v17 = vpop.f32.mrb[80].mxu1 }
 0x665   : > { %v2442_v19 = vadd.f32 %v2441_v17, %v204_v54  ;;  %v3646_v21 = vpop.f32.mrb[81].mxu1 }
 0x666   : > { %v2444_v18 = vpop.f32.mrb[82].mxu1 }
 0x667   : > { %v2468_v51 = vsel %vm218_vm1, %v2442_v19, -inf  ;;  %v3647_v9 = vpop.f32.mrb[83].mxu1 }
 0x668   : > { %2469 = vmax.xlane.f32.xlu0 %v2468_v51 }
 0x66e   : > { %2639 = vrot.lane.b32.xlu1 %v4367_v41, %s3908_s7 }
 0x672   : > { %2687 = vrot.lane.b32.xlu1 %v4353_v37, %s3908_s7 }
 0x67e   : > { %2591 = vrot.lane.b32.xlu0 %v4348_v14, %s3908_s7 }
 0x6d2   : > { %v2449_v25 = vpop.xlane.xlu0 %2448 }
 0x6d3   : > { %v2471_v4 = vsub.f32 %v4500_v57, %v2449_v25 }
 0x6d5   : > { %v2479_v38 = vmul.f32 1.442695, %v2471_v4 }
 0x6d7   : > { %3859 = vpow2.f32 %v2479_v38 }
 0x6da   : > { %v2455_v54 = vpop.xlane.xlu0 %2454 }
 0x6db   : > { %v2473_v30 = vsub.f32 %v2177_v7, %v2455_v54 }
 0x6dd   : > { %v2483_v8 = vmul.f32 1.442695, %v2473_v30  ;;  %v2452_v12 = vpop.xlane.xlu1 %2451 }
 0x6de   : > { %v2472_v10 = vsub.f32 %v2124_v22, %v2452_v12 }
 0x6df   : > { %3861 = vpow2.f32 %v2483_v8 }
 0x6e0   : > { %v2481_v13 = vmul.f32 1.442695, %v2472_v10 }
 0x6e1   : > { %v4528_v26 = vpop.eup %3859 }
 0x6e2   : > { %3863 = vpow2.f32 %v2481_v13  ;;  %v2495_v37 = vsel %vm218_vm1, %v4528_v26, 0.0  ;;  %v2461_v63 = vpop.xlane.xlu1 %2460 }
 0x6e3   : > { %2496 = vadd.xlane.f32.xlu1 %v2495_v37  ;;  %v2475_v15 = vsub.f32 %v4510_v29, %v2461_v63 }
 0x6e5   : > { %v2458_v14 = vpop.xlane.xlu0 %2457  ;;  %v2487_v20 = vmul.f32 1.442695, %v2475_v15 }
 0x6e6   : > { %v2474_v41 = vsub.f32 %v2230_v34, %v2458_v14 }
 0x6e8   : > { %v2485_v47 = vmul.f32 1.442695, %v2474_v41 }
 0x6e9   : > { %v4532_v57 = vpop.eup %3861 }
 0x6ea   : > { %3865 = vpow2.f32 %v2485_v47  ;;  %v2501_v7 = vsel %vm218_vm1, %v4532_v57, 0.0  ;;  %v2467_v16 = vpop.xlane.xlu1 %2466 }
 0x6eb   : > { %2502 = vadd.xlane.f32.xlu1 %v2501_v7  ;;  %v2477_v55 = vsub.f32 %v4515_v52, %v2467_v16  ;;  %3867 = vpow2.f32 %v2487_v20 }
 0x6ec   : > { %v4536_v22 = vpop.eup %3863 }
 0x6ed   : > { %v2498_v48 = vsel %vm218_vm1, %v4536_v22, 0.0  ;;  %v2464_v49 = vpop.xlane.xlu0 %2463  ;;  %v2491_v11 = vmul.f32 1.442695, %v2477_v55 }
 0x6ee   : > { %2499 = vadd.xlane.f32.xlu0 %v2498_v48  ;;  %v2476_v17 = vsub.f32 %v2336_v6, %v2464_v49  ;;  %v2640_v4 = vpop.permute.xlu1 %2639 }
 0x6ef   : > { %3869 = vpow2.f32 %v2491_v11  ;;  %v2645_v32 = vsel %vm723_vm2, %v2640_v4, 0  ;;  %v3793_v4 = vld [vmem:[%s4682_s2] sm:$0xff]  }
 0x6f0   : > { %v2489_v21 = vmul.f32 1.442695, %v2476_v17 }
 0x6f2   : > { %3871 = vpow2.f32 %v2489_v21  ;;  %v2688_v38 = vpop.permute.xlu1 %2687 }
 0x6f3   : > { %v2693_v14 = vsel %vm723_vm2, %v2688_v38, 0 }
 0x6f4   : > { %v4540_v50 = vpop.eup %3865 }
 0x6f5   : > { %v2470_v36 = vpop.xlane.xlu0 %2469  ;;  %v2504_v34 = vsel %vm218_vm1, %v4540_v50, 0.0  ;;  %v4552_v51 = vpop.eup %3867 }
 0x6f6   : > { %2505 = vadd.xlane.f32.xlu0 %v2504_v34  ;;  %v2478_v18 = vsub.f32 %v2442_v19, %v2470_v36  ;;  %v2507_v29 = vsel %vm218_vm1, %v4552_v51, 0.0 }
 0x6f9   : > { %v2592_v58 = vpop.permute.xlu0 %2591  ;;  %v4556_v9 = vpop.eup %3869 }
 0x6fa   : > { %v2597_v59 = vsel %vm723_vm2, %v2592_v58, 0 }
 0x6fb   : > { %3655 = vmatpush3.bf16.msra.mxu1 %v2597_v59 }
 0x6fc   : > { %2783 = vrot.lane.b32.xlu1 %v4361_v40, %s3908_s7  ;;  %3666 = vmatprep.subr.bf16.mxu1 %v3899_v0  ;;  %v2493_v40 = vmul.f32 1.442695, %v2478_v18  ;;  %v4560_v52 = vpop.eup %3871 }
 0x6fd   : > { %v2510_v6 = vsel %vm218_vm1, %v4560_v52, 0.0 }
 0x6fe   : > { %3873 = vpow2.f32 %v2493_v40 }
 0x708   : > { %v4564_v19 = vpop.eup %3873 }
 0x709   : > { %v2516_v25 = vsel %vm218_vm1, %v4564_v19, 0.0 }
 0x70c   : > { %2735 = vrot.lane.b32.xlu0 %v4377_v45, %s3908_s7  ;;  %v2513_v45 = vsel %vm218_vm1, %v4556_v9, 0.0 }
 0x720   : > { %2508 = vadd.xlane.f32.xlu1 %v2507_v29 }
 0x724   : > { %2514 = vadd.xlane.f32.xlu1 %v2513_v45 }
 0x72b   : > { %2511 = vadd.xlane.f32.xlu0 %v2510_v6 }
 0x72f   : > { %2517 = vadd.xlane.f32.xlu0 %v2516_v25 }
 0x735   : > { %2879 = vrot.lane.b32.xlu1 %v4371_v42, %s3908_s7 }
 0x739   : > { %3735 = vrot.lane.b32.xlu1 %v3734_v60, %s3909_s10 }
 0x745   : > { %2831 = vrot.lane.b32.xlu0 %v4383_v46, %s3908_s7 }
 0x749   : > { %3730 = vrot.lane.b32.xlu0 %v3729_v24, %s3909_s10 }
 0x770   : > { %v2497_v54 = vpop.xlane.xlu1 %2496 }
 0x771   : > { %3875 = vrcp.f32 %v2497_v54 }
 0x778   : > { %v2503_v30 = vpop.xlane.xlu1 %2502 }
 0x779   : > { %3877 = vrcp.f32 %v2503_v30 }
 0x77b   : > { %v3876_v42 = vpop.eup %3875  ;;  %v2500_v8 = vpop.xlane.xlu0 %2499 }
 0x77c   : > { %v2527_v12 = vmul.f32 %v3876_v42, %v4528_v26  ;;  %3879 = vrcp.f32 %v2500_v8 }
 0x77e   : > { %v2535_v3 = vpack.c.bf16 %v2527_v12, %v2527_v12 }
 0x780   : > { %3651 = vmatmul.mubr.msk.bf16.vlgmr.msra.gmra.mrb[76].mxu0 %vm218_vm1, %v2535_v3 }
 0x781   : > { %3661 = vmatpush3.bf16.msra.mxu0 %v2645_v32  ;;  %3662 = vmatprep.mubr.msk.bf16.mxu0 %vm3900_vm0, %v3899_v0 }
 0x782   : > { %3672 = vmatprep.subr.bf16.mxu0 %v3899_v0 }
 0x783   : > { %v3878_v46 = vpop.eup %3877  ;;  %v2506_v53 = vpop.xlane.xlu0 %2505 }
 0x784   : > { %v2529_v23 = vmul.f32 %v3878_v46, %v4532_v57  ;;  %3881 = vrcp.f32 %v2506_v53  ;;  %v2784_v57 = vpop.permute.xlu1 %2783 }
 0x786   : > { %v3880_v24 = vpop.eup %3879  ;;  %v2537_v60 = vpack.c.bf16 %v2529_v23, %v2529_v23 }
 0x787   : > { %v2528_v10 = vmul.f32 %v3880_v24, %v4536_v22  ;;  %v2736_v13 = vpop.permute.xlu0 %2735  ;;  %v2789_v22 = vsel %vm723_vm2, %v2784_v57, 0 }
 0x788   : > { %v2741_v26 = vsel %vm723_vm2, %v2736_v13, 0  ;;  %3663 = vmatmul.mubr.msk.bf16.vlgmr.msra.gmra.mrb[80].mxu0 %vm218_vm1, %v2537_v60 }
 0x789   : > { %3673 = vmatpush3.bf16.msra.mxu0 %v2741_v26  ;;  %v2536_v37 = vpack.c.bf16 %v2528_v10, %v2528_v10  ;;  %3674 = vmatprep.mubr.msk.bf16.mxu0 %vm3900_vm0, %v3899_v0 }
 0x78a   : > { %3684 = vmatprep.subr.bf16.mxu0 %v3899_v0 }
 0x78b   : > { %3657 = vmatmul.mubr.msk.bf16.vlgmr.msra.gmra.mrb[84].mxu1 %vm218_vm1, %v2536_v37 }
 0x78c   : > { %3667 = vmatpush3.bf16.msra.mxu1 %v2693_v14  ;;  %3668 = vmatprep.mubr.msk.bf16.mxu1 %vm3900_vm0, %v3899_v0 }
 0x78d   : > { %3678 = vmatprep.subr.bf16.mxu1 %v3899_v0 }
 0x78e   : > { %v3882_v41 = vpop.eup %3881 }
 0x78f   : > { %v2530_v47 = vmul.f32 %v3882_v41, %v4540_v50 }
 0x791   : > { %v2538_v7 = vpack.c.bf16 %v2530_v47, %v2530_v47 }
 0x793   : > { %3669 = vmatmul.mubr.msk.bf16.vlgmr.msra.gmra.mrb[88].mxu1 %vm218_vm1, %v2538_v7 }
 0x794   : > { %3679 = vmatpush3.bf16.msra.mxu1 %v2789_v22  ;;  %3680 = vmatprep.mubr.msk.bf16.mxu1 %vm3900_vm0, %v3899_v0 }
 0x795   : > { %3690 = vmatprep.subr.bf16.mxu1 %v3899_v0 }
 0x7ad   : > { %v2509_v48 = vpop.xlane.xlu1 %2508 }
 0x7ae   : > { %3883 = vrcp.f32 %v2509_v48 }
 0x7b1   : > { %v2515_v49 = vpop.xlane.xlu1 %2514 }
 0x7b2   : > { %3885 = vrcp.f32 %v2515_v49 }
 0x7b5   : > { %v2880_v21 = vpop.permute.xlu1 %2879 }
 0x7b6   : > { %v2885_v18 = vsel %vm723_vm2, %v2880_v21, 0 }
 0x7b8   : > { %v3884_v36 = vpop.eup %3883  ;;  %v2512_v34 = vpop.xlane.xlu0 %2511 }
 0x7b9   : > { %v2531_v50 = vmul.f32 %v3884_v36, %v4552_v51  ;;  %3887 = vrcp.f32 %v2512_v34 }
 0x7bb   : > { %v2539_v58 = vpack.c.bf16 %v2531_v50, %v2531_v50 }
 0x7bc   : > { %v3886_v59 = vpop.eup %3885  ;;  %v2518_v63 = vpop.xlane.xlu0 %2517 }
 0x7bd   : > { %3889 = vrcp.f32 %v2518_v63  ;;  %3675 = vmatmul.mubr.msk.bf16.vlgmr.msra.gmra.mrb[84].mxu0 %vm218_vm1, %v2539_v58  ;;  %v2533_v15 = vmul.f32 %v3886_v59, %v4556_v9 }
 0x7be   : > { %3686 = vmatprep.mubr.msk.bf16.mxu0 %vm3900_vm0, %v3899_v0 }
 0x7bf   : > { %v2541_v11 = vpack.c.bf16 %v2533_v15, %v2533_v15 }
 0x7c0   : > { %v2832_v16 = vpop.permute.xlu0 %2831 }
 0x7c1   : > { %v2837_v20 = vsel %vm723_vm2, %v2832_v16, 0 }
 0x7c2   : > { %3685 = vmatpush3.bf16.msra.mxu0 %v2837_v20 }
 0x7c3   : > { %v3888_v55 = vpop.eup %3887  ;;  %3696 = vmatprep.subr.bf16.mxu0 %v3793_v4 }
 0x7c4   : > { %v2532_v17 = vmul.f32 %v3888_v55, %v4560_v52  ;;  %v3731_v61 = vpop.permute.xlu0 %3730  ;;  %v3736_v55 = vpop.permute.xlu1 %3735 }
 0x7c5   : > { %3687 = vmatmul.mubr.msk.bf16.vlgmr.msra.gmra.mrb[88].mxu0 %vm218_vm1, %v2541_v11  ;;  %v3732_v58 = vunpack.i.l.bf16 %v3731_v61 }
 0x7c6   : > { %v2540_v51 = vpack.c.bf16 %v2532_v17, %v2532_v17  ;;  %3697 = vmatpush3.bf16.msra.mxu0 %v3793_v4 }
 0x7c7   : > { %v3890_v40 = vpop.eup %3889  ;;  %v2991_v20 = vsel %vm218_vm1, %v4264_v27, %v3732_v58 }
 0x7c8   : > { %3681 = vmatmul.mubr.msk.bf16.vlgmr.msra.gmra.mrb[92].mxu1 %vm218_vm1, %v2540_v51  ;;  %v2534_v29 = vmul.f32 %v3890_v40, %v4564_v19  ;;  %v3737_v51 = vunpack.i.l.bf16 %v3736_v55 }
 0x7c9   : > { %3691 = vmatpush3.bf16.msra.mxu1 %v2885_v18  ;;  %3692 = vmatprep.mubr.msk.bf16.mxu1 %vm3900_vm0, %v3899_v0  ;;  %v3794_v0 = vld [vmem:[%s4682_s2 + $0x8] ss:$0 sps:$4 sm:$0xff]   ;;  %v3738_v18 = vunpack.i.h.bf16 %v3736_v55 }
 0x7ca   : > { %v2542_v9 = vpack.c.bf16 %v2534_v29, %v2534_v29  ;;  %3708 = vmatprep.subr.msk.bf16.mxu0 %vm723_vm2, %v3794_v0  ;;  %v3062_v8 = vsel %vm723_vm2, %v3794_v0, 0  ;;  %v2993_v27 = vsel %vm218_vm1, %v4268_v31, %v3737_v51 }
 0x7cb   : > { %3699 = vmatpush3.bf16.msra.mxu0 %v3062_v8 }
 0x7d0   : > { %3693 = vmatmul.mubr.msk.bf16.vlgmr.msra.gmra.mrb[96].mxu1 %vm218_vm1, %v2542_v9 }
 0x853   : > { %v2585_v45 = vpop.f32.mrb[76].mxu0 }
 0x854   : > { %v3652_v52 = vpop.f32.mrb[77].mxu0 }
 0x855   : > { %v2588_v6 = vpop.f32.mrb[78].mxu0 }
 0x856   : > { %v3653_v25 = vpop.f32.mrb[79].mxu0 }
 0x85b   : > { %v2681_v38 = vpop.f32.mrb[80].mxu0 }
 0x85c   : > { %v3664_v54 = vpop.f32.mrb[81].mxu0 }
 0x85d   : > { %v2684_v19 = vpop.f32.mrb[82].mxu0 }
 0x85e   : > { %v2633_v30 = vpop.f32.mrb[84].mxu1  ;;  %v3665_v42 = vpop.f32.mrb[83].mxu0 }
 0x85f   : > { %v3739_v12 = vpack.i.bf16 %v2633_v30, %v2585_v45  ;;  %v3658_v3 = vpop.f32.mrb[85].mxu1 }
 0x860   : > { %v2636_v32 = vpop.f32.mrb[86].mxu1 }
 0x861   : > { %3740 = vrot.lane.b32.xlu0 %v3739_v12, %s3910_s16  ;;  %v3659_v46 = vpop.f32.mrb[87].mxu1 }
 0x865   : > { %3745 = vrot.lane.b32.xlu0 %v3744_v1, %s3909_s10 }
 0x866   : > { %v2729_v53 = vpop.f32.mrb[88].mxu1 }
 0x867   : > { %v3749_v23 = vpack.i.bf16 %v2729_v53, %v2681_v38  ;;  %v3670_v24 = vpop.f32.mrb[89].mxu1 }
 0x868   : > { %v2732_v60 = vpop.f32.mrb[90].mxu1 }
 0x869   : > { %3750 = vrot.lane.b32.xlu1 %v3749_v23, %s3910_s16  ;;  %v3671_v10 = vpop.f32.mrb[91].mxu1 }
 0x86d   : > { %3755 = vrot.lane.b32.xlu1 %v3754_v2, %s3909_s10  ;;  %v3733_v2 = vunpack.i.h.bf16 %v3731_v61 }
 0x86f   : > { %v2992_v16 = vsel %vm218_vm1, %v4266_v5, %v3733_v2  ;;  %v2994_v5 = vsel %vm218_vm1, %v4274_v39, %v3738_v18 }
 0x890   : > { %v2777_v13 = vpop.f32.mrb[84].mxu0 }
 0x891   : > { %v3676_v26 = vpop.f32.mrb[85].mxu0 }
 0x892   : > { %v2780_v37 = vpop.f32.mrb[86].mxu0 }
 0x893   : > { %v3677_v14 = vpop.f32.mrb[87].mxu0 }
 0x898   : > { %v2873_v41 = vpop.f32.mrb[88].mxu0 }
 0x899   : > { %v3688_v47 = vpop.f32.mrb[89].mxu0 }
 0x89a   : > { %v2876_v57 = vpop.f32.mrb[90].mxu0 }
 0x89b   : > { %v2825_v28 = vpop.f32.mrb[92].mxu1  ;;  %v3689_v62 = vpop.f32.mrb[91].mxu0 }
 0x89c   : > { %v3759_v1 = vpack.i.bf16 %v2825_v28, %v2777_v13  ;;  %v3682_v7 = vpop.f32.mrb[93].mxu1  ;;  %v3299_v13 = vld [vmem:[%s4683_s3] ss:$0 sm:$0xff] }
 0x89d   : > { %v2828_v22 = vpop.f32.mrb[94].mxu1 }
 0x89e   : > { %3760 = vrot.lane.b32.xlu0 %v3759_v1, %s3910_s16  ;;  %v3683_v48 = vpop.f32.mrb[95].mxu1 }
 0x8a3   : > { %v2921_v49 = vpop.f32.mrb[96].mxu1 }
 0x8a4   : > { %v3764_v36 = vpack.i.bf16 %v2921_v49, %v2873_v41  ;;  %v3694_v34 = vpop.f32.mrb[97].mxu1 }
 0x8a5   : > { %v2924_v50 = vpop.f32.mrb[98].mxu1 }
 0x8a6   : > { %v3695_v35 = vpop.f32.mrb[99].mxu1  ;;  %3765 = vrot.lane.b32.xlu1 %v3764_v36, %s3910_s16 }
 0x8d3   : > { %v3741_v59 = vpop.permute.xlu0 %3740 }
 0x8d4   : > { %v3743_v63 = vunpack.i.h.bf16 %v3741_v59  ;;  %v3742_v15 = vunpack.i.l.bf16 %v3741_v59 }
 0x8d6   : > { %v3000_v11 = vsel %vm2999_vm3, %v2991_v20, %v3742_v15  ;;  %v3001_v17 = vsel %vm2999_vm3, %v2992_v16, %v3743_v63 }
 0x8d7   : > { %v3302_v21 = vpack.c.bf16 %v3001_v17, %v3000_v11  ;;  %v3746_v25 = vpop.permute.xlu0 %3745 }
 0x8d8   : > { %v3748_v4 = vunpack.i.h.bf16 %v3746_v25  ;;  %v3747_v38 = vunpack.i.l.bf16 %v3746_v25 }
 0x8d9   : > { %3700 = vmatprep.mubr.msk.bf16.mxu0 %vm3048_vm4, %v3302_v21 }
 0x8da   : > { %v2996_v30 = vsel %vm218_vm1, %v4278_v43, %v3748_v4  ;;  %v2995_v39 = vsel %vm218_vm1, %v4270_v33, %v3747_v38 }
 0x8db   : > { %v3751_v40 = vpop.permute.xlu1 %3750 }
 0x8dc   : > { %v3753_v29 = vunpack.i.h.bf16 %v3751_v40  ;;  %v3752_v9 = vunpack.i.l.bf16 %v3751_v40 }
 0x8de   : > { %v3003_v45 = vsel %vm2999_vm3, %v2994_v5, %v3753_v29  ;;  %v3002_v52 = vsel %vm2999_vm3, %v2993_v27, %v3752_v9 }
 0x8df   : > { %v3303_v6 = vpack.c.bf16 %v3003_v45, %v3002_v52  ;;  %v3756_v31 = vpop.permute.xlu1 %3755 }
 0x8e0   : > { %v3758_v3 = vunpack.i.h.bf16 %v3756_v31  ;;  %v3757_v32 = vunpack.i.l.bf16 %v3756_v31 }
 0x8e1   : > { %3701 = vmatmul.mubr.msk.bf16.vlgmr.msra.gmra.mrb[92].mxu0 %vm3048_vm4, %v3303_v6 }
 0x8e2   : > { %v2998_v43 = vsel %vm218_vm1, %v4287_v56, %v3758_v3  ;;  %v2997_v33 = vsel %vm218_vm1, %v4280_v44, %v3757_v32 }
 0x910   : > { %v3761_v54 = vpop.permute.xlu0 %3760 }
 0x911   : > { %v3763_v0 = vunpack.i.h.bf16 %v3761_v54  ;;  %v3762_v19 = vunpack.i.l.bf16 %v3761_v54 }
 0x913   : > { %v3004_v42 = vsel %vm2999_vm3, %v2995_v39, %v3762_v19  ;;  %v3005_v8 = vsel %vm2999_vm3, %v2996_v30, %v3763_v0 }
 0x914   : > { %v3304_v12 = vpack.c.bf16 %v3005_v8, %v3004_v42 }
 0x916   : > { %3704 = vmatprep.mubr.msk.bf16.mxu0 %vm3048_vm4, %v3304_v12 }
 0x918   : > { %v3766_v46 = vpop.permute.xlu1 %3765 }
 0x919   : > { %v3768_v53 = vunpack.i.h.bf16 %v3766_v46  ;;  %v3767_v23 = vunpack.i.l.bf16 %v3766_v46 }
 0x91b   : > { %v3007_v24 = vsel %vm2999_vm3, %v2998_v43, %v3768_v53  ;;  %v3006_v60 = vsel %vm2999_vm3, %v2997_v33, %v3767_v23 }
 0x91c   : > { %v3305_v10 = vpack.c.bf16 %v3007_v24, %v3006_v60 }
 0x91e   : > { %3705 = vmatmul.mubr.msk.bf16.gmra.mrb[96].mxu0 %vm3048_vm4, %v3305_v10 }
 0x9b4   : > { %v3702_v56 = vpop.f32.mrb[92].mxu0 }
 0x9b5   : > { %v3138_v26 = vadd.f32 %v3702_v56, %v3299_v13  ;;  %v3098_v37 = vpop.f32.mrb[93].mxu0 }
 0x9b6   : > { %v3136_v44 = vadd.f32 %v3299_v13, %v3098_v37  ;;  %v3703_v14 = vpop.f32.mrb[94].mxu0 }
 0x9b7   : > { %3146 = vst.msk [vmem:[%s199_s23 + $0x10] sm:$0xff] %vm3048_vm4, %v3138_v26  ;;  %v3139_v41 = vadd.f32 %v3703_v14, %v3299_v13  ;;  %v3101_v47 = vpop.f32.mrb[95].mxu0 }
 0x9b8   : > { %3144 = vst.msk [vmem:[%s199_s23] sm:$0xff] %vm3048_vm4, %v3136_v44  ;;  %v3137_v57 = vadd.f32 %v3299_v13, %v3101_v47 }
 0x9b9   : > { %3147 = vst.msk [vmem:[%s199_s23 + $0x18] sm:$0xff] %vm3048_vm4, %v3139_v41 }
 0x9ba   : > { %3145 = vst.msk [vmem:[%s199_s23 + $0x8] sm:$0xff] %vm3048_vm4, %v3137_v57 }
 0x9f1   : > { %v3706_v28 = vpop.f32.mrb[96].mxu0 }
 0x9f2   : > { %v3142_v62 = vadd.f32 %v3706_v28, %v3299_v13  ;;  %v3114_v1 = vpop.f32.mrb[97].mxu0 }
 0x9f3   : > { %v3140_v7 = vadd.f32 %v3299_v13, %v3114_v1  ;;  %v3707_v22 = vpop.f32.mrb[98].mxu0 }
 0x9f4   : > { %3150 = vst.msk [vmem:[%s199_s23 + $0x30] sm:$0xff] %vm3048_vm4, %v3142_v62  ;;  %v3143_v48 = vadd.f32 %v3707_v22, %v3299_v13  ;;  %v3117_v49 = vpop.f32.mrb[99].mxu0 }
 0x9f5   : > { %3148 = vst.msk [vmem:[%s199_s23 + $0x20] sm:$0xff] %vm3048_vm4, %v3140_v7  ;;  %v3141_v36 = vadd.f32 %v3299_v13, %v3117_v49 }
 0x9f6   : > { %3151 = vst.msk [vmem:[%s199_s23 + $0x38] sm:$0xff] %vm3048_vm4, %v3143_v48 }
 0x9f7   : > { %3149 = vst.msk [vmem:[%s199_s23 + $0x28] sm:$0xff] %vm3048_vm4, %v3141_v36 }
 0x9f8 PF: > { %s14_s15 = sadd.s32 1, %s3897_s15  }
 0x9f9   : > { %p11_p4 = scmp.ge.s32.totalorder %s14_s15, 4  }
 0x9fb   :  { %13 = sbr.rel (!%p11_p4) target bundleno = 1 (0x1), region = 66 }

// kernel: swin_forward.20
= control target key start
LH: loop header
LB: loop body
LE: loop exit
PB: predicated region body
PF: predicated region fallthrough
CT: control target
= control target key end

     0   :  { %s1240_s27 = smov 0   ;;  %s1542_s0 = inlined_call_operand.vmem [shape: f32[128,24], index: 0, kind: input, shape index: {}]   ;;  %s1543_s1 = inlined_call_operand.vmem [shape: f32[128,24], index: 1, kind: input, shape index: {}]   ;;  %s1544_s2 = inlined_call_operand.vmem [shape: f32[1,24], index: 2, kind: input, shape index: {}]   ;;  %s1545_s3 = inlined_call_operand.vmem [shape: f32[1,24], index: 3, kind: input, shape index: {}]   ;;  %s1546_s4 = inlined_call_operand.vmem [shape: bf16[24,96], index: 4, kind: input, shape index: {}]   ;;  %s1547_s5 = inlined_call_operand.vmem [shape: f32[1,96], index: 5, kind: input, shape index: {}]   ;;  %s1548_s6 = inlined_call_operand.vmem [shape: bf16[96,24], index: 6, kind: input, shape index: {}]   ;;  %s1549_s7 = inlined_call_operand.vmem [shape: f32[1,24], index: 7, kind: input, shape index: {}]   ;;  %s1550_s8 = inlined_call_operand.vmem [shape: f32[128,24], index: 8, kind: output, shape index: {}]  }
   0x1 LB: > { %s1041_s28 = sadd.s32 4294967295, %s1193_s27   ;;  %p1045_p0 = scmp.ge.s32.totalorder %s1193_s27, 1  ;;  %s1193_s27 = sphi %s1240_s27, %s18_s27  }
   0x2   : > { %p274_p1 = scmp.lt.s32.totalorder %s1193_s27, 3 }
   0x4   : > { %p275_p2 = pnand %p1045_p0, %p274_p1 }
   0x5   : > { %s1046_s29 = sshll.u32 (!%p275_p2), %s1041_s28, 3  ;;  %vm356_vm0 = vcmask (!%p275_p2), 195584   ;;  %vm527_vm1 = vcmask (!%p275_p2), 1043456   ;;  %vm864_vm7 = vcmask (!%p275_p2), 785408  }
   0x6   : > { %278 = sbr.rel (%p275_p2) target bundleno = 843 (0x34b), region = 52  ;;  %p314_p3 = scmp.lt.s32.totalorder (!%p275_p2), %s1046_s29, 15 }
   0xd   : > { %s1552_s29 = smov (!%p314_p3, %s1046_s29), 15 }
   0xe   : > { %s1248_s30 = sshll.u32 %s1552_s29, 3 }
   0xf   : > { %s317_s11 = scalar_lea.vmem %s1542_s0, %s1248_s30  ;;  %s323_s14 = scalar_lea.vmem %s1543_s1, %s1248_s30 }
  0x10   : > { %v332_v0 = vld [vmem:[%s317_s11] sm:$0xff]  ;;  %v334_v2 = vld [vmem:[%s317_s11 + $0x10] sm:$0xff]  ;;  %v333_v5 = vld [vmem:[%s317_s11 + $0x8] sm:$0xff]  ;;  %s329_s21 = scalar_lea.vmem %s1550_s8, %s1248_s30 }
  0x11   : > { %v340_v1 = vld [vmem:[%s323_s14] sm:$0xff]  ;;  %v342_v4 = vld [vmem:[%s323_s14 + $0x10] sm:$0xff]  ;;  %v341_v6 = vld [vmem:[%s323_s14 + $0x8] sm:$0xff] }
  0x12   : > { %v1258_v3 = vadd.f32 %v340_v1, %v332_v0  ;;  %v1260_v7 = vadd.f32 %v342_v4, %v334_v2  ;;  %v1262_v8 = vadd.f32 %v341_v6, %v333_v5  ;;  %v335_v9 = vld [vmem:[%s317_s11 + $0x18] sm:$0xff]  ;;  %v336_v11 = vld [vmem:[%s317_s11 + $0x20] sm:$0xff]  ;;  %v337_v15 = vld [vmem:[%s317_s11 + $0x28] sm:$0xff] }
  0x13   : > { %v343_v10 = vld [vmem:[%s323_s14 + $0x18] sm:$0xff]  ;;  %v344_v14 = vld [vmem:[%s323_s14 + $0x20] sm:$0xff]  ;;  %v345_v16 = vld [vmem:[%s323_s14 + $0x28] sm:$0xff] }
  0x14   : > { %v357_v12 = vsel %vm356_vm0, %v1258_v3, 0.0  ;;  %v1266_v13 = vadd.f32 %v343_v10, %v335_v9  ;;  %v363_v17 = vsel %vm356_vm0, %v1260_v7, 0.0  ;;  %v360_v18 = vsel %vm356_vm0, %v1262_v8, 0.0  ;;  %v338_v22 = vld [vmem:[%s317_s11 + $0x30] sm:$0xff]  ;;  %v339_v24 = vld [vmem:[%s317_s11 + $0x38] sm:$0xff] }
  0x15   : > { %358 = vadd.xlane.f32.xlu0 %v357_v12  ;;  %364 = vadd.xlane.f32.xlu1 %v363_v17  ;;  %v1272_v19 = vadd.f32 %v344_v14, %v336_v11  ;;  %v1276_v21 = vadd.f32 %v345_v16, %v337_v15  ;;  %v346_v23 = vld [vmem:[%s323_s14 + $0x30] sm:$0xff]  ;;  %v347_v25 = vld [vmem:[%s323_s14 + $0x38] sm:$0xff]  ;;  %v1131_v11 = vld [vmem:[%s1546_s4] sm:$0xff]  }
  0x16   : > { %v366_v20 = vsel %vm356_vm0, %v1266_v13, 0.0  ;;  %v1280_v27 = vadd.f32 %v346_v23, %v338_v22  ;;  %v1284_v29 = vadd.f32 %v347_v25, %v339_v24  ;;  %1090 = vmatprep.subr.bf16.mxu0 %v1131_v11  ;;  %v1132_v12 = vld [vmem:[%s1546_s4 + $0x8] ss:$0 sps:$4 sm:$0xff]  }
  0x17   : > { %v369_v26 = vsel %vm356_vm0, %v1272_v19, 0.0  ;;  %v372_v28 = vsel %vm356_vm0, %v1276_v21, 0.0  ;;  %1091 = vmatpush3.bf16.msra.mxu0 %v1131_v11  ;;  %v529_v14 = vsel %vm527_vm1, %v1132_v12, 0 }
  0x18   : > { %v375_v30 = vsel %vm356_vm0, %v1280_v27, 0.0  ;;  %v378_v31 = vsel %vm356_vm0, %v1284_v29, 0.0  ;;  %1122 = vmatprep.subr.msk.bf16.mxu0 %vm527_vm1, %v1132_v12 }
  0x19   : > { %361 = vadd.xlane.f32.xlu0 %v360_v18  ;;  %367 = vadd.xlane.f32.xlu1 %v366_v20 }
  0x1b   : > { %1093 = vmatpush3.bf16.msra.mxu0 %v529_v14 }
  0x1d   : > { %370 = vadd.xlane.f32.xlu0 %v369_v26  ;;  %373 = vadd.xlane.f32.xlu1 %v372_v28 }
  0x21   : > { %376 = vadd.xlane.f32.xlu0 %v375_v30  ;;  %379 = vadd.xlane.f32.xlu1 %v378_v31 }
  0xa2   : > { %v359_v32 = vpop.xlane.xlu0 %358  ;;  %v365_v34 = vpop.xlane.xlu1 %364 }
  0xa3   : > { %v382_v33 = vmul.f32 0.041666668, %v359_v32  ;;  %v384_v35 = vmul.f32 0.041666668, %v365_v34 }
  0xa5   : > { %v1291_v36 = vsub.f32 %v1258_v3, %v382_v33  ;;  %v1294_v37 = vsub.f32 %v1260_v7, %v384_v35 }
  0xa6   : > { %v362_v38 = vpop.xlane.xlu0 %361  ;;  %v368_v40 = vpop.xlane.xlu1 %367 }
  0xa7   : > { %v383_v39 = vmul.f32 0.041666668, %v362_v38  ;;  %v398_v41 = vmul.f32 %v1291_v36, %v1291_v36  ;;  %v385_v42 = vmul.f32 0.041666668, %v368_v40  ;;  %v400_v43 = vmul.f32 %v1294_v37, %v1294_v37 }
  0xa9   : > { %v1301_v44 = vsub.f32 %v1262_v8, %v383_v39  ;;  %v406_v45 = vsel %vm356_vm0, %v398_v41, 0.0  ;;  %v1305_v46 = vsub.f32 %v1266_v13, %v385_v42  ;;  %v412_v50 = vsel %vm356_vm0, %v400_v43, 0.0 }
  0xaa   : > { %407 = vadd.xlane.f32.xlu0 %v406_v45  ;;  %v371_v47 = vpop.xlane.xlu0 %370  ;;  %v374_v49 = vpop.xlane.xlu1 %373 }
  0xab   : > { %v386_v48 = vmul.f32 0.041666668, %v371_v47  ;;  %v399_v51 = vmul.f32 %v1301_v44, %v1301_v44  ;;  %v387_v52 = vmul.f32 0.041666668, %v374_v49  ;;  %v401_v53 = vmul.f32 %v1305_v46, %v1305_v46 }
  0xad   : > { %v1313_v54 = vsub.f32 %v1272_v19, %v386_v48  ;;  %v409_v55 = vsel %vm356_vm0, %v399_v51, 0.0  ;;  %v1317_v56 = vsub.f32 %v1276_v21, %v387_v52  ;;  %v415_v60 = vsel %vm356_vm0, %v401_v53, 0.0  ;;  %v1052_v48 = vld [vmem:[%s1544_s2] ss:$0 sm:$0xff] }
  0xae   : > { %413 = vadd.xlane.f32.xlu0 %v412_v50  ;;  %410 = vadd.xlane.f32.xlu1 %v409_v55  ;;  %v377_v57 = vpop.xlane.xlu0 %376  ;;  %v380_v59 = vpop.xlane.xlu1 %379 }
  0xaf   : > { %v388_v58 = vmul.f32 0.041666668, %v377_v57  ;;  %v402_v61 = vmul.f32 %v1313_v54, %v1313_v54  ;;  %v389_v62 = vmul.f32 0.041666668, %v380_v59  ;;  %v403_v63 = vmul.f32 %v1317_v56, %v1317_v56 }
  0xb1   : > { %v1325_v0 = vsub.f32 %v1280_v27, %v388_v58  ;;  %v418_v1 = vsel %vm356_vm0, %v402_v61, 0.0  ;;  %v1329_v2 = vsub.f32 %v1284_v29, %v389_v62  ;;  %v421_v4 = vsel %vm356_vm0, %v403_v63, 0.0 }
  0xb2   : > { %416 = vadd.xlane.f32.xlu1 %v415_v60  ;;  %419 = vadd.xlane.f32.xlu0 %v418_v1 }
  0xb3   : > { %v404_v5 = vmul.f32 %v1325_v0, %v1325_v0  ;;  %v405_v6 = vmul.f32 %v1329_v2, %v1329_v2 }
  0xb5   : > { %v424_v9 = vsel %vm356_vm0, %v404_v5, 0.0  ;;  %v427_v10 = vsel %vm356_vm0, %v405_v6, 0.0 }
  0xb6   : > { %422 = vadd.xlane.f32.xlu1 %v421_v4  ;;  %425 = vadd.xlane.f32.xlu0 %v424_v9 }
  0xba   : > { %428 = vadd.xlane.f32.xlu1 %v427_v10 }
 0x137   : > { %v408_v15 = vpop.xlane.xlu0 %407 }
 0x138   : > { %v430_v16 = vmul.f32 0.041666668, %v408_v15 }
 0x13a   : > { %v438_v17 = vadd.f32 1e-05, %v430_v16 }
 0x13b   : > { %v411_v18 = vpop.xlane.xlu1 %410  ;;  %v414_v20 = vpop.xlane.xlu0 %413 }
 0x13c   : > { %1139 = vrsqrt.f32 %v438_v17  ;;  %v431_v22 = vmul.f32 0.041666668, %v411_v18  ;;  %v432_v23 = vmul.f32 0.041666668, %v414_v20 }
 0x13e   : > { %v439_v24 = vadd.f32 1e-05, %v431_v22  ;;  %v440_v25 = vadd.f32 1e-05, %v432_v23 }
 0x13f   : > { %v417_v26 = vpop.xlane.xlu1 %416  ;;  %v420_v28 = vpop.xlane.xlu0 %419 }
 0x140   : > { %1141 = vrsqrt.f32 %v439_v24  ;;  %v433_v30 = vmul.f32 0.041666668, %v417_v26  ;;  %v434_v31 = vmul.f32 0.041666668, %v420_v28  ;;  %v1136_v26 = vld [vmem:[%s1548_s6 + $0x18] sm:$0xff]   ;;  %v1137_v28 = vld [vmem:[%s1548_s6 + $0x20] sm:$0xff]  }
 0x141   : > { %1143 = vrsqrt.f32 %v440_v25  ;;  %v1135_v25 = vld [vmem:[%s1548_s6 + $0x10] sm:$0xff]  }
 0x142   : > { %v441_v32 = vadd.f32 1e-05, %v433_v30  ;;  %v442_v33 = vadd.f32 1e-05, %v434_v31  ;;  %v1138_v30 = vld [vmem:[%s1548_s6 + $0x28] sm:$0xff]  }
 0x143   : > { %v423_v34 = vpop.xlane.xlu1 %422  ;;  %v426_v35 = vpop.xlane.xlu0 %425  ;;  %v1054_v31 = vld [vmem:[%s1547_s5] ss:$0 sm:$0xff] }
 0x144   : > { %1145 = vrsqrt.f32 %v441_v32  ;;  %v435_v38 = vmul.f32 0.041666668, %v423_v34  ;;  %v436_v39 = vmul.f32 0.041666668, %v426_v35 }
 0x145   : > { %1147 = vrsqrt.f32 %v442_v33 }
 0x146   : > { %v1140_v40 = vpop.eup %1139  ;;  %v443_v41 = vadd.f32 1e-05, %v435_v38  ;;  %v444_v42 = vadd.f32 1e-05, %v436_v39 }
 0x147   : > { %v429_v43 = vpop.xlane.xlu1 %428  ;;  %v454_v45 = vmul.f32 %v1140_v40, %v1291_v36  ;;  %v1053_v36 = vld [vmem:[%s1545_s3] ss:$0 sm:$0xff] }
 0x148   : > { %1149 = vrsqrt.f32 %v443_v41  ;;  %v437_v47 = vmul.f32 0.041666668, %v429_v43 }
 0x149   : > { %1151 = vrsqrt.f32 %v444_v42  ;;  %v469_v53 = vmul.f32 %v1052_v48, %v454_v45 }
 0x14a   : > { %v1142_v49 = vpop.eup %1141  ;;  %v445_v50 = vadd.f32 1e-05, %v437_v47 }
 0x14b   : > { %v1144_v51 = vpop.eup %1143  ;;  %v455_v52 = vmul.f32 %v1142_v49, %v1301_v44  ;;  %v484_v61 = vadd.f32 %v1053_v36, %v469_v53 }
 0x14c   : > { %v456_v55 = vmul.f32 %v1144_v51, %v1294_v37  ;;  %1153 = vrsqrt.f32 %v445_v50 }
 0x14d   : > { %v470_v57 = vmul.f32 %v1052_v48, %v455_v52 }
 0x14e   : > { %v1146_v58 = vpop.eup %1145  ;;  %v471_v63 = vmul.f32 %v1052_v48, %v456_v55 }
 0x14f   : > { %v1148_v59 = vpop.eup %1147  ;;  %v457_v60 = vmul.f32 %v1146_v58, %v1305_v46  ;;  %v485_v62 = vadd.f32 %v1053_v36, %v470_v57 }
 0x150   : > { %v458_v1 = vmul.f32 %v1148_v59, %v1313_v54  ;;  %v486_v9 = vadd.f32 %v1053_v36, %v471_v63 }
 0x151   : > { %v492_v4 = vpack.c.bf16 %v485_v62, %v484_v61  ;;  %v472_v44 = vmul.f32 %v1052_v48, %v457_v60 }
 0x152   : > { %v1150_v5 = vpop.eup %1149  ;;  %v473_v11 = vmul.f32 %v1052_v48, %v458_v1 }
 0x153   : > { %v1152_v6 = vpop.eup %1151  ;;  %v459_v37 = vmul.f32 %v1150_v5, %v1317_v56  ;;  %1094 = vmatprep.mubr.msk.bf16.mxu0 %vm356_vm0, %v492_v4  ;;  %v487_v10 = vadd.f32 %v1053_v36, %v472_v44 }
 0x154   : > { %v460_v12 = vmul.f32 %v1152_v6, %v1325_v0  ;;  %v488_v54 = vadd.f32 %v1053_v36, %v473_v11  ;;  %v1133_v0 = vld [vmem:[%s1548_s6] sm:$0xff]  }
 0x155   : > { %v493_v14 = vpack.c.bf16 %v487_v10, %v486_v9  ;;  %v474_v46 = vmul.f32 %v1052_v48, %v459_v37  ;;  %1102 = vmatprep.subr.bf16.mxu1 %v1133_v0 }
 0x156   : > { %v1154_v15 = vpop.eup %1153  ;;  %v475_v18 = vmul.f32 %v1052_v48, %v460_v12  ;;  %1103 = vmatpush3.bf16.msra.mxu1 %v1133_v0 }
 0x157   : > { %v461_v16 = vmul.f32 %v1154_v15, %v1329_v2  ;;  %1095 = vmatmul.mubr.msk.bf16.vlgmr.msra.gmra.mrb[0].mxu0 %vm356_vm0, %v493_v14  ;;  %v489_v17 = vadd.f32 %v1053_v36, %v474_v46  ;;  %v1134_v2 = vld [vmem:[%s1548_s6 + $0x8] sm:$0xff]  }
 0x158   : > { %v490_v56 = vadd.f32 %v1053_v36, %v475_v18  ;;  %1104 = vmatprep.subr.bf16.mxu1 %v1134_v2 }
 0x159   : > { %v494_v20 = vpack.c.bf16 %v489_v17, %v488_v54  ;;  %v476_v22 = vmul.f32 %v1052_v48, %v461_v16 }
 0x15a   : > { %1105 = vmatpush3.bf16.msra.mxu1 %v1134_v2 }
 0x15b   : > { %1098 = vmatprep.mubr.msk.bf16.mxu0 %vm356_vm0, %v494_v20  ;;  %v491_v23 = vadd.f32 %v1053_v36, %v476_v22  ;;  %1106 = vmatprep.subr.bf16.mxu1 %v1135_v25 }
 0x15d   : > { %v495_v24 = vpack.c.bf16 %v491_v23, %v490_v56 }
 0x15e   : > { %1107 = vmatpush3.bf16.msra.mxu1 %v1135_v25 }
 0x15f   : > { %1099 = vmatmul.mubr.msk.bf16.gmra.mrb[4].mxu0 %vm356_vm0, %v495_v24  ;;  %1108 = vmatprep.subr.bf16.mxu1 %v1136_v26 }
 0x162   : > { %1109 = vmatpush3.bf16.msra.mxu1 %v1136_v26 }
 0x163   : > { %1110 = vmatprep.subr.bf16.mxu1 %v1137_v28 }
 0x166   : > { %1111 = vmatpush3.bf16.msra.mxu1 %v1137_v28 }
 0x167   : > { %1112 = vmatprep.subr.bf16.mxu1 %v1138_v30 }
 0x16a   : > { %1113 = vmatpush3.bf16.msra.mxu1 %v1138_v30 }
 0x22a   : > { %v1096_v32 = vpop.f32.mrb[0].mxu0 }
 0x22b   : > { %v574_v33 = vadd.f32 %v1096_v32, %v1054_v31  ;;  %v565_v34 = vpop.f32.mrb[1].mxu0 }
 0x22c   : > { %v566_v35 = vadd.f32 %v1054_v31, %v565_v34  ;;  %v1097_v38 = vpop.f32.mrb[2].mxu0 }
 0x22d   : > { %v1383_v39 = vmul.f32 0.70710677, %v574_v33  ;;  %v1385_v40 = vadd.f32 %v1097_v38, %v1054_v31  ;;  %v568_v41 = vpop.f32.mrb[3].mxu0  ;;  %v1424_v20 = vmul.f32 0.5, %v574_v33 }
 0x22e   : > { %v1387_v42 = vmul.f32 0.70710677, %v566_v35  ;;  %v1389_v43 = vadd.f32 %v1054_v31, %v568_v41  ;;  %v1428_v0 = vmul.f32 0.5, %v566_v35 }
 0x22f   : > { %v614_v45 = vand.u32 2147483647, %v1383_v39  ;;  %v1393_v47 = vmul.f32 0.70710677, %v1385_v40  ;;  %vm774_vm2 = vcmp.lt.f32.partialorder %v1383_v39, 0.0 }
 0x230   : > { %v612_v48 = vand.u32 2147483647, %v1387_v42  ;;  %v1397_v49 = vmul.f32 0.70710677, %v1389_v43  ;;  %vm772_vm3 = vcmp.lt.f32.partialorder %v1387_v42, 0.0  ;;  %v597_v42 = vmul.f32 0.5, %v1389_v43 }
 0x231   : > { %v622_v50 = vmul.f32 0.3275911, %v614_v45  ;;  %v615_v51 = vand.u32 2147483647, %v1393_v47  ;;  %v726_v5 = vsub.f32 0.0, %v614_v45  ;;  %vm775_vm4 = vcmp.lt.f32.partialorder %v1393_v47, 0.0 }
 0x232   : > { %v620_v52 = vmul.f32 0.3275911, %v612_v48  ;;  %v613_v53 = vand.u32 2147483647, %v1397_v49  ;;  %v1100_v57 = vpop.f32.mrb[4].mxu0  ;;  %v724_v12 = vsub.f32 0.0, %v612_v48 }
 0x233   : > { %v630_v55 = vadd.f32 1.0, %v622_v50  ;;  %v623_v36 = vmul.f32 0.3275911, %v615_v51  ;;  %v581_v60 = vpop.f32.mrb[5].mxu0  ;;  %v1401_v4 = vadd.f32 %v1100_v57, %v1054_v31  ;;  %v734_v46 = vmul.f32 %v726_v5, %v614_v45 }
 0x234   : > { %v628_v58 = vadd.f32 1.0, %v620_v52  ;;  %v621_v59 = vmul.f32 0.3275911, %v613_v53  ;;  %v1101_v62 = vpop.f32.mrb[6].mxu0  ;;  %v1403_v44 = vadd.f32 %v1054_v31, %v581_v60  ;;  %v727_v15 = vsub.f32 0.0, %v615_v51 }
 0x235   : > { %1155 = vrcp.f32 %v630_v55  ;;  %v631_v61 = vadd.f32 1.0, %v623_v36  ;;  %v584_v63 = vpop.f32.mrb[7].mxu0  ;;  %v1405_v6 = vadd.f32 %v1101_v62, %v1054_v31  ;;  %v1408_v37 = vmul.f32 0.70710677, %v1401_v4 }
 0x236   : > { %1157 = vrcp.f32 %v628_v58  ;;  %v629_v1 = vadd.f32 1.0, %v621_v59  ;;  %v1410_v9 = vadd.f32 %v1054_v31, %v584_v63  ;;  %v1413_v10 = vmul.f32 0.70710677, %v1403_v44 }
 0x237   : > { %1159 = vrcp.f32 %v631_v61  ;;  %v1416_v11 = vmul.f32 0.70710677, %v1405_v6  ;;  %v618_v14 = vand.u32 2147483647, %v1408_v37  ;;  %v725_v22 = vsub.f32 0.0, %v613_v53 }
 0x238   : > { %1161 = vrcp.f32 %v629_v1  ;;  %v616_v16 = vand.u32 2147483647, %v1413_v10  ;;  %v1422_v18 = vmul.f32 0.70710677, %v1410_v9  ;;  %v732_v2 = vmul.f32 %v724_v12, %v612_v48 }
 0x239   : > { %v619_v54 = vand.u32 2147483647, %v1416_v11  ;;  %v626_v17 = vmul.f32 0.3275911, %v618_v14  ;;  %v744_v31 = vmul.f32 1.442695, %v734_v46  ;;  %v735_v32 = vmul.f32 %v727_v15, %v615_v51 }
 0x23a   : > { %v624_v56 = vmul.f32 0.3275911, %v616_v16  ;;  %v617_v26 = vand.u32 2147483647, %v1422_v18  ;;  %v730_v33 = vsub.f32 0.0, %v618_v14  ;;  %v733_v50 = vmul.f32 %v725_v22, %v613_v53 }
 0x23b   : > { %v627_v23 = vmul.f32 0.3275911, %v619_v54  ;;  %v634_v25 = vadd.f32 1.0, %v626_v17  ;;  %v728_v35 = vsub.f32 0.0, %v616_v16  ;;  %v740_v48 = vmul.f32 1.442695, %v732_v2 }
 0x23c   : > { %v632_v34 = vadd.f32 1.0, %v624_v56  ;;  %v625_v41 = vmul.f32 0.3275911, %v617_v26  ;;  %v731_v55 = vsub.f32 0.0, %v619_v54  ;;  %v729_v59 = vsub.f32 0.0, %v617_v26 }
 0x23d   : > { %1163 = vrcp.f32 %v634_v25  ;;  %v635_v38 = vadd.f32 1.0, %v627_v23  ;;  %v746_v61 = vmul.f32 1.442695, %v735_v32  ;;  %v738_v62 = vmul.f32 %v730_v33, %v618_v14 }
 0x23e   : > { %1165 = vrcp.f32 %v632_v34  ;;  %v633_v36 = vadd.f32 1.0, %v625_v41  ;;  %v742_v5 = vmul.f32 1.442695, %v733_v50  ;;  %v736_v12 = vmul.f32 %v728_v35, %v616_v16 }
 0x23f   : > { %v1426_v24 = vpop.eup %1155  ;;  %1167 = vpow2.f32 %v744_v31  ;;  %v739_v46 = vmul.f32 %v731_v55, %v619_v54  ;;  %v1445_v56 = vmul.f32 0.5, %v1385_v40  ;;  %v737_v14 = vmul.f32 %v729_v59, %v617_v26 }
 0x240   : > { %v1431_v28 = vpop.eup %1157  ;;  %v654_v30 = vmul.f32 1.0614054, %v1426_v24  ;;  %1169 = vrcp.f32 %v635_v38  ;;  %v752_v2 = vmul.f32 1.442695, %v738_v62  ;;  %v748_v54 = vmul.f32 1.442695, %v736_v12 }
 0x241   : > { %v1434_v52 = vpop.eup %1159  ;;  %v652_v57 = vmul.f32 1.0614054, %v1431_v28  ;;  %1171 = vrcp.f32 %v633_v36  ;;  %v754_v34 = vmul.f32 1.442695, %v739_v46  ;;  %v750_v50 = vmul.f32 1.442695, %v737_v14 }
 0x242   : > { %v662_v45 = vadd.f32 -1.4531521, %v654_v30  ;;  %v655_v51 = vmul.f32 1.0614054, %v1434_v52  ;;  %v1439_v60 = vpop.eup %1161  ;;  %1173 = vpow2.f32 %v740_v48  ;;  %vm773_vm5 = vcmp.lt.f32.partialorder %v1397_v49, 0.0 }
 0x243   : > { %v660_v53 = vadd.f32 -1.4531521, %v652_v57  ;;  %v653_v15 = vmul.f32 1.0614054, %v1439_v60  ;;  %1175 = vpow2.f32 %v746_v61  ;;  %vm778_vm6 = vcmp.lt.f32.partialorder %v1408_v37, 0.0 }
 0x244   : > { %v670_v58 = vmul.f32 %v1426_v24, %v662_v45  ;;  %v663_v1 = vadd.f32 -1.4531521, %v655_v51  ;;  %1177 = vpow2.f32 %v742_v5  ;;  %vm776_vm8 = vcmp.lt.f32.partialorder %v1413_v10, 0.0 }
 0x245   : > { %v668_v17 = vmul.f32 %v1431_v28, %v660_v53  ;;  %v661_v25 = vadd.f32 -1.4531521, %v653_v15  ;;  %1179 = vpow2.f32 %v752_v2  ;;  %vm779_vm9 = vcmp.lt.f32.partialorder %v1416_v11, 0.0 }
 0x246   : > { %v678_v63 = vadd.f32 1.4214138, %v670_v58  ;;  %v671_v23 = vmul.f32 %v1434_v52, %v663_v1  ;;  %1181 = vpow2.f32 %v748_v54  ;;  %vm777_vm10 = vcmp.lt.f32.partialorder %v1422_v18, 0.0  ;;  %v1071_v18 = vld [vmem:[%s1549_s7] ss:$0 sm:$0xff] }
 0x247   : > { %v676_v30 = vadd.f32 1.4214138, %v668_v17  ;;  %v1448_v32 = vpop.eup %1163  ;;  %v669_v33 = vmul.f32 %v1439_v60, %v661_v25  ;;  %1183 = vpow2.f32 %v754_v34  ;;  %v601_v11 = vmul.f32 0.5, %v1410_v9 }
 0x248   : > { %v686_v22 = vmul.f32 %v1426_v24, %v678_v63  ;;  %v679_v16 = vadd.f32 1.4214138, %v671_v23  ;;  %v1452_v38 = vpop.eup %1165  ;;  %v658_v45 = vmul.f32 1.0614054, %v1448_v32  ;;  %1185 = vpow2.f32 %v750_v50 }
 0x249   : > { %v684_v40 = vmul.f32 %v1431_v28, %v676_v30  ;;  %v656_v35 = vmul.f32 1.0614054, %v1452_v38  ;;  %v677_v48 = vadd.f32 1.4214138, %v669_v33  ;;  %v1168_v36 = vpop.eup %1167 }
 0x24a   : > { %v694_v31 = vadd.f32 -0.28449672, %v686_v22  ;;  %v687_v41 = vmul.f32 %v1434_v52, %v679_v16  ;;  %v666_v51 = vadd.f32 -1.4531521, %v658_v45  ;;  %v1458_v59 = vpop.eup %1169 }
 0x24b   : > { %v692_v55 = vadd.f32 -0.28449672, %v684_v40  ;;  %v664_v61 = vadd.f32 -1.4531521, %v656_v35  ;;  %v685_v62 = vmul.f32 %v1439_v60, %v677_v48  ;;  %v659_v12 = vmul.f32 1.0614054, %v1458_v59  ;;  %v1467_v46 = vpop.eup %1171 }
 0x24c   : > { %v702_v26 = vmul.f32 %v1426_v24, %v694_v31  ;;  %v695_v58 = vadd.f32 -0.28449672, %v687_v41  ;;  %v674_v5 = vmul.f32 %v1448_v32, %v666_v51  ;;  %v1174_v30 = vpop.eup %1173  ;;  %v657_v31 = vmul.f32 1.0614054, %v1467_v46 }
 0x24d   : > { %v700_v53 = vmul.f32 %v1431_v28, %v692_v55  ;;  %v672_v15 = vmul.f32 %v1452_v38, %v664_v61  ;;  %v693_v17 = vadd.f32 -0.28449672, %v685_v62  ;;  %v667_v25 = vadd.f32 -1.4531521, %v659_v12  ;;  %v1176_v34 = vpop.eup %1175 }
 0x24e   : > { %v710_v57 = vadd.f32 0.2548296, %v702_v26  ;;  %v703_v1 = vmul.f32 %v1434_v52, %v695_v58  ;;  %v682_v2 = vadd.f32 1.4214138, %v674_v5  ;;  %v1178_v45 = vpop.eup %1177  ;;  %v665_v35 = vadd.f32 -1.4531521, %v657_v31 }
 0x24f   : > { %v708_v22 = vadd.f32 0.2548296, %v700_v53  ;;  %v701_v16 = vmul.f32 %v1439_v60, %v693_v17  ;;  %v675_v41 = vmul.f32 %v1458_v59, %v667_v25  ;;  %v1180_v61 = vpop.eup %1179 }
 0x250   : > { %v718_v63 = vmul.f32 %v1426_v24, %v710_v57  ;;  %v711_v14 = vadd.f32 0.2548296, %v703_v1  ;;  %v680_v24 = vadd.f32 1.4214138, %v672_v15  ;;  %v690_v26 = vmul.f32 %v1448_v32, %v682_v2 }
 0x251   : > { %v716_v54 = vmul.f32 %v1431_v28, %v708_v22  ;;  %v709_v48 = vadd.f32 0.2548296, %v701_v16  ;;  %v683_v51 = vadd.f32 1.4214138, %v675_v41  ;;  %v673_v62 = vmul.f32 %v1467_v46, %v665_v35 }
 0x252   : > { %v758_v23 = vmul.f32 %v1168_v36, %v718_v63  ;;  %v719_v40 = vmul.f32 %v1434_v52, %v711_v14  ;;  %v688_v50 = vmul.f32 %v1452_v38, %v680_v24  ;;  %v698_v58 = vadd.f32 -0.28449672, %v690_v26  ;;  %v1182_v63 = vpop.eup %1181 }
 0x253   : > { %v756_v55 = vmul.f32 %v1174_v30, %v716_v54  ;;  %v717_v52 = vmul.f32 %v1439_v60, %v709_v48  ;;  %v691_v15 = vmul.f32 %v1458_v59, %v683_v51  ;;  %v1184_v17 = vpop.eup %1183  ;;  %v681_v14 = vadd.f32 1.4214138, %v673_v62 }
 0x254   : > { %v766_v33 = vsub.f32 1.0, %v758_v23  ;;  %v759_v57 = vmul.f32 %v1176_v34, %v719_v40  ;;  %v696_v28 = vadd.f32 -0.28449672, %v688_v50  ;;  %v706_v12 = vmul.f32 %v1448_v32, %v698_v58  ;;  %v1186_v31 = vpop.eup %1185 }
 0x255   : > { %v764_v53 = vsub.f32 1.0, %v756_v55  ;;  %v757_v2 = vmul.f32 %v1178_v45, %v717_v52  ;;  %v699_v24 = vadd.f32 -0.28449672, %v691_v15  ;;  %v689_v16 = vmul.f32 %v1467_v46, %v681_v14 }
 0x256   : > { %v782_v36 = vsub.f32 0.0, %v766_v33  ;;  %v767_v5 = vsub.f32 1.0, %v759_v57  ;;  %v704_v23 = vmul.f32 %v1452_v38, %v696_v28  ;;  %v714_v30 = vadd.f32 0.2548296, %v706_v12 }
 0x257   : > { %v780_v60 = vsub.f32 0.0, %v764_v53  ;;  %v765_v54 = vsub.f32 1.0, %v757_v2  ;;  %v707_v40 = vmul.f32 %v1458_v59, %v699_v24  ;;  %v697_v50 = vadd.f32 -0.28449672, %v689_v16 }
 0x258   : > { %v790_v1 = vsel %vm774_vm2, %v782_v36, %v766_v33  ;;  %v783_v25 = vsub.f32 0.0, %v767_v5  ;;  %v712_v39 = vadd.f32 0.2548296, %v704_v23  ;;  %v722_v33 = vmul.f32 %v1448_v32, %v714_v30 }
 0x259   : > { %v798_v22 = vadd.f32 1.0, %v790_v1  ;;  %v788_v26 = vsel %vm772_vm3, %v780_v60, %v764_v53  ;;  %v781_v35 = vsub.f32 0.0, %v765_v54  ;;  %v715_v36 = vadd.f32 0.2548296, %v707_v40 }
 0x25a   : > { %v791_v34 = vsel %vm775_vm4, %v783_v25, %v767_v5  ;;  %v720_v45 = vmul.f32 %v1452_v38, %v712_v39  ;;  %v762_v55 = vmul.f32 %v1180_v61, %v722_v33  ;;  %v796_v57 = vadd.f32 1.0, %v788_v26 }
 0x25b   : > { %v799_v41 = vadd.f32 1.0, %v791_v34  ;;  %v806_v48 = vmul.f32 %v798_v22, %v1424_v20  ;;  %v705_v32 = vmul.f32 %v1467_v46, %v697_v50  ;;  %v789_v51 = vsel %vm773_vm5, %v781_v35, %v765_v54 }
 0x25c   : > { %v760_v58 = vmul.f32 %v1182_v63, %v720_v45  ;;  %v770_v28 = vsub.f32 1.0, %v762_v55  ;;  %v723_v38 = vmul.f32 %v1458_v59, %v715_v36  ;;  %v797_v62 = vadd.f32 1.0, %v789_v51 }
 0x25d   : > { %v807_v47 = vmul.f32 %v799_v41, %v1445_v56  ;;  %v713_v20 = vadd.f32 0.2548296, %v705_v32  ;;  %v804_v5 = vmul.f32 %v796_v57, %v1428_v0  ;;  %v603_v14 = vmul.f32 0.5, %v1405_v6 }
 0x25e   : > { %v768_v53 = vsub.f32 1.0, %v760_v58  ;;  %v786_v61 = vsub.f32 0.0, %v770_v28  ;;  %v763_v1 = vmul.f32 %v1184_v17, %v723_v38  ;;  %v805_v56 = vmul.f32 %v797_v62, %v597_v42 }
 0x25f   : > { %v813_v52 = vpack.c.bf16 %v807_v47, %v806_v48  ;;  %v721_v49 = vmul.f32 %v1467_v46, %v713_v20  ;;  %v602_v46 = vmul.f32 0.5, %v1401_v4 }
 0x260   : > { %v784_v63 = vsub.f32 0.0, %v768_v53  ;;  %v794_v12 = vsel %vm778_vm6, %v786_v61, %v770_v28  ;;  %v771_v43 = vsub.f32 1.0, %v763_v1  ;;  %v812_v15 = vpack.c.bf16 %v805_v56, %v804_v5 }
 0x261   : > { %v761_v22 = vmul.f32 %v1186_v31, %v721_v49  ;;  %v802_v23 = vadd.f32 1.0, %v794_v12  ;;  %v600_v31 = vmul.f32 0.5, %v1403_v44 }
 0x262   : > { %v787_v59 = vsub.f32 0.0, %v771_v43  ;;  %1114 = vmatprep.mubr.msk.bf16.mxu1 %vm864_vm7, %v812_v15  ;;  %v792_v17 = vsel %vm776_vm8, %v784_v63, %v768_v53 }
 0x263   : > { %v769_v0 = vsub.f32 1.0, %v761_v22  ;;  %1115 = vmatmul.mubr.msk.bf16.vlgmr.msra.gmra.mrb[0].mxu1 %vm864_vm7, %v813_v52  ;;  %v800_v30 = vadd.f32 1.0, %v792_v17  ;;  %v810_v10 = vmul.f32 %v802_v23, %v602_v46 }
 0x264   : > { %v795_v37 = vsel %vm779_vm9, %v787_v59, %v771_v43 }
 0x265   : > { %v803_v2 = vadd.f32 1.0, %v795_v37  ;;  %v785_v25 = vsub.f32 0.0, %v769_v0  ;;  %v808_v54 = vmul.f32 %v800_v30, %v600_v31 }
 0x267   : > { %v811_v24 = vmul.f32 %v803_v2, %v603_v14  ;;  %v793_v60 = vsel %vm777_vm10, %v785_v25, %v769_v0 }
 0x268   : > { %v801_v39 = vadd.f32 1.0, %v793_v60 }
 0x269   : > { %v815_v16 = vpack.c.bf16 %v811_v24, %v810_v10 }
 0x26a   : > { %v809_v34 = vmul.f32 %v801_v39, %v601_v11 }
 0x26c   : > { %v814_v4 = vpack.c.bf16 %v809_v34, %v808_v54 }
 0x26e   : > { %1118 = vmatprep.mubr.msk.bf16.mxu1 %vm864_vm7, %v814_v4 }
 0x26f   : > { %1119 = vmatmul.mubr.msk.bf16.gmra.mrb[4].mxu1 %vm864_vm7, %v815_v16 }
 0x336   : > { %v1116_v6 = vpop.f32.mrb[0].mxu1 }
 0x337   : > { %v944_v33 = vadd.f32 %v1116_v6, %v1260_v7  ;;  %v911_v40 = vpop.f32.mrb[1].mxu1 }
 0x338   : > { %v942_v44 = vadd.f32 %v911_v40, %v1258_v3  ;;  %v1117_v9 = vpop.f32.mrb[2].mxu1 }
 0x339   : > { %v959_v26 = vadd.f32 %v1071_v18, %v944_v33  ;;  %v945_v41 = vadd.f32 %v1117_v9, %v1266_v13  ;;  %v914_v45 = vpop.f32.mrb[3].mxu1 }
 0x33a   : > { %v957_v50 = vadd.f32 %v1071_v18, %v942_v44  ;;  %v943_v35 = vadd.f32 %v914_v45, %v1262_v8 }
 0x33b   : > { %967 = vst.msk [vmem:[%s329_s21 + $0x10] sm:$0xff] %vm356_vm0, %v959_v26  ;;  %v960_v48 = vadd.f32 %v1071_v18, %v945_v41 }
 0x33c   : > { %965 = vst.msk [vmem:[%s329_s21] sm:$0xff] %vm356_vm0, %v957_v50  ;;  %v958_v7 = vadd.f32 %v1071_v18, %v943_v35 }
 0x33d   : > { %968 = vst.msk [vmem:[%s329_s21 + $0x18] sm:$0xff] %vm356_vm0, %v960_v48 }
 0x33e   : > { %966 = vst.msk [vmem:[%s329_s21 + $0x8] sm:$0xff] %vm356_vm0, %v958_v7 }
 0x342   : > { %v1120_v55 = vpop.f32.mrb[4].mxu1 }
 0x343   : > { %v948_v3 = vadd.f32 %v1120_v55, %v1280_v27  ;;  %v927_v36 = vpop.f32.mrb[5].mxu1 }
 0x344   : > { %v946_v13 = vadd.f32 %v927_v36, %v1272_v19  ;;  %v1121_v57 = vpop.f32.mrb[6].mxu1 }
 0x345   : > { %v963_v47 = vadd.f32 %v1071_v18, %v948_v3  ;;  %v949_v8 = vadd.f32 %v1121_v57, %v1284_v29  ;;  %v930_v58 = vpop.f32.mrb[7].mxu1 }
 0x346   : > { %v961_v32 = vadd.f32 %v1071_v18, %v946_v13  ;;  %v947_v51 = vadd.f32 %v930_v58, %v1276_v21 }
 0x347   : > { %971 = vst.msk [vmem:[%s329_s21 + $0x30] sm:$0xff] %vm356_vm0, %v963_v47  ;;  %v964_v42 = vadd.f32 %v1071_v18, %v949_v8 }
 0x348   : > { %969 = vst.msk [vmem:[%s329_s21 + $0x20] sm:$0xff] %vm356_vm0, %v961_v32  ;;  %v962_v28 = vadd.f32 %v1071_v18, %v947_v51 }
 0x349   : > { %972 = vst.msk [vmem:[%s329_s21 + $0x38] sm:$0xff] %vm356_vm0, %v964_v42 }
 0x34a   : > { %970 = vst.msk [vmem:[%s329_s21 + $0x28] sm:$0xff] %vm356_vm0, %v962_v28 }
 0x34b PF: > { %s18_s27 = sadd.s32 1, %s1193_s27  }
 0x34c   : > { %p15_p4 = scmp.ge.s32.totalorder %s18_s27, 4  }
 0x34e   :  { %17 = sbr.rel (!%p15_p4) target bundleno = 1 (0x1), region = 85 }

// kernel: swin_forward.24
= control target key start
LH: loop header
LB: loop body
LE: loop exit
PB: predicated region body
PF: predicated region fallthrough
CT: control target
= control target key end

     0   :  { %s549_s18 = smov 0   ;;  %s622_s0 = inlined_call_operand.vmem [shape: f32[16,192], index: 0, kind: input, shape index: {}]   ;;  %s623_s1 = inlined_call_operand.vmem [shape: bf16[192,48], index: 1, kind: input, shape index: {}]   ;;  %s624_s2 = inlined_call_operand.vmem [shape: f32[1,48], index: 2, kind: input, shape index: {}]   ;;  %s625_s3 = inlined_call_operand.vmem [shape: f32[1,48], index: 3, kind: input, shape index: {}]   ;;  %s626_s4 = inlined_call_operand.vmem [shape: f32[1,48], index: 4, kind: input, shape index: {}]   ;;  %s627_s5 = inlined_call_operand.vmem [shape: f32[16,48], index: 5, kind: output, shape index: {}]  }
   0x1 LB: > { %s460_s19 = sadd.s32 4294967295, %s516_s18   ;;  %p464_p0 = scmp.ge.s32.totalorder %s516_s18, 1  ;;  %s516_s18 = sphi %s549_s18, %s15_s18  }
   0x2   : > { %p187_p1 = scmp.lt.s32.totalorder %s516_s18, 3 }
   0x4   : > { %p188_p2 = pnand %p464_p0, %p187_p1 }
   0x5   : > { %v496_v0 = vld [vmem:[%s623_s1] sm:$0xff] (!%p188_p2)   ;;  %v518_v1 = vmov (!%p188_p2), 0   ;;  %p214_p3 = scmp.lt.s32.totalorder (!%p188_p2), %s460_s19, 1  ;;  %v497_v2 = vld [vmem:[%s623_s1 + $0x8] sm:$0xff] (!%p188_p2)   ;;  %v498_v3 = vld [vmem:[%s623_s1 + $0x10] sm:$0xff] (!%p188_p2)   ;;  %vm331_vm0 = vcmask (!%p188_p2), 523264  }
   0x6   : > { %191 = sbr.rel (%p188_p2) target bundleno = 582 (0x246), region = 40  ;;  %335 = vmatprep.subr.bf16.mxu0 (!%p188_p2), %v518_v1  ;;  %v499_v4 = vld [vmem:[%s623_s1 + $0x18] sm:$0xff] (!%p188_p2)   ;;  %v500_v7 = vld [vmem:[%s623_s1 + $0x20] sm:$0xff] (!%p188_p2)   ;;  %v501_v8 = vld [vmem:[%s623_s1 + $0x28] sm:$0xff] (!%p188_p2)   ;;  %vm375_vm1 = vcmask (!%p188_p2), 392192  }
   0x7   : > { %336 = vmatpush1.bf16.msra.mxu0 (!%p188_p2), %v496_v0  ;;  %v502_v9 = vld [vmem:[%s623_s1 + $0x30] sm:$0xff] (!%p188_p2)   ;;  %v503_v10 = vld [vmem:[%s623_s1 + $0x38] sm:$0xff] (!%p188_p2)   ;;  %v504_v11 = vld [vmem:[%s623_s1 + $0x40] sm:$0xff] (!%p188_p2)  }
   0x8   : > { %337 = vmatprep.subr.bf16.mxu0 (!%p188_p2), %v518_v1  ;;  %v505_v12 = vld [vmem:[%s623_s1 + $0x48] sm:$0xff] (!%p188_p2)   ;;  %v506_v13 = vld [vmem:[%s623_s1 + $0x50] sm:$0xff] (!%p188_p2)   ;;  %v507_v14 = vld [vmem:[%s623_s1 + $0x58] sm:$0xff] (!%p188_p2)  }
   0x9   : > { %v468_v17 = vld [vmem:[%s624_s2] ss:$0 sm:$0xff] (!%p188_p2) }
   0xa   : > { %v482_v33 = vld [vmem:[%s625_s3] ss:$0 sm:$0xff] (!%p188_p2) }
   0xb   : > { %338 = vmatpush1.bf16.msra.mxu0 (!%p188_p2), %v497_v2  ;;  %v483_v35 = vld [vmem:[%s626_s4] ss:$0 sm:$0xff] (!%p188_p2) }
   0xc   : > { %339 = vmatprep.subr.bf16.mxu0 (!%p188_p2), %v518_v1 }
   0xd   : > { %s629_s19 = smov (!%p214_p3, %s460_s19), 1 }
   0xe   : > { %s486_s26 = sshll.u32 %s629_s19, 4 }
   0xf   : > { %s572_s29 = scalar_lea.vmem %s622_s0, %s486_s26  ;;  %340 = vmatpush1.bf16.msra.mxu0 %v498_v3 }
  0x10   : > { %341 = vmatprep.subr.bf16.mxu0 %v518_v1  ;;  %v225_v5 = vld [vmem:[%s572_s29 + $0x8] sm:$0xff]  ;;  %v224_v15 = vld [vmem:[%s572_s29] sm:$0xff]  ;;  %s467_s29 = sshll.u32 %s629_s19, 3 }
  0x11   : > { %v227_v6 = vpack.c.bf16 %v225_v5, %v225_v5  ;;  %v226_v16 = vpack.c.bf16 %v224_v15, %v224_v15  ;;  %s222_s9 = scalar_lea.vmem %s627_s5, %s467_s29 }
  0x13   : > { %342 = vmatpush1.bf16.msra.mxu0 %v499_v4  ;;  %481 = vmatprep.mubr.msk.bf16.mxu0 %vm331_vm0, %v227_v6 }
  0x14   : > { %343 = vmatprep.subr.bf16.mxu0 %v518_v1 }
  0x17   : > { %344 = vmatpush1.bf16.msra.mxu0 %v500_v7 }
  0x18   : > { %345 = vmatprep.subr.bf16.mxu0 %v518_v1 }
  0x1b   : > { %346 = vmatpush1.bf16.msra.mxu0 %v501_v8 }
  0x1c   : > { %347 = vmatprep.subr.bf16.mxu0 %v518_v1 }
  0x1f   : > { %348 = vmatpush1.bf16.msra.mxu0 %v502_v9 }
  0x20   : > { %349 = vmatprep.subr.bf16.mxu0 %v518_v1 }
  0x23   : > { %350 = vmatpush1.bf16.msra.mxu0 %v503_v10 }
  0x24   : > { %351 = vmatprep.subr.bf16.mxu0 %v518_v1 }
  0x27   : > { %352 = vmatpush1.bf16.msra.mxu0 %v504_v11 }
  0x28   : > { %353 = vmatprep.subr.bf16.mxu0 %v518_v1 }
  0x2b   : > { %354 = vmatpush1.bf16.msra.mxu0 %v505_v12 }
  0x2c   : > { %355 = vmatprep.subr.bf16.mxu0 %v518_v1 }
  0x2f   : > { %356 = vmatpush1.bf16.msra.mxu0 %v506_v13 }
  0x30   : > { %357 = vmatprep.subr.bf16.mxu0 %v518_v1 }
  0x33   : > { %358 = vmatpush1.bf16.msra.mxu0 %v507_v14 }
  0x36   : > { %368 = vmatmul.mubr.bf16.vlgmr.msra.gmra.mrb[0].mxu0 %v226_v16 }
 0x109   : > { %v369_v18 = vpop.f32.mrb[0].mxu0 }
 0x10a   : > { %v370_v19 = vadd.f32 %v468_v17, %v369_v18  ;;  %v371_v20 = vpop.f32.mrb[1].mxu0 }
 0x10b   : > { %v372_v21 = vpop.f32.mrb[2].mxu0 }
 0x10c   : > { %v373_v22 = vpop.f32.mrb[3].mxu0  ;;  %v376_v23 = vsel %vm375_vm1, %v370_v19, 0.0 }
 0x10d   : > { %377 = vadd.xlane.f32.xlu0 %v376_v23 }
 0x19a   : > { %v378_v24 = vpop.xlane.xlu0 %377 }
 0x19b   : > { %v380_v25 = vmul.f32 0.020833334, %v378_v24 }
 0x19d   : > { %v381_v26 = vsub.f32 %v370_v19, %v380_v25 }
 0x19f   : > { %v382_v27 = vmul.f32 %v381_v26, %v381_v26 }
 0x1a1   : > { %v383_v28 = vsel %vm375_vm1, %v382_v27, 0.0 }
 0x1a2   : > { %384 = vadd.xlane.f32.xlu0 %v383_v28 }
 0x22f   : > { %v385_v29 = vpop.xlane.xlu0 %384 }
 0x230   : > { %v386_v30 = vmul.f32 0.020833334, %v385_v29 }
 0x232   : > { %v387_v31 = vadd.f32 1e-05, %v386_v30 }
 0x234   : > { %508 = vrsqrt.f32 %v387_v31 }
 0x23e   : > { %v509_v32 = vpop.eup %508 }
 0x23f   : > { %v389_v34 = vmul.f32 %v509_v32, %v381_v26 }
 0x241   : > { %v397_v36 = vmul.f32 %v482_v33, %v389_v34 }
 0x243   : > { %v405_v37 = vadd.f32 %v483_v35, %v397_v36 }
 0x245   : > { %406 = vst.msk [vmem:[%s222_s9] sm:$0xff] %vm375_vm1, %v405_v37 }
 0x246 PF: > { %s15_s18 = sadd.s32 1, %s516_s18  }
 0x247   : > { %p12_p4 = scmp.ge.s32.totalorder %s15_s18, 4  }
 0x249   :  { %14 = sbr.rel (!%p12_p4) target bundleno = 1 (0x1), region = 70 }

// kernel: swin_forward.26
= control target key start
LH: loop header
LB: loop body
LE: loop exit
PB: predicated region body
PF: predicated region fallthrough
CT: control target
= control target key end

     0   :  { %s496_s18 = smov 0   ;;  %s550_s0 = inlined_call_operand.vmem [shape: f32[16,48], index: 0, kind: input, shape index: {}]   ;;  %s551_s1 = inlined_call_operand.vmem [shape: f32[1,48], index: 1, kind: input, shape index: {}]   ;;  %s552_s2 = inlined_call_operand.vmem [shape: f32[1,48], index: 2, kind: input, shape index: {}]   ;;  %s553_s3 = inlined_call_operand.vmem [shape: bf16[48,144], index: 3, kind: input, shape index: {}]   ;;  %s554_s4 = inlined_call_operand.vmem [shape: f32[1,144], index: 4, kind: input, shape index: {}]   ;;  %s555_s5 = inlined_call_operand.vmem [shape: bf16[16,144], index: 5, kind: output, shape index: {}]  }
   0x1 LB: > { %s415_s19 = sadd.s32 4294967295, %s463_s18   ;;  %p419_p0 = scmp.ge.s32.totalorder %s463_s18, 1  ;;  %s463_s18 = sphi %s496_s18, %s15_s18  }
   0x2   : > { %p186_p1 = scmp.lt.s32.totalorder %s463_s18, 3 }
   0x4   : > { %p187_p2 = pnand %p419_p0, %p186_p1 }
   0x5   : > { %p213_p3 = scmp.lt.s32.totalorder (!%p187_p2), %s415_s19, 1  ;;  %vm224_vm0 = vcmask (!%p187_p2), 392192   ;;  %v446_v7 = vld [vmem:[%s553_s3 + $0x4] ss:$8 sps:$4 sm:$0xff] (!%p187_p2)   ;;  %v448_v8 = vld [vmem:[%s553_s3] ss:$8 sps:$4 sm:$0xff] (!%p187_p2)   ;;  %v264_v24 = vlaneseq (!%p187_p2) }
   0x6   : > { %190 = sbr.rel (%p187_p2) target bundleno = 550 (0x226), region = 40  ;;  %307 = vmatprep.subr.bf16.mxu0 (!%p187_p2), %v446_v7  ;;  %v449_v9 = vld [vmem:[%s553_s3 + $0x14] ss:$8 sps:$4 sm:$0xff] (!%p187_p2)   ;;  %v451_v10 = vld [vmem:[%s553_s3 + $0x10] ss:$8 sps:$4 sm:$0xff] (!%p187_p2)   ;;  %v465_v13 = vmov (!%p187_p2), 0  }
   0x7   : > { %308 = vmatpush1.bf16.msra.mxu0 (!%p187_p2), %v448_v8  ;;  %v452_v11 = vld [vmem:[%s553_s3 + $0x24] ss:$8 sps:$4 sm:$0xff] (!%p187_p2)   ;;  %v454_v12 = vld [vmem:[%s553_s3 + $0x20] ss:$8 sps:$4 sm:$0xff] (!%p187_p2)   ;;  %339 = vmatprep.mubr.bf16.mxu0 (!%p187_p2), %v465_v13  ;;  %v265_v25 = vshrl.u32 (!%p187_p2), %v264_v24, 7  ;;  %vm356_vm1 = vcmask (!%p187_p2), 1043456  }
   0x8   : > { %309 = vmatprep.subr.bf16.mxu0 (!%p187_p2), %v449_v9  ;;  %v423_v18 = vld [vmem:[%s551_s1] ss:$0 sm:$0xff] (!%p187_p2)  ;;  %vm357_vm2 = vcmask (!%p187_p2), 130052  }
   0x9   : > { %v424_v20 = vld [vmem:[%s552_s2] ss:$0 sm:$0xff] (!%p187_p2)  ;;  %v266_v26 = vsub.s32 (!%p187_p2), 0, %v265_v25  ;;  %v270_v28 = vsub.s32 (!%p187_p2), 1, %v265_v25  ;;  %vm358_vm3 = vmor (!%p187_p2), %vm357_vm2, %vm356_vm1 }
   0xa   : > { %v262_v27 = vld [vmem:[%s554_s4] sm:$0x3] (!%p187_p2) }
   0xb   : > { %310 = vmatpush1.bf16.msra.mxu0 (!%p187_p2), %v451_v10  ;;  %v267_v29 = vrot.slane (!%p187_p2), %v262_v27, %v266_v26  ;;  %v271_v30 = vrot.slane (!%p187_p2), %v262_v27, %v270_v28 }
   0xc   : > { %311 = vmatprep.subr.bf16.mxu0 (!%p187_p2), %v452_v11 }
   0xd   : > { %s557_s19 = smov (!%p213_p3, %s415_s19), 1 }
   0xe   : > { %s420_s20 = sshll.u32 %s557_s19, 3 }
   0xf   : > { %s216_s23 = scalar_lea.vmem %s550_s0, %s420_s20  ;;  %312 = vmatpush1.bf16.msra.mxu0 %v454_v12  ;;  %s221_s22 = scalar_lea.vmem %s555_s5, %s420_s20 }
  0x10   : > { %v223_v0 = vld [vmem:[%s216_s23] sm:$0xff] }
  0x11   : > { %v225_v1 = vsel %vm224_vm0, %v223_v0, 0.0 }
  0x12   : > { %226 = vadd.xlane.f32.xlu0 %v225_v1 }
  0x9f   : > { %v227_v2 = vpop.xlane.xlu0 %226 }
  0xa0   : > { %v229_v3 = vmul.f32 0.020833334, %v227_v2 }
  0xa2   : > { %v230_v4 = vsub.f32 %v223_v0, %v229_v3 }
  0xa4   : > { %v231_v5 = vmul.f32 %v230_v4, %v230_v4 }
  0xa6   : > { %v232_v6 = vsel %vm224_vm0, %v231_v5, 0.0 }
  0xa7   : > { %233 = vadd.xlane.f32.xlu0 %v232_v6 }
 0x134   : > { %v234_v14 = vpop.xlane.xlu0 %233 }
 0x135   : > { %v235_v15 = vmul.f32 0.020833334, %v234_v14 }
 0x137   : > { %v236_v16 = vadd.f32 1e-05, %v235_v15 }
 0x139   : > { %455 = vrsqrt.f32 %v236_v16 }
 0x143   : > { %v456_v17 = vpop.eup %455 }
 0x144   : > { %v238_v19 = vmul.f32 %v456_v17, %v230_v4 }
 0x146   : > { %v246_v21 = vmul.f32 %v423_v18, %v238_v19 }
 0x148   : > { %v254_v22 = vadd.f32 %v424_v20, %v246_v21 }
 0x14a   : > { %v255_v23 = vpack.c.bf16 %v254_v22, %v254_v22 }
 0x14c   : > { %431 = vmatmul.mubr.msk.bf16.vlgmr.msra.gmra.mrb[0].mxu0 %vm224_vm0, %v255_v23 }
 0x21f   : > { %v341_v31 = vpop.f32.mrb[0].mxu0 }
 0x220   : > { %v342_v32 = vadd.f32 %v341_v31, %v267_v29  ;;  %v343_v33 = vpop.f32.mrb[1].mxu0 }
 0x221   : > { %v344_v34 = vadd.f32 %v343_v33, %v271_v30  ;;  %v345_v35 = vpop.f32.mrb[2].mxu0 }
 0x222   : > { %v346_v36 = vpop.f32.mrb[3].mxu0 }
 0x223   : > { %v436_v37 = vpack.c.bf16 %v344_v34, %v342_v32 }
 0x225   : > { %359 = vst.msk [vmem:[%s221_s22] sm:$0xff] %vm358_vm3, %v436_v37 }
 0x226 PF: > { %s15_s18 = sadd.s32 1, %s463_s18  }
 0x227   : > { %p12_p4 = scmp.ge.s32.totalorder %s15_s18, 4  }
 0x229   :  { %14 = sbr.rel (!%p12_p4) target bundleno = 1 (0x1), region = 70 }

// kernel: swin_forward.28
= control target key start
LH: loop header
LB: loop body
LE: loop exit
PB: predicated region body
PF: predicated region fallthrough
CT: control target
= control target key end

     0   :  { %s844_s27 = smov 0   ;;  %s944_s0 = inlined_call_operand.vmem [shape: f32[16,48], index: 0, kind: input, shape index: {}]   ;;  %s945_s1 = inlined_call_operand.vmem [shape: f32[16,48], index: 1, kind: input, shape index: {}]   ;;  %s946_s2 = inlined_call_operand.vmem [shape: f32[1,48], index: 2, kind: input, shape index: {}]   ;;  %s947_s3 = inlined_call_operand.vmem [shape: f32[1,48], index: 3, kind: input, shape index: {}]   ;;  %s948_s4 = inlined_call_operand.vmem [shape: bf16[48,192], index: 4, kind: input, shape index: {}]   ;;  %s949_s5 = inlined_call_operand.vmem [shape: f32[1,192], index: 5, kind: input, shape index: {}]   ;;  %s950_s6 = inlined_call_operand.vmem [shape: bf16[192,48], index: 6, kind: input, shape index: {}]   ;;  %s951_s7 = inlined_call_operand.vmem [shape: f32[1,48], index: 7, kind: input, shape index: {}]   ;;  %s952_s8 = inlined_call_operand.vmem [shape: f32[16,48], index: 8, kind: output, shape index: {}]  }
   0x1 LB: > { %s717_s28 = sadd.s32 4294967295, %s796_s27   ;;  %p721_p0 = scmp.ge.s32.totalorder %s796_s27, 1  ;;  %s796_s27 = sphi %s844_s27, %s18_s27  }
   0x2   : > { %p270_p1 = scmp.lt.s32.totalorder %s796_s27, 3 }
   0x4   : > { %p271_p2 = pnand %p721_p0, %p270_p1 }
   0x5   : > { %p306_p3 = scmp.lt.s32.totalorder (!%p271_p2), %s717_s28, 1  ;;  %vm322_vm0 = vcmask (!%p271_p2), 392192   ;;  %v759_v9 = vld [vmem:[%s948_s4 + $0x4] ss:$8 sps:$4 sm:$0xff] (!%p271_p2)   ;;  %v761_v10 = vld [vmem:[%s948_s4] ss:$8 sps:$4 sm:$0xff] (!%p271_p2)   ;;  %v362_v38 = vlaneseq (!%p271_p2) }
   0x6   : > { %274 = sbr.rel (%p271_p2) target bundleno = 818 (0x332), region = 52  ;;  %405 = vmatprep.subr.bf16.mxu0 (!%p271_p2), %v759_v9  ;;  %v762_v11 = vld [vmem:[%s948_s4 + $0x14] ss:$8 sps:$4 sm:$0xff] (!%p271_p2)   ;;  %v764_v12 = vld [vmem:[%s948_s4 + $0x10] ss:$8 sps:$4 sm:$0xff] (!%p271_p2)   ;;  %v798_v15 = vmov (!%p271_p2), 0  }
   0x7   : > { %406 = vmatpush1.bf16.msra.mxu0 (!%p271_p2), %v761_v10  ;;  %v765_v13 = vld [vmem:[%s948_s4 + $0x24] ss:$8 sps:$4 sm:$0xff] (!%p271_p2)   ;;  %v767_v14 = vld [vmem:[%s948_s4 + $0x20] ss:$8 sps:$4 sm:$0xff] (!%p271_p2)   ;;  %437 = vmatprep.mubr.bf16.mxu0 (!%p271_p2), %v798_v15  ;;  %v770_v28 = vld [vmem:[%s950_s6 + $0x10] sm:$0xff] (!%p271_p2)   ;;  %v363_v39 = vshrl.u32 (!%p271_p2), %v362_v38, 7 }
   0x8   : > { %407 = vmatprep.subr.bf16.mxu0 (!%p271_p2), %v762_v11  ;;  %602 = vmatprep.subr.bf16.mxu1 (!%p271_p2), %v798_v15  ;;  %v725_v20 = vld [vmem:[%s946_s2] ss:$0 sm:$0xff] (!%p271_p2)  ;;  %v769_v27 = vld [vmem:[%s950_s6 + $0x8] sm:$0xff] (!%p271_p2)   ;;  %v771_v29 = vld [vmem:[%s950_s6 + $0x18] sm:$0xff] (!%p271_p2)   ;;  %vm598_vm3 = vcmask (!%p271_p2), 523264  }
   0x9   : > { %v726_v22 = vld [vmem:[%s947_s3] ss:$0 sm:$0xff] (!%p271_p2)  ;;  %v773_v31 = vld [vmem:[%s950_s6 + $0x28] sm:$0xff] (!%p271_p2)   ;;  %v774_v32 = vld [vmem:[%s950_s6 + $0x30] sm:$0xff] (!%p271_p2)   ;;  %v364_v40 = vsub.s32 (!%p271_p2), 0, %v363_v39  ;;  %v368_v42 = vsub.s32 (!%p271_p2), 1, %v363_v39 }
   0xa   : > { %v768_v26 = vld [vmem:[%s950_s6] sm:$0xff] (!%p271_p2)   ;;  %v775_v33 = vld [vmem:[%s950_s6 + $0x38] sm:$0xff] (!%p271_p2)   ;;  %v777_v35 = vld [vmem:[%s950_s6 + $0x48] sm:$0xff] (!%p271_p2)  }
   0xb   : > { %408 = vmatpush1.bf16.msra.mxu0 (!%p271_p2), %v764_v12  ;;  %603 = vmatpush1.bf16.msra.mxu1 (!%p271_p2), %v768_v26  ;;  %v772_v30 = vld [vmem:[%s950_s6 + $0x20] sm:$0xff] (!%p271_p2)   ;;  %v778_v36 = vld [vmem:[%s950_s6 + $0x50] sm:$0xff] (!%p271_p2)   ;;  %v779_v37 = vld [vmem:[%s950_s6 + $0x58] sm:$0xff] (!%p271_p2)  }
   0xc   : > { %409 = vmatprep.subr.bf16.mxu0 (!%p271_p2), %v765_v13  ;;  %604 = vmatprep.subr.bf16.mxu1 (!%p271_p2), %v798_v15  ;;  %v776_v34 = vld [vmem:[%s950_s6 + $0x40] sm:$0xff] (!%p271_p2)  }
   0xd   : > { %s954_s28 = smov (!%p306_p3, %s717_s28), 1  ;;  %v360_v41 = vld [vmem:[%s949_s5] sm:$0x3] }
   0xe   : > { %s852_s29 = sshll.u32 %s954_s28, 3  ;;  %v365_v43 = vrot.slane %v360_v41, %v364_v40  ;;  %v369_v44 = vrot.slane %v360_v41, %v368_v42  ;;  %v747_v41 = vld [vmem:[%s951_s7] ss:$0 sm:$0xff] }
   0xf   : > { %s309_s10 = scalar_lea.vmem %s944_s0, %s852_s29  ;;  %s313_s13 = scalar_lea.vmem %s945_s1, %s852_s29  ;;  %410 = vmatpush1.bf16.msra.mxu0 %v767_v14  ;;  %605 = vmatpush1.bf16.msra.mxu1 %v769_v27 }
  0x10   : > { %v319_v0 = vld [vmem:[%s309_s10] sm:$0xff]  ;;  %606 = vmatprep.subr.bf16.mxu1 %v798_v15  ;;  %s317_s20 = scalar_lea.vmem %s952_s8, %s852_s29 }
  0x11   : > { %v320_v1 = vld [vmem:[%s313_s13] sm:$0xff] }
  0x12   : > { %v862_v2 = vadd.f32 %v320_v1, %v319_v0 }
  0x13   : > { %607 = vmatpush1.bf16.msra.mxu1 %v770_v28 }
  0x14   : > { %v323_v3 = vsel %vm322_vm0, %v862_v2, 0.0  ;;  %608 = vmatprep.subr.bf16.mxu1 %v798_v15 }
  0x15   : > { %324 = vadd.xlane.f32.xlu0 %v323_v3 }
  0x17   : > { %609 = vmatpush1.bf16.msra.mxu1 %v771_v29 }
  0x18   : > { %610 = vmatprep.subr.bf16.mxu1 %v798_v15 }
  0x1b   : > { %611 = vmatpush1.bf16.msra.mxu1 %v772_v30 }
  0x1c   : > { %612 = vmatprep.subr.bf16.mxu1 %v798_v15 }
  0x1f   : > { %613 = vmatpush1.bf16.msra.mxu1 %v773_v31 }
  0x20   : > { %614 = vmatprep.subr.bf16.mxu1 %v798_v15 }
  0x23   : > { %615 = vmatpush1.bf16.msra.mxu1 %v774_v32 }
  0x24   : > { %616 = vmatprep.subr.bf16.mxu1 %v798_v15 }
  0x27   : > { %617 = vmatpush1.bf16.msra.mxu1 %v775_v33 }
  0x28   : > { %618 = vmatprep.subr.bf16.mxu1 %v798_v15 }
  0x2b   : > { %619 = vmatpush1.bf16.msra.mxu1 %v776_v34 }
  0x2c   : > { %620 = vmatprep.subr.bf16.mxu1 %v798_v15 }
  0x2f   : > { %621 = vmatpush1.bf16.msra.mxu1 %v777_v35 }
  0x30   : > { %622 = vmatprep.subr.bf16.mxu1 %v798_v15 }
  0x33   : > { %623 = vmatpush1.bf16.msra.mxu1 %v778_v36 }
  0x34   : > { %624 = vmatprep.subr.bf16.mxu1 %v798_v15 }
  0x37   : > { %625 = vmatpush1.bf16.msra.mxu1 %v779_v37 }
  0xa2   : > { %v325_v4 = vpop.xlane.xlu0 %324 }
  0xa3   : > { %v327_v5 = vmul.f32 0.020833334, %v325_v4 }
  0xa5   : > { %v328_v6 = vsub.f32 %v862_v2, %v327_v5 }
  0xa7   : > { %v329_v7 = vmul.f32 %v328_v6, %v328_v6 }
  0xa9   : > { %v330_v8 = vsel %vm322_vm0, %v329_v7, 0.0 }
  0xaa   : > { %331 = vadd.xlane.f32.xlu0 %v330_v8 }
 0x137   : > { %v332_v16 = vpop.xlane.xlu0 %331 }
 0x138   : > { %v333_v17 = vmul.f32 0.020833334, %v332_v16 }
 0x13a   : > { %v334_v18 = vadd.f32 1e-05, %v333_v17 }
 0x13c   : > { %780 = vrsqrt.f32 %v334_v18 }
 0x146   : > { %v781_v19 = vpop.eup %780 }
 0x147   : > { %v336_v21 = vmul.f32 %v781_v19, %v328_v6 }
 0x149   : > { %v344_v23 = vmul.f32 %v725_v20, %v336_v21 }
 0x14b   : > { %v352_v24 = vadd.f32 %v726_v22, %v344_v23 }
 0x14d   : > { %v353_v25 = vpack.c.bf16 %v352_v24, %v352_v24 }
 0x14f   : > { %733 = vmatmul.mubr.msk.bf16.vlgmr.msra.gmra.mrb[0].mxu0 %vm322_vm0, %v353_v25 }
 0x222   : > { %v439_v45 = vpop.f32.mrb[0].mxu0 }
 0x223   : > { %v440_v46 = vadd.f32 %v439_v45, %v365_v43  ;;  %v441_v47 = vpop.f32.mrb[1].mxu0 }
 0x224   : > { %v442_v48 = vadd.f32 %v441_v47, %v369_v44  ;;  %v443_v49 = vpop.f32.mrb[2].mxu0 }
 0x225   : > { %v448_v50 = vmul.f32 0.70710677, %v440_v46  ;;  %v444_v51 = vpop.f32.mrb[3].mxu0  ;;  %v446_v31 = vmul.f32 0.5, %v440_v46 }
 0x226   : > { %v449_v52 = vmul.f32 0.70710677, %v442_v48  ;;  %v447_v34 = vmul.f32 0.5, %v442_v48 }
 0x227   : > { %v450_v53 = vand.u32 2147483647, %v448_v50  ;;  %vm490_vm1 = vcmp.lt.f32.partialorder %v448_v50, 0.0 }
 0x228   : > { %v451_v54 = vand.u32 2147483647, %v449_v52  ;;  %vm491_vm2 = vcmp.lt.f32.partialorder %v449_v52, 0.0 }
 0x229   : > { %v452_v55 = vmul.f32 0.3275911, %v450_v53  ;;  %v478_v59 = vsub.f32 0.0, %v450_v53 }
 0x22a   : > { %v453_v56 = vmul.f32 0.3275911, %v451_v54  ;;  %v479_v60 = vsub.f32 0.0, %v451_v54 }
 0x22b   : > { %v454_v57 = vadd.f32 1.0, %v452_v55  ;;  %v480_v62 = vmul.f32 %v478_v59, %v450_v53 }
 0x22c   : > { %v455_v58 = vadd.f32 1.0, %v453_v56  ;;  %v481_v0 = vmul.f32 %v479_v60, %v451_v54 }
 0x22d   : > { %782 = vrcp.f32 %v454_v57  ;;  %v482_v5 = vmul.f32 1.442695, %v480_v62 }
 0x22e   : > { %784 = vrcp.f32 %v455_v58  ;;  %v484_v7 = vmul.f32 1.442695, %v481_v0 }
 0x22f   : > { %786 = vpow2.f32 %v482_v5 }
 0x230   : > { %788 = vpow2.f32 %v484_v7 }
 0x237   : > { %v783_v61 = vpop.eup %782 }
 0x238   : > { %v785_v63 = vpop.eup %784  ;;  %v460_v1 = vmul.f32 1.0614054, %v783_v61 }
 0x239   : > { %v461_v3 = vmul.f32 1.0614054, %v785_v63  ;;  %v787_v21 = vpop.eup %786 }
 0x23a   : > { %v462_v4 = vadd.f32 -1.4531521, %v460_v1  ;;  %v789_v23 = vpop.eup %788 }
 0x23b   : > { %v463_v6 = vadd.f32 -1.4531521, %v461_v3 }
 0x23c   : > { %v464_v8 = vmul.f32 %v783_v61, %v462_v4 }
 0x23d   : > { %v465_v9 = vmul.f32 %v785_v63, %v463_v6 }
 0x23e   : > { %v466_v10 = vadd.f32 1.4214138, %v464_v8 }
 0x23f   : > { %v467_v11 = vadd.f32 1.4214138, %v465_v9 }
 0x240   : > { %v468_v12 = vmul.f32 %v783_v61, %v466_v10 }
 0x241   : > { %v469_v13 = vmul.f32 %v785_v63, %v467_v11 }
 0x242   : > { %v470_v14 = vadd.f32 -0.28449672, %v468_v12 }
 0x243   : > { %v471_v15 = vadd.f32 -0.28449672, %v469_v13 }
 0x244   : > { %v472_v16 = vmul.f32 %v783_v61, %v470_v14 }
 0x245   : > { %v473_v17 = vmul.f32 %v785_v63, %v471_v15 }
 0x246   : > { %v474_v18 = vadd.f32 0.2548296, %v472_v16 }
 0x247   : > { %v475_v19 = vadd.f32 0.2548296, %v473_v17 }
 0x248   : > { %v476_v20 = vmul.f32 %v783_v61, %v474_v18 }
 0x249   : > { %v477_v22 = vmul.f32 %v785_v63, %v475_v19 }
 0x24a   : > { %v486_v24 = vmul.f32 %v787_v21, %v476_v20 }
 0x24b   : > { %v487_v25 = vmul.f32 %v789_v23, %v477_v22 }
 0x24c   : > { %v488_v26 = vsub.f32 1.0, %v486_v24 }
 0x24d   : > { %v489_v27 = vsub.f32 1.0, %v487_v25 }
 0x24e   : > { %v492_v28 = vsub.f32 0.0, %v488_v26 }
 0x24f   : > { %v493_v29 = vsub.f32 0.0, %v489_v27 }
 0x250   : > { %v494_v30 = vsel %vm490_vm1, %v492_v28, %v488_v26 }
 0x251   : > { %v495_v32 = vsel %vm491_vm2, %v493_v29, %v489_v27  ;;  %v496_v33 = vadd.f32 1.0, %v494_v30 }
 0x252   : > { %v497_v35 = vadd.f32 1.0, %v495_v32 }
 0x253   : > { %v498_v36 = vmul.f32 %v496_v33, %v446_v31 }
 0x254   : > { %v499_v37 = vmul.f32 %v497_v35, %v447_v34 }
 0x255   : > { %v500_v39 = vpack.c.bf16 %v498_v36, %v498_v36 }
 0x256   : > { %v501_v38 = vpack.c.bf16 %v499_v37, %v499_v37 }
 0x258   : > { %746 = vmatprep.mubr.msk.bf16.mxu1 %vm598_vm3, %v501_v38 }
 0x259   : > { %635 = vmatmul.mubr.bf16.vlgmr.msra.gmra.mrb[0].mxu1 %v500_v39 }
 0x32c   : > { %v636_v40 = vpop.f32.mrb[0].mxu1 }
 0x32d   : > { %v642_v42 = vadd.f32 %v636_v40, %v862_v2  ;;  %v638_v43 = vpop.f32.mrb[1].mxu1 }
 0x32e   : > { %v639_v44 = vpop.f32.mrb[2].mxu1 }
 0x32f   : > { %v650_v45 = vadd.f32 %v747_v41, %v642_v42  ;;  %v640_v46 = vpop.f32.mrb[3].mxu1 }
 0x331   : > { %651 = vst.msk [vmem:[%s317_s20] sm:$0xff] %vm322_vm0, %v650_v45 }
 0x332 PF: > { %s18_s27 = sadd.s32 1, %s796_s27  }
 0x333   : > { %p15_p4 = scmp.ge.s32.totalorder %s18_s27, 4  }
 0x335   :  { %17 = sbr.rel (!%p15_p4) target bundleno = 1 (0x1), region = 85 }

// kernel: swin_forward.33
= control target key start
LH: loop header
LB: loop body
LE: loop exit
PB: predicated region body
PF: predicated region fallthrough
CT: control target
= control target key end

     0   :  { %6 = vsyncpa [#allocation3], 0  ;;  %s414_s0 = inlined_call_operand.vmem [shape: f32[2,8,48], index: 0, kind: input, shape index: {}]   ;;  %s415_s1 = inlined_call_operand.hbm [shape: f32[2,1,48], index: 1, kind: output, shape index: {}]  }
   0x1   :  { %8 = vsyncpa [#allocation3 + $0x1], 0  ;;  %s314_s6 = smov 0   ;;  %s316_s7 = smov 0  }
   0x2   :  { %s318_s8 = smov 0   ;;  %s320_s9 = smov 0  }
   0x3 LB: > { %s335_s10 = sadd.s32 4294967295, %s301_s9   ;;  %s192_s11 = sadd.s32 4294967294, %s301_s9   ;;  %s301_s9 = sphi %s320_s9, %s421_s9   ;;  %s297_s8 = sphi %s318_s8, %s420_s8   ;;  %s293_s7 = sphi %s316_s7, %s419_s7   ;;  %s289_s6 = sphi %s314_s6, %s418_s6  }
   0x4   : > { %s339_s12 = sadd.s32 1, %s301_s9   ;;  %s47_s13 = sadd.s32 1, %s297_s8 }
   0x5   : > { %s44_s14 = ssub.s32 %s301_s9, %s339_s12  ;;  %p57_p0 = scmp.ne.s32.totalorder %s297_s8, %s293_s7 }
   0x6   : > { %p45_p1 = scmp.eq.s32.totalorder %s44_s14, 0  ;;  %p58_p2 = scmp.eq.s32.totalorder %s335_s10, 1 }
   0x7   : > { %p63_p3 = scmp.ne.s32.totalorder %s293_s7, %s289_s6  ;;  %p64_p4 = scmp.eq.s32.totalorder %s192_s11, 1 }
   0x8   : > { %s350_s15 = scalar_select %p45_p1, %s297_s8, %s47_s13  }
   0x9   : > { %p352_p5 = por %p58_p2, %p57_p0  ;;  %p356_p6 = por %p64_p4, %p63_p3 }
   0xa   : > { %p195_p7 = scmp.ge.s32.totalorder %s301_s9, 1  ;;  %p89_p8 = scmp.lt.s32.totalorder %s301_s9, 3 }
   0xc   : > { %p90_p9 = pnand %p195_p7, %p89_p8 }
   0xd   : > { %p107_p10 = scmp.lt.s32.totalorder (!%p90_p9), %s335_s10, 1  ;;  %vm112_vm0 = vcmask (!%p90_p9), 392192   ;;  %s105_s23 = sand.u32 (!%p90_p9), 1, %s293_s7   ;;  %vm122_vm1 = vcmask (!%p90_p9), 385024  }
   0xe   : > { %93 = sbr.rel (%p90_p9) target bundleno = 55 (0x37), region = 24  ;;  %s106_s24 = scalar_lea.vmem (!%p90_p9), [#allocation2], %s105_s23 }
   0xf   : > { %s137_s25 = sshll.u32 (!%p90_p9), %s106_s24, 4  ;;  %s197_s26 = sshll.u32 (!%p90_p9), %s335_s10, 4  ;;  %s369_s25 = int_to_ptr.vmem [resolvable:$true] %s137_s25 }
  0x10   : > { %s374_s29 = scalar_lea.hbm (!%p90_p9), %s415_s1, %s197_s26  ;;  %s125_s30 = scalar_lea.sflag (!%p90_p9), [#allocation3], %s105_s23 }
  0x11   : > { %s239_s2 = scalar_lea.vmem (!%p90_p9), %s369_s25, 16  ;;  %s303_s3 = smov (!%p90_p9), [#allocation2]  }
  0x12   : > { %p240_p11 = scmp.ne.s32.totalorder (!%p90_p9), %s369_s25, %s239_s2  ;;  %s243_s4 = sshll.u32 (!%p90_p9), %s303_s3, 4  ;;  %s244_s4 = int_to_ptr.vmem [resolvable:$false] %s243_s4 }
  0x13   : > { %s245_s5 = scalar_lea.vmem (!%p90_p9), %s244_s4, 32  ;;  %p246_p0 = scmp.lt.s32.totalorder (!%p90_p9), %s369_s25, %s244_s4 }
  0x14   : > { %p241_p12 = pnand (!%p90_p9), %p240_p11, %p352_p5  ;;  %p247_p1 = scmp.lt.s32.totalorder (!%p90_p9), %s245_s5, %s239_s2 }
  0x15   : > { %s108_s18 = scalar_select %p107_p10, %s335_s10, 1 }
  0x16   : > { %p242_p13 = pneg %p241_p12  ;;  %p248_p2 = por %p247_p1, %p246_p0 }
  0x17   : > { %s196_s19 = sshll.u32 %s108_s18, 3 }
  0x18   : > { %s110_s22 = scalar_lea.vmem %s414_s0, %s196_s19  ;;  %p249_p3 = pnand %p248_p2, %p242_p13 }
  0x19   : > { %v111_v0 = vld [vmem:[%s110_s22] sm:$0xff] }
  0x1a   : > { %v113_v1 = vsel %vm112_vm0, %v111_v0, 0.0 }
  0x1b   : > { %v114_v2 = vrot.slane %v113_v1, 4 }
  0x1d   : > { %v115_v3 = vadd.f32 %v114_v2, %v113_v1 }
  0x1f   : > { %v116_v4 = vrot.slane %v115_v3, 2 }
  0x21   : > { %v117_v5 = vadd.f32 %v116_v4, %v115_v3 }
  0x23   : > { %v118_v6 = vrot.slane %v117_v5, 1 }
  0x25   : > { %v119_v7 = vadd.f32 %v118_v6, %v117_v5 }
  0x27   : > { %v121_v8 = vmul.f32 0.125, %v119_v7 }
  0x29   : > { %123 = vst.msk [vmem:[%s106_s24] sm:$0x1] %vm122_vm1, %v121_v8 }
  0x2a   : > { %252 = shalt.err (!%p249_p3)
}
  0x2b   : > { %s253_s10 = scalar_lea.hbm %s374_s29, 16  ;;  %s257_s14 = scalar_lea.hbm %s415_s1, 32 }
  0x2c   : > { %p254_p4 = scmp.ne.s32.totalorder %s374_s29, %s253_s10  ;;  %p258_p9 = scmp.lt.u32.totalorder %s374_s29, %s415_s1 }
  0x2d   : > { %p259_p10 = scmp.lt.u32.totalorder %s257_s14, %s253_s10  ;;  %p261_p12 = scmp.lt.u32.totalorder %s253_s10, %s374_s29 }
  0x2e   : > { %p255_p7 = pnand %p254_p4, %p352_p5 }
  0x2f   : > { %p260_p11 = por %p259_p10, %p258_p9 }
  0x30   : > { %p256_p8 = pneg %p255_p7 }
  0x31   : > { %p262_p13 = por %p261_p12, %p260_p11 }
  0x33   : > { %p263_p0 = pnand %p262_p13, %p256_p8 }
  0x35   : > { %266 = shalt.err (!%p263_p0)
}
  0x36   : > { %200 = dma.vmem_to_hbm [thread:$0]  (%p352_p5), %s369_s25, 16, %s374_s29, %s125_s30  }
  0x37 PF: > { %p206_p1 = scmp.ge.s32.totalorder %s301_s9, 2  ;;  %s149_s20 = sand.u32 1, %s289_s6  }
  0x38   : > { %s150_s21 = scalar_lea.sflag [#allocation3], %s149_s20 }
  0x39   : > { %p203_p2 = pnand %p206_p1, %p356_p6 }
  0x3b   : > { %284 = dma.done.wait (!%p203_p2), %s150_s21, 16  }
  0x3c   : > { %286 = vsyncadd (!%p203_p2), %s150_s21, 4294967280  ;;  %p11_p3 = scmp.ge.s32.totalorder %s339_s12, 4   ;;  %s418_s6 = smov %s293_s7 }
  0x3d   : > { %s419_s7 = smov %s297_s8  ;;  %s420_s8 = smov %s350_s15 }
  0x3e   : > { %s421_s9 = smov %s339_s12  ;;  %13 = sbr.rel (!%p11_p3) target bundleno = 3 (0x3), region = 59 }
  0x45   :  { %154 = vsyncpa [#allocation3], 1 }
  0x46   :  { %156 = vsyncpa [#allocation3 + $0x1], 1 }

// kernel: swin_forward.27
= control target key start
LH: loop header
LB: loop body
LE: loop exit
PB: predicated region body
PF: predicated region fallthrough
CT: control target
= control target key end

     0   :  { %s1304_s15 = smov 0   ;;  %s1476_s0 = inlined_call_operand.vmem [shape: bf16[2,8,144], index: 0, kind: input, shape index: {}]   ;;  %s1477_s1 = inlined_call_operand.vmem [shape: f32[6,8,8], index: 1, kind: input, shape index: {}]   ;;  %s1478_s2 = inlined_call_operand.vmem [shape: bf16[48,48], index: 2, kind: input, shape index: {}]   ;;  %s1479_s3 = inlined_call_operand.vmem [shape: f32[1,48], index: 3, kind: input, shape index: {}]   ;;  %s1480_s4 = inlined_call_operand.vmem [shape: f32[2,8,48], index: 4, kind: output, shape index: {}]  }
   0x1 LB: > { %s1050_s16 = sadd.s32 4294967295, %s1260_s15   ;;  %p1054_p0 = scmp.ge.s32.totalorder %s1260_s15, 1  ;;  %s1260_s15 = sphi %s1304_s15, %s14_s15  }
   0x2   : > { %p162_p1 = scmp.lt.s32.totalorder %s1260_s15, 3 }
   0x4   : > { %p163_p2 = pnand %p1054_p0, %p162_p1 }
   0x5   : > { %p187_p3 = scmp.lt.s32.totalorder (!%p163_p2), %s1050_s16, 1  ;;  %v1262_v0 = vmov (!%p163_p2), 0.0   ;;  %vm1263_vm0 = vmmov (!%p163_p2), 0   ;;  %s1264_s21 = smov (!%p163_p2), 80   ;;  %vm209_vm1 = vcmask (!%p163_p2), 64512   ;;  %v197_v6 = vld [vmem:[%s1477_s1] sm:$0xff] (!%p163_p2) }
   0x6   : > { %166 = sbr.rel (%p163_p2) target bundleno = 1824 (0x720), region = 36  ;;  %1113 = vmatprep.subr.bf16.mxu0 (!%p163_p2), %v1262_v0  ;;  %1115 = vmatprep.mubr.msk.bf16.mxu0 (!%p163_p2), %vm1263_vm0, %v1262_v0  ;;  %s1265_s22 = smov (!%p163_p2), 32   ;;  %vm273_vm2 = vcmask (!%p163_p2), 1043456   ;;  %v198_v47 = vld [vmem:[%s1477_s1 + $0x8] sm:$0xff] (!%p163_p2)  ;;  %v199_v54 = vld [vmem:[%s1477_s1 + $0x10] sm:$0xff] (!%p163_p2)  ;;  %v200_v61 = vld [vmem:[%s1477_s1 + $0x18] sm:$0xff] (!%p163_p2) }
   0x7   : > { %1119 = vmatprep.subr.bf16.mxu1 (!%p163_p2), %v1262_v0  ;;  %1121 = vmatprep.mubr.msk.bf16.mxu1 (!%p163_p2), %vm1263_vm0, %v1262_v0  ;;  %s1266_s23 = smov (!%p163_p2), 72   ;;  %s1267_s26 = smov (!%p163_p2), 56   ;;  %vm911_vm3 = vcmask (!%p163_p2), 130048   ;;  %vm913_vm4 = vcmask (!%p163_p2), 195584   ;;  %vm915_vm5 = vcmask (!%p163_p2), 261120   ;;  %vm917_vm6 = vcmask (!%p163_p2), 326656  }
   0x8   : > { %s1268_s27 = smov (!%p163_p2), 120   ;;  %s1269_s28 = smov (!%p163_p2), 64   ;;  %vm944_vm7 = vcmask (!%p163_p2), 392192  }
   0x9   : > { %s1270_s29 = smov (!%p163_p2), 112   ;;  %s1271_s30 = smov (!%p163_p2), 104  }
   0xa   : > { %s1272_s5 = smov (!%p163_p2), 48   ;;  %s1273_s6 = smov (!%p163_p2), 96  }
   0xb   : > { %s1274_s7 = smov (!%p163_p2), 40   ;;  %s1275_s8 = smov (!%p163_p2), 88  }
   0xc   : > { %s1276_s24 = smov (!%p163_p2), 24   ;;  %s1277_s25 = smov (!%p163_p2), 16  }
   0xd   : > { %s1482_s16 = smov (!%p187_p3, %s1050_s16), 1 }
   0xe   : > { %s1084_s17 = sshll.u32 %s1482_s16, 3 }
   0xf   : > { %s1326_s20 = scalar_lea.vmem %s1476_s0, %s1084_s17  ;;  %s195_s9 = scalar_lea.vmem %s1480_s4, %s1084_s17 }
  0x10   : > { %v203_v1 = vld [vmem:[%s1326_s20] sm:$0xf] }
  0x11   : > { %v1058_v2 = vcombine.low %v203_v1, %v203_v1  ;;  %v1336_v5 = vld [vmem:[%s1326_s20] ss:$0 sps:$4 sm:$0xff]  }
  0x12   : > { %v1344_v13 = vld [vmem:[%s1326_s20] ss:$0 sps:$4 sm:$0xff]  }
  0x13   : > { %207 = vrot.lane.b32.xlu0 %v1058_v2, %s1264_s21  ;;  %268 = vrot.lane.b32.xlu1 %v1058_v2, %s1265_s22  ;;  %v1353_v21 = vld [vmem:[%s1326_s20] ss:$0 sps:$4 sm:$0xff]  }
  0x14   : > { %v1224_v22 = vld [vmem:[%s1326_s20] ss:$0 sps:$4 sm:$0xff]  }
  0x15   : > { %v1225_v23 = vld [vmem:[%s1326_s20] ss:$0 sps:$4 sm:$0xff]  }
  0x17   : > { %323 = vrot.lane.b32.xlu1 %v1336_v5, %s1266_s23 }
  0x85   : > { %v208_v3 = vpop.permute.xlu0 %207  ;;  %v269_v14 = vpop.permute.xlu1 %268 }
  0x86   : > { %v214_v4 = vsel %vm209_vm1, %v208_v3, 0  ;;  %v275_v15 = vsel %vm273_vm2, %v269_v14, 0  ;;  %v202_v14 = vld [vmem:[%s1477_s1 + $0x28] sm:$0xff] }
  0x87   : > { %1114 = vmatpush3.bf16.xpose.msra.mxu0 %v214_v4  ;;  %1120 = vmatpush3.bf16.msra.mxu1 %v275_v15 }
  0x88   : > { %1131 = vmatprep.subr.bf16.mxu0 %v1262_v0  ;;  %1125 = vmatprep.subr.bf16.mxu1 %v1262_v0 }
  0x89   : > { %v324_v24 = vpop.permute.xlu1 %323 }
  0x8a   : > { %v329_v31 = vsel %vm209_vm1, %v324_v24, 0 }
  0x8e   : > { %1116 = vmatmul.mubr.msk.bf16.vlgmr.msra.gmra.mrb[0].mxu0 %vm209_vm1, %v203_v1 }
  0x8f   : > { %1133 = vmatprep.mubr.msk.bf16.mxu0 %vm1263_vm0, %v1262_v0 }
 0x161   : > { %v250_v7 = vpop.f32.mrb[0].mxu0 }
 0x162   : > { %v251_v8 = vadd.f32 %v250_v7, %v197_v6  ;;  %v1117_v9 = vpop.f32.mrb[1].mxu0  ;;  %v201_v6 = vld [vmem:[%s1477_s1 + $0x20] sm:$0xff] }
 0x163   : > { %v253_v10 = vpop.f32.mrb[2].mxu0 }
 0x164   : > { %v1118_v11 = vpop.f32.mrb[3].mxu0  ;;  %v256_v12 = vsel %vm209_vm1, %v251_v8, -inf }
 0x165   : > { %257 = vmax.xlane.f32.xlu0 %v256_v12 }
 0x17b   : > { %551 = vrot.lane.b32.xlu0 %v1344_v13, %s1267_s26  ;;  %s1278_s26 = smov 8  }
 0x1f2   : > { %v258_v16 = vpop.xlane.xlu0 %257 }
 0x1f3   : > { %v259_v17 = vsub.f32 %v251_v8, %v258_v16 }
 0x1f5   : > { %v260_v18 = vmul.f32 1.442695, %v259_v17 }
 0x1f6   : > { %v552_v35 = vpop.permute.xlu0 %551 }
 0x1f7   : > { %1230 = vpow2.f32 %v260_v18  ;;  %v557_v36 = vsel %vm209_vm1, %v552_v35, 0 }
 0x201   : > { %v1231_v19 = vpop.eup %1230 }
 0x202   : > { %v262_v20 = vsel %vm209_vm1, %v1231_v19, 0.0 }
 0x203   : > { %263 = vadd.xlane.f32.xlu1 %v262_v20 }
 0x214   : > { %321 = vrot.lane.b32.xlu1 %v1336_v5, %s1268_s27 }
 0x218   : > { %437 = vrot.lane.b32.xlu1 %v1353_v21, %s1269_s28 }
 0x21c   : > { %435 = vrot.lane.b32.xlu1 %v1353_v21, %s1270_s29 }
 0x220   : > { %549 = vrot.lane.b32.xlu1 %v1344_v13, %s1271_s30 }
 0x224   : > { %666 = vrot.lane.b32.xlu1 %v1224_v22, %s1272_s5 }
 0x228   : > { %664 = vrot.lane.b32.xlu1 %v1224_v22, %s1273_s6 }
 0x22c   : > { %779 = vrot.lane.b32.xlu1 %v1225_v23, %s1274_s7 }
 0x230   : > { %777 = vrot.lane.b32.xlu1 %v1225_v23, %s1275_s8 }
 0x290   : > { %v264_v25 = vpop.xlane.xlu1 %263 }
 0x291   : > { %1232 = vrcp.f32 %v264_v25 }
 0x294   : > { %v322_v26 = vpop.permute.xlu1 %321 }
 0x298   : > { %v438_v30 = vpop.permute.xlu1 %437 }
 0x299   : > { %v443_v33 = vsel %vm209_vm1, %v438_v30, 0 }
 0x29b   : > { %v1233_v27 = vpop.eup %1232 }
 0x29c   : > { %v266_v28 = vmul.f32 %v1233_v27, %v1231_v19  ;;  %v436_v32 = vpop.permute.xlu1 %435 }
 0x29e   : > { %v267_v29 = vpack.c.bf16 %v266_v28, %v266_v28 }
 0x2a0   : > { %1122 = vmatmul.mubr.msk.bf16.vlgmr.msra.gmra.mrb[0].mxu1 %vm209_vm1, %v267_v29  ;;  %v550_v34 = vpop.permute.xlu1 %549 }
 0x2a1   : > { %1126 = vmatpush3.bf16.xpose.msra.mxu1 %v329_v31  ;;  %1127 = vmatprep.mubr.msk.bf16.mxu1 %vm1263_vm0, %v1262_v0 }
 0x2a2   : > { %1137 = vmatprep.subr.bf16.mxu1 %v1262_v0 }
 0x2a4   : > { %v667_v37 = vpop.permute.xlu1 %666 }
 0x2a5   : > { %v672_v39 = vsel %vm209_vm1, %v667_v37, 0 }
 0x2a8   : > { %1128 = vmatmul.mubr.msk.bf16.vlgmr.msra.gmra.mrb[4].mxu1 %vm209_vm1, %v322_v26  ;;  %v665_v38 = vpop.permute.xlu1 %664 }
 0x2a9   : > { %1138 = vmatpush3.bf16.xpose.msra.mxu1 %v443_v33  ;;  %1139 = vmatprep.mubr.msk.bf16.mxu1 %vm1263_vm0, %v1262_v0 }
 0x2aa   : > { %1149 = vmatprep.subr.bf16.mxu1 %v1262_v0 }
 0x2ac   : > { %v780_v40 = vpop.permute.xlu1 %779 }
 0x2ad   : > { %v785_v41 = vsel %vm209_vm1, %v780_v40, 0 }
 0x2b0   : > { %1140 = vmatmul.mubr.msk.bf16.vlgmr.msra.gmra.mrb[8].mxu1 %vm209_vm1, %v436_v32  ;;  %v778_v42 = vpop.permute.xlu1 %777 }
 0x2b1   : > { %1150 = vmatpush3.bf16.xpose.msra.mxu1 %v557_v36  ;;  %1151 = vmatprep.mubr.msk.bf16.mxu1 %vm1263_vm0, %v1262_v0 }
 0x2b2   : > { %1161 = vmatprep.subr.bf16.mxu1 %v1262_v0 }
 0x2b8   : > { %1152 = vmatmul.mubr.msk.bf16.vlgmr.msra.gmra.mrb[12].mxu1 %vm209_vm1, %v550_v34 }
 0x2b9   : > { %1162 = vmatpush3.bf16.xpose.msra.mxu1 %v672_v39  ;;  %1163 = vmatprep.mubr.msk.bf16.mxu1 %vm1263_vm0, %v1262_v0 }
 0x2ba   : > { %1173 = vmatprep.subr.bf16.mxu1 %v1262_v0 }
 0x2c0   : > { %1164 = vmatmul.mubr.msk.bf16.vlgmr.msra.gmra.mrb[16].mxu1 %vm209_vm1, %v665_v38 }
 0x2c1   : > { %1174 = vmatpush3.bf16.xpose.msra.mxu1 %v785_v41  ;;  %1175 = vmatprep.mubr.msk.bf16.mxu1 %vm1263_vm0, %v1262_v0 }
 0x2c2   : > { %1185 = vmatprep.subr.bf16.mxu1 %v1262_v0 }
 0x2c8   : > { %1176 = vmatmul.mubr.msk.bf16.vlgmr.msra.gmra.mrb[20].mxu1 %vm209_vm1, %v778_v42 }
 0x2c9   : > { %1191 = vmatprep.mubr.msk.bf16.mxu1 %vm1263_vm0, %v1262_v0 }
 0x373   : > { %v1389_v43 = vpop.f32.mrb[0].mxu1 }
 0x374   : > { %v1123_v44 = vpop.f32.mrb[1].mxu1 }
 0x375   : > { %v314_v45 = vpop.f32.mrb[2].mxu1 }
 0x376   : > { %v1124_v46 = vpop.f32.mrb[3].mxu1 }
 0x377   : > { %v1226_v46 = vld [vmem:[%s1326_s20 + $0x4] ss:$0 sps:$4 sm:$0xff]  }
 0x37b   : > { %v365_v48 = vpop.f32.mrb[4].mxu1 }
 0x37c   : > { %v366_v49 = vadd.f32 %v365_v48, %v198_v47  ;;  %v1129_v50 = vpop.f32.mrb[5].mxu1 }
 0x37d   : > { %v368_v51 = vpop.f32.mrb[6].mxu1 }
 0x37e   : > { %v1130_v52 = vpop.f32.mrb[7].mxu1  ;;  %v371_v53 = vsel %vm209_vm1, %v366_v49, -inf }
 0x37f   : > { %372 = vmax.xlane.f32.xlu0 %v371_v53 }
 0x383   : > { %v479_v55 = vpop.f32.mrb[8].mxu1 }
 0x384   : > { %v480_v56 = vadd.f32 %v479_v55, %v199_v54  ;;  %v1141_v57 = vpop.f32.mrb[9].mxu1 }
 0x385   : > { %v482_v58 = vpop.f32.mrb[10].mxu1 }
 0x386   : > { %v1142_v59 = vpop.f32.mrb[11].mxu1  ;;  %v485_v60 = vsel %vm209_vm1, %v480_v56, -inf }
 0x387   : > { %486 = vmax.xlane.f32.xlu1 %v485_v60 }
 0x38b   : > { %v593_v62 = vpop.f32.mrb[12].mxu1 }
 0x38c   : > { %v594_v63 = vadd.f32 %v593_v62, %v200_v61  ;;  %v1153_v1 = vpop.f32.mrb[13].mxu1 }
 0x38d   : > { %v596_v2 = vpop.f32.mrb[14].mxu1 }
 0x38e   : > { %v599_v3 = vsel %vm209_vm1, %v594_v63, -inf  ;;  %v1154_v4 = vpop.f32.mrb[15].mxu1 }
 0x38f   : > { %600 = vmax.xlane.f32.xlu0 %v599_v3 }
 0x393   : > { %v708_v7 = vpop.f32.mrb[16].mxu1 }
 0x394   : > { %v709_v8 = vadd.f32 %v708_v7, %v201_v6  ;;  %v1165_v9 = vpop.f32.mrb[17].mxu1 }
 0x395   : > { %v711_v10 = vpop.f32.mrb[18].mxu1 }
 0x396   : > { %v714_v11 = vsel %vm209_vm1, %v709_v8, -inf  ;;  %v1166_v12 = vpop.f32.mrb[19].mxu1 }
 0x397   : > { %715 = vmax.xlane.f32.xlu0 %v714_v11 }
 0x39b   : > { %v821_v15 = vpop.f32.mrb[20].mxu1 }
 0x39c   : > { %v822_v16 = vadd.f32 %v821_v15, %v202_v14  ;;  %v1177_v17 = vpop.f32.mrb[21].mxu1 }
 0x39d   : > { %v824_v18 = vpop.f32.mrb[22].mxu1 }
 0x39e   : > { %v827_v19 = vsel %vm209_vm1, %v822_v16, -inf  ;;  %v1178_v20 = vpop.f32.mrb[23].mxu1 }
 0x39f   : > { %828 = vmax.xlane.f32.xlu1 %v827_v19 }
 0x40c   : > { %v373_v22 = vpop.xlane.xlu0 %372 }
 0x40d   : > { %v374_v23 = vsub.f32 %v366_v49, %v373_v22 }
 0x40f   : > { %v375_v24 = vmul.f32 1.442695, %v374_v23 }
 0x411   : > { %1234 = vpow2.f32 %v375_v24  ;;  %v1227_v24 = vld [vmem:[%s1478_s2] sm:$0xff]  }
 0x412   : > { %1186 = vmatpush3.bf16.msra.mxu1 %v1227_v24 }
 0x413   : > { %1187 = vmatprep.subr.bf16.mxu1 %v1262_v0 }
 0x414   : > { %v487_v25 = vpop.xlane.xlu1 %486 }
 0x415   : > { %v488_v26 = vsub.f32 %v480_v56, %v487_v25  ;;  %v1228_v25 = vld [vmem:[%s1478_s2 + $0x8] sm:$0xff]  }
 0x416   : > { %1188 = vmatpush3.bf16.msra.mxu1 %v1228_v25 }
 0x417   : > { %v489_v27 = vmul.f32 1.442695, %v488_v26  ;;  %1189 = vmatprep.subr.bf16.mxu1 %v1262_v0 }
 0x419   : > { %1236 = vpow2.f32 %v489_v27 }
 0x41b   : > { %v1235_v28 = vpop.eup %1234 }
 0x41c   : > { %v377_v29 = vsel %vm209_vm1, %v1235_v28, 0.0  ;;  %v601_v32 = vpop.xlane.xlu0 %600 }
 0x41d   : > { %378 = vadd.xlane.f32.xlu0 %v377_v29  ;;  %v602_v33 = vsub.f32 %v594_v63, %v601_v32  ;;  %v660_v63 = vld [vmem:[%s1326_s20 + $0x4] sm:$0xf] }
 0x41e   : > { %v730_v4 = vsel %vm273_vm2, %v660_v63, 0 }
 0x41f   : > { %v603_v34 = vmul.f32 1.442695, %v602_v33 }
 0x421   : > { %1238 = vpow2.f32 %v603_v34 }
 0x423   : > { %v1237_v30 = vpop.eup %1236 }
 0x424   : > { %v491_v31 = vsel %vm209_vm1, %v1237_v30, 0.0  ;;  %v716_v35 = vpop.xlane.xlu0 %715 }
 0x425   : > { %492 = vadd.xlane.f32.xlu1 %v491_v31  ;;  %v717_v36 = vsub.f32 %v709_v8, %v716_v35 }
 0x427   : > { %v718_v38 = vmul.f32 1.442695, %v717_v36 }
 0x429   : > { %1240 = vpow2.f32 %v718_v38 }
 0x42b   : > { %v1239_v41 = vpop.eup %1238 }
 0x42c   : > { %v829_v37 = vpop.xlane.xlu1 %828 }
 0x42d   : > { %v830_v39 = vsub.f32 %v822_v16, %v829_v37 }
 0x42f   : > { %v831_v40 = vmul.f32 1.442695, %v830_v39 }
 0x431   : > { %1242 = vpow2.f32 %v831_v40 }
 0x433   : > { %383 = vrot.lane.b32.xlu0 %v1336_v5, %s1276_s24  ;;  %v605_v5 = vsel %vm209_vm1, %v1239_v41, 0.0  ;;  %v1241_v42 = vpop.eup %1240 }
 0x436   : > { %497 = vrot.lane.b32.xlu1 %v1353_v21, %s1277_s25  ;;  %v720_v21 = vsel %vm209_vm1, %v1241_v42, 0.0 }
 0x43b   : > { %v1243_v44 = vpop.eup %1242 }
 0x43c   : > { %v833_v45 = vsel %vm209_vm1, %v1243_v44, 0.0 }
 0x452   : > { %606 = vadd.xlane.f32.xlu0 %v605_v5 }
 0x45a   : > { %721 = vadd.xlane.f32.xlu1 %v720_v21 }
 0x45e   : > { %834 = vadd.xlane.f32.xlu1 %v833_v45 }
 0x468   : > { %611 = vrot.lane.b32.xlu0 %v1344_v13, %s1278_s26 }
 0x46f   : > { %842 = vrot.lane.b32.xlu1 %v1226_v46, %s1268_s27 }
 0x4aa   : > { %v379_v47 = vpop.xlane.xlu0 %378 }
 0x4ab   : > { %1244 = vrcp.f32 %v379_v47 }
 0x4ae   : > { %v384_v48 = vpop.permute.xlu0 %383 }
 0x4af   : > { %v389_v49 = vsel %vm273_vm2, %v384_v48, 0  ;;  %v1081_v48 = vld [vmem:[%s1479_s3] ss:$0 sm:$0xff] }
 0x4b0   : > { %1132 = vmatpush3.bf16.msra.mxu0 %v389_v49 }
 0x4b1   : > { %1143 = vmatprep.subr.bf16.mxu0 %v1262_v0 }
 0x4b2   : > { %v493_v50 = vpop.xlane.xlu1 %492 }
 0x4b3   : > { %1246 = vrcp.f32 %v493_v50 }
 0x4b5   : > { %v1245_v51 = vpop.eup %1244 }
 0x4b6   : > { %v381_v52 = vmul.f32 %v1245_v51, %v1235_v28  ;;  %v498_v53 = vpop.permute.xlu1 %497 }
 0x4b7   : > { %v503_v55 = vsel %vm273_vm2, %v498_v53, 0 }
 0x4b8   : > { %v382_v54 = vpack.c.bf16 %v381_v52, %v381_v52 }
 0x4ba   : > { %1134 = vmatmul.mubr.msk.bf16.vlgmr.msra.gmra.mrb[4].mxu0 %vm209_vm1, %v382_v54 }
 0x4bb   : > { %1144 = vmatpush3.bf16.msra.mxu0 %v503_v55  ;;  %1145 = vmatprep.mubr.msk.bf16.mxu0 %vm1263_vm0, %v1262_v0 }
 0x4bc   : > { %1155 = vmatprep.subr.bf16.mxu0 %v1262_v0 }
 0x4bd   : > { %v1247_v13 = vpop.eup %1246 }
 0x4be   : > { %v495_v56 = vmul.f32 %v1247_v13, %v1237_v30  ;;  %v1229_v30 = vld [vmem:[%s1478_s2 + $0x10] sm:$0xff]  }
 0x4bf   : > { %1190 = vmatpush3.bf16.msra.mxu1 %v1229_v30 }
 0x4c0   : > { %v496_v57 = vpack.c.bf16 %v495_v56, %v495_v56 }
 0x4c2   : > { %1146 = vmatmul.mubr.msk.bf16.vlgmr.msra.gmra.mrb[8].mxu0 %vm209_vm1, %v496_v57 }
 0x4c3   : > { %1157 = vmatprep.mubr.msk.bf16.mxu0 %vm1263_vm0, %v1262_v0 }
 0x4df   : > { %v607_v58 = vpop.xlane.xlu0 %606 }
 0x4e0   : > { %1248 = vrcp.f32 %v607_v58 }
 0x4e3   : > { %v612_v59 = vpop.permute.xlu0 %611 }
 0x4e4   : > { %v617_v60 = vsel %vm273_vm2, %v612_v59, 0 }
 0x4e5   : > { %1156 = vmatpush3.bf16.msra.mxu0 %v617_v60 }
 0x4e6   : > { %1167 = vmatprep.subr.bf16.mxu0 %v1262_v0 }
 0x4e7   : > { %v722_v61 = vpop.xlane.xlu1 %721 }
 0x4e8   : > { %1250 = vrcp.f32 %v722_v61 }
 0x4ea   : > { %v1249_v62 = vpop.eup %1248 }
 0x4eb   : > { %v609_v1 = vmul.f32 %v1249_v62, %v1239_v41  ;;  %v835_v2 = vpop.xlane.xlu1 %834 }
 0x4ec   : > { %1252 = vrcp.f32 %v835_v2 }
 0x4ed   : > { %v610_v3 = vpack.c.bf16 %v609_v1, %v609_v1 }
 0x4ef   : > { %1158 = vmatmul.mubr.msk.bf16.vlgmr.msra.gmra.mrb[12].mxu0 %vm209_vm1, %v610_v3  ;;  %v843_v7 = vpop.permute.xlu1 %842 }
 0x4f0   : > { %1168 = vmatpush3.bf16.msra.mxu0 %v730_v4  ;;  %1169 = vmatprep.mubr.msk.bf16.mxu0 %vm1263_vm0, %v1262_v0  ;;  %v848_v9 = vsel %vm273_vm2, %v843_v7, 0 }
 0x4f1   : > { %1179 = vmatprep.subr.bf16.mxu0 %v1262_v0 }
 0x4f2   : > { %v1251_v6 = vpop.eup %1250 }
 0x4f3   : > { %v724_v8 = vmul.f32 %v1251_v6, %v1241_v42 }
 0x4f5   : > { %v725_v10 = vpack.c.bf16 %v724_v8, %v724_v8 }
 0x4f6   : > { %v1253_v11 = vpop.eup %1252 }
 0x4f7   : > { %1170 = vmatmul.mubr.msk.bf16.vlgmr.msra.gmra.mrb[16].mxu0 %vm209_vm1, %v725_v10  ;;  %v837_v12 = vmul.f32 %v1253_v11, %v1243_v44 }
 0x4f8   : > { %1180 = vmatpush3.bf16.msra.mxu0 %v848_v9  ;;  %1181 = vmatprep.mubr.msk.bf16.mxu0 %vm1263_vm0, %v1262_v0 }
 0x4f9   : > { %v838_v14 = vpack.c.bf16 %v837_v12, %v837_v12 }
 0x4ff   : > { %1182 = vmatmul.mubr.msk.bf16.vlgmr.msra.gmra.mrb[20].mxu0 %vm209_vm1, %v838_v14 }
 0x58d   : > { %v425_v15 = vpop.f32.mrb[4].mxu0 }
 0x58e   : > { %891 = vrot.lane.b32.xlu0 %v425_v15, %s1278_s26  ;;  %v1135_v16 = vpop.f32.mrb[5].mxu0 }
 0x58f   : > { %v428_v17 = vpop.f32.mrb[6].mxu0 }
 0x590   : > { %v1136_v18 = vpop.f32.mrb[7].mxu0 }
 0x595   : > { %v539_v19 = vpop.f32.mrb[8].mxu0 }
 0x596   : > { %895 = vrot.lane.b32.xlu1 %v539_v19, %s1277_s25  ;;  %v1147_v20 = vpop.f32.mrb[9].mxu0 }
 0x597   : > { %v542_v22 = vpop.f32.mrb[10].mxu0 }
 0x598   : > { %v1148_v23 = vpop.f32.mrb[11].mxu0 }
 0x5c2   : > { %v653_v26 = vpop.f32.mrb[12].mxu0 }
 0x5c3   : > { %899 = vrot.lane.b32.xlu0 %v653_v26, %s1276_s24  ;;  %v1159_v27 = vpop.f32.mrb[13].mxu0 }
 0x5c4   : > { %v656_v28 = vpop.f32.mrb[14].mxu0 }
 0x5c5   : > { %v1160_v29 = vpop.f32.mrb[15].mxu0 }
 0x5ca   : > { %v766_v31 = vpop.f32.mrb[16].mxu0 }
 0x5cb   : > { %903 = vrot.lane.b32.xlu1 %v766_v31, %s1265_s22  ;;  %v1171_v32 = vpop.f32.mrb[17].mxu0 }
 0x5cc   : > { %v769_v33 = vpop.f32.mrb[18].mxu0 }
 0x5cd   : > { %v1172_v34 = vpop.f32.mrb[19].mxu0 }
 0x5d2   : > { %v884_v35 = vpop.f32.mrb[20].mxu0 }
 0x5d3   : > { %907 = vrot.lane.b32.xlu0 %v884_v35, %s1274_s7  ;;  %v1183_v36 = vpop.f32.mrb[21].mxu0 }
 0x5d4   : > { %v887_v37 = vpop.f32.mrb[22].mxu0 }
 0x5d5   : > { %v1184_v38 = vpop.f32.mrb[23].mxu0 }
 0x600   : > { %v892_v39 = vpop.permute.xlu0 %891 }
 0x601   : > { %v910_v41 = vsel %vm209_vm1, %v1389_v43, %v892_v39 }
 0x608   : > { %v896_v0 = vpop.permute.xlu1 %895 }
 0x609   : > { %v912_v42 = vsel %vm911_vm3, %v910_v41, %v896_v0 }
 0x635   : > { %v900_v40 = vpop.permute.xlu0 %899 }
 0x636   : > { %v914_v21 = vsel %vm913_vm4, %v912_v42, %v900_v40 }
 0x63d   : > { %v904_v5 = vpop.permute.xlu1 %903 }
 0x63e   : > { %v916_v44 = vsel %vm915_vm5, %v914_v21, %v904_v5 }
 0x645   : > { %v908_v45 = vpop.permute.xlu0 %907 }
 0x646   : > { %v918_v46 = vsel %vm917_vm6, %v916_v44, %v908_v45 }
 0x647   : > { %v919_v47 = vpack.c.bf16 %v918_v46, %v918_v46 }
 0x649   : > { %1192 = vmatmul.mubr.msk.bf16.vlgmr.msra.gmra.mrb[24].mxu1 %vm944_vm7, %v919_v47 }
 0x71c   : > { %v982_v43 = vpop.f32.mrb[24].mxu1 }
 0x71d   : > { %v995_v49 = vadd.f32 %v1081_v48, %v982_v43  ;;  %v1193_v50 = vpop.f32.mrb[25].mxu1 }
 0x71e   : > { %v985_v51 = vpop.f32.mrb[26].mxu1 }
 0x71f   : > { %996 = vst.msk [vmem:[%s195_s9] sm:$0xff] %vm944_vm7, %v995_v49  ;;  %v1194_v52 = vpop.f32.mrb[27].mxu1 }
 0x720 PF: > { %s14_s15 = sadd.s32 1, %s1260_s15  }
 0x721   : > { %p11_p4 = scmp.ge.s32.totalorder %s14_s15, 4  }
 0x723   :  { %13 = sbr.rel (!%p11_p4) target bundleno = 1 (0x1), region = 66 }

// kernel: swin_forward.22
= control target key start
LH: loop header
LB: loop body
LE: loop exit
PB: predicated region body
PF: predicated region fallthrough
CT: control target
= control target key end

     0   :  { %s4008_s18 = smov 0   ;;  %s4846_s0 = inlined_call_operand.vmem [shape: bf16[16,8,72], index: 0, kind: input, shape index: {}]   ;;  %s4847_s1 = inlined_call_operand.vmem [shape: f32[3,8,8], index: 1, kind: input, shape index: {}]   ;;  %s4848_s2 = inlined_call_operand.vmem [shape: f32[8,8,8], index: 2, kind: input, shape index: {}]   ;;  %s4849_s3 = inlined_call_operand.vmem [shape: bf16[24,24], index: 3, kind: input, shape index: {}]   ;;  %s4850_s4 = inlined_call_operand.vmem [shape: f32[1,24], index: 4, kind: input, shape index: {}]   ;;  %s4851_s5 = inlined_call_operand.vmem [shape: f32[16,8,24], index: 5, kind: output, shape index: {}]  }
   0x1 LB: > { %s3267_s19 = sadd.s32 4294967295, %s3964_s18   ;;  %p3271_p0 = scmp.ge.s32.totalorder %s3964_s18, 1  ;;  %s3964_s18 = sphi %s4008_s18, %s15_s18  }
   0x2   : > { %p188_p1 = scmp.lt.s32.totalorder %s3964_s18, 3 }
   0x4   : > { %p189_p2 = pnand %p3271_p0, %p188_p1 }
   0x5   : > { %s3272_s20 = sshll.u32 (!%p189_p2), %s3267_s19, 3  ;;  %v3966_v0 = vmov (!%p189_p2), 0.0   ;;  %vm3967_vm0 = vmmov (!%p189_p2), 0   ;;  %s3968_s25 = smov (!%p189_p2), 104   ;;  %vm253_vm1 = vcmask (!%p189_p2), 64512   ;;  %v229_v33 = vld [vmem:[%s4847_s1] sm:$0xff] (!%p189_p2) }
   0x6   : > { %192 = sbr.rel (%p189_p2) target bundleno = 2558 (0x9fe), region = 40  ;;  %p217_p3 = scmp.lt.s32.totalorder (!%p189_p2), %s3272_s20, 15  ;;  %3467 = vmatprep.subr.bf16.mxu1 (!%p189_p2), %v3966_v0  ;;  %3479 = vmatprep.subr.bf16.mxu0 (!%p189_p2), %v3966_v0  ;;  %v4108_v36 = vld [vmem:[%s4848_s2] sm:$0xff] (!%p189_p2)  ;;  %v4113_v37 = vld [vmem:[%s4848_s2 + $0x10] sm:$0xff] (!%p189_p2)  ;;  %v4128_v52 = vld [vmem:[%s4848_s2 + $0x8] sm:$0xff] (!%p189_p2)  ;;  %vm766_vm2 = vcmask (!%p189_p2), 1043456  }
   0x7   : > { %3469 = vmatprep.mubr.msk.bf16.mxu1 (!%p189_p2), %vm3967_vm0, %v3966_v0  ;;  %3481 = vmatprep.mubr.msk.bf16.mxu0 (!%p189_p2), %vm3967_vm0, %v3966_v0  ;;  %v4133_v53 = vld [vmem:[%s4848_s2 + $0x20] sm:$0xff] (!%p189_p2)  ;;  %s3969_s11 = smov (!%p189_p2), 80   ;;  %s3970_s22 = smov (!%p189_p2), 96   ;;  %vm3058_vm3 = vcmask (!%p189_p2), 130048   ;;  %vm3107_vm4 = vcmask (!%p189_p2), 195584  }
   0x8   : > { %s3971_s23 = smov (!%p189_p2), 120   ;;  %s3973_s28 = smov (!%p189_p2), 88  }
   0x9   : > { %s3974_s29 = smov (!%p189_p2), 112   ;;  %s3976_s26 = smov (!%p189_p2), 8  }
   0xa   : > { %s3977_s30 = smov (!%p189_p2), 16  }
   0xd   : > { %s4853_s20 = smov (!%p217_p3, %s3272_s20), 15 }
   0xe   : > { %s3273_s21 = sshll.u32 %s4853_s20, 2  ;;  %s3275_s6 = sshll.u32 %s4853_s20, 3 }
   0xf   : > { %s4028_s24 = scalar_lea.vmem %s4846_s0, %s3273_s21 }
  0x10   : > { %v240_v1 = vld [vmem:[%s4028_s24] sm:$0xf]  ;;  %v242_v2 = vld [vmem:[%s4028_s24 + $0x8] sm:$0xf]  ;;  %v241_v3 = vld [vmem:[%s4028_s24 + $0x4] sm:$0xf] }
  0x11   : > { %v4033_v4 = vcombine.low %v240_v1, %v240_v1  ;;  %v4035_v5 = vcombine.low %v242_v2, %v242_v2  ;;  %v243_v6 = vld [vmem:[%s4028_s24 + $0xc] sm:$0xf]  ;;  %v244_v7 = vld [vmem:[%s4028_s24 + $0x10] sm:$0xf]  ;;  %v245_v8 = vld [vmem:[%s4028_s24 + $0x14] sm:$0xf]  ;;  %v4042_v9 = vcombine.low %v241_v3, %v241_v3 }
  0x12   : > { %v4044_v10 = vcombine.low %v243_v6, %v243_v6  ;;  %v247_v11 = vld [vmem:[%s4028_s24 + $0x1c] sm:$0xf]  ;;  %v4048_v12 = vcombine.low %v244_v7, %v244_v7  ;;  %v4051_v13 = vcombine.low %v245_v8, %v245_v8  ;;  %v246_v14 = vld [vmem:[%s4028_s24 + $0x18] sm:$0xf] }
  0x13   : > { %251 = vrot.lane.b32.xlu0 %v4033_v4, %s3968_s25  ;;  %354 = vrot.lane.b32.xlu1 %v4035_v5, %s3968_s25  ;;  %v4056_v15 = vcombine.low %v247_v11, %v247_v11  ;;  %v4058_v16 = vcombine.low %v246_v14, %v246_v14 }
  0x17   : > { %303 = vrot.lane.b32.xlu0 %v4042_v9, %s3968_s25  ;;  %405 = vrot.lane.b32.xlu1 %v4044_v10, %s3968_s25 }
  0x1b   : > { %456 = vrot.lane.b32.xlu0 %v4048_v12, %s3968_s25  ;;  %507 = vrot.lane.b32.xlu1 %v4051_v13, %s3968_s25 }
  0x1f   : > { %609 = vrot.lane.b32.xlu1 %v4056_v15, %s3968_s25  ;;  %558 = vrot.lane.b32.xlu0 %v4058_v16, %s3968_s25  ;;  %s3972_s25 = smov 72  }
  0x85   : > { %v252_v17 = vpop.permute.xlu0 %251  ;;  %v355_v18 = vpop.permute.xlu1 %354 }
  0x86   : > { %v258_v19 = vsel %vm253_vm1, %v252_v17, 0  ;;  %v360_v20 = vsel %vm253_vm1, %v355_v18, 0 }
  0x87   : > { %3468 = vmatpush3.bf16.xpose.msra.mxu1 %v258_v19  ;;  %3480 = vmatpush3.bf16.xpose.msra.mxu0 %v360_v20 }
  0x88   : > { %3473 = vmatprep.subr.bf16.mxu1 %v3966_v0  ;;  %3491 = vmatprep.subr.bf16.mxu0 %v3966_v0 }
  0x89   : > { %v304_v21 = vpop.permute.xlu0 %303  ;;  %v406_v25 = vpop.permute.xlu1 %405 }
  0x8a   : > { %v309_v22 = vsel %vm253_vm1, %v304_v21, 0  ;;  %v411_v27 = vsel %vm253_vm1, %v406_v25, 0 }
  0x8d   : > { %v457_v23 = vpop.permute.xlu0 %456  ;;  %v508_v29 = vpop.permute.xlu1 %507 }
  0x8e   : > { %3470 = vmatmul.mubr.msk.bf16.vlgmr.msra.gmra.mrb[0].mxu1 %vm253_vm1, %v240_v1  ;;  %3482 = vmatmul.mubr.msk.bf16.vlgmr.msra.gmra.mrb[0].mxu0 %vm253_vm1, %v242_v2  ;;  %v462_v24 = vsel %vm253_vm1, %v457_v23, 0  ;;  %v513_v30 = vsel %vm253_vm1, %v508_v29, 0 }
  0x8f   : > { %3474 = vmatpush3.bf16.xpose.msra.mxu1 %v309_v22  ;;  %3492 = vmatpush3.bf16.xpose.msra.mxu0 %v462_v24 }
  0x90   : > { %3475 = vmatprep.mubr.msk.bf16.mxu1 %vm3967_vm0, %v3966_v0  ;;  %3493 = vmatprep.mubr.msk.bf16.mxu0 %vm3967_vm0, %v3966_v0 }
  0x91   : > { %3485 = vmatprep.subr.bf16.mxu1 %v3966_v0  ;;  %3503 = vmatprep.subr.bf16.mxu0 %v3966_v0  ;;  %v559_v26 = vpop.permute.xlu0 %558  ;;  %v610_v31 = vpop.permute.xlu1 %609 }
  0x92   : > { %v564_v28 = vsel %vm253_vm1, %v559_v26, 0  ;;  %v615_v32 = vsel %vm253_vm1, %v610_v31, 0 }
  0x96   : > { %3476 = vmatmul.mubr.msk.bf16.vlgmr.msra.gmra.mrb[4].mxu1 %vm253_vm1, %v241_v3  ;;  %3494 = vmatmul.mubr.msk.bf16.vlgmr.msra.gmra.mrb[4].mxu0 %vm253_vm1, %v244_v7 }
  0x97   : > { %3486 = vmatpush3.bf16.xpose.msra.mxu1 %v411_v27  ;;  %3487 = vmatprep.mubr.msk.bf16.mxu1 %vm3967_vm0, %v3966_v0 }
  0x98   : > { %3497 = vmatprep.subr.bf16.mxu1 %v3966_v0  ;;  %3504 = vmatpush3.bf16.xpose.msra.mxu0 %v564_v28 }
  0x99   : > { %3505 = vmatprep.mubr.msk.bf16.mxu0 %vm3967_vm0, %v3966_v0  ;;  %3515 = vmatprep.subr.bf16.mxu0 %v3966_v0 }
  0x9e   : > { %3488 = vmatmul.mubr.msk.bf16.vlgmr.msra.gmra.mrb[8].mxu1 %vm253_vm1, %v243_v6 }
  0x9f   : > { %3498 = vmatpush3.bf16.xpose.msra.mxu1 %v513_v30  ;;  %3499 = vmatprep.mubr.msk.bf16.mxu1 %vm3967_vm0, %v3966_v0  ;;  %v4152_v30 = vld [vmem:[%s4848_s2 + $0x18] sm:$0xff] }
  0xa0   : > { %3509 = vmatprep.subr.bf16.mxu1 %v3966_v0  ;;  %3506 = vmatmul.mubr.msk.bf16.vlgmr.msra.gmra.mrb[8].mxu0 %vm253_vm1, %v246_v14 }
  0xa1   : > { %3517 = vmatprep.mubr.msk.bf16.mxu0 %vm3967_vm0, %v3966_v0 }
  0xa6   : > { %3500 = vmatmul.mubr.msk.bf16.vlgmr.msra.gmra.mrb[12].mxu1 %vm253_vm1, %v245_v8 }
  0xa7   : > { %3510 = vmatpush3.bf16.xpose.msra.mxu1 %v615_v32  ;;  %3511 = vmatprep.mubr.msk.bf16.mxu1 %vm3967_vm0, %v3966_v0  ;;  %v4157_v32 = vld [vmem:[%s4848_s2 + $0x28] sm:$0xff] }
  0xa8   : > { %3521 = vmatprep.subr.bf16.mxu1 %v3966_v0 }
  0xae   : > { %3512 = vmatmul.mubr.msk.bf16.vlgmr.msra.gmra.mrb[16].mxu1 %vm253_vm1, %v247_v11 }
  0xaf   : > { %3523 = vmatprep.mubr.msk.bf16.mxu1 %vm3967_vm0, %v3966_v0 }
 0x161   : > { %v294_v34 = vpop.f32.mrb[0].mxu1  ;;  %v396_v35 = vpop.f32.mrb[0].mxu0 }
 0x162   : > { %v295_v38 = vadd.f32 %v294_v34, %v229_v33  ;;  %v3471_v39 = vpop.f32.mrb[1].mxu1  ;;  %v397_v40 = vadd.f32 %v396_v35, %v229_v33  ;;  %v3483_v41 = vpop.f32.mrb[1].mxu0  ;;  %v4169_v35 = vld [vmem:[%s4848_s2 + $0x30] sm:$0xff] }
 0x163   : > { %v297_v42 = vpop.f32.mrb[2].mxu1  ;;  %v399_v43 = vpop.f32.mrb[2].mxu0 }
 0x164   : > { %v3472_v44 = vpop.f32.mrb[3].mxu1  ;;  %v3484_v45 = vpop.f32.mrb[3].mxu0  ;;  %v4116_v46 = vadd.f32 %v295_v38, %v4108_v36  ;;  %v4119_v47 = vadd.f32 %v397_v40, %v4113_v37 }
 0x166   : > { %v665_v48 = vsel %vm253_vm1, %v4116_v46, -inf  ;;  %v671_v49 = vsel %vm253_vm1, %v4119_v47, -inf }
 0x167   : > { %666 = vmax.xlane.f32.xlu0 %v665_v48 }
 0x169   : > { %v345_v50 = vpop.f32.mrb[4].mxu1  ;;  %v498_v51 = vpop.f32.mrb[4].mxu0 }
 0x16a   : > { %v346_v54 = vadd.f32 %v345_v50, %v229_v33  ;;  %v499_v55 = vadd.f32 %v498_v51, %v229_v33  ;;  %v3477_v56 = vpop.f32.mrb[5].mxu1  ;;  %v3495_v57 = vpop.f32.mrb[5].mxu0 }
 0x16b   : > { %672 = vmax.xlane.f32.xlu0 %v671_v49  ;;  %v348_v58 = vpop.f32.mrb[6].mxu1  ;;  %v501_v59 = vpop.f32.mrb[6].mxu0 }
 0x16c   : > { %v4136_v60 = vadd.f32 %v346_v54, %v4128_v52  ;;  %v4139_v61 = vadd.f32 %v499_v55, %v4133_v53  ;;  %v3478_v62 = vpop.f32.mrb[7].mxu1  ;;  %v3496_v63 = vpop.f32.mrb[7].mxu0 }
 0x16e   : > { %v668_v1 = vsel %vm253_vm1, %v4136_v60, -inf  ;;  %v677_v2 = vsel %vm253_vm1, %v4139_v61, -inf }
 0x16f   : > { %669 = vmax.xlane.f32.xlu1 %v668_v1 }
 0x171   : > { %v447_v3 = vpop.f32.mrb[8].mxu1 }
 0x172   : > { %v3489_v6 = vpop.f32.mrb[9].mxu1  ;;  %v448_v29 = vadd.f32 %v447_v3, %v229_v33 }
 0x173   : > { %678 = vmax.xlane.f32.xlu1 %v677_v2  ;;  %v450_v7 = vpop.f32.mrb[10].mxu1  ;;  %v600_v8 = vpop.f32.mrb[8].mxu0 }
 0x174   : > { %v3490_v11 = vpop.f32.mrb[11].mxu1  ;;  %v601_v14 = vadd.f32 %v600_v8, %v229_v33  ;;  %v3507_v17 = vpop.f32.mrb[9].mxu0 }
 0x175   : > { %v603_v18 = vpop.f32.mrb[10].mxu0 }
 0x176   : > { %v3508_v19 = vpop.f32.mrb[11].mxu0  ;;  %v663_v40 = vadd.f32 %v601_v14, %v4169_v35 }
 0x178   : > { %v683_v42 = vsel %vm253_vm1, %v663_v40, -inf }
 0x179   : > { %v549_v20 = vpop.f32.mrb[12].mxu1 }
 0x17a   : > { %v3501_v21 = vpop.f32.mrb[13].mxu1  ;;  %v550_v31 = vadd.f32 %v549_v20, %v229_v33 }
 0x17b   : > { %v552_v22 = vpop.f32.mrb[14].mxu1 }
 0x17c   : > { %v3502_v23 = vpop.f32.mrb[15].mxu1  ;;  %v662_v34 = vadd.f32 %v550_v31, %v4157_v32 }
 0x17e   : > { %v680_v38 = vsel %vm253_vm1, %v662_v34, -inf }
 0x181   : > { %810 = vrot.lane.b32.xlu0 %v4042_v9, %s3969_s11  ;;  %v651_v24 = vpop.f32.mrb[16].mxu1  ;;  %v660_v9 = vadd.f32 %v448_v29, %v4152_v30  ;;  %v4251_v29 = vld [vmem:[%s4028_s24 + $0x1c] ss:$0 sps:$4 sm:$0xff]  }
 0x182   : > { %v652_v25 = vadd.f32 %v651_v24, %v229_v33  ;;  %v3513_v26 = vpop.f32.mrb[17].mxu1 }
 0x183   : > { %v654_v27 = vpop.f32.mrb[18].mxu1  ;;  %v674_v33 = vsel %vm253_vm1, %v660_v9, -inf }
 0x184   : > { %761 = vrot.lane.b32.xlu1 %v4033_v4, %s3969_s11  ;;  %v3514_v28 = vpop.f32.mrb[19].mxu1  ;;  %v4164_v4 = vld [vmem:[%s4848_s2 + $0x38] sm:$0xff]  ;;  %v4236_v27 = vld [vmem:[%s4028_s24 + $0xc] ss:$0 sps:$4 sm:$0xff]  }
 0x185   : > { %v4174_v39 = vadd.f32 %v652_v25, %v4164_v4  ;;  %v4227_v25 = vld [vmem:[%s4028_s24 + $0x4] ss:$0 sps:$4 sm:$0xff]  }
 0x187   : > { %v686_v41 = vsel %vm253_vm1, %v4174_v39, -inf }
 0x1a0   : > { %675 = vmax.xlane.f32.xlu0 %v674_v33 }
 0x1a4   : > { %681 = vmax.xlane.f32.xlu0 %v680_v38  ;;  %v4262_v38 = vld [vmem:[%s4028_s24] ss:$0 sps:$4 sm:$0xff]  }
 0x1a8   : > { %687 = vmax.xlane.f32.xlu0 %v686_v41  ;;  %684 = vmax.xlane.f32.xlu1 %v683_v42 }
 0x1b9   : > { %858 = vrot.lane.b32.xlu1 %v4035_v5, %s3969_s11 }
 0x1bd   : > { %906 = vrot.lane.b32.xlu1 %v4044_v10, %s3969_s11 }
 0x1be   : > { %954 = vrot.lane.b32.xlu0 %v4048_v12, %s3969_s11 }
 0x1c1   : > { %1002 = vrot.lane.b32.xlu1 %v4051_v13, %s3969_s11 }
 0x1f4   : > { %v667_v43 = vpop.xlane.xlu0 %666 }
 0x1f5   : > { %v689_v44 = vsub.f32 %v4116_v46, %v667_v43 }
 0x1f7   : > { %v697_v45 = vmul.f32 1.442695, %v689_v44  ;;  %v4278_v44 = vld [vmem:[%s4028_s24 + $0x10] ss:$0 sps:$4 sm:$0xff]  }
 0x1f8   : > { %v673_v48 = vpop.xlane.xlu0 %672 }
 0x1f9   : > { %3854 = vpow2.f32 %v697_v45  ;;  %v691_v49 = vsub.f32 %v4119_v47, %v673_v48 }
 0x1fb   : > { %v701_v50 = vmul.f32 1.442695, %v691_v49 }
 0x1fc   : > { %v670_v5 = vpop.xlane.xlu1 %669  ;;  %v811_v51 = vpop.permute.xlu0 %810 }
 0x1fd   : > { %3856 = vpow2.f32 %v701_v50  ;;  %v690_v10 = vsub.f32 %v4136_v60, %v670_v5  ;;  %v816_v12 = vsel %vm766_vm2, %v811_v51, 0 }
 0x1fe   : > { %3522 = vmatpush3.bf16.msra.mxu1 %v816_v12  ;;  %v4287_v12 = vld [vmem:[%s4028_s24 + $0x18] ss:$0 sps:$4 sm:$0xff]  }
 0x1ff   : > { %v699_v54 = vmul.f32 1.442695, %v690_v10  ;;  %3533 = vmatprep.subr.bf16.mxu1 %v3966_v0 }
 0x200   : > { %v679_v13 = vpop.xlane.xlu1 %678 }
 0x201   : > { %3858 = vpow2.f32 %v699_v54  ;;  %v693_v46 = vsub.f32 %v4139_v61, %v679_v13 }
 0x203   : > { %v4194_v55 = vpop.eup %3854  ;;  %v705_v47 = vmul.f32 1.442695, %v693_v46 }
 0x204   : > { %v713_v56 = vsel %vm253_vm1, %v4194_v55, 0.0  ;;  %v762_v57 = vpop.permute.xlu1 %761 }
 0x205   : > { %3860 = vpow2.f32 %v705_v47  ;;  %714 = vadd.xlane.f32.xlu1 %v713_v56  ;;  %v768_v58 = vsel %vm766_vm2, %v762_v57, 0 }
 0x206   : > { %3516 = vmatpush3.bf16.msra.mxu0 %v768_v58 }
 0x207   : > { %v4199_v59 = vpop.eup %3856  ;;  %3527 = vmatprep.subr.bf16.mxu0 %v3966_v0 }
 0x208   : > { %v719_v60 = vsel %vm253_vm1, %v4199_v59, 0.0 }
 0x209   : > { %720 = vadd.xlane.f32.xlu1 %v719_v60 }
 0x20b   : > { %v4204_v61 = vpop.eup %3858 }
 0x20c   : > { %v716_v62 = vsel %vm253_vm1, %v4204_v61, 0.0 }
 0x20d   : > { %717 = vadd.xlane.f32.xlu0 %v716_v62 }
 0x20f   : > { %v4208_v63 = vpop.eup %3860 }
 0x210   : > { %v725_v1 = vsel %vm253_vm1, %v4208_v63, 0.0 }
 0x211   : > { %726 = vadd.xlane.f32.xlu1 %v725_v1 }
 0x22d   : > { %v676_v2 = vpop.xlane.xlu0 %675 }
 0x22e   : > { %v692_v3 = vsub.f32 %v660_v9, %v676_v2 }
 0x230   : > { %v703_v6 = vmul.f32 1.442695, %v692_v3 }
 0x231   : > { %v682_v7 = vpop.xlane.xlu0 %681 }
 0x232   : > { %3862 = vpow2.f32 %v703_v6  ;;  %v694_v8 = vsub.f32 %v662_v34, %v682_v7 }
 0x234   : > { %v707_v11 = vmul.f32 1.442695, %v694_v8 }
 0x235   : > { %v685_v14 = vpop.xlane.xlu1 %684  ;;  %v688_v26 = vpop.xlane.xlu0 %687 }
 0x236   : > { %3864 = vpow2.f32 %v707_v11  ;;  %v695_v17 = vsub.f32 %v663_v40, %v685_v14  ;;  %v696_v28 = vsub.f32 %v4174_v39, %v688_v26  ;;  %v4271_v40 = vld [vmem:[%s4028_s24 + $0x8] ss:$0 sps:$4 sm:$0xff]  }
 0x238   : > { %v709_v18 = vmul.f32 1.442695, %v695_v17 }
 0x239   : > { %v859_v34 = vpop.permute.xlu1 %858  ;;  %v955_v42 = vpop.permute.xlu0 %954 }
 0x23a   : > { %3866 = vpow2.f32 %v709_v18  ;;  %v864_v5 = vsel %vm766_vm2, %v859_v34, 0  ;;  %v960_v58 = vsel %vm766_vm2, %v955_v42, 0 }
 0x23c   : > { %v4212_v19 = vpop.eup %3862 }
 0x23d   : > { %v722_v20 = vsel %vm253_vm1, %v4212_v19, 0.0  ;;  %v907_v33 = vpop.permute.xlu1 %906 }
 0x23e   : > { %723 = vadd.xlane.f32.xlu0 %v722_v20  ;;  %v912_v57 = vsel %vm766_vm2, %v907_v33, 0 }
 0x240   : > { %v4216_v21 = vpop.eup %3864 }
 0x241   : > { %v728_v22 = vsel %vm253_vm1, %v4216_v21, 0.0  ;;  %v4264_v39 = vpop.permute.xlu1 %1002 }
 0x242   : > { %729 = vadd.xlane.f32.xlu0 %v728_v22  ;;  %v1008_v11 = vsel %vm766_vm2, %v4264_v39, 0 }
 0x244   : > { %v4220_v23 = vpop.eup %3866 }
 0x245   : > { %v731_v24 = vsel %vm253_vm1, %v4220_v23, 0.0 }
 0x246   : > { %732 = vadd.xlane.f32.xlu1 %v731_v24 }
 0x257   : > { %1098 = vrot.lane.b32.xlu1 %v4056_v15, %s3969_s11  ;;  %v711_v15 = vmul.f32 1.442695, %v696_v28 }
 0x258   : > { %1050 = vrot.lane.b32.xlu0 %v4058_v16, %s3969_s11  ;;  %v4244_v16 = vld [vmem:[%s4028_s24 + $0x14] ss:$0 sps:$4 sm:$0xff]   ;;  %s226_s11 = scalar_lea.vmem %s4851_s5, %s3275_s6 }
 0x259   : > { %3868 = vpow2.f32 %v711_v15 }
 0x25b   : > { %1212 = vrot.lane.b32.xlu1 %v4227_v25, %s3970_s22 }
 0x25f   : > { %1210 = vrot.lane.b32.xlu1 %v4227_v25, %s3971_s23 }
 0x263   : > { %1318 = vrot.lane.b32.xlu1 %v4236_v27, %s3970_s22  ;;  %v4253_v31 = vpop.eup %3868 }
 0x264   : > { %v734_v9 = vsel %vm253_vm1, %v4253_v31, 0.0 }
 0x267   : > { %1316 = vrot.lane.b32.xlu1 %v4236_v27, %s3971_s23 }
 0x26b   : > { %1424 = vrot.lane.b32.xlu1 %v4244_v16, %s3970_s22 }
 0x26f   : > { %1422 = vrot.lane.b32.xlu1 %v4244_v16, %s3971_s23 }
 0x273   : > { %1530 = vrot.lane.b32.xlu1 %v4251_v29, %s3970_s22 }
 0x277   : > { %735 = vadd.xlane.f32.xlu0 %v734_v9  ;;  %1528 = vrot.lane.b32.xlu1 %v4251_v29, %s3971_s23 }
 0x27b   : > { %1682 = vrot.lane.b32.xlu1 %v4262_v38, %s3972_s25 }
 0x27f   : > { %1778 = vrot.lane.b32.xlu1 %v4271_v40, %s3972_s25 }
 0x283   : > { %1826 = vrot.lane.b32.xlu1 %v4236_v27, %s3972_s25 }
 0x28d   : > { %1159 = vrot.lane.b32.xlu0 %v4262_v38, %s3970_s22 }
 0x291   : > { %1157 = vrot.lane.b32.xlu0 %v4262_v38, %s3971_s23 }
 0x292   : > { %v715_v41 = vpop.xlane.xlu1 %714 }
 0x293   : > { %3870 = vrcp.f32 %v715_v41 }
 0x295   : > { %1265 = vrot.lane.b32.xlu0 %v4271_v40, %s3970_s22 }
 0x296   : > { %v721_v43 = vpop.xlane.xlu1 %720 }
 0x297   : > { %3872 = vrcp.f32 %v721_v43 }
 0x299   : > { %1263 = vrot.lane.b32.xlu0 %v4271_v40, %s3971_s23 }
 0x29a   : > { %v718_v45 = vpop.xlane.xlu0 %717 }
 0x29b   : > { %3874 = vrcp.f32 %v718_v45 }
 0x29d   : > { %v3871_v48 = vpop.eup %3870  ;;  %1371 = vrot.lane.b32.xlu0 %v4278_v44, %s3970_s22 }
 0x29e   : > { %v745_v49 = vmul.f32 %v3871_v48, %v4194_v55  ;;  %v727_v50 = vpop.xlane.xlu1 %726 }
 0x29f   : > { %3876 = vrcp.f32 %v727_v50 }
 0x2a0   : > { %v753_v51 = vpack.c.bf16 %v745_v49, %v745_v49 }
 0x2a1   : > { %v3873_v10 = vpop.eup %3872  ;;  %1369 = vrot.lane.b32.xlu0 %v4278_v44, %s3971_s23 }
 0x2a2   : > { %3518 = vmatmul.mubr.msk.bf16.vlgmr.msra.gmra.mrb[12].mxu0 %vm253_vm1, %v753_v51  ;;  %v747_v54 = vmul.f32 %v3873_v10, %v4199_v59 }
 0x2a3   : > { %3528 = vmatpush3.bf16.msra.mxu0 %v864_v5  ;;  %3529 = vmatprep.mubr.msk.bf16.mxu0 %vm3967_vm0, %v3966_v0 }
 0x2a4   : > { %3539 = vmatprep.subr.bf16.mxu0 %v3966_v0  ;;  %v755_v55 = vpack.c.bf16 %v747_v54, %v747_v54 }
 0x2a5   : > { %v3875_v13 = vpop.eup %3874  ;;  %1477 = vrot.lane.b32.xlu0 %v4287_v12, %s3970_s22 }
 0x2a6   : > { %v746_v46 = vmul.f32 %v3875_v13, %v4204_v61 }
 0x2a8   : > { %v754_v47 = vpack.c.bf16 %v746_v46, %v746_v46 }
 0x2a9   : > { %v3877_v56 = vpop.eup %3876  ;;  %1475 = vrot.lane.b32.xlu0 %v4287_v12, %s3971_s23 }
 0x2aa   : > { %3530 = vmatmul.mubr.msk.bf16.vlgmr.msra.gmra.mrb[16].mxu0 %vm253_vm1, %v755_v55  ;;  %3524 = vmatmul.mubr.msk.bf16.vlgmr.msra.gmra.mrb[20].mxu1 %vm253_vm1, %v754_v47  ;;  %v749_v59 = vmul.f32 %v3877_v56, %v4208_v63 }
 0x2ab   : > { %3534 = vmatpush3.bf16.msra.mxu1 %v912_v57  ;;  %3540 = vmatpush3.bf16.msra.mxu0 %v960_v58 }
 0x2ac   : > { %3541 = vmatprep.mubr.msk.bf16.mxu0 %vm3967_vm0, %v3966_v0  ;;  %3551 = vmatprep.subr.bf16.mxu0 %v3966_v0  ;;  %v757_v60 = vpack.c.bf16 %v749_v59, %v749_v59 }
 0x2ad   : > { %3535 = vmatprep.mubr.msk.bf16.mxu1 %vm3967_vm0, %v3966_v0  ;;  %3545 = vmatprep.subr.bf16.mxu1 %v3966_v0 }
 0x2ae   : > { %1730 = vrot.lane.b32.xlu0 %v4227_v25, %s3972_s25 }
 0x2b2   : > { %3542 = vmatmul.mubr.msk.bf16.vlgmr.msra.gmra.mrb[20].mxu0 %vm253_vm1, %v757_v60 }
 0x2b3   : > { %3553 = vmatprep.mubr.msk.bf16.mxu0 %vm3967_vm0, %v3966_v0 }
 0x2cb   : > { %v724_v61 = vpop.xlane.xlu0 %723 }
 0x2cc   : > { %3878 = vrcp.f32 %v724_v61 }
 0x2cf   : > { %v730_v62 = vpop.xlane.xlu0 %729 }
 0x2d0   : > { %3880 = vrcp.f32 %v730_v62 }
 0x2d3   : > { %v733_v63 = vpop.xlane.xlu1 %732  ;;  %v1051_v1 = vpop.permute.xlu0 %1050 }
 0x2d4   : > { %3882 = vrcp.f32 %v733_v63  ;;  %v1056_v2 = vsel %vm766_vm2, %v1051_v1, 0 }
 0x2d5   : > { %3552 = vmatpush3.bf16.msra.mxu0 %v1056_v2 }
 0x2d6   : > { %v3879_v3 = vpop.eup %3878  ;;  %3563 = vmatprep.subr.bf16.mxu0 %v3966_v0 }
 0x2d7   : > { %v748_v6 = vmul.f32 %v3879_v3, %v4212_v19  ;;  %v1099_v18 = vpop.permute.xlu1 %1098 }
 0x2d8   : > { %v1104_v24 = vsel %vm766_vm2, %v1099_v18, 0 }
 0x2d9   : > { %v756_v7 = vpack.c.bf16 %v748_v6, %v748_v6 }
 0x2da   : > { %v3881_v8 = vpop.eup %3880 }
 0x2db   : > { %3536 = vmatmul.mubr.msk.bf16.vlgmr.msra.gmra.mrb[24].mxu1 %vm253_vm1, %v756_v7  ;;  %v750_v14 = vmul.f32 %v3881_v8, %v4216_v21  ;;  %v1213_v21 = vpop.permute.xlu1 %1212 }
 0x2dc   : > { %3546 = vmatpush3.bf16.msra.mxu1 %v1008_v11  ;;  %3547 = vmatprep.mubr.msk.bf16.mxu1 %vm3967_vm0, %v3966_v0  ;;  %v1218_v43 = vsel %vm253_vm1, %v1213_v21, 0 }
 0x2dd   : > { %3557 = vmatprep.subr.bf16.mxu1 %v3966_v0  ;;  %v758_v19 = vpack.c.bf16 %v750_v14, %v750_v14 }
 0x2de   : > { %v3883_v17 = vpop.eup %3882 }
 0x2df   : > { %v751_v20 = vmul.f32 %v3883_v17, %v4220_v23  ;;  %v1211_v15 = vpop.permute.xlu1 %1210 }
 0x2e1   : > { %v759_v22 = vpack.c.bf16 %v751_v20, %v751_v20 }
 0x2e3   : > { %3548 = vmatmul.mubr.msk.bf16.vlgmr.msra.gmra.mrb[28].mxu1 %vm253_vm1, %v758_v19  ;;  %3554 = vmatmul.mubr.msk.bf16.vlgmr.msra.gmra.mrb[24].mxu0 %vm253_vm1, %v759_v22  ;;  %v1319_v33 = vpop.permute.xlu1 %1318 }
 0x2e4   : > { %3558 = vmatpush3.bf16.msra.mxu1 %v1104_v24  ;;  %3565 = vmatprep.mubr.msk.bf16.mxu0 %vm3967_vm0, %v3966_v0  ;;  %v1324_v5 = vsel %vm253_vm1, %v1319_v33, 0 }
 0x2e5   : > { %3559 = vmatprep.mubr.msk.bf16.mxu1 %vm3967_vm0, %v3966_v0  ;;  %3569 = vmatprep.subr.bf16.mxu1 %v3966_v0 }
 0x304   : > { %v736_v26 = vpop.xlane.xlu0 %735 }
 0x305   : > { %3884 = vrcp.f32 %v736_v26 }
 0x308   : > { %v1160_v23 = vpop.permute.xlu0 %1159 }
 0x309   : > { %v1165_v28 = vsel %vm253_vm1, %v1160_v23, 0 }
 0x30a   : > { %3564 = vmatpush3.bf16.xpose.msra.mxu0 %v1165_v28 }
 0x30b   : > { %3575 = vmatprep.subr.bf16.mxu0 %v3966_v0 }
 0x30c   : > { %v1158_v9 = vpop.permute.xlu0 %1157 }
 0x30f   : > { %v3885_v34 = vpop.eup %3884 }
 0x310   : > { %v752_v39 = vmul.f32 %v3885_v34, %v4253_v31  ;;  %v1266_v41 = vpop.permute.xlu0 %1265  ;;  %v1317_v31 = vpop.permute.xlu1 %1316 }
 0x311   : > { %v1271_v42 = vsel %vm253_vm1, %v1266_v41, 0  ;;  %3566 = vmatmul.mubr.msk.bf16.vlgmr.msra.gmra.mrb[28].mxu0 %vm253_vm1, %v1158_v9  ;;  %v230_v41 = vld [vmem:[%s4847_s1 + $0x8] sm:$0xff] }
 0x312   : > { %3576 = vmatpush3.bf16.xpose.msra.mxu0 %v1271_v42  ;;  %v760_v45 = vpack.c.bf16 %v752_v39, %v752_v39  ;;  %3577 = vmatprep.mubr.msk.bf16.mxu0 %vm3967_vm0, %v3966_v0 }
 0x313   : > { %3587 = vmatprep.subr.bf16.mxu0 %v3966_v0 }
 0x314   : > { %3560 = vmatmul.mubr.msk.bf16.vlgmr.msra.gmra.mrb[32].mxu1 %vm253_vm1, %v760_v45  ;;  %v1264_v48 = vpop.permute.xlu0 %1263  ;;  %v1425_v51 = vpop.permute.xlu1 %1424 }
 0x315   : > { %3570 = vmatpush3.bf16.xpose.msra.mxu1 %v1218_v43  ;;  %3571 = vmatprep.mubr.msk.bf16.mxu1 %vm3967_vm0, %v3966_v0  ;;  %v1430_v55 = vsel %vm253_vm1, %v1425_v51, 0 }
 0x316   : > { %3581 = vmatprep.subr.bf16.mxu1 %v3966_v0 }
 0x318   : > { %v1372_v49 = vpop.permute.xlu0 %1371  ;;  %v1423_v46 = vpop.permute.xlu1 %1422 }
 0x319   : > { %v1377_v50 = vsel %vm253_vm1, %v1372_v49, 0  ;;  %3578 = vmatmul.mubr.msk.bf16.vlgmr.msra.gmra.mrb[32].mxu0 %vm253_vm1, %v1264_v48 }
 0x31a   : > { %3588 = vmatpush3.bf16.xpose.msra.mxu0 %v1377_v50  ;;  %3589 = vmatprep.mubr.msk.bf16.mxu0 %vm3967_vm0, %v3966_v0 }
 0x31b   : > { %3599 = vmatprep.subr.bf16.mxu0 %v3966_v0 }
 0x31c   : > { %3572 = vmatmul.mubr.msk.bf16.vlgmr.msra.gmra.mrb[36].mxu1 %vm253_vm1, %v1211_v15  ;;  %v1370_v10 = vpop.permute.xlu0 %1369  ;;  %v1531_v56 = vpop.permute.xlu1 %1530 }
 0x31d   : > { %3582 = vmatpush3.bf16.xpose.msra.mxu1 %v1324_v5  ;;  %3583 = vmatprep.mubr.msk.bf16.mxu1 %vm3967_vm0, %v3966_v0  ;;  %v1536_v57 = vsel %vm253_vm1, %v1531_v56, 0 }
 0x31e   : > { %3593 = vmatprep.subr.bf16.mxu1 %v3966_v0 }
 0x320   : > { %v1478_v54 = vpop.permute.xlu0 %1477  ;;  %v1529_v58 = vpop.permute.xlu1 %1528 }
 0x321   : > { %v1483_v13 = vsel %vm253_vm1, %v1478_v54, 0  ;;  %3590 = vmatmul.mubr.msk.bf16.vlgmr.msra.gmra.mrb[36].mxu0 %vm253_vm1, %v1370_v10 }
 0x322   : > { %3600 = vmatpush3.bf16.xpose.msra.mxu0 %v1483_v13  ;;  %3601 = vmatprep.mubr.msk.bf16.mxu0 %vm3967_vm0, %v3966_v0 }
 0x323   : > { %3611 = vmatprep.subr.bf16.mxu0 %v3966_v0 }
 0x324   : > { %3584 = vmatmul.mubr.msk.bf16.vlgmr.msra.gmra.mrb[40].mxu1 %vm253_vm1, %v1317_v31  ;;  %v1476_v47 = vpop.permute.xlu0 %1475  ;;  %v1683_v14 = vpop.permute.xlu1 %1682 }
 0x325   : > { %3594 = vmatpush3.bf16.xpose.msra.mxu1 %v1430_v55  ;;  %3595 = vmatprep.mubr.msk.bf16.mxu1 %vm3967_vm0, %v3966_v0  ;;  %v1688_v18 = vsel %vm766_vm2, %v1683_v14, 0 }
 0x326   : > { %3605 = vmatprep.subr.bf16.mxu1 %v3966_v0 }
 0x328   : > { %v1731_v17 = vpop.permute.xlu0 %1730 }
 0x329   : > { %3602 = vmatmul.mubr.msk.bf16.vlgmr.msra.gmra.mrb[40].mxu0 %vm253_vm1, %v1476_v47  ;;  %v1736_v20 = vsel %vm766_vm2, %v1731_v17, 0 }
 0x32a   : > { %3613 = vmatprep.mubr.msk.bf16.mxu0 %vm3967_vm0, %v3966_v0  ;;  %3612 = vmatpush3.bf16.msra.mxu0 %v1688_v18 }
 0x32b   : > { %3623 = vmatprep.subr.bf16.mxu0 %v3966_v0 }
 0x32c   : > { %3596 = vmatmul.mubr.msk.bf16.vlgmr.msra.gmra.mrb[44].mxu1 %vm253_vm1, %v1423_v46 }
 0x32d   : > { %3606 = vmatpush3.bf16.xpose.msra.mxu1 %v1536_v57  ;;  %3607 = vmatprep.mubr.msk.bf16.mxu1 %vm3967_vm0, %v3966_v0 }
 0x32e   : > { %3617 = vmatprep.subr.bf16.mxu1 %v3966_v0 }
 0x334   : > { %3608 = vmatmul.mubr.msk.bf16.vlgmr.msra.gmra.mrb[48].mxu1 %vm253_vm1, %v1529_v58 }
 0x335   : > { %3619 = vmatprep.mubr.msk.bf16.mxu1 %vm3967_vm0, %v3966_v0  ;;  %3618 = vmatpush3.bf16.msra.mxu1 %v1736_v20 }
 0x336   : > { %3629 = vmatprep.subr.bf16.mxu1 %v3966_v0 }
 0x375   : > { %v4384_v59 = vpop.f32.mrb[12].mxu0 }
 0x376   : > { %v3519_v60 = vpop.f32.mrb[13].mxu0 }
 0x377   : > { %v807_v61 = vpop.f32.mrb[14].mxu0 }
 0x378   : > { %v3520_v62 = vpop.f32.mrb[15].mxu0 }
 0x37d   : > { %v4386_v63 = vpop.f32.mrb[20].mxu1  ;;  %v4388_v1 = vpop.f32.mrb[16].mxu0 }
 0x37e   : > { %v3525_v2 = vpop.f32.mrb[21].mxu1  ;;  %v3531_v38 = vpop.f32.mrb[17].mxu0 }
 0x37f   : > { %v855_v3 = vpop.f32.mrb[22].mxu1  ;;  %v903_v6 = vpop.f32.mrb[18].mxu0 }
 0x380   : > { %v3526_v25 = vpop.f32.mrb[23].mxu1  ;;  %v3532_v7 = vpop.f32.mrb[19].mxu0 }
 0x385   : > { %v4390_v8 = vpop.f32.mrb[20].mxu0 }
 0x386   : > { %v3543_v40 = vpop.f32.mrb[21].mxu0 }
 0x387   : > { %v999_v11 = vpop.f32.mrb[22].mxu0 }
 0x388   : > { %v3544_v27 = vpop.f32.mrb[23].mxu0 }
 0x3ae   : > { %v4394_v19 = vpop.f32.mrb[24].mxu1 }
 0x3af   : > { %v3537_v22 = vpop.f32.mrb[25].mxu1 }
 0x3b0   : > { %v951_v24 = vpop.f32.mrb[26].mxu1 }
 0x3b1   : > { %v3538_v21 = vpop.f32.mrb[27].mxu1 }
 0x3b6   : > { %v4398_v26 = vpop.f32.mrb[28].mxu1  ;;  %v4400_v23 = vpop.f32.mrb[24].mxu0 }
 0x3b7   : > { %v3549_v28 = vpop.f32.mrb[29].mxu1  ;;  %v3555_v15 = vpop.f32.mrb[25].mxu0 }
 0x3b8   : > { %v1047_v9 = vpop.f32.mrb[30].mxu1  ;;  %v1095_v34 = vpop.f32.mrb[26].mxu0 }
 0x3b9   : > { %v3550_v33 = vpop.f32.mrb[31].mxu1  ;;  %v3556_v39 = vpop.f32.mrb[27].mxu0 }
 0x3e4   : > { %v1201_v42 = vpop.f32.mrb[28].mxu0 }
 0x3e5   : > { %v1202_v43 = vadd.f32 %v1201_v42, %v230_v41  ;;  %v3567_v45 = vpop.f32.mrb[29].mxu0 }
 0x3e6   : > { %v1204_v48 = vpop.f32.mrb[30].mxu0 }
 0x3e7   : > { %v4405_v31 = vpop.f32.mrb[32].mxu1  ;;  %v3568_v49 = vpop.f32.mrb[31].mxu0  ;;  %v4408_v50 = vadd.f32 %v1202_v43, %v4108_v36 }
 0x3e8   : > { %v3561_v5 = vpop.f32.mrb[33].mxu1 }
 0x3e9   : > { %v1143_v51 = vpop.f32.mrb[34].mxu1  ;;  %v1586_v10 = vsel %vm253_vm1, %v4408_v50, -inf }
 0x3ea   : > { %v3562_v54 = vpop.f32.mrb[35].mxu1  ;;  %1587 = vmax.xlane.f32.xlu0 %v1586_v10 }
 0x3ec   : > { %v1307_v13 = vpop.f32.mrb[32].mxu0 }
 0x3ed   : > { %v1308_v46 = vadd.f32 %v1307_v13, %v230_v41  ;;  %v3579_v55 = vpop.f32.mrb[33].mxu0 }
 0x3ee   : > { %v1310_v47 = vpop.f32.mrb[34].mxu0  ;;  %v4433_v55 = vpop.permute.xlu1 %1778 }
 0x3ef   : > { %v1254_v56 = vpop.f32.mrb[36].mxu1  ;;  %v3580_v57 = vpop.f32.mrb[35].mxu0  ;;  %v1580_v58 = vadd.f32 %v1308_v46, %v4113_v37 }
 0x3f0   : > { %v1255_v60 = vadd.f32 %v1254_v56, %v230_v41  ;;  %v3573_v61 = vpop.f32.mrb[37].mxu1 }
 0x3f1   : > { %v1257_v62 = vpop.f32.mrb[38].mxu1  ;;  %v1592_v36 = vsel %vm253_vm1, %v1580_v58, -inf }
 0x3f2   : > { %v3574_v2 = vpop.f32.mrb[39].mxu1  ;;  %1593 = vmax.xlane.f32.xlu0 %v1592_v36  ;;  %v1579_v38 = vadd.f32 %v1255_v60, %v4128_v52  ;;  %v4436_v56 = vpop.permute.xlu1 %1826 }
 0x3f4   : > { %v1413_v3 = vpop.f32.mrb[36].mxu0  ;;  %v1589_v6 = vsel %vm253_vm1, %v1579_v38, -inf }
 0x3f5   : > { %v1414_v25 = vadd.f32 %v1413_v3, %v230_v41  ;;  %1590 = vmax.xlane.f32.xlu1 %v1589_v6  ;;  %v3591_v7 = vpop.f32.mrb[37].mxu0 }
 0x3f6   : > { %v1416_v40 = vpop.f32.mrb[38].mxu0 }
 0x3f7   : > { %v1360_v11 = vpop.f32.mrb[40].mxu1  ;;  %v1582_v27 = vadd.f32 %v1414_v25, %v4133_v53  ;;  %v3592_v37 = vpop.f32.mrb[39].mxu0 }
 0x3f8   : > { %v1361_v14 = vadd.f32 %v1360_v11, %v230_v41  ;;  %v3585_v17 = vpop.f32.mrb[41].mxu1 }
 0x3f9   : > { %v1363_v18 = vpop.f32.mrb[42].mxu1  ;;  %v1598_v20 = vsel %vm253_vm1, %v1582_v27, -inf }
 0x3fa   : > { %v3586_v22 = vpop.f32.mrb[43].mxu1  ;;  %1599 = vmax.xlane.f32.xlu1 %v1598_v20  ;;  %v1581_v52 = vadd.f32 %v1361_v14, %v4152_v30 }
 0x3fc   : > { %v1519_v24 = vpop.f32.mrb[40].mxu0  ;;  %v1595_v21 = vsel %vm253_vm1, %v1581_v52, -inf }
 0x3fd   : > { %v1520_v28 = vadd.f32 %v1519_v24, %v230_v41  ;;  %1596 = vmax.xlane.f32.xlu0 %v1595_v21  ;;  %v3603_v15 = vpop.f32.mrb[41].mxu0 }
 0x3fe   : > { %v1522_v9 = vpop.f32.mrb[42].mxu0 }
 0x3ff   : > { %v1466_v34 = vpop.f32.mrb[44].mxu1  ;;  %v4421_v53 = vadd.f32 %v1520_v28, %v4169_v35  ;;  %v3604_v33 = vpop.f32.mrb[43].mxu0 }
 0x400   : > { %v1467_v39 = vadd.f32 %v1466_v34, %v230_v41  ;;  %v3597_v42 = vpop.f32.mrb[45].mxu1 }
 0x401   : > { %v1469_v43 = vpop.f32.mrb[46].mxu1  ;;  %v1604_v45 = vsel %vm253_vm1, %v4421_v53, -inf }
 0x402   : > { %v3598_v48 = vpop.f32.mrb[47].mxu1  ;;  %1605 = vmax.xlane.f32.xlu1 %v1604_v45  ;;  %v1583_v30 = vadd.f32 %v1467_v39, %v4157_v32  ;;  %v4481_v43 = vld [vmem:[%s4028_s24 + $0xc] ss:$0 sps:$4 sm:$0xff]   ;;  %v4485_v45 = vld [vmem:[%s4028_s24] ss:$0 sps:$4 sm:$0xff]  }
 0x403   : > { %v4489_v48 = vld [vmem:[%s4028_s24 + $0x14] ss:$0 sps:$4 sm:$0xff]  }
 0x404   : > { %v1601_v49 = vsel %vm253_vm1, %v1583_v30, -inf }
 0x405   : > { %1602 = vmax.xlane.f32.xlu0 %v1601_v49  ;;  %v4499_v49 = vld [vmem:[%s4028_s24 + $0x1c] ss:$0 sps:$4 sm:$0xff]  }
 0x407   : > { %v1572_v5 = vpop.f32.mrb[48].mxu1 }
 0x408   : > { %v1573_v51 = vadd.f32 %v1572_v5, %v230_v41  ;;  %v3609_v10 = vpop.f32.mrb[49].mxu1  ;;  %v4505_v5 = vld [vmem:[%s4028_s24 + $0x10] ss:$0 sps:$4 sm:$0xff]  }
 0x409   : > { %v1575_v54 = vpop.f32.mrb[50].mxu1 }
 0x40a   : > { %v1585_v35 = vadd.f32 %v1573_v51, %v4164_v4  ;;  %v3610_v13 = vpop.f32.mrb[51].mxu1  ;;  %v4511_v51 = vld [vmem:[%s4028_s24 + $0x18] ss:$0 sps:$4 sm:$0xff]  }
 0x40c   : > { %v1607_v46 = vsel %vm253_vm1, %v1585_v35, -inf }
 0x40d   : > { %1608 = vmax.xlane.f32.xlu0 %v1607_v46 }
 0x413   : > { %1922 = vrot.lane.b32.xlu1 %v4244_v16, %s3972_s25 }
 0x423   : > { %1874 = vrot.lane.b32.xlu0 %v4278_v44, %s3972_s25 }
 0x477   : > { %v1588_v32 = vpop.xlane.xlu0 %1587 }
 0x478   : > { %v1610_v47 = vsub.f32 %v4408_v50, %v1588_v32 }
 0x47a   : > { %v1618_v41 = vmul.f32 1.442695, %v1610_v47 }
 0x47c   : > { %3886 = vpow2.f32 %v1618_v41 }
 0x47f   : > { %v1594_v4 = vpop.xlane.xlu0 %1593 }
 0x480   : > { %v1612_v57 = vsub.f32 %v1580_v58, %v1594_v4  ;;  %v1784_v4 = vsel %vm766_vm2, %v4433_v55, 0 }
 0x482   : > { %v1622_v60 = vmul.f32 1.442695, %v1612_v57  ;;  %v1591_v61 = vpop.xlane.xlu1 %1590 }
 0x483   : > { %v1611_v62 = vsub.f32 %v1579_v38, %v1591_v61 }
 0x484   : > { %3888 = vpow2.f32 %v1622_v60 }
 0x485   : > { %v1620_v36 = vmul.f32 1.442695, %v1611_v62 }
 0x486   : > { %v4438_v16 = vpop.eup %3886 }
 0x487   : > { %3890 = vpow2.f32 %v1620_v36  ;;  %v1600_v44 = vpop.xlane.xlu1 %1599  ;;  %v1634_v2 = vsel %vm253_vm1, %v4438_v16, 0.0 }
 0x488   : > { %v1614_v3 = vsub.f32 %v1582_v27, %v1600_v44  ;;  %1635 = vadd.xlane.f32.xlu1 %v1634_v2 }
 0x48a   : > { %v1626_v50 = vmul.f32 1.442695, %v1614_v3  ;;  %v1597_v6 = vpop.xlane.xlu0 %1596 }
 0x48b   : > { %v1613_v25 = vsub.f32 %v1581_v52, %v1597_v6 }
 0x48c   : > { %3892 = vpow2.f32 %v1626_v50  ;;  %v1832_v50 = vsel %vm766_vm2, %v4436_v56, 0 }
 0x48d   : > { %v1624_v7 = vmul.f32 1.442695, %v1613_v25 }
 0x48e   : > { %v4442_v58 = vpop.eup %3888 }
 0x48f   : > { %3894 = vpow2.f32 %v1624_v7  ;;  %v1640_v38 = vsel %vm253_vm1, %v4442_v58, 0.0  ;;  %v1606_v21 = vpop.xlane.xlu1 %1605 }
 0x490   : > { %1641 = vadd.xlane.f32.xlu1 %v1640_v38  ;;  %v1616_v28 = vsub.f32 %v4421_v53, %v1606_v21  ;;  %v4476_v53 = vld [vmem:[%s4028_s24 + $0x4] ss:$0 sps:$4 sm:$0xff]  }
 0x491   : > { %v4446_v40 = vpop.eup %3890 }
 0x492   : > { %v1603_v11 = vpop.xlane.xlu0 %1602  ;;  %v1637_v37 = vsel %vm253_vm1, %v4446_v40, 0.0  ;;  %v1630_v15 = vmul.f32 1.442695, %v1616_v28 }
 0x493   : > { %v1615_v27 = vsub.f32 %v1583_v30, %v1603_v11  ;;  %1638 = vadd.xlane.f32.xlu0 %v1637_v37  ;;  %v4495_v30 = vld [vmem:[%s4028_s24 + $0x8] ss:$0 sps:$4 sm:$0xff]   ;;  %v1923_v10 = vpop.permute.xlu1 %1922  ;;  %s3975_s24 = smov 64  }
 0x494   : > { %v1928_v37 = vsel %vm766_vm2, %v1923_v10, 0 }
 0x495   : > { %v1628_v14 = vmul.f32 1.442695, %v1615_v27 }
 0x496   : > { %v4450_v17 = vpop.eup %3892 }
 0x497   : > { %3896 = vpow2.f32 %v1628_v14  ;;  %v1646_v18 = vsel %vm253_vm1, %v4450_v17, 0.0 }
 0x498   : > { %1647 = vadd.xlane.f32.xlu1 %v1646_v18  ;;  %3898 = vpow2.f32 %v1630_v15 }
 0x499   : > { %v4454_v20 = vpop.eup %3894 }
 0x49a   : > { %v1643_v22 = vsel %vm253_vm1, %v4454_v20, 0.0  ;;  %v1609_v9 = vpop.xlane.xlu0 %1608 }
 0x49b   : > { %1644 = vadd.xlane.f32.xlu0 %v1643_v22  ;;  %v1617_v34 = vsub.f32 %v1585_v35, %v1609_v9 }
 0x49d   : > { %v1632_v33 = vmul.f32 1.442695, %v1617_v34 }
 0x49e   : > { %v1875_v35 = vpop.permute.xlu0 %1874 }
 0x49f   : > { %3900 = vpow2.f32 %v1632_v33  ;;  %v1880_v55 = vsel %vm766_vm2, %v1875_v35, 0 }
 0x4a1   : > { %v4458_v52 = vpop.eup %3896 }
 0x4a2   : > { %v1649_v24 = vsel %vm253_vm1, %v4458_v52, 0.0  ;;  %v4467_v39 = vpop.eup %3898 }
 0x4a3   : > { %1650 = vadd.xlane.f32.xlu0 %v1649_v24 }
 0x4a9   : > { %2018 = vrot.lane.b32.xlu1 %v4251_v29, %s3972_s25  ;;  %v1652_v29 = vsel %vm253_vm1, %v4467_v39, 0.0  ;;  %v4471_v42 = vpop.eup %3900 }
 0x4b9   : > { %1970 = vrot.lane.b32.xlu0 %v4287_v12, %s3972_s25  ;;  %v1655_v12 = vsel %vm253_vm1, %v4471_v42, 0.0 }
 0x4cd   : > { %1653 = vadd.xlane.f32.xlu1 %v1652_v29 }
 0x4d8   : > { %1656 = vadd.xlane.f32.xlu0 %v1655_v12 }
 0x4de   : > { %2132 = vrot.lane.b32.xlu1 %v4476_v53, %s3973_s28 }
 0x4e2   : > { %2130 = vrot.lane.b32.xlu1 %v4476_v53, %s3974_s29 }
 0x4e6   : > { %2238 = vrot.lane.b32.xlu1 %v4481_v43, %s3973_s28 }
 0x4ea   : > { %2236 = vrot.lane.b32.xlu1 %v4481_v43, %s3974_s29 }
 0x4ee   : > { %2079 = vrot.lane.b32.xlu0 %v4485_v45, %s3973_s28  ;;  %2344 = vrot.lane.b32.xlu1 %v4489_v48, %s3973_s28 }
 0x4f2   : > { %2077 = vrot.lane.b32.xlu0 %v4485_v45, %s3974_s29  ;;  %2342 = vrot.lane.b32.xlu1 %v4489_v48, %s3974_s29 }
 0x4f6   : > { %2185 = vrot.lane.b32.xlu0 %v4495_v30, %s3973_s28  ;;  %2450 = vrot.lane.b32.xlu1 %v4499_v49, %s3973_s28 }
 0x4fa   : > { %2183 = vrot.lane.b32.xlu0 %v4495_v30, %s3974_s29  ;;  %2448 = vrot.lane.b32.xlu1 %v4499_v49, %s3974_s29 }
 0x4fe   : > { %2291 = vrot.lane.b32.xlu0 %v4505_v5, %s3973_s28  ;;  %2602 = vrot.lane.b32.xlu1 %v4485_v45, %s3975_s24 }
 0x502   : > { %2289 = vrot.lane.b32.xlu0 %v4505_v5, %s3974_s29 }
 0x506   : > { %2397 = vrot.lane.b32.xlu0 %v4511_v51, %s3973_s28 }
 0x50a   : > { %2395 = vrot.lane.b32.xlu0 %v4511_v51, %s3974_s29 }
 0x515   : > { %v1636_v54 = vpop.xlane.xlu1 %1635 }
 0x516   : > { %3902 = vrcp.f32 %v1636_v54 }
 0x51d   : > { %v1642_v13 = vpop.xlane.xlu1 %1641 }
 0x51e   : > { %3904 = vrcp.f32 %v1642_v13 }
 0x520   : > { %v3903_v46 = vpop.eup %3902  ;;  %v1639_v32 = vpop.xlane.xlu0 %1638 }
 0x521   : > { %v1666_v47 = vmul.f32 %v3903_v46, %v4438_v16  ;;  %3906 = vrcp.f32 %v1639_v32 }
 0x523   : > { %v1674_v41 = vpack.c.bf16 %v1666_v47, %v1666_v47 }
 0x525   : > { %3614 = vmatmul.mubr.msk.bf16.vlgmr.msra.gmra.mrb[44].mxu0 %vm253_vm1, %v1674_v41  ;;  %v1648_v57 = vpop.xlane.xlu1 %1647 }
 0x526   : > { %3624 = vmatpush3.bf16.msra.mxu0 %v1784_v4  ;;  %3908 = vrcp.f32 %v1648_v57  ;;  %3625 = vmatprep.mubr.msk.bf16.mxu0 %vm3967_vm0, %v3966_v0 }
 0x527   : > { %3635 = vmatprep.subr.bf16.mxu0 %v3966_v0 }
 0x528   : > { %v3905_v60 = vpop.eup %3904  ;;  %v1645_v61 = vpop.xlane.xlu0 %1644 }
 0x529   : > { %v1668_v62 = vmul.f32 %v3905_v60, %v4442_v58  ;;  %3910 = vrcp.f32 %v1645_v61 }
 0x52b   : > { %v3907_v36 = vpop.eup %3906  ;;  %v1676_v16 = vpack.c.bf16 %v1668_v62, %v1668_v62 }
 0x52c   : > { %v1667_v44 = vmul.f32 %v3907_v36, %v4446_v40 }
 0x52d   : > { %3626 = vmatmul.mubr.msk.bf16.vlgmr.msra.gmra.mrb[48].mxu0 %vm253_vm1, %v1676_v16 }
 0x52e   : > { %3636 = vmatpush3.bf16.msra.mxu0 %v1880_v55  ;;  %v1675_v2 = vpack.c.bf16 %v1667_v44, %v1667_v44  ;;  %3637 = vmatprep.mubr.msk.bf16.mxu0 %vm3967_vm0, %v3966_v0 }
 0x52f   : > { %3647 = vmatprep.subr.bf16.mxu0 %v3966_v0 }
 0x530   : > { %v3909_v3 = vpop.eup %3908  ;;  %3620 = vmatmul.mubr.msk.bf16.vlgmr.msra.gmra.mrb[52].mxu1 %vm253_vm1, %v1675_v2  ;;  %v1651_v6 = vpop.xlane.xlu0 %1650 }
 0x531   : > { %v1670_v25 = vmul.f32 %v3909_v3, %v4450_v17  ;;  %3630 = vmatpush3.bf16.msra.mxu1 %v1832_v50  ;;  %3912 = vrcp.f32 %v1651_v6  ;;  %3631 = vmatprep.mubr.msk.bf16.mxu1 %vm3967_vm0, %v3966_v0  ;;  %v2019_v17 = vpop.permute.xlu1 %2018 }
 0x532   : > { %3641 = vmatprep.subr.bf16.mxu1 %v3966_v0 }
 0x533   : > { %v3911_v7 = vpop.eup %3910  ;;  %v1678_v58 = vpack.c.bf16 %v1670_v25, %v1670_v25 }
 0x534   : > { %v1669_v38 = vmul.f32 %v3911_v7, %v4454_v20  ;;  %v1971_v40 = vpop.permute.xlu0 %1970  ;;  %v2024_v20 = vsel %vm766_vm2, %v2019_v17, 0 }
 0x535   : > { %v1976_v11 = vsel %vm766_vm2, %v1971_v40, 0  ;;  %3638 = vmatmul.mubr.msk.bf16.vlgmr.msra.gmra.mrb[52].mxu0 %vm253_vm1, %v1678_v58 }
 0x536   : > { %3648 = vmatpush3.bf16.msra.mxu0 %v1976_v11  ;;  %v1677_v56 = vpack.c.bf16 %v1669_v38, %v1669_v38  ;;  %3649 = vmatprep.mubr.msk.bf16.mxu0 %vm3967_vm0, %v3966_v0 }
 0x537   : > { %3659 = vmatprep.subr.bf16.mxu0 %v3966_v0 }
 0x538   : > { %3632 = vmatmul.mubr.msk.bf16.vlgmr.msra.gmra.mrb[56].mxu1 %vm253_vm1, %v1677_v56 }
 0x539   : > { %3642 = vmatpush3.bf16.msra.mxu1 %v1928_v37  ;;  %3643 = vmatprep.mubr.msk.bf16.mxu1 %vm3967_vm0, %v3966_v0 }
 0x53a   : > { %3653 = vmatprep.subr.bf16.mxu1 %v3966_v0 }
 0x53b   : > { %v3913_v27 = vpop.eup %3912 }
 0x53c   : > { %v1671_v14 = vmul.f32 %v3913_v27, %v4458_v52 }
 0x53e   : > { %v1679_v18 = vpack.c.bf16 %v1671_v14, %v1671_v14 }
 0x540   : > { %3644 = vmatmul.mubr.msk.bf16.vlgmr.msra.gmra.mrb[60].mxu1 %vm253_vm1, %v1679_v18 }
 0x541   : > { %3654 = vmatpush3.bf16.msra.mxu1 %v2024_v20  ;;  %3655 = vmatprep.mubr.msk.bf16.mxu1 %vm3967_vm0, %v3966_v0 }
 0x542   : > { %3665 = vmatprep.subr.bf16.mxu1 %v3966_v0 }
 0x55a   : > { %v1654_v22 = vpop.xlane.xlu1 %1653 }
 0x55b   : > { %3914 = vrcp.f32 %v1654_v22 }
 0x55e   : > { %v2133_v24 = vpop.permute.xlu1 %2132 }
 0x55f   : > { %v2138_v13 = vsel %vm253_vm1, %v2133_v24, 0 }
 0x562   : > { %v2131_v33 = vpop.permute.xlu1 %2130 }
 0x565   : > { %v3915_v21 = vpop.eup %3914  ;;  %v1657_v28 = vpop.xlane.xlu0 %1656 }
 0x566   : > { %v1672_v15 = vmul.f32 %v3915_v21, %v4467_v39  ;;  %3916 = vrcp.f32 %v1657_v28  ;;  %v2239_v10 = vpop.permute.xlu1 %2238 }
 0x567   : > { %v2244_v4 = vsel %vm253_vm1, %v2239_v10, 0 }
 0x568   : > { %v1680_v52 = vpack.c.bf16 %v1672_v15, %v1672_v15 }
 0x569   : > { %v2080_v9 = vpop.permute.xlu0 %2079 }
 0x56a   : > { %v2085_v34 = vsel %vm253_vm1, %v2080_v9, 0  ;;  %3650 = vmatmul.mubr.msk.bf16.vlgmr.msra.gmra.mrb[56].mxu0 %vm253_vm1, %v1680_v52 }
 0x56b   : > { %3660 = vmatpush3.bf16.xpose.msra.mxu0 %v2085_v34  ;;  %3661 = vmatprep.mubr.msk.bf16.mxu0 %vm3967_vm0, %v3966_v0 }
 0x56c   : > { %3671 = vmatprep.subr.bf16.mxu0 %v3966_v0 }
 0x56d   : > { %v2078_v29 = vpop.permute.xlu0 %2077 }
 0x570   : > { %v3917_v12 = vpop.eup %3916 }
 0x571   : > { %v1673_v54 = vmul.f32 %v3917_v12, %v4471_v42  ;;  %v2186_v39 = vpop.permute.xlu0 %2185  ;;  %v2237_v42 = vpop.permute.xlu1 %2236 }
 0x572   : > { %v2191_v35 = vsel %vm253_vm1, %v2186_v39, 0  ;;  %3662 = vmatmul.mubr.msk.bf16.vlgmr.msra.gmra.mrb[60].mxu0 %vm253_vm1, %v2078_v29 }
 0x573   : > { %3672 = vmatpush3.bf16.xpose.msra.mxu0 %v2191_v35  ;;  %v1681_v46 = vpack.c.bf16 %v1673_v54, %v1673_v54  ;;  %3673 = vmatprep.mubr.msk.bf16.mxu0 %vm3967_vm0, %v3966_v0 }
 0x574   : > { %3683 = vmatprep.subr.bf16.mxu0 %v3966_v0 }
 0x575   : > { %3656 = vmatmul.mubr.msk.bf16.vlgmr.msra.gmra.mrb[64].mxu1 %vm253_vm1, %v1681_v46  ;;  %v2184_v32 = vpop.permute.xlu0 %2183  ;;  %v2345_v57 = vpop.permute.xlu1 %2344 }
 0x576   : > { %3666 = vmatpush3.bf16.xpose.msra.mxu1 %v2138_v13  ;;  %3667 = vmatprep.mubr.msk.bf16.mxu1 %vm3967_vm0, %v3966_v0  ;;  %v2350_v16 = vsel %vm253_vm1, %v2345_v57, 0 }
 0x577   : > { %3677 = vmatprep.subr.bf16.mxu1 %v3966_v0 }
 0x579   : > { %v2292_v47 = vpop.permute.xlu0 %2291  ;;  %v2343_v36 = vpop.permute.xlu1 %2342 }
 0x57a   : > { %v2297_v41 = vsel %vm253_vm1, %v2292_v47, 0  ;;  %3674 = vmatmul.mubr.msk.bf16.vlgmr.msra.gmra.mrb[64].mxu0 %vm253_vm1, %v2184_v32  ;;  %v4628_v32 = vld [vmem:[%s4847_s1 + $0x10] sm:$0xff] }
 0x57b   : > { %3684 = vmatpush3.bf16.xpose.msra.mxu0 %v2297_v41  ;;  %3685 = vmatprep.mubr.msk.bf16.mxu0 %vm3967_vm0, %v3966_v0 }
 0x57c   : > { %3695 = vmatprep.subr.bf16.mxu0 %v3966_v0 }
 0x57d   : > { %3668 = vmatmul.mubr.msk.bf16.vlgmr.msra.gmra.mrb[68].mxu1 %vm253_vm1, %v2131_v33  ;;  %v2290_v60 = vpop.permute.xlu0 %2289  ;;  %v2451_v55 = vpop.permute.xlu1 %2450 }
 0x57e   : > { %3678 = vmatpush3.bf16.xpose.msra.mxu1 %v2244_v4  ;;  %3679 = vmatprep.mubr.msk.bf16.mxu1 %vm3967_vm0, %v3966_v0  ;;  %v2456_v2 = vsel %vm253_vm1, %v2451_v55, 0 }
 0x57f   : > { %3689 = vmatprep.subr.bf16.mxu1 %v3966_v0 }
 0x581   : > { %v2398_v61 = vpop.permute.xlu0 %2397  ;;  %v2449_v3 = vpop.permute.xlu1 %2448 }
 0x582   : > { %v2403_v62 = vsel %vm253_vm1, %v2398_v61, 0  ;;  %3686 = vmatmul.mubr.msk.bf16.vlgmr.msra.gmra.mrb[68].mxu0 %vm253_vm1, %v2290_v60  ;;  %v3950_v61 = vld [vmem:[%s4848_s2] sm:$0xff] }
 0x583   : > { %3696 = vmatpush3.bf16.xpose.msra.mxu0 %v2403_v62  ;;  %3697 = vmatprep.mubr.msk.bf16.mxu0 %vm3967_vm0, %v3966_v0 }
 0x584   : > { %3707 = vmatprep.subr.bf16.mxu0 %v3966_v0 }
 0x585   : > { %3680 = vmatmul.mubr.msk.bf16.vlgmr.msra.gmra.mrb[72].mxu1 %vm253_vm1, %v2237_v42  ;;  %v2396_v44 = vpop.permute.xlu0 %2395  ;;  %v2603_v20 = vpop.permute.xlu1 %2602 }
 0x586   : > { %3690 = vmatpush3.bf16.xpose.msra.mxu1 %v2350_v16  ;;  %3691 = vmatprep.mubr.msk.bf16.mxu1 %vm3967_vm0, %v3966_v0  ;;  %v2608_v24 = vsel %vm766_vm2, %v2603_v20, 0 }
 0x587   : > { %3701 = vmatprep.subr.bf16.mxu1 %v3966_v0 }
 0x58a   : > { %3698 = vmatmul.mubr.msk.bf16.vlgmr.msra.gmra.mrb[72].mxu0 %vm253_vm1, %v2396_v44 }
 0x58b   : > { %3709 = vmatprep.mubr.msk.bf16.mxu0 %vm3967_vm0, %v3966_v0  ;;  %3708 = vmatpush3.bf16.msra.mxu0 %v2608_v24  ;;  %v3952_v24 = vld [vmem:[%s4848_s2 + $0x8] sm:$0xff] }
 0x58c   : > { %3719 = vmatprep.subr.bf16.mxu0 %v3966_v0 }
 0x58d   : > { %3692 = vmatmul.mubr.msk.bf16.vlgmr.msra.gmra.mrb[76].mxu1 %vm253_vm1, %v2343_v36 }
 0x58e   : > { %3702 = vmatpush3.bf16.xpose.msra.mxu1 %v2456_v2  ;;  %3703 = vmatprep.mubr.msk.bf16.mxu1 %vm3967_vm0, %v3966_v0 }
 0x58f   : > { %3713 = vmatprep.subr.bf16.mxu1 %v3966_v0 }
 0x595   : > { %3704 = vmatmul.mubr.msk.bf16.vlgmr.msra.gmra.mrb[80].mxu1 %vm253_vm1, %v2449_v3 }
 0x596   : > { %3715 = vmatprep.mubr.msk.bf16.mxu1 %vm3967_vm0, %v3966_v0 }
 0x5f8   : > { %v4603_v50 = vpop.f32.mrb[44].mxu0 }
 0x5f9   : > { %v3615_v6 = vpop.f32.mrb[45].mxu0 }
 0x5fa   : > { %v1727_v25 = vpop.f32.mrb[46].mxu0 }
 0x5fb   : > { %v3616_v7 = vpop.f32.mrb[47].mxu0 }
 0x600   : > { %v4605_v58 = vpop.f32.mrb[48].mxu0 }
 0x601   : > { %v3627_v38 = vpop.f32.mrb[49].mxu0 }
 0x602   : > { %v1823_v40 = vpop.f32.mrb[50].mxu0 }
 0x603   : > { %v4607_v11 = vpop.f32.mrb[52].mxu1  ;;  %v3628_v56 = vpop.f32.mrb[51].mxu0  ;;  %v3951_v40 = vld [vmem:[%s4848_s2 + $0x10] sm:$0xff] }
 0x604   : > { %v3788_v37 = vpack.i.bf16 %v4607_v11, %v4603_v50  ;;  %v3621_v27 = vpop.f32.mrb[53].mxu1 }
 0x605   : > { %v1775_v14 = vpop.f32.mrb[54].mxu1 }
 0x606   : > { %v3622_v17 = vpop.f32.mrb[55].mxu1 }
 0x608   : > { %v4611_v18 = vpop.f32.mrb[52].mxu0 }
 0x609   : > { %v3639_v45 = vpop.f32.mrb[53].mxu0 }
 0x60a   : > { %v1919_v22 = vpop.f32.mrb[54].mxu0 }
 0x60b   : > { %v4614_v21 = vpop.f32.mrb[56].mxu1  ;;  %v3640_v28 = vpop.f32.mrb[55].mxu0 }
 0x60c   : > { %v3793_v15 = vpack.i.bf16 %v4614_v21, %v4605_v58  ;;  %v3633_v52 = vpop.f32.mrb[57].mxu1 }
 0x60d   : > { %v1871_v9 = vpop.f32.mrb[58].mxu1 }
 0x60e   : > { %v3634_v34 = vpop.f32.mrb[59].mxu1 }
 0x613   : > { %v4619_v33 = vpop.f32.mrb[60].mxu1 }
 0x614   : > { %v3803_v29 = vpack.i.bf16 %v4619_v33, %v4611_v18  ;;  %v3645_v12 = vpop.f32.mrb[61].mxu1 }
 0x615   : > { %v1967_v10 = vpop.f32.mrb[62].mxu1 }
 0x616   : > { %v3646_v54 = vpop.f32.mrb[63].mxu1 }
 0x63d   : > { %v4623_v39 = vpop.f32.mrb[56].mxu0 }
 0x63e   : > { %v3651_v35 = vpop.f32.mrb[57].mxu0 }
 0x63f   : > { %v2015_v13 = vpop.f32.mrb[58].mxu0  ;;  %v3953_v35 = vld [vmem:[%s4848_s2 + $0x20] sm:$0xff] }
 0x640   : > { %v3652_v46 = vpop.f32.mrb[59].mxu0 }
 0x645   : > { %v2121_v42 = vpop.f32.mrb[60].mxu0 }
 0x646   : > { %v2122_v47 = vadd.f32 %v2121_v42, %v4628_v32  ;;  %v3663_v41 = vpop.f32.mrb[61].mxu0 }
 0x647   : > { %v2124_v4 = vpop.f32.mrb[62].mxu0 }
 0x648   : > { %v4631_v57 = vpop.f32.mrb[64].mxu1  ;;  %v3664_v60 = vpop.f32.mrb[63].mxu0  ;;  %v4636_v62 = vadd.f32 %v3950_v61, %v2122_v47  ;;  %v3954_v61 = vld [vmem:[%s4848_s2 + $0x18] sm:$0xff] }
 0x649   : > { %v3813_v36 = vpack.i.bf16 %v4631_v57, %v4623_v39  ;;  %v3657_v16 = vpop.f32.mrb[65].mxu1 }
 0x64a   : > { %v2063_v44 = vpop.f32.mrb[66].mxu1  ;;  %v2506_v55 = vsel %vm253_vm1, %v4636_v62, -inf }
 0x64b   : > { %v3658_v2 = vpop.f32.mrb[67].mxu1  ;;  %2507 = vmax.xlane.f32.xlu0 %v2506_v55 }
 0x64d   : > { %v2227_v3 = vpop.f32.mrb[64].mxu0 }
 0x64e   : > { %v2228_v6 = vadd.f32 %v2227_v3, %v4628_v32  ;;  %v3675_v25 = vpop.f32.mrb[65].mxu0 }
 0x64f   : > { %v2230_v7 = vpop.f32.mrb[66].mxu0 }
 0x650   : > { %v2174_v38 = vpop.f32.mrb[68].mxu1  ;;  %v4646_v56 = vadd.f32 %v3951_v40, %v2228_v6  ;;  %v3676_v27 = vpop.f32.mrb[67].mxu0  ;;  %v3955_v7 = vld [vmem:[%s4848_s2 + $0x30] sm:$0xff] }
 0x651   : > { %v2175_v14 = vadd.f32 %v2174_v38, %v4628_v32  ;;  %v3669_v17 = vpop.f32.mrb[69].mxu1 }
 0x652   : > { %v2177_v45 = vpop.f32.mrb[70].mxu1  ;;  %v2512_v20 = vsel %vm253_vm1, %v4646_v56, -inf }
 0x653   : > { %v3670_v22 = vpop.f32.mrb[71].mxu1  ;;  %2513 = vmax.xlane.f32.xlu0 %v2512_v20  ;;  %v2499_v28 = vadd.f32 %v3952_v24, %v2175_v14  ;;  %v3956_v20 = vld [vmem:[%s4848_s2 + $0x28] sm:$0xff] }
 0x655   : > { %v2333_v52 = vpop.f32.mrb[68].mxu0  ;;  %v2509_v9 = vsel %vm253_vm1, %v2499_v28, -inf }
 0x656   : > { %v2334_v34 = vadd.f32 %v2333_v52, %v4628_v32  ;;  %2510 = vmax.xlane.f32.xlu1 %v2509_v9  ;;  %v3687_v12 = vpop.f32.mrb[69].mxu0 }
 0x657   : > { %v2336_v10 = vpop.f32.mrb[70].mxu0 }
 0x658   : > { %v2280_v54 = vpop.f32.mrb[72].mxu1  ;;  %v4659_v13 = vadd.f32 %v3953_v35, %v2334_v34  ;;  %v3688_v46 = vpop.f32.mrb[71].mxu0 }
 0x659   : > { %v2281_v42 = vadd.f32 %v2280_v54, %v4628_v32  ;;  %v3681_v47 = vpop.f32.mrb[73].mxu1  ;;  %v3957_v54 = vld [vmem:[%s4848_s2 + $0x38] sm:$0xff] }
 0x65a   : > { %v2283_v41 = vpop.f32.mrb[74].mxu1  ;;  %v2518_v4 = vsel %vm253_vm1, %v4659_v13, -inf }
 0x65b   : > { %v3682_v60 = vpop.f32.mrb[75].mxu1  ;;  %2519 = vmax.xlane.f32.xlu1 %v2518_v4  ;;  %v2501_v16 = vadd.f32 %v3954_v61, %v2281_v42 }
 0x65d   : > { %v2439_v44 = vpop.f32.mrb[72].mxu0  ;;  %v2515_v55 = vsel %vm253_vm1, %v2501_v16, -inf }
 0x65e   : > { %v2440_v2 = vadd.f32 %v2439_v44, %v4628_v32  ;;  %2516 = vmax.xlane.f32.xlu0 %v2515_v55  ;;  %v3699_v3 = vpop.f32.mrb[73].mxu0 }
 0x65f   : > { %v2442_v6 = vpop.f32.mrb[74].mxu0 }
 0x660   : > { %v2386_v25 = vpop.f32.mrb[76].mxu1  ;;  %v4672_v38 = vadd.f32 %v3955_v7, %v2440_v2  ;;  %v3700_v40 = vpop.f32.mrb[75].mxu0 }
 0x661   : > { %v2387_v27 = vadd.f32 %v2386_v25, %v4628_v32  ;;  %v3693_v14 = vpop.f32.mrb[77].mxu1 }
 0x662   : > { %v2524_v17 = vsel %vm253_vm1, %v4672_v38, -inf  ;;  %v2389_v45 = vpop.f32.mrb[78].mxu1 }
 0x663   : > { %2525 = vmax.xlane.f32.xlu1 %v2524_v17  ;;  %v2503_v22 = vadd.f32 %v3956_v20, %v2387_v27  ;;  %v3694_v24 = vpop.f32.mrb[79].mxu1 }
 0x665   : > { %v2521_v52 = vsel %vm253_vm1, %v2503_v22, -inf }
 0x666   : > { %2522 = vmax.xlane.f32.xlu0 %v2521_v52 }
 0x668   : > { %v2492_v9 = vpop.f32.mrb[80].mxu1 }
 0x669   : > { %v2493_v34 = vadd.f32 %v2492_v9, %v4628_v32  ;;  %v3705_v12 = vpop.f32.mrb[81].mxu1 }
 0x66a   : > { %v2495_v10 = vpop.f32.mrb[82].mxu1 }
 0x66b   : > { %v2505_v35 = vadd.f32 %v3957_v54, %v2493_v34  ;;  %v3706_v46 = vpop.f32.mrb[83].mxu1 }
 0x66d   : > { %v2527_v42 = vsel %vm253_vm1, %v2505_v35, -inf }
 0x66e   : > { %2528 = vmax.xlane.f32.xlu0 %v2527_v42 }
 0x674   : > { %2698 = vrot.lane.b32.xlu1 %v4495_v30, %s3975_s24 }
 0x678   : > { %2746 = vrot.lane.b32.xlu1 %v4481_v43, %s3975_s24 }
 0x684   : > { %2650 = vrot.lane.b32.xlu0 %v4476_v53, %s3975_s24 }
 0x6d8   : > { %v2508_v32 = vpop.xlane.xlu0 %2507 }
 0x6d9   : > { %v2530_v47 = vsub.f32 %v4636_v62, %v2508_v32 }
 0x6db   : > { %v2538_v41 = vmul.f32 1.442695, %v2530_v47 }
 0x6dd   : > { %3918 = vpow2.f32 %v2538_v41 }
 0x6e0   : > { %v2514_v4 = vpop.xlane.xlu0 %2513 }
 0x6e1   : > { %v2532_v60 = vsub.f32 %v4646_v56, %v2514_v4 }
 0x6e3   : > { %v2542_v61 = vmul.f32 1.442695, %v2532_v60  ;;  %v2511_v44 = vpop.xlane.xlu1 %2510 }
 0x6e4   : > { %v2531_v55 = vsub.f32 %v2499_v28, %v2511_v44 }
 0x6e5   : > { %3920 = vpow2.f32 %v2542_v61 }
 0x6e6   : > { %v2540_v2 = vmul.f32 1.442695, %v2531_v55 }
 0x6e7   : > { %v4694_v30 = vpop.eup %3918 }
 0x6e8   : > { %3922 = vpow2.f32 %v2540_v2  ;;  %v2554_v43 = vsel %vm253_vm1, %v4694_v30, 0.0  ;;  %v2520_v45 = vpop.xlane.xlu1 %2519 }
 0x6e9   : > { %2555 = vadd.xlane.f32.xlu1 %v2554_v43  ;;  %v2534_v20 = vsub.f32 %v4659_v13, %v2520_v45 }
 0x6eb   : > { %v2517_v53 = vpop.xlane.xlu0 %2516  ;;  %v2546_v52 = vmul.f32 1.442695, %v2534_v20 }
 0x6ec   : > { %v2533_v3 = vsub.f32 %v2501_v16, %v2517_v53 }
 0x6ee   : > { %v2544_v62 = vmul.f32 1.442695, %v2533_v3 }
 0x6ef   : > { %v4698_v6 = vpop.eup %3920 }
 0x6f0   : > { %3924 = vpow2.f32 %v2544_v62  ;;  %v2560_v56 = vsel %vm253_vm1, %v4698_v6, 0.0  ;;  %v2526_v24 = vpop.xlane.xlu1 %2525 }
 0x6f1   : > { %2561 = vadd.xlane.f32.xlu1 %v2560_v56  ;;  %v2536_v9 = vsub.f32 %v4672_v38, %v2526_v24  ;;  %3926 = vpow2.f32 %v2546_v52 }
 0x6f2   : > { %v4702_v28 = vpop.eup %3922 }
 0x6f3   : > { %v2557_v25 = vsel %vm253_vm1, %v4702_v28, 0.0  ;;  %v2523_v7 = vpop.xlane.xlu0 %2522  ;;  %v2550_v34 = vmul.f32 1.442695, %v2536_v9 }
 0x6f4   : > { %2558 = vadd.xlane.f32.xlu0 %v2557_v25  ;;  %v2535_v12 = vsub.f32 %v2503_v22, %v2523_v7  ;;  %v2699_v47 = vpop.permute.xlu1 %2698 }
 0x6f5   : > { %3928 = vpow2.f32 %v2550_v34  ;;  %v2704_v21 = vsel %vm766_vm2, %v2699_v47, 0  ;;  %v3852_v47 = vld [vmem:[%s4849_s3] sm:$0xff]  }
 0x6f6   : > { %v2548_v10 = vmul.f32 1.442695, %v2535_v12 }
 0x6f8   : > { %3930 = vpow2.f32 %v2548_v10  ;;  %v2747_v41 = vpop.permute.xlu1 %2746 }
 0x6f9   : > { %v2752_v53 = vsel %vm766_vm2, %v2747_v41, 0 }
 0x6fa   : > { %v4706_v40 = vpop.eup %3924 }
 0x6fb   : > { %v2529_v27 = vpop.xlane.xlu0 %2528  ;;  %v2563_v16 = vsel %vm253_vm1, %v4706_v40, 0.0  ;;  %v4718_v46 = vpop.eup %3926 }
 0x6fc   : > { %2564 = vadd.xlane.f32.xlu0 %v2563_v16  ;;  %v2537_v54 = vsub.f32 %v2505_v35, %v2529_v27  ;;  %v2566_v13 = vsel %vm253_vm1, %v4718_v46, 0.0 }
 0x6ff   : > { %v2651_v14 = vpop.permute.xlu0 %2650  ;;  %v4722_v42 = vpop.eup %3928 }
 0x700   : > { %v2656_v17 = vsel %vm766_vm2, %v2651_v14, 0 }
 0x701   : > { %3714 = vmatpush3.bf16.msra.mxu1 %v2656_v17 }
 0x702   : > { %2842 = vrot.lane.b32.xlu1 %v4489_v48, %s3975_s24  ;;  %3725 = vmatprep.subr.bf16.mxu1 %v3966_v0  ;;  %v2552_v48 = vmul.f32 1.442695, %v2537_v54  ;;  %v4726_v38 = vpop.eup %3930 }
 0x703   : > { %v2569_v22 = vsel %vm253_vm1, %v4726_v38, 0.0 }
 0x704   : > { %3932 = vpow2.f32 %v2552_v48 }
 0x70e   : > { %v4730_v35 = vpop.eup %3932 }
 0x70f   : > { %v2575_v32 = vsel %vm253_vm1, %v4730_v35, 0.0 }
 0x712   : > { %2794 = vrot.lane.b32.xlu0 %v4505_v5, %s3975_s24  ;;  %v2572_v5 = vsel %vm253_vm1, %v4722_v42, 0.0 }
 0x726   : > { %2567 = vadd.xlane.f32.xlu1 %v2566_v13 }
 0x72a   : > { %2573 = vadd.xlane.f32.xlu1 %v2572_v5 }
 0x731   : > { %2570 = vadd.xlane.f32.xlu0 %v2569_v22 }
 0x735   : > { %2576 = vadd.xlane.f32.xlu0 %v2575_v32 }
 0x73b   : > { %2938 = vrot.lane.b32.xlu1 %v4499_v49, %s3975_s24 }
 0x73f   : > { %3794 = vrot.lane.b32.xlu1 %v3793_v15, %s3976_s26 }
 0x74b   : > { %2890 = vrot.lane.b32.xlu0 %v4511_v51, %s3975_s24 }
 0x74f   : > { %3789 = vrot.lane.b32.xlu0 %v3788_v37, %s3976_s26 }
 0x776   : > { %v2556_v4 = vpop.xlane.xlu1 %2555 }
 0x777   : > { %3934 = vrcp.f32 %v2556_v4 }
 0x77e   : > { %v2562_v60 = vpop.xlane.xlu1 %2561 }
 0x77f   : > { %3936 = vrcp.f32 %v2562_v60 }
 0x781   : > { %v3935_v49 = vpop.eup %3934  ;;  %v2559_v61 = vpop.xlane.xlu0 %2558 }
 0x782   : > { %v2586_v44 = vmul.f32 %v3935_v49, %v4694_v30  ;;  %3938 = vrcp.f32 %v2559_v61 }
 0x784   : > { %v2594_v58 = vpack.c.bf16 %v2586_v44, %v2586_v44 }
 0x786   : > { %3710 = vmatmul.mubr.msk.bf16.vlgmr.msra.gmra.mrb[76].mxu0 %vm253_vm1, %v2594_v58 }
 0x787   : > { %3720 = vmatpush3.bf16.msra.mxu0 %v2704_v21  ;;  %3721 = vmatprep.mubr.msk.bf16.mxu0 %vm3967_vm0, %v3966_v0 }
 0x788   : > { %3731 = vmatprep.subr.bf16.mxu0 %v3966_v0 }
 0x789   : > { %v3937_v51 = vpop.eup %3936  ;;  %v2565_v50 = vpop.xlane.xlu0 %2564 }
 0x78a   : > { %v2588_v11 = vmul.f32 %v3937_v51, %v4698_v6  ;;  %3940 = vrcp.f32 %v2565_v50  ;;  %v2843_v6 = vpop.permute.xlu1 %2842 }
 0x78c   : > { %v3939_v37 = vpop.eup %3938  ;;  %v2596_v15 = vpack.c.bf16 %v2588_v11, %v2588_v11 }
 0x78d   : > { %v2587_v55 = vmul.f32 %v3939_v37, %v4702_v28  ;;  %v2795_v2 = vpop.permute.xlu0 %2794  ;;  %v2848_v28 = vsel %vm766_vm2, %v2843_v6, 0 }
 0x78e   : > { %v2800_v30 = vsel %vm766_vm2, %v2795_v2, 0  ;;  %3722 = vmatmul.mubr.msk.bf16.vlgmr.msra.gmra.mrb[80].mxu0 %vm253_vm1, %v2596_v15 }
 0x78f   : > { %3732 = vmatpush3.bf16.msra.mxu0 %v2800_v30  ;;  %v2595_v43 = vpack.c.bf16 %v2587_v55, %v2587_v55  ;;  %3733 = vmatprep.mubr.msk.bf16.mxu0 %vm3967_vm0, %v3966_v0 }
 0x790   : > { %3743 = vmatprep.subr.bf16.mxu0 %v3966_v0 }
 0x791   : > { %3716 = vmatmul.mubr.msk.bf16.vlgmr.msra.gmra.mrb[84].mxu1 %vm253_vm1, %v2595_v43 }
 0x792   : > { %3726 = vmatpush3.bf16.msra.mxu1 %v2752_v53  ;;  %3727 = vmatprep.mubr.msk.bf16.mxu1 %vm3967_vm0, %v3966_v0 }
 0x793   : > { %3737 = vmatprep.subr.bf16.mxu1 %v3966_v0 }
 0x794   : > { %v3941_v3 = vpop.eup %3940 }
 0x795   : > { %v2589_v62 = vmul.f32 %v3941_v3, %v4706_v40 }
 0x797   : > { %v2597_v56 = vpack.c.bf16 %v2589_v62, %v2589_v62 }
 0x799   : > { %3728 = vmatmul.mubr.msk.bf16.vlgmr.msra.gmra.mrb[88].mxu1 %vm253_vm1, %v2597_v56 }
 0x79a   : > { %3738 = vmatpush3.bf16.msra.mxu1 %v2848_v28  ;;  %3739 = vmatprep.mubr.msk.bf16.mxu1 %vm3967_vm0, %v3966_v0 }
 0x79b   : > { %3749 = vmatprep.subr.bf16.mxu1 %v3966_v0 }
 0x7b3   : > { %v2568_v25 = vpop.xlane.xlu1 %2567 }
 0x7b4   : > { %3942 = vrcp.f32 %v2568_v25 }
 0x7b7   : > { %v2574_v7 = vpop.xlane.xlu1 %2573 }
 0x7b8   : > { %3944 = vrcp.f32 %v2574_v7 }
 0x7bb   : > { %v2939_v10 = vpop.permute.xlu1 %2938 }
 0x7bc   : > { %v2944_v54 = vsel %vm766_vm2, %v2939_v10, 0 }
 0x7be   : > { %v3943_v27 = vpop.eup %3942  ;;  %v2571_v16 = vpop.xlane.xlu0 %2570 }
 0x7bf   : > { %v2590_v40 = vmul.f32 %v3943_v27, %v4718_v46  ;;  %3946 = vrcp.f32 %v2571_v16 }
 0x7c1   : > { %v2598_v14 = vpack.c.bf16 %v2590_v40, %v2590_v40 }
 0x7c2   : > { %v3945_v17 = vpop.eup %3944  ;;  %v2577_v45 = vpop.xlane.xlu0 %2576 }
 0x7c3   : > { %3948 = vrcp.f32 %v2577_v45  ;;  %3734 = vmatmul.mubr.msk.bf16.vlgmr.msra.gmra.mrb[84].mxu0 %vm253_vm1, %v2598_v14  ;;  %v2592_v20 = vmul.f32 %v3945_v17, %v4722_v42 }
 0x7c4   : > { %3745 = vmatprep.mubr.msk.bf16.mxu0 %vm3967_vm0, %v3966_v0 }
 0x7c5   : > { %v2600_v34 = vpack.c.bf16 %v2592_v20, %v2592_v20 }
 0x7c6   : > { %v2891_v24 = vpop.permute.xlu0 %2890 }
 0x7c7   : > { %v2896_v52 = vsel %vm766_vm2, %v2891_v24, 0 }
 0x7c8   : > { %3744 = vmatpush3.bf16.msra.mxu0 %v2896_v52 }
 0x7c9   : > { %v3947_v9 = vpop.eup %3946  ;;  %3755 = vmatprep.subr.bf16.mxu0 %v3852_v47 }
 0x7ca   : > { %v2591_v12 = vmul.f32 %v3947_v9, %v4726_v38  ;;  %v3790_v57 = vpop.permute.xlu0 %3789  ;;  %v3795_v9 = vpop.permute.xlu1 %3794 }
 0x7cb   : > { %3746 = vmatmul.mubr.msk.bf16.vlgmr.msra.gmra.mrb[88].mxu0 %vm253_vm1, %v2600_v34  ;;  %v3791_v14 = vunpack.i.l.bf16 %v3790_v57 }
 0x7cc   : > { %v2599_v46 = vpack.c.bf16 %v2591_v12, %v2591_v12  ;;  %3756 = vmatpush3.bf16.msra.mxu0 %v3852_v47 }
 0x7cd   : > { %v3949_v48 = vpop.eup %3948  ;;  %v3050_v52 = vsel %vm253_vm1, %v4384_v59, %v3791_v14 }
 0x7ce   : > { %3740 = vmatmul.mubr.msk.bf16.vlgmr.msra.gmra.mrb[92].mxu1 %vm253_vm1, %v2599_v46  ;;  %v2593_v13 = vmul.f32 %v3949_v48, %v4730_v35  ;;  %v3796_v46 = vunpack.i.l.bf16 %v3795_v9 }
 0x7cf   : > { %3750 = vmatpush3.bf16.msra.mxu1 %v2944_v54  ;;  %3751 = vmatprep.mubr.msk.bf16.mxu1 %vm3967_vm0, %v3966_v0  ;;  %v3853_v0 = vld [vmem:[%s4849_s3 + $0x8] ss:$0 sps:$4 sm:$0xff]   ;;  %v3797_v54 = vunpack.i.h.bf16 %v3795_v9 }
 0x7d0   : > { %v2601_v42 = vpack.c.bf16 %v2593_v13, %v2593_v13  ;;  %3767 = vmatprep.subr.msk.bf16.mxu0 %vm766_vm2, %v3853_v0  ;;  %v3121_v61 = vsel %vm766_vm2, %v3853_v0, 0  ;;  %v3052_v59 = vsel %vm253_vm1, %v4388_v1, %v3796_v46 }
 0x7d1   : > { %3758 = vmatpush3.bf16.msra.mxu0 %v3121_v61 }
 0x7d6   : > { %3752 = vmatmul.mubr.msk.bf16.vlgmr.msra.gmra.mrb[96].mxu1 %vm253_vm1, %v2601_v42 }
 0x859   : > { %v2644_v5 = vpop.f32.mrb[76].mxu0 }
 0x85a   : > { %v3711_v38 = vpop.f32.mrb[77].mxu0 }
 0x85b   : > { %v2647_v22 = vpop.f32.mrb[78].mxu0 }
 0x85c   : > { %v3712_v32 = vpop.f32.mrb[79].mxu0 }
 0x861   : > { %v2740_v41 = vpop.f32.mrb[80].mxu0 }
 0x862   : > { %v3723_v4 = vpop.f32.mrb[81].mxu0 }
 0x863   : > { %v2743_v35 = vpop.f32.mrb[82].mxu0 }
 0x864   : > { %v2692_v60 = vpop.f32.mrb[84].mxu1  ;;  %v3724_v49 = vpop.f32.mrb[83].mxu0 }
 0x865   : > { %v3798_v44 = vpack.i.bf16 %v2692_v60, %v2644_v5  ;;  %v3717_v58 = vpop.f32.mrb[85].mxu1 }
 0x866   : > { %v2695_v21 = vpop.f32.mrb[86].mxu1 }
 0x867   : > { %3799 = vrot.lane.b32.xlu0 %v3798_v44, %s3977_s30  ;;  %v3718_v51 = vpop.f32.mrb[87].mxu1 }
 0x86b   : > { %3804 = vrot.lane.b32.xlu0 %v3803_v29, %s3976_s26 }
 0x86c   : > { %v2788_v50 = vpop.f32.mrb[88].mxu1 }
 0x86d   : > { %v3808_v11 = vpack.i.bf16 %v2788_v50, %v2740_v41  ;;  %v3729_v37 = vpop.f32.mrb[89].mxu1 }
 0x86e   : > { %v2791_v15 = vpop.f32.mrb[90].mxu1 }
 0x86f   : > { %3809 = vrot.lane.b32.xlu1 %v3808_v11, %s3977_s30  ;;  %v3730_v55 = vpop.f32.mrb[91].mxu1 }
 0x873   : > { %3814 = vrot.lane.b32.xlu1 %v3813_v36, %s3976_s26  ;;  %v3792_v36 = vunpack.i.h.bf16 %v3790_v57 }
 0x875   : > { %v3051_v24 = vsel %vm253_vm1, %v4386_v63, %v3792_v36  ;;  %v3053_v63 = vsel %vm253_vm1, %v4394_v19, %v3797_v54 }
 0x896   : > { %v2836_v2 = vpop.f32.mrb[84].mxu0 }
 0x897   : > { %v3735_v30 = vpop.f32.mrb[85].mxu0 }
 0x898   : > { %v2839_v43 = vpop.f32.mrb[86].mxu0 }
 0x899   : > { %v3736_v53 = vpop.f32.mrb[87].mxu0 }
 0x89e   : > { %v2932_v3 = vpop.f32.mrb[88].mxu0 }
 0x89f   : > { %v3747_v62 = vpop.f32.mrb[89].mxu0 }
 0x8a0   : > { %v2935_v6 = vpop.f32.mrb[90].mxu0 }
 0x8a1   : > { %v2884_v18 = vpop.f32.mrb[92].mxu1  ;;  %v3748_v33 = vpop.f32.mrb[91].mxu0 }
 0x8a2   : > { %v3818_v29 = vpack.i.bf16 %v2884_v18, %v2836_v2  ;;  %v3741_v56 = vpop.f32.mrb[93].mxu1  ;;  %v3358_v2 = vld [vmem:[%s4850_s4] ss:$0 sm:$0xff] }
 0x8a3   : > { %v2887_v28 = vpop.f32.mrb[94].mxu1 }
 0x8a4   : > { %3819 = vrot.lane.b32.xlu0 %v3818_v29, %s3977_s30  ;;  %v3742_v25 = vpop.f32.mrb[95].mxu1 }
 0x8a9   : > { %v2980_v7 = vpop.f32.mrb[96].mxu1 }
 0x8aa   : > { %v3823_v27 = vpack.i.bf16 %v2980_v7, %v2932_v3  ;;  %v3753_v16 = vpop.f32.mrb[97].mxu1 }
 0x8ab   : > { %v2983_v40 = vpop.f32.mrb[98].mxu1 }
 0x8ac   : > { %v3754_v39 = vpop.f32.mrb[99].mxu1  ;;  %3824 = vrot.lane.b32.xlu1 %v3823_v27, %s3977_s30 }
 0x8d9   : > { %v3800_v17 = vpop.permute.xlu0 %3799 }
 0x8da   : > { %v3802_v45 = vunpack.i.h.bf16 %v3800_v17  ;;  %v3801_v20 = vunpack.i.l.bf16 %v3800_v17 }
 0x8dc   : > { %v3059_v34 = vsel %vm3058_vm3, %v3050_v52, %v3801_v20  ;;  %v3060_v12 = vsel %vm3058_vm3, %v3051_v24, %v3802_v45 }
 0x8dd   : > { %v3361_v10 = vpack.c.bf16 %v3060_v12, %v3059_v34  ;;  %v3805_v32 = vpop.permute.xlu0 %3804 }
 0x8de   : > { %v3807_v47 = vunpack.i.h.bf16 %v3805_v32  ;;  %v3806_v41 = vunpack.i.l.bf16 %v3805_v32 }
 0x8df   : > { %3759 = vmatprep.mubr.msk.bf16.mxu0 %vm3107_vm4, %v3361_v10 }
 0x8e0   : > { %v3055_v60 = vsel %vm253_vm1, %v4398_v26, %v3807_v47  ;;  %v3054_v19 = vsel %vm253_vm1, %v4390_v8, %v3806_v41 }
 0x8e1   : > { %v3810_v48 = vpop.permute.xlu1 %3809 }
 0x8e2   : > { %v3812_v13 = vunpack.i.h.bf16 %v3810_v48  ;;  %v3811_v42 = vunpack.i.l.bf16 %v3810_v48 }
 0x8e4   : > { %v3062_v5 = vsel %vm3058_vm3, %v3053_v63, %v3812_v13  ;;  %v3061_v38 = vsel %vm3058_vm3, %v3052_v59, %v3811_v42 }
 0x8e5   : > { %v3362_v22 = vpack.c.bf16 %v3062_v5, %v3061_v38  ;;  %v3815_v1 = vpop.permute.xlu1 %3814 }
 0x8e6   : > { %v3817_v58 = vunpack.i.h.bf16 %v3815_v1  ;;  %v3816_v21 = vunpack.i.l.bf16 %v3815_v1 }
 0x8e7   : > { %3760 = vmatmul.mubr.msk.bf16.vlgmr.msra.gmra.mrb[92].mxu0 %vm3107_vm4, %v3362_v22 }
 0x8e8   : > { %v3057_v26 = vsel %vm253_vm1, %v4405_v31, %v3817_v58  ;;  %v3056_v8 = vsel %vm253_vm1, %v4400_v23, %v3816_v21 }
 0x916   : > { %v3820_v4 = vpop.permute.xlu0 %3819 }
 0x917   : > { %v3822_v0 = vunpack.i.h.bf16 %v3820_v4  ;;  %v3821_v35 = vunpack.i.l.bf16 %v3820_v4 }
 0x919   : > { %v3063_v49 = vsel %vm3058_vm3, %v3054_v19, %v3821_v35  ;;  %v3064_v61 = vsel %vm3058_vm3, %v3055_v60, %v3822_v0 }
 0x91a   : > { %v3363_v44 = vpack.c.bf16 %v3064_v61, %v3063_v49 }
 0x91c   : > { %3763 = vmatprep.mubr.msk.bf16.mxu0 %vm3107_vm4, %v3363_v44 }
 0x91e   : > { %v3825_v51 = vpop.permute.xlu1 %3824 }
 0x91f   : > { %v3827_v50 = vunpack.i.h.bf16 %v3825_v51  ;;  %v3826_v11 = vunpack.i.l.bf16 %v3825_v51 }
 0x921   : > { %v3066_v37 = vsel %vm3058_vm3, %v3057_v26, %v3827_v50  ;;  %v3065_v15 = vsel %vm3058_vm3, %v3056_v8, %v3826_v11 }
 0x922   : > { %v3364_v55 = vpack.c.bf16 %v3066_v37, %v3065_v15 }
 0x924   : > { %3764 = vmatmul.mubr.msk.bf16.gmra.mrb[96].mxu0 %vm3107_vm4, %v3364_v55 }
 0x9ba   : > { %v3761_v31 = vpop.f32.mrb[92].mxu0 }
 0x9bb   : > { %v3197_v30 = vadd.f32 %v3761_v31, %v3358_v2  ;;  %v3157_v43 = vpop.f32.mrb[93].mxu0 }
 0x9bc   : > { %v3195_v23 = vadd.f32 %v3358_v2, %v3157_v43  ;;  %v3762_v53 = vpop.f32.mrb[94].mxu0 }
 0x9bd   : > { %3205 = vst.msk [vmem:[%s226_s11 + $0x10] sm:$0xff] %vm3107_vm4, %v3197_v30  ;;  %v3198_v3 = vadd.f32 %v3762_v53, %v3358_v2  ;;  %v3160_v62 = vpop.f32.mrb[95].mxu0 }
 0x9be   : > { %3203 = vst.msk [vmem:[%s226_s11] sm:$0xff] %vm3107_vm4, %v3195_v23  ;;  %v3196_v6 = vadd.f32 %v3358_v2, %v3160_v62 }
 0x9bf   : > { %3206 = vst.msk [vmem:[%s226_s11 + $0x18] sm:$0xff] %vm3107_vm4, %v3198_v3 }
 0x9c0   : > { %3204 = vst.msk [vmem:[%s226_s11 + $0x8] sm:$0xff] %vm3107_vm4, %v3196_v6 }
 0x9f7   : > { %v3765_v18 = vpop.f32.mrb[96].mxu0 }
 0x9f8   : > { %v3201_v33 = vadd.f32 %v3765_v18, %v3358_v2  ;;  %v3173_v29 = vpop.f32.mrb[97].mxu0 }
 0x9f9   : > { %v3199_v56 = vadd.f32 %v3358_v2, %v3173_v29  ;;  %v3766_v28 = vpop.f32.mrb[98].mxu0 }
 0x9fa   : > { %3209 = vst.msk [vmem:[%s226_s11 + $0x30] sm:$0xff] %vm3107_vm4, %v3201_v33  ;;  %v3202_v25 = vadd.f32 %v3766_v28, %v3358_v2  ;;  %v3176_v7 = vpop.f32.mrb[99].mxu0 }
 0x9fb   : > { %3207 = vst.msk [vmem:[%s226_s11 + $0x20] sm:$0xff] %vm3107_vm4, %v3199_v56  ;;  %v3200_v27 = vadd.f32 %v3358_v2, %v3176_v7 }
 0x9fc   : > { %3210 = vst.msk [vmem:[%s226_s11 + $0x38] sm:$0xff] %vm3107_vm4, %v3202_v25 }
 0x9fd   : > { %3208 = vst.msk [vmem:[%s226_s11 + $0x28] sm:$0xff] %vm3107_vm4, %v3200_v27 }
 0x9fe PF: > { %s15_s18 = sadd.s32 1, %s3964_s18  }
 0x9ff   : > { %p12_p4 = scmp.ge.s32.totalorder %s15_s18, 4  }
 0xa01   :  { %14 = sbr.rel (!%p12_p4) target bundleno = 1 (0x1), region = 70 }

// kernel: swin_forward.32
= control target key start
LH: loop header
LB: loop body
LE: loop exit
PB: predicated region body
PF: predicated region fallthrough
CT: control target
= control target key end

     0   :  { %s301_s12 = smov 0   ;;  %s327_s0 = inlined_call_operand.vmem [shape: f32[16,48], index: 0, kind: input, shape index: {}]   ;;  %s328_s1 = inlined_call_operand.vmem [shape: f32[1,48], index: 1, kind: input, shape index: {}]   ;;  %s329_s2 = inlined_call_operand.vmem [shape: f32[1,48], index: 2, kind: input, shape index: {}]   ;;  %s330_s3 = inlined_call_operand.vmem [shape: f32[16,48], index: 3, kind: output, shape index: {}]  }
   0x1 LB: > { %s252_s13 = sadd.s32 4294967295, %s279_s12   ;;  %p256_p0 = scmp.ge.s32.totalorder %s279_s12, 1  ;;  %s279_s12 = sphi %s301_s12, %s13_s12  }
   0x2   : > { %p136_p1 = scmp.lt.s32.totalorder %s279_s12, 3 }
   0x4   : > { %p137_p2 = pnand %p256_p0, %p136_p1 }
   0x5   : > { %p158_p3 = scmp.lt.s32.totalorder (!%p137_p2), %s252_s13, 1  ;;  %vm167_vm0 = vcmask (!%p137_p2), 392192   ;;  %v259_v11 = vld [vmem:[%s328_s1] ss:$0 sm:$0xff] (!%p137_p2) }
   0x6   : > { %140 = sbr.rel (%p137_p2) target bundleno = 331 (0x14b), region = 32  ;;  %v260_v13 = vld [vmem:[%s329_s2] ss:$0 sm:$0xff] (!%p137_p2) }
   0xd   : > { %s332_s13 = smov (!%p158_p3, %s252_s13), 1 }
   0xe   : > { %s257_s14 = sshll.u32 %s332_s13, 3 }
   0xf   : > { %s161_s17 = scalar_lea.vmem %s327_s0, %s257_s14  ;;  %s165_s24 = scalar_lea.vmem %s330_s3, %s257_s14 }
  0x10   : > { %v166_v0 = vld [vmem:[%s161_s17] sm:$0xff] }
  0x11   : > { %v168_v1 = vsel %vm167_vm0, %v166_v0, 0.0 }
  0x12   : > { %169 = vadd.xlane.f32.xlu0 %v168_v1 }
  0x9f   : > { %v170_v2 = vpop.xlane.xlu0 %169 }
  0xa0   : > { %v172_v3 = vmul.f32 0.020833334, %v170_v2 }
  0xa2   : > { %v173_v4 = vsub.f32 %v166_v0, %v172_v3 }
  0xa4   : > { %v174_v5 = vmul.f32 %v173_v4, %v173_v4 }
  0xa6   : > { %v175_v6 = vsel %vm167_vm0, %v174_v5, 0.0 }
  0xa7   : > { %176 = vadd.xlane.f32.xlu0 %v175_v6 }
 0x134   : > { %v177_v7 = vpop.xlane.xlu0 %176 }
 0x135   : > { %v178_v8 = vmul.f32 0.020833334, %v177_v7 }
 0x137   : > { %v179_v9 = vadd.f32 1e-05, %v178_v8 }
 0x139   : > { %271 = vrsqrt.f32 %v179_v9 }
 0x143   : > { %v272_v10 = vpop.eup %271 }
 0x144   : > { %v181_v12 = vmul.f32 %v272_v10, %v173_v4 }
 0x146   : > { %v189_v14 = vmul.f32 %v259_v11, %v181_v12 }
 0x148   : > { %v197_v15 = vadd.f32 %v260_v13, %v189_v14 }
 0x14a   : > { %198 = vst.msk [vmem:[%s165_s24] sm:$0xff] %vm167_vm0, %v197_v15 }
 0x14b PF: > { %s13_s12 = sadd.s32 1, %s279_s12  }
 0x14c   : > { %p10_p4 = scmp.ge.s32.totalorder %s13_s12, 4  }
 0x14e   :  { %12 = sbr.rel (!%p10_p4) target bundleno = 1 (0x1), region = 62 }

// kernel: swin_forward.25
= control target key start
LH: loop header
LB: loop body
LE: loop exit
PB: predicated region body
PF: predicated region fallthrough
CT: control target
= control target key end

     0   :  { %8 = vsyncpa [#allocation3], 0  ;;  %s746_s0 = inlined_call_operand.vmem [shape: f32[128,24], index: 0, kind: input, shape index: {}]   ;;  %s747_s1 = inlined_call_operand.vmem [shape: f32[1,24], index: 1, kind: input, shape index: {}]   ;;  %s748_s2 = inlined_call_operand.vmem [shape: f32[1,24], index: 2, kind: input, shape index: {}]   ;;  %s749_s3 = inlined_call_operand.hbm [shape: f32[128,24], index: 3, kind: output, shape index: {}]  }
   0x1   :  { %10 = vsyncpa [#allocation3 + $0x1], 0  ;;  %s559_s12 = smov 0   ;;  %s561_s13 = smov 0  }
   0x2   :  { %s563_s14 = smov 0   ;;  %s565_s15 = smov 0  }
   0x3 LB: > { %s580_s16 = sadd.s32 4294967295, %s534_s15   ;;  %s400_s17 = sadd.s32 4294967294, %s534_s15   ;;  %s534_s15 = sphi %s565_s15, %s755_s15   ;;  %s530_s14 = sphi %s563_s14, %s754_s14   ;;  %s526_s13 = sphi %s561_s13, %s753_s13   ;;  %s522_s12 = sphi %s559_s12, %s752_s12  }
   0x4   : > { %s584_s18 = sadd.s32 1, %s534_s15   ;;  %s91_s19 = sadd.s32 1, %s530_s14 }
   0x5   : > { %s88_s20 = ssub.s32 %s534_s15, %s584_s18  ;;  %p101_p0 = scmp.ne.s32.totalorder %s530_s14, %s526_s13 }
   0x6   : > { %p89_p1 = scmp.eq.s32.totalorder %s88_s20, 0  ;;  %p102_p2 = scmp.eq.s32.totalorder %s580_s16, 1 }
   0x7   : > { %p107_p3 = scmp.ne.s32.totalorder %s526_s13, %s522_s12  ;;  %p108_p4 = scmp.eq.s32.totalorder %s400_s17, 1 }
   0x8   : > { %s595_s21 = scalar_select %p89_p1, %s530_s14, %s91_s19  }
   0x9   : > { %p597_p5 = por %p102_p2, %p101_p0  ;;  %p601_p6 = por %p108_p4, %p107_p3 }
   0xa   : > { %p403_p7 = scmp.ge.s32.totalorder %s534_s15, 1  ;;  %p141_p8 = scmp.lt.s32.totalorder %s534_s15, 3 }
   0xc   : > { %p142_p9 = pnand %p403_p7, %p141_p8 }
   0xd   : > { %s405_s24 = sshll.u32 (!%p142_p9), %s580_s16, 3  ;;  %vm180_vm0 = vcmask (!%p142_p9), 195584   ;;  %s162_s29 = sand.u32 (!%p142_p9), 1, %s526_s13  }
   0xe   : > { %145 = sbr.rel (%p142_p9) target bundleno = 369 (0x171), region = 32  ;;  %p166_p10 = scmp.lt.s32.totalorder (!%p142_p9), %s405_s24, 15 }
   0xf   : > { %s404_s5 = sshll.u32 (!%p142_p9), %s162_s29, 6  ;;  %s414_s9 = sshll.u32 (!%p142_p9), %s580_s16, 10 }
  0x10   : > { %s671_s8 = scalar_lea.vmem (!%p142_p9), [#allocation2], %s404_s5  ;;  %s697_s19 = scalar_lea.hbm (!%p142_p9), %s749_s3, %s414_s9 }
  0x11   : > { %s338_s10 = sshll.u32 (!%p142_p9), %s671_s8, 4  ;;  %s705_s16 = scalar_lea.sflag (!%p142_p9), [#allocation3], %s162_s29  ;;  %s699_s10 = int_to_ptr.vmem [resolvable:$true] %s338_s10 }
  0x12   : > { %s472_s20 = scalar_lea.vmem (!%p142_p9), %s699_s10, 1024 }
  0x13   : > { %p473_p11 = scmp.ne.s32.totalorder (!%p142_p9), %s699_s10, %s472_s20 }
  0x15   : > { %s757_s24 = smov (!%p166_p10, %s405_s24), 15  ;;  %p474_p12 = pnand %p473_p11, %p597_p5 }
  0x16   : > { %s406_s25 = sshll.u32 %s757_s24, 3  ;;  %s536_s24 = smov [#allocation2]  }
  0x17   : > { %s169_s28 = scalar_lea.vmem %s746_s0, %s406_s25  ;;  %p475_p13 = pneg %p474_p12 }
  0x18   : > { %v172_v0 = vld [vmem:[%s169_s28] sm:$0xff]  ;;  %v174_v1 = vld [vmem:[%s169_s28 + $0x10] sm:$0xff]  ;;  %v173_v2 = vld [vmem:[%s169_s28 + $0x8] sm:$0xff]  ;;  %s476_s25 = sshll.u32 %s536_s24, 4  ;;  %s477_s25 = int_to_ptr.vmem [resolvable:$false] %s476_s25 }
  0x19   : > { %v181_v3 = vsel %vm180_vm0, %v172_v0, 0.0  ;;  %v187_v4 = vsel %vm180_vm0, %v174_v1, 0.0  ;;  %v175_v5 = vld [vmem:[%s169_s28 + $0x18] sm:$0xff]  ;;  %v184_v6 = vsel %vm180_vm0, %v173_v2, 0.0  ;;  %v176_v8 = vld [vmem:[%s169_s28 + $0x20] sm:$0xff]  ;;  %v177_v9 = vld [vmem:[%s169_s28 + $0x28] sm:$0xff]  ;;  %p479_p0 = scmp.lt.s32.totalorder %s699_s10, %s477_s25 }
  0x1a   : > { %182 = vadd.xlane.f32.xlu0 %v181_v3  ;;  %188 = vadd.xlane.f32.xlu1 %v187_v4  ;;  %v190_v7 = vsel %vm180_vm0, %v175_v5, 0.0  ;;  %v193_v10 = vsel %vm180_vm0, %v176_v8, 0.0  ;;  %v196_v11 = vsel %vm180_vm0, %v177_v9, 0.0  ;;  %v178_v12 = vld [vmem:[%s169_s28 + $0x30] sm:$0xff]  ;;  %v179_v13 = vld [vmem:[%s169_s28 + $0x38] sm:$0xff]  ;;  %s478_s26 = scalar_lea.vmem %s477_s25, 2048 }
  0x1b   : > { %v199_v14 = vsel %vm180_vm0, %v178_v12, 0.0  ;;  %v202_v15 = vsel %vm180_vm0, %v179_v13, 0.0  ;;  %p480_p1 = scmp.lt.s32.totalorder %s478_s26, %s472_s20 }
  0x1d   : > { %p481_p2 = por %p480_p1, %p479_p0 }
  0x1e   : > { %185 = vadd.xlane.f32.xlu0 %v184_v6  ;;  %191 = vadd.xlane.f32.xlu1 %v190_v7 }
  0x1f   : > { %p482_p3 = pnand %p481_p2, %p475_p13 }
  0x22   : > { %194 = vadd.xlane.f32.xlu0 %v193_v10  ;;  %197 = vadd.xlane.f32.xlu1 %v196_v11 }
  0x26   : > { %200 = vadd.xlane.f32.xlu0 %v199_v14  ;;  %203 = vadd.xlane.f32.xlu1 %v202_v15 }
  0xa7   : > { %v183_v16 = vpop.xlane.xlu0 %182  ;;  %v189_v17 = vpop.xlane.xlu1 %188 }
  0xa8   : > { %v206_v18 = vmul.f32 0.041666668, %v183_v16  ;;  %v208_v19 = vmul.f32 0.041666668, %v189_v17  ;;  %v408_v17 = vld [vmem:[%s748_s2] ss:$0 sm:$0xff] }
  0xaa   : > { %v619_v20 = vsub.f32 %v172_v0, %v206_v18  ;;  %v621_v21 = vsub.f32 %v174_v1, %v208_v19 }
  0xab   : > { %v186_v22 = vpop.xlane.xlu0 %185  ;;  %v192_v23 = vpop.xlane.xlu1 %191 }
  0xac   : > { %v207_v24 = vmul.f32 0.041666668, %v186_v22  ;;  %v209_v25 = vmul.f32 0.041666668, %v192_v23  ;;  %v222_v26 = vmul.f32 %v619_v20, %v619_v20  ;;  %v224_v27 = vmul.f32 %v621_v21, %v621_v21 }
  0xae   : > { %v627_v28 = vsub.f32 %v173_v2, %v207_v24  ;;  %v629_v29 = vsub.f32 %v175_v5, %v209_v25  ;;  %v230_v30 = vsel %vm180_vm0, %v222_v26, 0.0  ;;  %v236_v33 = vsel %vm180_vm0, %v224_v27, 0.0 }
  0xaf   : > { %231 = vadd.xlane.f32.xlu0 %v230_v30  ;;  %v195_v31 = vpop.xlane.xlu0 %194  ;;  %v198_v32 = vpop.xlane.xlu1 %197 }
  0xb0   : > { %v210_v34 = vmul.f32 0.041666668, %v195_v31  ;;  %v211_v35 = vmul.f32 0.041666668, %v198_v32  ;;  %v223_v36 = vmul.f32 %v627_v28, %v627_v28  ;;  %v225_v37 = vmul.f32 %v629_v29, %v629_v29 }
  0xb2   : > { %v637_v38 = vsub.f32 %v176_v8, %v210_v34  ;;  %v639_v39 = vsub.f32 %v177_v9, %v211_v35  ;;  %v233_v40 = vsel %vm180_vm0, %v223_v36, 0.0  ;;  %v239_v43 = vsel %vm180_vm0, %v225_v37, 0.0 }
  0xb3   : > { %237 = vadd.xlane.f32.xlu0 %v236_v33  ;;  %234 = vadd.xlane.f32.xlu1 %v233_v40  ;;  %v201_v41 = vpop.xlane.xlu0 %200  ;;  %v204_v42 = vpop.xlane.xlu1 %203 }
  0xb4   : > { %v212_v44 = vmul.f32 0.041666668, %v201_v41  ;;  %v213_v45 = vmul.f32 0.041666668, %v204_v42  ;;  %v226_v46 = vmul.f32 %v637_v38, %v637_v38  ;;  %v227_v47 = vmul.f32 %v639_v39, %v639_v39 }
  0xb6   : > { %v647_v48 = vsub.f32 %v178_v12, %v212_v44  ;;  %v649_v49 = vsub.f32 %v179_v13, %v213_v45  ;;  %v242_v50 = vsel %vm180_vm0, %v226_v46, 0.0  ;;  %v245_v51 = vsel %vm180_vm0, %v227_v47, 0.0  ;;  %v407_v12 = vld [vmem:[%s747_s1] ss:$0 sm:$0xff] }
  0xb7   : > { %240 = vadd.xlane.f32.xlu1 %v239_v43  ;;  %243 = vadd.xlane.f32.xlu0 %v242_v50 }
  0xb8   : > { %v228_v52 = vmul.f32 %v647_v48, %v647_v48  ;;  %v229_v53 = vmul.f32 %v649_v49, %v649_v49 }
  0xba   : > { %v248_v54 = vsel %vm180_vm0, %v228_v52, 0.0  ;;  %v251_v55 = vsel %vm180_vm0, %v229_v53, 0.0 }
  0xbb   : > { %246 = vadd.xlane.f32.xlu1 %v245_v51  ;;  %249 = vadd.xlane.f32.xlu0 %v248_v54 }
  0xbf   : > { %252 = vadd.xlane.f32.xlu1 %v251_v55 }
 0x13c   : > { %v232_v56 = vpop.xlane.xlu0 %231 }
 0x13d   : > { %v254_v57 = vmul.f32 0.041666668, %v232_v56 }
 0x13f   : > { %v262_v58 = vadd.f32 1e-05, %v254_v57 }
 0x140   : > { %v235_v59 = vpop.xlane.xlu1 %234  ;;  %v238_v60 = vpop.xlane.xlu0 %237 }
 0x141   : > { %456 = vrsqrt.f32 %v262_v58  ;;  %v255_v61 = vmul.f32 0.041666668, %v235_v59  ;;  %v256_v62 = vmul.f32 0.041666668, %v238_v60 }
 0x143   : > { %v263_v63 = vadd.f32 1e-05, %v255_v61  ;;  %v264_v0 = vadd.f32 1e-05, %v256_v62 }
 0x144   : > { %v241_v1 = vpop.xlane.xlu1 %240  ;;  %v244_v2 = vpop.xlane.xlu0 %243 }
 0x145   : > { %458 = vrsqrt.f32 %v263_v63  ;;  %v257_v3 = vmul.f32 0.041666668, %v241_v1  ;;  %v258_v4 = vmul.f32 0.041666668, %v244_v2 }
 0x146   : > { %460 = vrsqrt.f32 %v264_v0 }
 0x147   : > { %v265_v5 = vadd.f32 1e-05, %v257_v3  ;;  %v266_v6 = vadd.f32 1e-05, %v258_v4 }
 0x148   : > { %v247_v7 = vpop.xlane.xlu1 %246  ;;  %v250_v8 = vpop.xlane.xlu0 %249 }
 0x149   : > { %462 = vrsqrt.f32 %v265_v5  ;;  %v259_v9 = vmul.f32 0.041666668, %v247_v7  ;;  %v260_v10 = vmul.f32 0.041666668, %v250_v8 }
 0x14a   : > { %464 = vrsqrt.f32 %v266_v6 }
 0x14b   : > { %v457_v11 = vpop.eup %456  ;;  %v267_v13 = vadd.f32 1e-05, %v259_v9  ;;  %v268_v14 = vadd.f32 1e-05, %v260_v10 }
 0x14c   : > { %v278_v15 = vmul.f32 %v457_v11, %v619_v20  ;;  %v253_v16 = vpop.xlane.xlu1 %252 }
 0x14d   : > { %466 = vrsqrt.f32 %v267_v13  ;;  %v261_v18 = vmul.f32 0.041666668, %v253_v16 }
 0x14e   : > { %v293_v19 = vmul.f32 %v407_v12, %v278_v15  ;;  %468 = vrsqrt.f32 %v268_v14 }
 0x14f   : > { %v459_v22 = vpop.eup %458  ;;  %v269_v23 = vadd.f32 1e-05, %v261_v18 }
 0x150   : > { %v461_v24 = vpop.eup %460  ;;  %v308_v25 = vadd.f32 %v408_v17, %v293_v19  ;;  %v279_v26 = vmul.f32 %v459_v22, %v627_v28 }
 0x151   : > { %v280_v27 = vmul.f32 %v461_v24, %v621_v21  ;;  %470 = vrsqrt.f32 %v269_v23 }
 0x152   : > { %316 = vst.msk [vmem:[%s671_s8] sm:$0xff] %vm180_vm0, %v308_v25  ;;  %v294_v20 = vmul.f32 %v407_v12, %v279_v26 }
 0x153   : > { %v463_v30 = vpop.eup %462  ;;  %v295_v31 = vmul.f32 %v407_v12, %v280_v27 }
 0x154   : > { %v465_v32 = vpop.eup %464  ;;  %v309_v33 = vadd.f32 %v408_v17, %v294_v20  ;;  %v281_v34 = vmul.f32 %v463_v30, %v629_v29 }
 0x155   : > { %v310_v28 = vadd.f32 %v408_v17, %v295_v31  ;;  %v282_v21 = vmul.f32 %v465_v32, %v637_v38 }
 0x156   : > { %317 = vst.msk [vmem:[%s671_s8 + $0x8] sm:$0xff] %vm180_vm0, %v309_v33  ;;  %v296_v35 = vmul.f32 %v407_v12, %v281_v34 }
 0x157   : > { %v467_v36 = vpop.eup %466  ;;  %318 = vst.msk [vmem:[%s671_s8 + $0x10] sm:$0xff] %vm180_vm0, %v310_v28  ;;  %v297_v37 = vmul.f32 %v407_v12, %v282_v21 }
 0x158   : > { %v469_v40 = vpop.eup %468  ;;  %v311_v41 = vadd.f32 %v408_v17, %v296_v35  ;;  %v283_v42 = vmul.f32 %v467_v36, %v639_v39 }
 0x159   : > { %v312_v29 = vadd.f32 %v408_v17, %v297_v37  ;;  %v284_v43 = vmul.f32 %v469_v40, %v647_v48 }
 0x15a   : > { %319 = vst.msk [vmem:[%s671_s8 + $0x18] sm:$0xff] %vm180_vm0, %v311_v41  ;;  %v298_v38 = vmul.f32 %v407_v12, %v283_v42 }
 0x15b   : > { %v471_v44 = vpop.eup %470  ;;  %320 = vst.msk [vmem:[%s671_s8 + $0x20] sm:$0xff] %vm180_vm0, %v312_v29  ;;  %v299_v45 = vmul.f32 %v407_v12, %v284_v43 }
 0x15c   : > { %v313_v46 = vadd.f32 %v408_v17, %v298_v38  ;;  %v285_v47 = vmul.f32 %v471_v44, %v649_v49 }
 0x15d   : > { %v314_v50 = vadd.f32 %v408_v17, %v299_v45 }
 0x15e   : > { %321 = vst.msk [vmem:[%s671_s8 + $0x28] sm:$0xff] %vm180_vm0, %v313_v46  ;;  %v300_v39 = vmul.f32 %v407_v12, %v285_v47 }
 0x15f   : > { %322 = vst.msk [vmem:[%s671_s8 + $0x30] sm:$0xff] %vm180_vm0, %v314_v50 }
 0x160   : > { %v315_v48 = vadd.f32 %v408_v17, %v300_v39 }
 0x162   : > { %323 = vst.msk [vmem:[%s671_s8 + $0x38] sm:$0xff] %vm180_vm0, %v315_v48 }
 0x163   : > { %485 = shalt.err (!%p482_p3)
}
 0x164   : > { %s486_s27 = scalar_lea.hbm %s697_s19, 1024  ;;  %s490_s30 = scalar_lea.hbm %s749_s3, 2048 }
 0x165   : > { %p487_p4 = scmp.ne.s32.totalorder %s697_s19, %s486_s27  ;;  %p491_p9 = scmp.lt.u32.totalorder %s697_s19, %s749_s3 }
 0x166   : > { %p492_p10 = scmp.lt.u32.totalorder %s490_s30, %s486_s27  ;;  %p494_p12 = scmp.lt.u32.totalorder %s486_s27, %s697_s19 }
 0x167   : > { %p488_p7 = pnand %p487_p4, %p597_p5 }
 0x168   : > { %p493_p11 = por %p492_p10, %p491_p9 }
 0x169   : > { %p489_p8 = pneg %p488_p7 }
 0x16a   : > { %p495_p13 = por %p494_p12, %p493_p11 }
 0x16c   : > { %p496_p0 = pnand %p495_p13, %p489_p8 }
 0x16e   : > { %499 = shalt.err (!%p496_p0)
}
 0x16f   : > { %s537_s6 = smov 128   ;;  %s538_s7 = smov 8  }
 0x170   : > { %415 = dma.vmem_to_hbm [thread:$0]  (%p597_p5), %s699_s10, 1024, %s697_s19, %s705_s16, %s537_s6, %s537_s6, %s538_s7  }
 0x171 PF: > { %p421_p1 = scmp.ge.s32.totalorder %s534_s15, 2  ;;  %s353_s8 = sand.u32 1, %s522_s12  }
 0x172   : > { %s354_s9 = scalar_lea.sflag [#allocation3], %s353_s8 }
 0x173   : > { %p418_p2 = pnand %p421_p1, %p601_p6 }
 0x175   : > { %517 = dma.done.wait (!%p418_p2), %s354_s9, 1024  }
 0x176   : > { %519 = vsyncadd (!%p418_p2), %s354_s9, 4294966272  ;;  %p13_p3 = scmp.ge.s32.totalorder %s584_s18, 4   ;;  %s752_s12 = smov %s526_s13 }
 0x177   : > { %s753_s13 = smov %s530_s14  ;;  %s754_s14 = smov %s595_s21 }
 0x178   : > { %s755_s15 = smov %s584_s18  ;;  %15 = sbr.rel (!%p13_p3) target bundleno = 3 (0x3), region = 67 }
 0x17f   :  { %359 = vsyncpa [#allocation3], 1 }
 0x180   :  { %361 = vsyncpa [#allocation3 + $0x1], 1 }

</bundles_post_ra>
